<compile_context>
chip_gen: v6e
topology: v6e:2x2x1
jax: 0.10.0
libtpu: 0.0.40
codegen_flags: <defaults>
</compile_context>

<pallas_src>
import numpy as np

import jax
import jax.numpy as jnp
from jax import lax
from jax.experimental import pallas as pl
from jax.experimental.pallas import tpu as pltpu

LRELU_SLOPE = 0.2


def _tap_decomp(k):
    """Kernel tap k (0..3) of a stride-2, pad-1 conv: input index
    2*i + k - 1 == 2*(i + delta) + parity.  Returns (parity, delta)."""
    parity = (k + 1) % 2
    delta = (k - 1 - parity) // 2
    return parity, delta


def _parity_perm(oh, ow):
    """(oh*ow, oh*ow) 0/1 matrix reordering raster conv-output rows (i, j) into
    parity-major order (q=2a+b, y, x) with i = 2y+a, j = 2x+b."""
    oh2, ow2 = oh // 2, ow // 2
    size = oh * ow
    rows = np.arange(size)
    q, rem = rows // (oh2 * ow2), rows % (oh2 * ow2)
    y, x = rem // ow2, rem % ow2
    a, b = q // 2, q % 2
    src = (2 * y + a) * ow + (2 * x + b)
    perm = np.zeros((size, size), np.float32)
    perm[rows, src] = 1.0
    return perm


# ----------------------------------------------------------------------------
# Fused kernel: all conv layers + FC for one batch element per grid step.
# ----------------------------------------------------------------------------
def _make_kernel(layer_dims, spatials):
    num_layers = len(layer_dims)

    def kernel(*refs):
        it = iter(refs)
        x_ref = next(it)                                   # (4*(oh1+2), oh1+2, cin) bf16
        conv_wb = [(next(it), next(it)) for _ in range(num_layers)]
        perm_refs = [next(it) for _ in range(num_layers - 1)]
        w_fc_ref = next(it)
        b_fc_ref = next(it)
        out_ref = next(it)
        slab_scr = [next(it) for _ in range(num_layers - 1)]

        src = x_ref                                        # halo'd 2x2 parity slabs
        for l in range(num_layers):
            oh = ow = spatials[l]
            cin, cout = layer_dims[l]
            stride_q = oh + 2                              # rows per parity slab

            # Fused im2col: 16 static (oh, ow, cin) windows of the parity slabs,
            # lane-concatenated -> single K = 16*cin MXU matmul (f32 accumulate).
            taps = []
            for ki in range(4):
                a, di = _tap_decomp(ki)
                for kj in range(4):
                    b, dj = _tap_decomp(kj)
                    q = 2 * a + b
                    r0 = q * stride_q + 1 + di
                    taps.append(src[r0:r0 + oh, 1 + dj:1 + dj + ow, :])
            patch = jnp.concatenate(taps, axis=-1)                     # (oh, ow, 16*cin)
            patch = patch.reshape(oh * ow, 16 * cin).astype(jnp.bfloat16)

            w_ref, b_ref = conv_wb[l]
            z = jnp.dot(patch, w_ref[...], preferred_element_type=jnp.float32)
            z = z + b_ref[...]
            z = jnp.where(z > 0, z, LRELU_SLOPE * z)                   # (oh*ow, cout) f32

            if l + 1 < num_layers:
                # In-VMEM space-to-depth for the next layer: reorder rows into
                # parity-major order with a 0/1 permutation matmul, then store
                # the four halo-padded parity slabs into VMEM scratch.
                # TODO(synk): swap for strided VMEM reads when spatial is large.
                zp = jnp.dot(perm_refs[l][...], z.astype(jnp.bfloat16),
                             preferred_element_type=jnp.float32)
                oh2 = spatials[l + 1]
                s2 = oh2 * oh2
                scr = slab_scr[l]
                scr[...] = jnp.zeros_like(scr)             # zero halo ring
                for q in range(4):
                    blk = zp[q * s2:(q + 1) * s2, :].reshape(oh2, oh2, cout)
                    r0 = q * (oh2 + 2) + 1
                    scr[r0:r0 + oh2, 1:1 + oh2, :] = blk
                src = scr
            else:
                # FC head: flatten in (c, h, w) order (== torch NCHW .view),
                # one K = cout*8*8 matmul with the real (unpadded) FC weight.
                zt = jnp.transpose(z)                                  # (cout, oh*ow)
                flat = jnp.concatenate(
                    [zt[c:c + 1, :] for c in range(cout)], axis=1)     # (1, cout*oh*ow)
                y = jnp.dot(flat.astype(jnp.bfloat16), w_fc_ref[...],
                            preferred_element_type=jnp.float32)
                out_ref[...] = y + b_fc_ref[...]

    return kernel


# ----------------------------------------------------------------------------
# Wrapper glue
# ----------------------------------------------------------------------------
def _input_slabs(x_nchw, oh):
    """NCHW input -> halo-padded 2x2 parity slabs, flattened to
    (N, 4*(oh+2), oh+2, C) bf16, slab q=2a+b holds x[2u+a, 2v+b]."""
    n, c, _, _ = x_nchw.shape
    x = jnp.transpose(x_nchw, (0, 2, 3, 1))                            # NHWC
    slabs = jnp.stack([x[:, a::2, b::2, :] for a in (0, 1) for b in (0, 1)],
                      axis=1)                                          # (N,4,oh,oh,C)
    slabs = jnp.pad(slabs, ((0, 0), (0, 0), (1, 1), (1, 1), (0, 0)))
    return slabs.reshape(n, 4 * (oh + 2), oh + 2, c).astype(jnp.bfloat16)


def prepare_operands(conv_params, w_fc, b_fc, spatial_in):
    """Static (offline) parameter prep: real channel counts, bf16 weights."""
    conv_ops, spatials, layer_dims = [], [], []
    s = spatial_in
    for w, b in conv_params:                      # w: (4,4,Cin,Cout) HWIO, b: (Cout,)
        kh, kw, cin, cout = w.shape
        assert (kh, kw) == (4, 4)
        s //= 2
        spatials.append(s)
        layer_dims.append((cin, cout))
        conv_ops.append((jnp.asarray(w, jnp.float32).reshape(16 * cin, cout)
                         .astype(jnp.bfloat16),
                         jnp.asarray(b, jnp.float32).reshape(1, cout)))
    assert spatials[-1] == 8, "GlobalDiscriminator FC expects an 8x8 feature map"
    assert w_fc.shape[0] == layer_dims[-1][1] * 64
    perms = [jnp.asarray(_parity_perm(spatials[l], spatials[l]), jnp.bfloat16)
             for l in range(len(conv_params) - 1)]
    fc_out = w_fc.shape[1]
    w_fc_b = jnp.asarray(w_fc, jnp.float32).astype(jnp.bfloat16)
    b_fc_b = jnp.asarray(b_fc, jnp.float32).reshape(1, fc_out)
    meta = dict(spatials=spatials, layer_dims=layer_dims, fc_out=fc_out)
    return conv_ops, perms, w_fc_b, b_fc_b, meta


def global_discriminator_forward(x_nchw, conv_ops, perms, w_fc_b, b_fc_b, meta):
    n = x_nchw.shape[0]
    spatials, layer_dims, fc_out = meta["spatials"], meta["layer_dims"], meta["fc_out"]
    num_layers = len(layer_dims)

    x_slabs = _input_slabs(x_nchw, spatials[0])
    kernel = _make_kernel(layer_dims, spatials)

    in_specs = [pl.BlockSpec((None,) + x_slabs.shape[1:],
                             lambda i: (i, 0, 0, 0))]
    operands = [x_slabs]
    for w, b in conv_ops:
        in_specs += [pl.BlockSpec(w.shape, lambda i: (0, 0)),
                     pl.BlockSpec(b.shape, lambda i: (0, 0))]
        operands += [w, b]
    for p in perms:
        in_specs.append(pl.BlockSpec(p.shape, lambda i: (0, 0)))
        operands.append(p)
    in_specs += [pl.BlockSpec(w_fc_b.shape, lambda i: (0, 0)),
                 pl.BlockSpec(b_fc_b.shape, lambda i: (0, 0))]
    operands += [w_fc_b, b_fc_b]

    scratch_shapes = [
        pltpu.VMEM((4 * (spatials[l + 1] + 2), spatials[l + 1] + 2,
                    layer_dims[l][1]), jnp.float32)
        for l in range(num_layers - 1)
    ]

    out = pl.pallas_call(
        kernel,
        out_shape=jax.ShapeDtypeStruct((n, 1, fc_out), jnp.float32),
        grid=(n,),
        in_specs=in_specs,
        out_specs=pl.BlockSpec((None, 1, fc_out), lambda i: (i, 0, 0)),
        scratch_shapes=scratch_shapes,
        compiler_params=pltpu.CompilerParams(
            dimension_semantics=("parallel",)),
    )(*operands)
    return out.reshape(n, fc_out)


# ----------------------------------------------------------------------------
# Pure-JAX f32 reference (correctness check)
# ----------------------------------------------------------------------------
def reference_forward(x_nchw, conv_params, w_fc, b_fc):
    x = x_nchw
    for w, b in conv_params:
        x = lax.conv_general_dilated(
            x, w, window_strides=(2, 2), padding=((1, 1), (1, 1)),
            dimension_numbers=("NCHW", "HWIO", "NCHW"))
        x = x + b.reshape(1, -1, 1, 1)
        x = jnp.where(x > 0, x, LRELU_SLOPE * x)
    x = x.reshape(x.shape[0], -1)
    return x @ w_fc + b_fc


# ----------------------------------------------------------------------------
# Deterministic parameter init (shapes follow GlobalDiscriminator.__init__)
# ----------------------------------------------------------------------------
def init_params(key, in_c=3, ndf=4, num_layers=2):
    conv_params = []
    c_out = in_c
    for i in range(num_layers):
        c_in, c_out = c_out, min(ndf * 2 ** (i + 1), 256)
        key, kw_, kb_ = jax.random.split(key, 3)
        bound = 1.0 / np.sqrt(c_in * 16)
        w = jax.random.uniform(kw_, (4, 4, c_in, c_out), jnp.float32, -bound, bound)
        b = jax.random.uniform(kb_, (c_out,), jnp.float32, -bound, bound)
        conv_params.append((w, b))
    fc_in = c_out * 8 * 8
    key, kw_, kb_ = jax.random.split(key, 3)
    bound = 1.0 / np.sqrt(fc_in)
    w_fc = jax.random.uniform(kw_, (fc_in, c_out), jnp.float32, -bound, bound)
    b_fc = jax.random.uniform(kb_, (c_out,), jnp.float32, -bound, bound)
    return conv_params, w_fc, b_fc


if __name__ == "__main__":
    # Small config: in_c=3, ndf=4, num_layers=2 -> final conv channels 16,
    # spatial must end at 8x8 => input 32x32 (each conv halves H, W).
    in_c, ndf, num_layers = 3, 4, 2
    batch, spatial = 2, 8 * (2 ** num_layers)      # 32

    key = jax.random.PRNGKey(0)
    key, kx = jax.random.split(key)
    x = jax.random.normal(kx, (batch, in_c, spatial, spatial), jnp.float32)

    conv_params, w_fc, b_fc = init_params(key, in_c=in_c, ndf=ndf,
                                          num_layers=num_layers)
    conv_ops, perms, w_fc_b, b_fc_b, meta = prepare_operands(
        conv_params, w_fc, b_fc, spatial)

    out = global_discriminator_forward(x, conv_ops, perms, w_fc_b, b_fc_b, meta)
    out = jax.block_until_ready(out)

    ref = jax.block_until_ready(reference_forward(x, conv_params, w_fc, b_fc))
    assert out.shape == ref.shape == (batch, min(ndf * 2 ** num_layers, 256)), \
        (out.shape, ref.shape)
    max_err = float(jnp.max(jnp.abs(out - ref)))
    # bf16 activations/weights with f32 accumulation -> tolerance relaxed vs f32
    assert jnp.allclose(out, ref, rtol=2e-2, atol=2e-2), f"max abs err {max_err}"

    print("KERNEL_OK")
</pallas_src>

<mosaic_0001>
module attributes {stable_mosaic.version = 11 : i64} {
  func.func @kernel(%arg0: i32, %arg1: memref<1x72x18x3xbf16, #tpu.memory_space<vmem>>, %arg2: memref<48x8xbf16, #tpu.memory_space<vmem>>, %arg3: memref<1x8xf32, #tpu.memory_space<vmem>>, %arg4: memref<128x16xbf16, #tpu.memory_space<vmem>>, %arg5: memref<1x16xf32, #tpu.memory_space<vmem>>, %arg6: memref<256x256xbf16, #tpu.memory_space<vmem>>, %arg7: memref<1024x16xbf16, #tpu.memory_space<vmem>>, %arg8: memref<1x16xf32, #tpu.memory_space<vmem>>, %arg9: memref<1x1x16xf32, #tpu.memory_space<vmem>>, %arg10: memref<40x10x8xf32, #tpu.memory_space<vmem>>) attributes {dimension_semantics = [#tpu.dimension_semantics<parallel>], iteration_bounds = array<i64: 2>, scalar_prefetch = 0 : i64, scratch_operands = 1 : i64, tpu.core_type = #tpu.core_type<tc>, window_params = [{transform_indices = @transform_0, window_bounds = array<i64: 1, 72, 18, 3>}, {pipeline_mode = #tpu.pipeline_mode<synchronous>, transform_indices = @transform_1, window_bounds = array<i64: 48, 8>}, {pipeline_mode = #tpu.pipeline_mode<synchronous>, transform_indices = @transform_2, window_bounds = array<i64: 1, 8>}, {pipeline_mode = #tpu.pipeline_mode<synchronous>, transform_indices = @transform_3, window_bounds = array<i64: 128, 16>}, {pipeline_mode = #tpu.pipeline_mode<synchronous>, transform_indices = @transform_4, window_bounds = array<i64: 1, 16>}, {pipeline_mode = #tpu.pipeline_mode<synchronous>, transform_indices = @transform_5, window_bounds = array<i64: 256, 256>}, {pipeline_mode = #tpu.pipeline_mode<synchronous>, transform_indices = @transform_6, window_bounds = array<i64: 1024, 16>}, {pipeline_mode = #tpu.pipeline_mode<synchronous>, transform_indices = @transform_7, window_bounds = array<i64: 1, 16>}, {transform_indices = @transform_8, window_bounds = array<i64: 1, 1, 16>}]} {
    %c0 = arith.constant 0 : index
    %c54 = arith.constant 54 : index
    %c0_0 = arith.constant 0 : index
    %c0_1 = arith.constant 0 : index
    %0 = vector.load %arg1[%c0, %c54, %c0_0, %c0_1] : memref<1x72x18x3xbf16, #tpu.memory_space<vmem>>, vector<1x16x16x3xbf16>
    %1 = vector.shape_cast %0 : vector<1x16x16x3xbf16> to vector<16x16x3xbf16>
    %c0_2 = arith.constant 0 : index
    %c36 = arith.constant 36 : index
    %c1 = arith.constant 1 : index
    %c0_3 = arith.constant 0 : index
    %2 = vector.load %arg1[%c0_2, %c36, %c1, %c0_3] : memref<1x72x18x3xbf16, #tpu.memory_space<vmem>>, vector<1x16x16x3xbf16>
    %3 = vector.shape_cast %2 : vector<1x16x16x3xbf16> to vector<16x16x3xbf16>
    %c0_4 = arith.constant 0 : index
    %c54_5 = arith.constant 54 : index
    %c1_6 = arith.constant 1 : index
    %c0_7 = arith.constant 0 : index
    %4 = vector.load %arg1[%c0_4, %c54_5, %c1_6, %c0_7] : memref<1x72x18x3xbf16, #tpu.memory_space<vmem>>, vector<1x16x16x3xbf16>
    %5 = vector.shape_cast %4 : vector<1x16x16x3xbf16> to vector<16x16x3xbf16>
    %c0_8 = arith.constant 0 : index
    %c36_9 = arith.constant 36 : index
    %c2 = arith.constant 2 : index
    %c0_10 = arith.constant 0 : index
    %6 = vector.load %arg1[%c0_8, %c36_9, %c2, %c0_10] : memref<1x72x18x3xbf16, #tpu.memory_space<vmem>>, vector<1x16x16x3xbf16>
    %7 = vector.shape_cast %6 : vector<1x16x16x3xbf16> to vector<16x16x3xbf16>
    %c0_11 = arith.constant 0 : index
    %c19 = arith.constant 19 : index
    %c0_12 = arith.constant 0 : index
    %c0_13 = arith.constant 0 : index
    %8 = vector.load %arg1[%c0_11, %c19, %c0_12, %c0_13] : memref<1x72x18x3xbf16, #tpu.memory_space<vmem>>, vector<1x16x16x3xbf16>
    %9 = vector.shape_cast %8 : vector<1x16x16x3xbf16> to vector<16x16x3xbf16>
    %c0_14 = arith.constant 0 : index
    %c1_15 = arith.constant 1 : index
    %c1_16 = arith.constant 1 : index
    %c0_17 = arith.constant 0 : index
    %10 = vector.load %arg1[%c0_14, %c1_15, %c1_16, %c0_17] : memref<1x72x18x3xbf16, #tpu.memory_space<vmem>>, vector<1x16x16x3xbf16>
    %11 = vector.shape_cast %10 : vector<1x16x16x3xbf16> to vector<16x16x3xbf16>
    %c0_18 = arith.constant 0 : index
    %c19_19 = arith.constant 19 : index
    %c1_20 = arith.constant 1 : index
    %c0_21 = arith.constant 0 : index
    %12 = vector.load %arg1[%c0_18, %c19_19, %c1_20, %c0_21] : memref<1x72x18x3xbf16, #tpu.memory_space<vmem>>, vector<1x16x16x3xbf16>
    %13 = vector.shape_cast %12 : vector<1x16x16x3xbf16> to vector<16x16x3xbf16>
    %c0_22 = arith.constant 0 : index
    %c1_23 = arith.constant 1 : index
    %c2_24 = arith.constant 2 : index
    %c0_25 = arith.constant 0 : index
    %14 = vector.load %arg1[%c0_22, %c1_23, %c2_24, %c0_25] : memref<1x72x18x3xbf16, #tpu.memory_space<vmem>>, vector<1x16x16x3xbf16>
    %15 = vector.shape_cast %14 : vector<1x16x16x3xbf16> to vector<16x16x3xbf16>
    %c0_26 = arith.constant 0 : index
    %c55 = arith.constant 55 : index
    %c0_27 = arith.constant 0 : index
    %c0_28 = arith.constant 0 : index
    %16 = vector.load %arg1[%c0_26, %c55, %c0_27, %c0_28] : memref<1x72x18x3xbf16, #tpu.memory_space<vmem>>, vector<1x16x16x3xbf16>
    %17 = vector.shape_cast %16 : vector<1x16x16x3xbf16> to vector<16x16x3xbf16>
    %c0_29 = arith.constant 0 : index
    %c37 = arith.constant 37 : index
    %c1_30 = arith.constant 1 : index
    %c0_31 = arith.constant 0 : index
    %18 = vector.load %arg1[%c0_29, %c37, %c1_30, %c0_31] : memref<1x72x18x3xbf16, #tpu.memory_space<vmem>>, vector<1x16x16x3xbf16>
    %19 = vector.shape_cast %18 : vector<1x16x16x3xbf16> to vector<16x16x3xbf16>
    %c0_32 = arith.constant 0 : index
    %c55_33 = arith.constant 55 : index
    %c1_34 = arith.constant 1 : index
    %c0_35 = arith.constant 0 : index
    %20 = vector.load %arg1[%c0_32, %c55_33, %c1_34, %c0_35] : memref<1x72x18x3xbf16, #tpu.memory_space<vmem>>, vector<1x16x16x3xbf16>
    %21 = vector.shape_cast %20 : vector<1x16x16x3xbf16> to vector<16x16x3xbf16>
    %c0_36 = arith.constant 0 : index
    %c37_37 = arith.constant 37 : index
    %c2_38 = arith.constant 2 : index
    %c0_39 = arith.constant 0 : index
    %22 = vector.load %arg1[%c0_36, %c37_37, %c2_38, %c0_39] : memref<1x72x18x3xbf16, #tpu.memory_space<vmem>>, vector<1x16x16x3xbf16>
    %23 = vector.shape_cast %22 : vector<1x16x16x3xbf16> to vector<16x16x3xbf16>
    %c0_40 = arith.constant 0 : index
    %c20 = arith.constant 20 : index
    %c0_41 = arith.constant 0 : index
    %c0_42 = arith.constant 0 : index
    %24 = vector.load %arg1[%c0_40, %c20, %c0_41, %c0_42] : memref<1x72x18x3xbf16, #tpu.memory_space<vmem>>, vector<1x16x16x3xbf16>
    %25 = vector.shape_cast %24 : vector<1x16x16x3xbf16> to vector<16x16x3xbf16>
    %c0_43 = arith.constant 0 : index
    %c2_44 = arith.constant 2 : index
    %c1_45 = arith.constant 1 : index
    %c0_46 = arith.constant 0 : index
    %26 = vector.load %arg1[%c0_43, %c2_44, %c1_45, %c0_46] : memref<1x72x18x3xbf16, #tpu.memory_space<vmem>>, vector<1x16x16x3xbf16>
    %27 = vector.shape_cast %26 : vector<1x16x16x3xbf16> to vector<16x16x3xbf16>
    %c0_47 = arith.constant 0 : index
    %c20_48 = arith.constant 20 : index
    %c1_49 = arith.constant 1 : index
    %c0_50 = arith.constant 0 : index
    %28 = vector.load %arg1[%c0_47, %c20_48, %c1_49, %c0_50] : memref<1x72x18x3xbf16, #tpu.memory_space<vmem>>, vector<1x16x16x3xbf16>
    %29 = vector.shape_cast %28 : vector<1x16x16x3xbf16> to vector<16x16x3xbf16>
    %c0_51 = arith.constant 0 : index
    %c2_52 = arith.constant 2 : index
    %c2_53 = arith.constant 2 : index
    %c0_54 = arith.constant 0 : index
    %30 = vector.load %arg1[%c0_51, %c2_52, %c2_53, %c0_54] : memref<1x72x18x3xbf16, #tpu.memory_space<vmem>>, vector<1x16x16x3xbf16>
    %31 = vector.shape_cast %30 : vector<1x16x16x3xbf16> to vector<16x16x3xbf16>
    %32 = tpu.concatenate %1, %3, %5, %7, %9, %11, %13, %15, %17, %19, %21, %23, %25, %27, %29, %31 in 2 : vector<16x16x3xbf16>, vector<16x16x3xbf16>, vector<16x16x3xbf16>, vector<16x16x3xbf16>, vector<16x16x3xbf16>, vector<16x16x3xbf16>, vector<16x16x3xbf16>, vector<16x16x3xbf16>, vector<16x16x3xbf16>, vector<16x16x3xbf16>, vector<16x16x3xbf16>, vector<16x16x3xbf16>, vector<16x16x3xbf16>, vector<16x16x3xbf16>, vector<16x16x3xbf16>, vector<16x16x3xbf16> -> vector<16x16x48xbf16>
    %33 = vector.shape_cast %32 : vector<16x16x48xbf16> to vector<256x48xbf16>
    %c0_55 = arith.constant 0 : index
    %c0_56 = arith.constant 0 : index
    %34 = vector.load %arg2[%c0_55, %c0_56] : memref<48x8xbf16, #tpu.memory_space<vmem>>, vector<48x8xbf16>
    %cst = arith.constant dense<0.000000e+00> : vector<256x8xf32>
    %35 = tpu.matmul %33, %34, %cst {dimension_numbers = #tpu.dot_dimension_numbers<[1], [0], [0], [1], [0, 0, 1, 1], [], []>} : vector<256x48xbf16>, vector<48x8xbf16>, vector<256x8xf32> -> vector<256x8xf32>
    %c0_57 = arith.constant 0 : index
    %c0_58 = arith.constant 0 : index
    %36 = vector.load %arg3[%c0_57, %c0_58] : memref<1x8xf32, #tpu.memory_space<vmem>>, vector<1x8xf32>
    %37 = vector.broadcast %36 : vector<1x8xf32> to vector<256x8xf32>
    %38 = arith.addf %35, %37 : vector<256x8xf32>
    %cst_59 = arith.constant 0.000000e+00 : f32
    %39 = vector.broadcast %cst_59 : f32 to vector<256x8xf32>
    %40 = arith.cmpf ogt, %38, %39 : vector<256x8xf32>
    %cst_60 = arith.constant 2.000000e-01 : f32
    %41 = vector.broadcast %cst_60 : f32 to vector<256x8xf32>
    %42 = arith.mulf %41, %38 : vector<256x8xf32>
    %43 = arith.select %40, %38, %42 : vector<256x8xi1>, vector<256x8xf32>
    %c0_61 = arith.constant 0 : index
    %c0_62 = arith.constant 0 : index
    %44 = vector.load %arg6[%c0_61, %c0_62] : memref<256x256xbf16, #tpu.memory_space<vmem>>, vector<256x256xbf16>
    %45 = arith.truncf %43 : vector<256x8xf32> to vector<256x8xbf16>
    %cst_63 = arith.constant dense<0.000000e+00> : vector<256x8xf32>
    %46 = tpu.matmul %44, %45, %cst_63 {dimension_numbers = #tpu.dot_dimension_numbers<[1], [0], [0], [1], [0, 0, 1, 1], [], []>} : vector<256x256xbf16>, vector<256x8xbf16>, vector<256x8xf32> -> vector<256x8xf32>
    %cst_64 = arith.constant 0.000000e+00 : f32
    %47 = vector.broadcast %cst_64 : f32 to vector<40x10x8xf32>
    %c0_65 = arith.constant 0 : index
    %c0_66 = arith.constant 0 : index
    %c0_67 = arith.constant 0 : index
    %48 = vector.load %arg10[%c0_65, %c0_66, %c0_67] : memref<40x10x8xf32, #tpu.memory_space<vmem>>, vector<40x10x8xf32>
    tpu.vector_store %arg10[%c0_65, %c0_66, %c0_67], %47 {strides = array<i32>} : memref<40x10x8xf32, #tpu.memory_space<vmem>>, vector<40x10x8xf32>,
    %49 = vector.extract_strided_slice %46 {offsets = [0, 0], sizes = [64, 8], strides = [1, 1]} : vector<256x8xf32> to vector<64x8xf32>
    %50 = vector.shape_cast %49 : vector<64x8xf32> to vector<8x8x8xf32>
    %c1_68 = arith.constant 1 : index
    %c1_69 = arith.constant 1 : index
    %c0_70 = arith.constant 0 : index
    %51 = vector.load %arg10[%c1_68, %c1_69, %c0_70] : memref<40x10x8xf32, #tpu.memory_space<vmem>>, vector<8x8x8xf32>
    tpu.vector_store %arg10[%c1_68, %c1_69, %c0_70], %50 {strides = array<i32>} : memref<40x10x8xf32, #tpu.memory_space<vmem>>, vector<8x8x8xf32>,
    %52 = vector.extract_strided_slice %46 {offsets = [64, 0], sizes = [64, 8], strides = [1, 1]} : vector<256x8xf32> to vector<64x8xf32>
    %53 = vector.shape_cast %52 : vector<64x8xf32> to vector<8x8x8xf32>
    %c11 = arith.constant 11 : index
    %c1_71 = arith.constant 1 : index
    %c0_72 = arith.constant 0 : index
    %54 = vector.load %arg10[%c11, %c1_71, %c0_72] : memref<40x10x8xf32, #tpu.memory_space<vmem>>, vector<8x8x8xf32>
    tpu.vector_store %arg10[%c11, %c1_71, %c0_72], %53 {strides = array<i32>} : memref<40x10x8xf32, #tpu.memory_space<vmem>>, vector<8x8x8xf32>,
    %55 = vector.extract_strided_slice %46 {offsets = [128, 0], sizes = [64, 8], strides = [1, 1]} : vector<256x8xf32> to vector<64x8xf32>
    %56 = vector.shape_cast %55 : vector<64x8xf32> to vector<8x8x8xf32>
    %c21 = arith.constant 21 : index
    %c1_73 = arith.constant 1 : index
    %c0_74 = arith.constant 0 : index
    %57 = vector.load %arg10[%c21, %c1_73, %c0_74] : memref<40x10x8xf32, #tpu.memory_space<vmem>>, vector<8x8x8xf32>
    tpu.vector_store %arg10[%c21, %c1_73, %c0_74], %56 {strides = array<i32>} : memref<40x10x8xf32, #tpu.memory_space<vmem>>, vector<8x8x8xf32>,
    %58 = vector.extract_strided_slice %46 {offsets = [192, 0], sizes = [64, 8], strides = [1, 1]} : vector<256x8xf32> to vector<64x8xf32>
    %59 = vector.shape_cast %58 : vector<64x8xf32> to vector<8x8x8xf32>
    %c31 = arith.constant 31 : index
    %c1_75 = arith.constant 1 : index
    %c0_76 = arith.constant 0 : index
    %60 = vector.load %arg10[%c31, %c1_75, %c0_76] : memref<40x10x8xf32, #tpu.memory_space<vmem>>, vector<8x8x8xf32>
    tpu.vector_store %arg10[%c31, %c1_75, %c0_76], %59 {strides = array<i32>} : memref<40x10x8xf32, #tpu.memory_space<vmem>>, vector<8x8x8xf32>,
    %c30 = arith.constant 30 : index
    %c0_77 = arith.constant 0 : index
    %c0_78 = arith.constant 0 : index
    %61 = vector.load %arg10[%c30, %c0_77, %c0_78] : memref<40x10x8xf32, #tpu.memory_space<vmem>>, vector<8x8x8xf32>
    %c20_79 = arith.constant 20 : index
    %c1_80 = arith.constant 1 : index
    %c0_81 = arith.constant 0 : index
    %62 = vector.load %arg10[%c20_79, %c1_80, %c0_81] : memref<40x10x8xf32, #tpu.memory_space<vmem>>, vector<8x8x8xf32>
    %c30_82 = arith.constant 30 : index
    %c1_83 = arith.constant 1 : index
    %c0_84 = arith.constant 0 : index
    %63 = vector.load %arg10[%c30_82, %c1_83, %c0_84] : memref<40x10x8xf32, #tpu.memory_space<vmem>>, vector<8x8x8xf32>
    %c20_85 = arith.constant 20 : index
    %c2_86 = arith.constant 2 : index
    %c0_87 = arith.constant 0 : index
    %64 = vector.load %arg10[%c20_85, %c2_86, %c0_87] : memref<40x10x8xf32, #tpu.memory_space<vmem>>, vector<8x8x8xf32>
    %c11_88 = arith.constant 11 : index
    %c0_89 = arith.constant 0 : index
    %c0_90 = arith.constant 0 : index
    %65 = vector.load %arg10[%c11_88, %c0_89, %c0_90] : memref<40x10x8xf32, #tpu.memory_space<vmem>>, vector<8x8x8xf32>
    %c1_91 = arith.constant 1 : index
    %c1_92 = arith.constant 1 : index
    %c0_93 = arith.constant 0 : index
    %66 = vector.load %arg10[%c1_91, %c1_92, %c0_93] : memref<40x10x8xf32, #tpu.memory_space<vmem>>, vector<8x8x8xf32>
    %c11_94 = arith.constant 11 : index
    %c1_95 = arith.constant 1 : index
    %c0_96 = arith.constant 0 : index
    %67 = vector.load %arg10[%c11_94, %c1_95, %c0_96] : memref<40x10x8xf32, #tpu.memory_space<vmem>>, vector<8x8x8xf32>
    %c1_97 = arith.constant 1 : index
    %c2_98 = arith.constant 2 : index
    %c0_99 = arith.constant 0 : index
    %68 = vector.load %arg10[%c1_97, %c2_98, %c0_99] : memref<40x10x8xf32, #tpu.memory_space<vmem>>, vector<8x8x8xf32>
    %c31_100 = arith.constant 31 : index
    %c0_101 = arith.constant 0 : index
    %c0_102 = arith.constant 0 : index
    %69 = vector.load %arg10[%c31_100, %c0_101, %c0_102] : memref<40x10x8xf32, #tpu.memory_space<vmem>>, vector<8x8x8xf32>
    %c21_103 = arith.constant 21 : index
    %c1_104 = arith.constant 1 : index
    %c0_105 = arith.constant 0 : index
    %70 = vector.load %arg10[%c21_103, %c1_104, %c0_105] : memref<40x10x8xf32, #tpu.memory_space<vmem>>, vector<8x8x8xf32>
    %c31_106 = arith.constant 31 : index
    %c1_107 = arith.constant 1 : index
    %c0_108 = arith.constant 0 : index
    %71 = vector.load %arg10[%c31_106, %c1_107, %c0_108] : memref<40x10x8xf32, #tpu.memory_space<vmem>>, vector<8x8x8xf32>
    %c21_109 = arith.constant 21 : index
    %c2_110 = arith.constant 2 : index
    %c0_111 = arith.constant 0 : index
    %72 = vector.load %arg10[%c21_109, %c2_110, %c0_111] : memref<40x10x8xf32, #tpu.memory_space<vmem>>, vector<8x8x8xf32>
    %c12 = arith.constant 12 : index
    %c0_112 = arith.constant 0 : index
    %c0_113 = arith.constant 0 : index
    %73 = vector.load %arg10[%c12, %c0_112, %c0_113] : memref<40x10x8xf32, #tpu.memory_space<vmem>>, vector<8x8x8xf32>
    %c2_114 = arith.constant 2 : index
    %c1_115 = arith.constant 1 : index
    %c0_116 = arith.constant 0 : index
    %74 = vector.load %arg10[%c2_114, %c1_115, %c0_116] : memref<40x10x8xf32, #tpu.memory_space<vmem>>, vector<8x8x8xf32>
    %c12_117 = arith.constant 12 : index
    %c1_118 = arith.constant 1 : index
    %c0_119 = arith.constant 0 : index
    %75 = vector.load %arg10[%c12_117, %c1_118, %c0_119] : memref<40x10x8xf32, #tpu.memory_space<vmem>>, vector<8x8x8xf32>
    %c2_120 = arith.constant 2 : index
    %c2_121 = arith.constant 2 : index
    %c0_122 = arith.constant 0 : index
    %76 = vector.load %arg10[%c2_120, %c2_121, %c0_122] : memref<40x10x8xf32, #tpu.memory_space<vmem>>, vector<8x8x8xf32>
    %77 = tpu.concatenate %61, %62, %63, %64, %65, %66, %67, %68, %69, %70, %71, %72, %73, %74, %75, %76 in 2 : vector<8x8x8xf32>, vector<8x8x8xf32>, vector<8x8x8xf32>, vector<8x8x8xf32>, vector<8x8x8xf32>, vector<8x8x8xf32>, vector<8x8x8xf32>, vector<8x8x8xf32>, vector<8x8x8xf32>, vector<8x8x8xf32>, vector<8x8x8xf32>, vector<8x8x8xf32>, vector<8x8x8xf32>, vector<8x8x8xf32>, vector<8x8x8xf32>, vector<8x8x8xf32> -> vector<8x8x128xf32>
    %78 = vector.shape_cast %77 : vector<8x8x128xf32> to vector<64x128xf32>
    %79 = arith.truncf %78 : vector<64x128xf32> to vector<64x128xbf16>
    %c0_123 = arith.constant 0 : index
    %c0_124 = arith.constant 0 : index
    %80 = vector.load %arg4[%c0_123, %c0_124] : memref<128x16xbf16, #tpu.memory_space<vmem>>, vector<128x16xbf16>
    %cst_125 = arith.constant dense<0.000000e+00> : vector<64x16xf32>
    %81 = tpu.matmul %79, %80, %cst_125 {dimension_numbers = #tpu.dot_dimension_numbers<[1], [0], [0], [1], [0, 0, 1, 1], [], []>} : vector<64x128xbf16>, vector<128x16xbf16>, vector<64x16xf32> -> vector<64x16xf32>
    %c0_126 = arith.constant 0 : index
    %c0_127 = arith.constant 0 : index
    %82 = vector.load %arg5[%c0_126, %c0_127] : memref<1x16xf32, #tpu.memory_space<vmem>>, vector<1x16xf32>
    %83 = vector.broadcast %82 : vector<1x16xf32> to vector<64x16xf32>
    %84 = arith.addf %81, %83 : vector<64x16xf32>
    %cst_128 = arith.constant 0.000000e+00 : f32
    %85 = vector.broadcast %cst_128 : f32 to vector<64x16xf32>
    %86 = arith.cmpf ogt, %84, %85 : vector<64x16xf32>
    %cst_129 = arith.constant 2.000000e-01 : f32
    %87 = vector.broadcast %cst_129 : f32 to vector<64x16xf32>
    %88 = arith.mulf %87, %84 : vector<64x16xf32>
    %89 = arith.select %86, %84, %88 : vector<64x16xi1>, vector<64x16xf32>
    %90 = tpu.transpose %89, [1, 0] : vector<64x16xf32> -> vector<16x64xf32>
    %91 = vector.extract_strided_slice %90 {offsets = [0, 0], sizes = [1, 64], strides = [1, 1]} : vector<16x64xf32> to vector<1x64xf32>
    %92 = vector.extract_strided_slice %90 {offsets = [1, 0], sizes = [1, 64], strides = [1, 1]} : vector<16x64xf32> to vector<1x64xf32>
    %93 = vector.extract_strided_slice %90 {offsets = [2, 0], sizes = [1, 64], strides = [1, 1]} : vector<16x64xf32> to vector<1x64xf32>
    %94 = vector.extract_strided_slice %90 {offsets = [3, 0], sizes = [1, 64], strides = [1, 1]} : vector<16x64xf32> to vector<1x64xf32>
    %95 = vector.extract_strided_slice %90 {offsets = [4, 0], sizes = [1, 64], strides = [1, 1]} : vector<16x64xf32> to vector<1x64xf32>
    %96 = vector.extract_strided_slice %90 {offsets = [5, 0], sizes = [1, 64], strides = [1, 1]} : vector<16x64xf32> to vector<1x64xf32>
    %97 = vector.extract_strided_slice %90 {offsets = [6, 0], sizes = [1, 64], strides = [1, 1]} : vector<16x64xf32> to vector<1x64xf32>
    %98 = vector.extract_strided_slice %90 {offsets = [7, 0], sizes = [1, 64], strides = [1, 1]} : vector<16x64xf32> to vector<1x64xf32>
    %99 = vector.extract_strided_slice %90 {offsets = [8, 0], sizes = [1, 64], strides = [1, 1]} : vector<16x64xf32> to vector<1x64xf32>
    %100 = vector.extract_strided_slice %90 {offsets = [9, 0], sizes = [1, 64], strides = [1, 1]} : vector<16x64xf32> to vector<1x64xf32>
    %101 = vector.extract_strided_slice %90 {offsets = [10, 0], sizes = [1, 64], strides = [1, 1]} : vector<16x64xf32> to vector<1x64xf32>
    %102 = vector.extract_strided_slice %90 {offsets = [11, 0], sizes = [1, 64], strides = [1, 1]} : vector<16x64xf32> to vector<1x64xf32>
    %103 = vector.extract_strided_slice %90 {offsets = [12, 0], sizes = [1, 64], strides = [1, 1]} : vector<16x64xf32> to vector<1x64xf32>
    %104 = vector.extract_strided_slice %90 {offsets = [13, 0], sizes = [1, 64], strides = [1, 1]} : vector<16x64xf32> to vector<1x64xf32>
    %105 = vector.extract_strided_slice %90 {offsets = [14, 0], sizes = [1, 64], strides = [1, 1]} : vector<16x64xf32> to vector<1x64xf32>
    %106 = vector.extract_strided_slice %90 {offsets = [15, 0], sizes = [1, 64], strides = [1, 1]} : vector<16x64xf32> to vector<1x64xf32>
    %107 = tpu.concatenate %91, %92, %93, %94, %95, %96, %97, %98, %99, %100, %101, %102, %103, %104, %105, %106 in 1 : vector<1x64xf32>, vector<1x64xf32>, vector<1x64xf32>, vector<1x64xf32>, vector<1x64xf32>, vector<1x64xf32>, vector<1x64xf32>, vector<1x64xf32>, vector<1x64xf32>, vector<1x64xf32>, vector<1x64xf32>, vector<1x64xf32>, vector<1x64xf32>, vector<1x64xf32>, vector<1x64xf32>, vector<1x64xf32> -> vector<1x1024xf32>
    %108 = arith.truncf %107 : vector<1x1024xf32> to vector<1x1024xbf16>
    %c0_130 = arith.constant 0 : index
    %c0_131 = arith.constant 0 : index
    %109 = vector.load %arg7[%c0_130, %c0_131] : memref<1024x16xbf16, #tpu.memory_space<vmem>>, vector<1024x16xbf16>
    %cst_132 = arith.constant dense<0.000000e+00> : vector<1x16xf32>
    %110 = tpu.matmul %108, %109, %cst_132 {dimension_numbers = #tpu.dot_dimension_numbers<[1], [0], [0], [1], [0, 0, 1, 1], [], []>} : vector<1x1024xbf16>, vector<1024x16xbf16>, vector<1x16xf32> -> vector<1x16xf32>
    %c0_133 = arith.constant 0 : index
    %c0_134 = arith.constant 0 : index
    %111 = vector.load %arg8[%c0_133, %c0_134] : memref<1x16xf32, #tpu.memory_space<vmem>>, vector<1x16xf32>
    %112 = arith.addf %110, %111 : vector<1x16xf32>
    %c0_135 = arith.constant 0 : index
    %c0_136 = arith.constant 0 : index
    %c0_137 = arith.constant 0 : index
    %113 = vector.load %arg9[%c0_135, %c0_136, %c0_137] : memref<1x1x16xf32, #tpu.memory_space<vmem>>, vector<1x1x16xf32>
    %114 = vector.shape_cast %113 : vector<1x1x16xf32> to vector<1x16xf32>
    %115 = vector.shape_cast %112 : vector<1x16xf32> to vector<1x1x16xf32>
    tpu.vector_store %arg9[%c0_135, %c0_136, %c0_137], %115 {strides = array<i32>} : memref<1x1x16xf32, #tpu.memory_space<vmem>>, vector<1x1x16xf32>,
    return
  }
  func.func @transform_0(%arg0: i32) -> (i32, i32, i32, i32) {
    %c0_i32 = arith.constant 0 : i32
    %c0_i32_0 = arith.constant 0 : i32
    %c0_i32_1 = arith.constant 0 : i32
    %c0_i32_2 = arith.constant 0 : i32
    return %arg0, %c0_i32, %c0_i32_0, %c0_i32_1 : i32, i32, i32, i32
  }
  func.func @transform_1(%arg0: i32) -> (i32, i32) {
    %c0_i32 = arith.constant 0 : i32
    %c0_i32_0 = arith.constant 0 : i32
    %c0_i32_1 = arith.constant 0 : i32
    return %c0_i32, %c0_i32_0 : i32, i32
  }
  func.func @transform_2(%arg0: i32) -> (i32, i32) {
    %c0_i32 = arith.constant 0 : i32
    %c0_i32_0 = arith.constant 0 : i32
    %c0_i32_1 = arith.constant 0 : i32
    return %c0_i32, %c0_i32_0 : i32, i32
  }
  func.func @transform_3(%arg0: i32) -> (i32, i32) {
    %c0_i32 = arith.constant 0 : i32
    %c0_i32_0 = arith.constant 0 : i32
    %c0_i32_1 = arith.constant 0 : i32
    return %c0_i32, %c0_i32_0 : i32, i32
  }
  func.func @transform_4(%arg0: i32) -> (i32, i32) {
    %c0_i32 = arith.constant 0 : i32
    %c0_i32_0 = arith.constant 0 : i32
    %c0_i32_1 = arith.constant 0 : i32
    return %c0_i32, %c0_i32_0 : i32, i32
  }
  func.func @transform_5(%arg0: i32) -> (i32, i32) {
    %c0_i32 = arith.constant 0 : i32
    %c0_i32_0 = arith.constant 0 : i32
    %c0_i32_1 = arith.constant 0 : i32
    return %c0_i32, %c0_i32_0 : i32, i32
  }
  func.func @transform_6(%arg0: i32) -> (i32, i32) {
    %c0_i32 = arith.constant 0 : i32
    %c0_i32_0 = arith.constant 0 : i32
    %c0_i32_1 = arith.constant 0 : i32
    return %c0_i32, %c0_i32_0 : i32, i32
  }
  func.func @transform_7(%arg0: i32) -> (i32, i32) {
    %c0_i32 = arith.constant 0 : i32
    %c0_i32_0 = arith.constant 0 : i32
    %c0_i32_1 = arith.constant 0 : i32
    return %c0_i32, %c0_i32_0 : i32, i32
  }
  func.func @transform_8(%arg0: i32) -> (i32, i32, i32) {
    %c0_i32 = arith.constant 0 : i32
    %c0_i32_0 = arith.constant 0 : i32
    %c0_i32_1 = arith.constant 0 : i32
    return %arg0, %c0_i32, %c0_i32_0 : i32, i32, i32
  }
}

</mosaic_0001>

<bundles_post_ra>
// kernel: tpu_custom_call.1
= control target key start
LH: loop header
LB: loop body
LE: loop exit
PB: predicated region body
PF: predicated region fallthrough
CT: control target
= control target key end

     0   :  { %s13538_s0 = inlined_call_operand.vmem [shape: bf16[2,72,18,3], index: 0, kind: input, shape index: {}]   ;;  %s13539_s1 = inlined_call_operand.vmem [shape: bf16[48,8], index: 1, kind: input, shape index: {}]   ;;  %s13540_s2 = inlined_call_operand.vmem [shape: f32[1,8], index: 2, kind: input, shape index: {}]   ;;  %s13541_s3 = inlined_call_operand.vmem [shape: bf16[128,16], index: 3, kind: input, shape index: {}]   ;;  %s13542_s4 = inlined_call_operand.vmem [shape: f32[1,16], index: 4, kind: input, shape index: {}]   ;;  %s13543_s5 = inlined_call_operand.vmem [shape: bf16[256,256], index: 5, kind: input, shape index: {}]   ;;  %s13544_s6 = inlined_call_operand.vmem [shape: bf16[1024,16], index: 6, kind: input, shape index: {}]   ;;  %s13545_s7 = inlined_call_operand.vmem [shape: f32[1,16], index: 7, kind: input, shape index: {}]   ;;  %s13546_s8 = inlined_call_operand.hbm [shape: f32[2,1,16], index: 8, kind: output, shape index: {}]  }
   0x1   :  { %13603 = sst [smem:[#allocation52_spill]] %s13538_s0 }
   0x2   :  { %13604 = sst [smem:[#allocation53_spill]] %s13539_s1 }
   0x3   :  { %13 = vsyncpa [#allocation4], 0 }
   0x4   :  { %15 = vsyncpa [#allocation4 + $0x1], 0  ;;  %s9416_s27 = smov 0   ;;  %s9418_s28 = smov 0  }
   0x5   :  { %s9420_s29 = smov 0   ;;  %s9422_s30 = smov 0  }
   0x6 LB: > { %13605 = sst [smem:[#allocation6_spill]] %s9334_s29  ;;  %s9437_s9 = sadd.s32 4294967295, %s9338_s30   ;;  %s9338_s30 = sphi %s9422_s30, %s13964_s30   ;;  %s9334_s29 = sphi %s9420_s29, %s13966_s29   ;;  %s9330_s28 = sphi %s9418_s28, %s13968_s28   ;;  %s9326_s27 = sphi %s9416_s27, %s13967_s27  }
   0x7   : > { %s7234_s10 = sadd.s32 4294967294, %s9338_s30   ;;  %s9441_s11 = sadd.s32 1, %s9338_s30  }
   0x8   : > { %13606 = sst [smem:[#allocation7_spill]] %s9441_s11  ;;  %s201_s12 = sadd.s32 1, %s9334_s29 }
   0x9   : > { %s198_s13 = ssub.s32 %s9338_s30, %s9441_s11  ;;  %p211_p0 = scmp.ne.s32.totalorder %s9334_s29, %s9330_s28 }
   0xa   : > { %p199_p1 = scmp.eq.s32.totalorder %s198_s13, 0  ;;  %p212_p2 = scmp.eq.s32.totalorder %s9437_s9, 1 }
   0xb   : > { %p217_p3 = scmp.ne.s32.totalorder %s9330_s28, %s9326_s27  ;;  %p218_p4 = scmp.eq.s32.totalorder %s7234_s10, 1 }
   0xc   : > { %s9452_s14 = scalar_select %p199_p1, %s9334_s29, %s201_s12  }
   0xd   : > { %p9454_p5 = por %p212_p2, %p211_p0  ;;  %p9458_p6 = por %p218_p4, %p217_p3 }
   0xe   : > { %13607 = sst [smem:[#allocation8_spill]] %s9452_s14  ;;  %p7237_p7 = scmp.ge.s32.totalorder %s9338_s30, 1 }
   0xf   : > { %p265_p8 = scmp.lt.s32.totalorder %s9338_s30, 3 }
  0x11   : > { %p266_p9 = pnand %p7237_p7, %p265_p8 }
  0x13   : > { %269 = sbr.rel (%p266_p9) target bundleno = 2058 (0x80a), region = 52 }
  0x18   : > { %p298_p10 = scmp.lt.s32.totalorder %s9437_s9, 1  ;;  %s13610_s0 = sld [smem:[#allocation52_spill]]  ;;  %vm1513_vm0 = vcmask 1046528   ;;  %vm968_vm1 = vsmask.f32 7424  ;;  %vm4186_vm2 = vcmask 23552  }
  0x19   : > { %s13547_s22 = smov 12   ;;  %s13573_s23 = smov 9   ;;  %vm13581_vm3 = vcmask 48128   ;;  %vm13579_vm4 = vcmask 72704   ;;  %vm13580_vm5 = vcmask 97280   ;;  %vm4318_vm6 = vcmask 121856  }
  0x1a   : > { %s299_s17 = scalar_select %p298_p10, %s9437_s9, 1  ;;  %vm13569_vm7 = vcmask 146432   ;;  %vm13570_vm8 = vcmask 171008   ;;  %vm4417_vm9 = vcmask 195584   ;;  %vm4450_vm10 = vcmask 220160  }
  0x1b   : > { %s13577_s24 = smov 6   ;;  %s13559_s25 = smov 3   ;;  %vm4483_vm11 = vcmask 244736   ;;  %vm4516_vm12 = vcmask 269312   ;;  %vm4549_vm13 = vcmask 293888   ;;  %vm4582_vm14 = vcmask 318464  }
  0x1c   : > { %s8428_s18 = smul.u32 864, %s299_s17  ;;  %s13549_s26 = smov 15   ;;  %vm4615_vm15 = vcmask 343040  }
  0x1d   : > { %s13551_s10 = smov 18   ;;  %s13563_s12 = smov 21  }
  0x1e   : > { %s9469_s21 = scalar_lea.vmem %s13610_s0, %s8428_s18  ;;  %s13553_s13 = smov 24  }
  0x1f   : > { %v9472_v0 = vld [vmem:[%s9469_s21 + $0xf0] sm:$0xff]   ;;  %v9475_v1 = vld [vmem:[%s9469_s21 + $0xe4] sm:$0xff]   ;;  %v7275_v3 = vld [vmem:[%s9469_s21 + $0x1c0] sm:$0xf]  ;;  %s13557_s17 = smov 27   ;;  %s13575_s18 = smov 30  }
  0x20   : > { %1676 = vrot.lane.b32.xlu1 %v9472_v0, %s13547_s22  ;;  %v2121_v2 = vshll.u32 %v9472_v0, 16  ;;  %v8826_v4 = vld [vmem:[%s9469_s21 + $0x288] sm:$0xff]   ;;  %1674 = vrot.lane.b32.xlu0 %v9475_v1, %s13547_s22  ;;  %v2109_v5 = vshll.u32 %v9475_v1, 16  ;;  %v7336_v6 = vld [vmem:[%s9469_s21 + $0x1bc] sm:$0xe]  ;;  %v2107_v48 = vshrl.u32 %v9475_v1, 16 }
  0x21   : > { %v8820_v7 = vld [vmem:[%s9469_s21 + $0x1c4] ss:$0 sps:$4 sm:$0x11]   ;;  %v7752_v8 = vcombine.low %v7336_v6, %v7275_v3  ;;  %v7274_v9 = vld [vmem:[%s9469_s21 + $0x1bc] sm:$0xf]  ;;  %v1242_v18 = vshrl.u32 %v8826_v4, 16 }
  0x22   : > { %v7272_v10 = vld [vmem:[%s9469_s21 + $0x1b4] sm:$0xf]  ;;  %v1518_v11 = vrot.slane %v8820_v7, 1  ;;  %v7705_v12 = vcombine.low %v7274_v9, %v7275_v3  ;;  %v7335_v13 = vld [vmem:[%s9469_s21 + $0x1b0] sm:$0xe]  ;;  %v1244_v25 = vshll.u32 %v8826_v4, 16 }
  0x23   : > { %v8823_v14 = vld [vmem:[%s9469_s21 + $0x1b8] ss:$0 sps:$4 sm:$0x11]   ;;  %v1517_v15 = vrot.slane %v7752_v8, 1  ;;  %v7751_v16 = vcombine.low %v7335_v13, %v7272_v10  ;;  %v7271_v17 = vld [vmem:[%s9469_s21 + $0x1b0] sm:$0xf] }
  0x24   : > { %v1515_v19 = vrot.slane %v8823_v14, 1  ;;  %v7703_v20 = vcombine.low %v7271_v17, %v7272_v10  ;;  %v977_v21 = vshll.u32 %v8823_v14, 16  ;;  %v8827_v24 = vld [vmem:[%s9469_s21 + $0x290] ss:$0 sps:$4 sm:$0x11]   ;;  %v982_v26 = vshrl.u32 %v7705_v12, 16 }
  0x25   : > { %v1519_v22 = vsel %vm1513_vm0, %v1517_v15, %v1518_v11  ;;  %v1514_v23 = vrot.slane %v7751_v16, 1  ;;  %v984_v30 = vshll.u32 %v7705_v12, 16  ;;  %v1246_v32 = vrot.slane %v1244_v25, 1  ;;  %v8828_v35 = vld [vmem:[%s9469_s21 + $0x294] sm:$0xff]   ;;  %v7383_v38 = vld [vmem:[%s9469_s21 + $0xc] sm:$0xf] }
  0x26   : > { %1564 = vrot.lane.b32.xlu1 %v1519_v22, %s13573_s23  ;;  %v970_v27 = vshrl.u32 %v7703_v20, 16  ;;  %v972_v28 = vshll.u32 %v7703_v20, 16  ;;  %v979_v29 = vrot.slane %v977_v21, 1  ;;  %v1249_v33 = vshll.u32 %v8827_v24, 16  ;;  %v7384_v47 = vld [vmem:[%s9469_s21 + $0x10] sm:$0xf] }
  0x27   : > { %v1516_v31 = vsel %vm1513_vm0, %v1514_v23, %v1515_v19  ;;  %v989_v34 = vshll.u32 %v8820_v7, 16  ;;  %v986_v37 = vrot.slane %v984_v30, 1  ;;  %v1247_v39 = vor.u32 %v1246_v32, %v1242_v18  ;;  %v8829_v42 = vld [vmem:[%s9469_s21 + $0x29c] ss:$0 sps:$4 sm:$0x11]   ;;  %v9532_v30 = vld [vmem:[%s9469_s21 + $0x294] sm:$0xff]  }
  0x28   : > { %1562 = vrot.lane.b32.xlu0 %v1516_v31, %s13573_s23  ;;  %v974_v36 = vrot.slane %v972_v28, 1  ;;  %v1251_v40 = vrot.slane %v1249_v33, 1  ;;  %v1254_v43 = vshrl.u32 %v8828_v35, 16  ;;  %v1256_v46 = vshll.u32 %v8828_v35, 16  ;;  %v7386_v53 = vld [vmem:[%s9469_s21 + $0x18] sm:$0xf] }
  0x29   : > { %v991_v41 = vrot.slane %v989_v34, 1  ;;  %v987_v45 = vor.u32 %v986_v37, %v982_v26  ;;  %v1261_v50 = vshll.u32 %v8829_v42, 16  ;;  %v7783_v51 = vcombine.low %v7383_v38, %v7384_v47  ;;  %v9504_v52 = vld [vmem:[%s9469_s21 + $0x14] ss:$0 sps:$4 sm:$0x11]   ;;  %s13571_s19 = smov 33  }
  0x2a   : > { %v975_v44 = vor.u32 %v974_v36, %v970_v27  ;;  %v1252_v49 = vsel %vm968_vm1, %v1247_v39, %v1251_v40  ;;  %v1258_v55 = vrot.slane %v1256_v46, 1  ;;  %v7387_v56 = vld [vmem:[%s9469_s21 + $0x1c] sm:$0xf]  ;;  %v2111_v57 = vrot.slane %v2109_v5, 1  ;;  %v7447_v17 = vld [vmem:[%s9469_s21 + $0xc] sm:$0xe] }
  0x2b   : > { %1433 = vrot.lane.b32.xlu1 %v1252_v49, %s13577_s24  ;;  %v1263_v58 = vrot.slane %v1261_v50, 1  ;;  %v1835_v59 = vshrl.u32 %v7783_v51, 16  ;;  %v1837_v60 = vshll.u32 %v7783_v51, 16  ;;  %v1842_v61 = vshll.u32 %v9504_v52, 16  ;;  %v7448_v18 = vld [vmem:[%s9469_s21 + $0x18] sm:$0xe] }
  0x2c   : > { %v980_v54 = vsel %vm968_vm1, %v975_v44, %v979_v29  ;;  %v992_v62 = vsel %vm968_vm1, %v987_v45, %v991_v41  ;;  %v1259_v63 = vor.u32 %v1258_v55, %v1254_v43  ;;  %v7785_v1 = vcombine.low %v7386_v53, %v7387_v56  ;;  %v8833_v3 = vld [vmem:[%s9469_s21 + $0x20] ss:$0 sps:$4 sm:$0x11]   ;;  %v8834_v4 = vld [vmem:[%s9469_s21 + $0xec] ss:$0 sps:$4 sm:$0x11]  }
  0x2d   : > { %1161 = vrot.lane.b32.xlu0 %v980_v54, %s13559_s25  ;;  %v1839_v6 = vrot.slane %v1837_v60, 1  ;;  %v1844_v7 = vrot.slane %v1842_v61, 1  ;;  %v2119_v5 = vshrl.u32 %v9472_v0, 16  ;;  %v2123_v8 = vrot.slane %v2121_v2, 1  ;;  %v7277_v24 = vld [vmem:[%s9469_s21 + $0x1c8] sm:$0xf] }
  0x2e   : > { %v1264_v9 = vsel %vm968_vm1, %v1259_v63, %v1263_v58  ;;  %v1847_v10 = vshrl.u32 %v7785_v1, 16  ;;  %v1849_v11 = vshll.u32 %v7785_v1, 16  ;;  %v1854_v12 = vshll.u32 %v8833_v3, 16  ;;  %v8835_v13 = vld [vmem:[%s9469_s21 + $0xf8] ss:$0 sps:$4 sm:$0x11]  }
  0x2f   : > { %1435 = vrot.lane.b32.xlu1 %v1264_v9, %s13577_s24  ;;  %v1840_v14 = vor.u32 %v1839_v6, %v1835_v59  ;;  %v2112_v15 = vor.u32 %v2111_v57, %v2107_v48  ;;  %v2114_v16 = vshll.u32 %v8834_v4, 16  ;;  %v2126_v19 = vshll.u32 %v8835_v13, 16  ;;  %v9528_v29 = vld [vmem:[%s9469_s21 + $0x1cc] sm:$0xf]  ;;  %v7495_v41 = vld [vmem:[%s9469_s21 + $0x1bc] sm:$0xf] }
  0x30   : > { %v1851_v0 = vrot.slane %v1849_v11, 1  ;;  %v1856_v2 = vrot.slane %v1854_v12, 1  ;;  %v7831_v20 = vcombine.low %v7447_v17, %v7384_v47  ;;  %v7832_v23 = vcombine.low %v7448_v18, %v7387_v56  ;;  %v9536_v32 = vld [vmem:[%s9469_s21 + $0x1d0] ss:$0 sps:$4 sm:$0x11]   ;;  %v8846_v45 = vld [vmem:[%s9469_s21 + $0x2a0] sm:$0xff]  }
  0x31   : > { %1163 = vrot.lane.b32.xlu0 %v992_v62, %s13559_s25  ;;  %v1845_v21 = vsel %vm968_vm1, %v1840_v14, %v1844_v7  ;;  %v2116_v22 = vrot.slane %v2114_v16, 1  ;;  %v2124_v26 = vor.u32 %v2123_v8, %v2119_v5  ;;  %v2128_v27 = vrot.slane %v2126_v19, 1  ;;  %v9546_v44 = vld [vmem:[%s9469_s21 + $0x1c0] sm:$0xf]  ;;  %v7280_v49 = vld [vmem:[%s9469_s21 + $0x1d4] sm:$0xf] }
  0x32   : > { %v1852_v25 = vor.u32 %v1851_v0, %v1847_v10  ;;  %v2379_v28 = vrot.slane %v9504_v52, 1  ;;  %v7707_v31 = vcombine.low %v7277_v24, %v9528_v29  ;;  %v2378_v35 = vrot.slane %v7831_v20, 1  ;;  %v9552_v48 = vld [vmem:[%s9469_s21 + $0x1c4] ss:$0 sps:$4 sm:$0x11]   ;;  %v8851_v12 = vld [vmem:[%s9469_s21 + $0x2ac] sm:$0xff]  }
  0x33   : > { %v2117_v34 = vsel %vm968_vm1, %v2112_v15, %v2116_v22  ;;  %v2382_v36 = vrot.slane %v8833_v3, 1  ;;  %v2381_v37 = vrot.slane %v7832_v23, 1  ;;  %v2973_v38 = vshll.u32 %v9532_v30, 16  ;;  %v9557_v51 = vld [vmem:[%s9469_s21 + $0x1d8] sm:$0xf]  ;;  %v8841_v8 = vld [vmem:[%s9469_s21 + $0x2a0] sm:$0xff]  }
  0x34   : > { %v1857_v33 = vsel %vm968_vm1, %v1852_v25, %v1856_v2  ;;  %v996_v39 = vshll.u32 %v7707_v31, 16  ;;  %v1001_v40 = vshll.u32 %v9536_v32, 16  ;;  %v2129_v42 = vsel %vm968_vm1, %v2124_v26, %v2128_v27  ;;  %v9563_v56 = vld [vmem:[%s9469_s21 + $0x1dc] ss:$0 sps:$4 sm:$0x11]   ;;  %s13567_s20 = smov 36  }
  0x35   : > { %2026 = vrot.lane.b32.xlu0 %v1845_v21, %s13549_s26  ;;  %2028 = vrot.lane.b32.xlu1 %v1857_v33, %s13549_s26  ;;  %v994_v43 = vshrl.u32 %v7707_v31, 16  ;;  %v7863_v47 = vcombine.low %v7495_v41, %v9546_v44  ;;  %v2380_v50 = vsel %vm1513_vm0, %v2378_v35, %v2379_v28  ;;  %v2383_v52 = vsel %vm1513_vm0, %v2381_v37, %v2382_v36  ;;  %v8847_v63 = vld [vmem:[%s9469_s21 + $0x2a8] ss:$0 sps:$4 sm:$0x11]   ;;  %v9574_v11 = vld [vmem:[%s9469_s21 + $0x1cc] sm:$0xf] }
  0x36   : > { %v998_v46 = vrot.slane %v996_v39, 1  ;;  %v1003_v53 = vrot.slane %v1001_v40, 1  ;;  %v2706_v55 = vshll.u32 %v9552_v48, 16  ;;  %v7709_v59 = vcombine.low %v7280_v49, %v9557_v51  ;;  %v7498_v7 = vld [vmem:[%s9469_s21 + $0x1c8] sm:$0xf]  ;;  %s13611_s1 = sld [smem:[#allocation53_spill]] }
  0x37   : > { %v2701_v54 = vshll.u32 %v7863_v47, 16  ;;  %v2699_v58 = vshrl.u32 %v7863_v47, 16  ;;  %v1268_v60 = vshll.u32 %v8846_v45, 16  ;;  %v1013_v62 = vshll.u32 %v9563_v56, 16  ;;  %v7559_v49 = vld [vmem:[%s9469_s21 + $0x1bc] sm:$0xe] }
  0x38   : > { %v999_v57 = vor.u32 %v998_v46, %v994_v43  ;;  %v1266_v1 = vshrl.u32 %v8846_v45, 16  ;;  %v2708_v3 = vrot.slane %v2706_v55, 1  ;;  %v1006_v4 = vshrl.u32 %v7709_v59, 16  ;;  %v9580_v17 = vld [vmem:[%s9469_s21 + $0x1d0] ss:$0 sps:$4 sm:$0x11]  }
  0x39   : > { %2298 = vrot.lane.b32.xlu0 %v2117_v34, %s13551_s10  ;;  %2300 = vrot.lane.b32.xlu1 %v2129_v42, %s13551_s10  ;;  %v2703_v61 = vrot.slane %v2701_v54, 1  ;;  %v1008_v6 = vshll.u32 %v7709_v59, 16  ;;  %v2971_v5 = vshrl.u32 %v9532_v30, 16  ;;  %v1270_v9 = vrot.slane %v1268_v60, 1  ;;  %v7337_v34 = vld [vmem:[%s9469_s21 + $0x1c8] sm:$0xe] }
  0x3a   : > { %v1273_v10 = vshll.u32 %v8847_v63, 16  ;;  %v1004_v13 = vsel %vm968_vm1, %v999_v57, %v1003_v53  ;;  %v7865_v16 = vcombine.low %v7498_v7, %v9574_v11  ;;  %v1015_v18 = vrot.slane %v1013_v62, 1  ;;  %v8850_v0 = vld [vmem:[%s9469_s21 + $0x29c] ss:$0 sps:$4 sm:$0x11]   ;;  %s13628_s0 = smov 33  }
  0x3b   : > { %v2704_v14 = vor.u32 %v2703_v61, %v2699_v58  ;;  %v1010_v15 = vrot.slane %v1008_v6, 1  ;;  %v2718_v21 = vshll.u32 %v9580_v17, 16  ;;  %v1271_v22 = vor.u32 %v1270_v9, %v1266_v1  ;;  %v8852_v24 = vld [vmem:[%s9469_s21 + $0x2b4] ss:$0 sps:$4 sm:$0x11]   ;;  %s13640_s14 = smov 6  }
  0x3c   : > { %v2711_v19 = vshrl.u32 %v7865_v16, 16  ;;  %v2713_v20 = vshll.u32 %v7865_v16, 16  ;;  %v2975_v23 = vrot.slane %v2973_v38, 1  ;;  %v1275_v26 = vrot.slane %v1273_v10, 1  ;;  %v7338_v55 = vld [vmem:[%s9469_s21 + $0x1d4] sm:$0xe] }
  0x3d   : > { %2426 = vrot.lane.b32.xlu0 %v2380_v50, %s13563_s12  ;;  %2428 = vrot.lane.b32.xlu1 %v2383_v52, %s13563_s12  ;;  %v1011_v2 = vor.u32 %v1010_v15, %v1006_v4  ;;  %v2709_v25 = vsel %vm968_vm1, %v2704_v14, %v2708_v3  ;;  %v2978_v28 = vshll.u32 %v8850_v0, 16  ;;  %v1280_v33 = vshll.u32 %v8851_v12, 16  ;;  %v8854_v40 = vld [vmem:[%s9469_s21 + $0x2a8] ss:$0 sps:$4 sm:$0x11]   ;;  %s9360_s29 = smov 32  }
  0x3e   : > { %v2715_v27 = vrot.slane %v2713_v20, 1  ;;  %v2720_v36 = vrot.slane %v2718_v21, 1  ;;  %v1278_v37 = vshrl.u32 %v8851_v12, 16  ;;  %v1285_v39 = vshll.u32 %v8852_v24, 16  ;;  %v7389_v60 = vld [vmem:[%s9469_s21 + $0x24] sm:$0xf] }
  0x3f   : > { %v1016_v31 = vsel %vm968_vm1, %v1011_v2, %v1015_v18  ;;  %v1282_v38 = vrot.slane %v1280_v33, 1  ;;  %v1276_v41 = vsel %vm968_vm1, %v1271_v22, %v1275_v26  ;;  %v2976_v42 = vor.u32 %v2975_v23, %v2971_v5  ;;  %v9607_v62 = vld [vmem:[%s9469_s21 + $0x28] sm:$0xf]  ;;  %v9630_v15 = vld [vmem:[%s9469_s21 + $0x34] sm:$0xf]  ;;  %v8857_v18 = vld [vmem:[%s9469_s21 + $0xfc] sm:$0xff]  }
  0x40   : > { %v2716_v35 = vor.u32 %v2715_v27, %v2711_v19  ;;  %v2980_v43 = vrot.slane %v2978_v28, 1  ;;  %v7753_v45 = vcombine.low %v7337_v34, %v9528_v29  ;;  %v2983_v46 = vshrl.u32 %v8841_v8, 16  ;;  %v7560_v4 = vld [vmem:[%s9469_s21 + $0x1c8] sm:$0xe]  ;;  %v7610_v24 = vld [vmem:[%s9469_s21 + $0x24] sm:$0xf] }
  0x41   : > { %2538 = vrot.lane.b32.xlu0 %v9532_v30, %s13553_s13  ;;  %1165 = vrot.lane.b32.xlu1 %v1004_v13, %s13559_s25  ;;  %v2985_v30 = vshll.u32 %v8841_v8, 16  ;;  %v1283_v52 = vor.u32 %v1282_v38, %v1278_v37  ;;  %v1287_v53 = vrot.slane %v1285_v39, 1  ;;  %v2990_v54 = vshll.u32 %v8854_v40, 16  ;;  %v9625_v13 = vld [vmem:[%s9469_s21 + $0x2c] ss:$0 sps:$4 sm:$0x11]  }
  0x42   : > { %v2721_v50 = vsel %vm968_vm1, %v2716_v35, %v2720_v36  ;;  %v2981_v57 = vsel %vm968_vm1, %v2976_v42, %v2980_v43  ;;  %v1520_v58 = vrot.slane %v7753_v45, 1  ;;  %v1521_v29 = vrot.slane %v9536_v32, 1  ;;  %v9639_v20 = vld [vmem:[%s9469_s21 + $0x20] ss:$0 sps:$4 sm:$0x11]   ;;  %v8859_v34 = vld [vmem:[%s9469_s21 + $0xf0] sm:$0xff]  }
  0x43   : > { %v2987_v47 = vrot.slane %v2985_v30, 1  ;;  %v7911_v59 = vcombine.low %v7559_v49, %v9546_v44  ;;  %v1288_v63 = vsel %vm968_vm1, %v1283_v52, %v1287_v53  ;;  %v2992_v1 = vrot.slane %v2990_v54, 1  ;;  %v8868_v28 = vld [vmem:[%s9469_s21 + $0x104] ss:$0 sps:$4 sm:$0x11]   ;;  %v8860_v38 = vld [vmem:[%s9469_s21 + $0x108] sm:$0xff]  }
  0x44   : > { %v7754_v3 = vcombine.low %v7338_v55, %v9557_v51  ;;  %v7787_v6 = vcombine.low %v7389_v60, %v9607_v62  ;;  %v1522_v32 = vsel %vm1513_vm0, %v1520_v58, %v1521_v29  ;;  %v3243_v7 = vrot.slane %v9552_v48, 1  ;;  %v9620_v51 = vld [vmem:[%s9469_s21 + $0x1c] sm:$0xf]  ;;  %v7392_v48 = vld [vmem:[%s9469_s21 + $0x30] sm:$0xf]  ;;  %s9361_s11 = smov 96  }
  0x45   : > { %2540 = vrot.lane.b32.xlu0 %v8841_v8, %s13553_s13  ;;  %2890 = vrot.lane.b32.xlu1 %v2709_v25, %s13557_s17  ;;  %v2988_v61 = vor.u32 %v2987_v47, %v2983_v46  ;;  %v3242_v44 = vrot.slane %v7911_v59, 1  ;;  %v7912_v5 = vcombine.low %v7560_v4, %v9574_v11  ;;  %v7607_v8 = vld [vmem:[%s9469_s21 + $0x18] sm:$0xf]  ;;  %v1524_v12 = vrot.slane %v9563_v56, 1  ;;  %v9646_v25 = vld [vmem:[%s9469_s21 + $0x28] sm:$0xf] }
  0x46   : > { %v1523_v10 = vrot.slane %v7754_v3, 1  ;;  %v1861_v14 = vshll.u32 %v7787_v6, 16  ;;  %v7943_v16 = vcombine.low %v7607_v8, %v9620_v51  ;;  %v3246_v56 = vrot.slane %v9580_v17, 1  ;;  %v9649_v17 = vld [vmem:[%s9469_s21 + $0x38] ss:$0 sps:$4 sm:$0x11]  }
  0x47   : > { %v2993_v9 = vsel %vm968_vm1, %v2988_v61, %v2992_v1  ;;  %v3244_v11 = vsel %vm1513_vm0, %v3242_v44, %v3243_v7  ;;  %v3245_v0 = vrot.slane %v7912_v5, 1  ;;  %v1859_v19 = vshrl.u32 %v7787_v6, 16  ;;  %v9662_v49 = vld [vmem:[%s9469_s21 + $0x2c] ss:$0 sps:$4 sm:$0x11]   ;;  %v8863_v59 = vld [vmem:[%s9469_s21 + $0xfc] sm:$0xff]  }
  0x48   : > { %v1525_v2 = vsel %vm1513_vm0, %v1523_v10, %v1524_v12  ;;  %v7789_v21 = vcombine.low %v7392_v48, %v9630_v15  ;;  %v1863_v22 = vrot.slane %v1861_v14, 1  ;;  %v1866_v23 = vshll.u32 %v9625_v13, 16  ;;  %v8871_v53 = vld [vmem:[%s9469_s21 + $0xf8] ss:$0 sps:$4 sm:$0x11]  }
  0x49   : > { %1167 = vrot.lane.b32.xlu0 %v1016_v31, %s13559_s25  ;;  %1437 = vrot.lane.b32.xlu1 %v1276_v41, %s13577_s24  ;;  %v3565_v26 = vshll.u32 %v7943_v16, 16  ;;  %v2133_v27 = vshll.u32 %v8857_v18, 16  ;;  %v3247_v30 = vsel %vm1513_vm0, %v3245_v0, %v3246_v56  ;;  %v7945_v33 = vcombine.low %v7610_v24, %v9646_v25  ;;  %v8872_v58 = vld [vmem:[%s9469_s21 + $0x110] ss:$0 sps:$4 sm:$0x11]  }
  0x4a   : > { %v1873_v31 = vshll.u32 %v7789_v21, 16  ;;  %v1868_v35 = vrot.slane %v1866_v23, 1  ;;  %v1864_v36 = vor.u32 %v1863_v22, %v1859_v19  ;;  %v3563_v37 = vshrl.u32 %v7943_v16, 16  ;;  %v8874_v10 = vld [vmem:[%s9469_s21 + $0x104] ss:$0 sps:$4 sm:$0x11]  }
  0x4b   : > { %v3567_v39 = vrot.slane %v3565_v26, 1  ;;  %v3570_v40 = vshll.u32 %v9639_v20, 16  ;;  %v1878_v41 = vshll.u32 %v9649_v17, 16  ;;  %v2131_v42 = vshrl.u32 %v8857_v18, 16  ;;  %v7449_v48 = vld [vmem:[%s9469_s21 + $0x24] sm:$0xe] }
  0x4c   : > { %v2135_v43 = vrot.slane %v2133_v27, 1  ;;  %v2138_v45 = vshll.u32 %v8868_v28, 16  ;;  %v1871_v46 = vshrl.u32 %v7789_v21, 16  ;;  %v1875_v47 = vrot.slane %v1873_v31, 1  ;;  %v7671_v27 = vld [vmem:[%s9469_s21 + $0x18] sm:$0xe] }
  0x4d   : > { %2892 = vrot.lane.b32.xlu0 %v2721_v50, %s13557_s17  ;;  %3162 = vrot.lane.b32.xlu1 %v2981_v57, %s13575_s18  ;;  %v3577_v50 = vshll.u32 %v7945_v33, 16  ;;  %v3837_v52 = vshll.u32 %v8859_v34, 16  ;;  %v1869_v54 = vsel %vm968_vm1, %v1864_v36, %v1868_v35  ;;  %v3568_v55 = vor.u32 %v3567_v39, %v3563_v37  ;;  %v7283_v28 = vld [vmem:[%s9469_s21 + $0x1e0] sm:$0xf]  ;;  %v7501_v35 = vld [vmem:[%s9469_s21 + $0x1d4] sm:$0xf] }
  0x4e   : > { %v3572_v57 = vrot.slane %v3570_v40, 1  ;;  %v2145_v29 = vshll.u32 %v8860_v38, 16  ;;  %v1880_v60 = vrot.slane %v1878_v41, 1  ;;  %v2136_v61 = vor.u32 %v2135_v43, %v2131_v42  ;;  %v9693_v36 = vld [vmem:[%s9469_s21 + $0x1d8] sm:$0xf] }
  0x4f   : > { %v1876_v1 = vor.u32 %v1875_v47, %v1871_v46  ;;  %v3575_v3 = vshrl.u32 %v7945_v33, 16  ;;  %v3579_v4 = vrot.slane %v3577_v50, 1  ;;  %v3582_v6 = vshll.u32 %v9662_v49, 16  ;;  %v7450_v33 = vld [vmem:[%s9469_s21 + $0x30] sm:$0xe] }
  0x50   : > { %v3835_v44 = vshrl.u32 %v8859_v34, 16  ;;  %v3839_v7 = vrot.slane %v3837_v52, 1  ;;  %v3842_v5 = vshll.u32 %v8871_v53, 16  ;;  %v3573_v8 = vsel %vm968_vm1, %v3568_v55, %v3572_v57  ;;  %v7286_v41 = vld [vmem:[%s9469_s21 + $0x1ec] sm:$0xf] }
  0x51   : > { %1439 = vrot.lane.b32.xlu0 %v1288_v63, %s13577_s24  ;;  %1566 = vrot.lane.b32.xlu1 %v1522_v32, %s13573_s23  ;;  %v2140_v63 = vrot.slane %v2138_v45, 1  ;;  %v3849_v32 = vshll.u32 %v8863_v59, 16  ;;  %v2143_v14 = vshrl.u32 %v8860_v38, 16  ;;  %v3580_v16 = vor.u32 %v3579_v4, %v3575_v3  ;;  %v9704_v43 = vld [vmem:[%s9469_s21 + $0x1f0] sm:$0xf] }
  0x52   : > { %v2147_v0 = vrot.slane %v2145_v29, 1  ;;  %v3844_v56 = vrot.slane %v3842_v5, 1  ;;  %v3847_v19 = vshrl.u32 %v8863_v59, 16  ;;  %v3840_v22 = vor.u32 %v3839_v7, %v3835_v44  ;;  %v9718_v29 = vld [vmem:[%s9469_s21 + $0x1dc] ss:$0 sps:$4 sm:$0x11]  }
  0x53   : > { %v2141_v12 = vsel %vm968_vm1, %v2136_v61, %v2140_v63  ;;  %v3851_v21 = vrot.slane %v3849_v32, 1  ;;  %v7833_v24 = vcombine.low %v7449_v48, %v9607_v62  ;;  %v3854_v26 = vshll.u32 %v8874_v10, 16  ;;  %v7504_v61 = vld [vmem:[%s9469_s21 + $0x1e0] sm:$0xf]  ;;  %v9724_v63 = vld [vmem:[%s9469_s21 + $0x1e4] sm:$0xf] }
  0x54   : > { %v2148_v31 = vor.u32 %v2147_v0, %v2143_v14  ;;  %v3845_v62 = vsel %vm968_vm1, %v3840_v22, %v3844_v56  ;;  %v7991_v39 = vcombine.low %v7671_v27, %v9620_v51  ;;  %v7834_v47 = vcombine.low %v7450_v33, %v9630_v15  ;;  %v9730_v32 = vld [vmem:[%s9469_s21 + $0x1f4] ss:$0 sps:$4 sm:$0x11]   ;;  %v8877_v7 = vld [vmem:[%s9469_s21 + $0x2ac] sm:$0xff]  }
  0x55   : > { %3164 = vrot.lane.b32.xlu0 %v2993_v9, %s13575_s18  ;;  %3290 = vrot.lane.b32.xlu1 %v3244_v11, %s13571_s19  ;;  %v2150_v9 = vshll.u32 %v8872_v58, 16  ;;  %v1881_v11 = vsel %vm968_vm1, %v1876_v1, %v1880_v60  ;;  %v2384_v37 = vrot.slane %v7833_v24, 1  ;;  %v3852_v42 = vor.u32 %v3851_v21, %v3847_v19  ;;  %v9742_v56 = vld [vmem:[%s9469_s21 + $0x1e8] ss:$0 sps:$4 sm:$0x11]  }
  0x56   : > { %v3856_v46 = vrot.slane %v3854_v26, 1  ;;  %v7867_v50 = vcombine.low %v7501_v35, %v9693_v36  ;;  %v4107_v51 = vrot.slane %v9639_v20, 1  ;;  %v7713_v57 = vcombine.low %v7286_v41, %v9704_v43  ;;  %v8891_v24 = vld [vmem:[%s9469_s21 + $0x2c4] sm:$0xff]   ;;  %v8890_v27 = vld [vmem:[%s9469_s21 + $0x2b4] ss:$0 sps:$4 sm:$0x11]  }
  0x57   : > { %v2152_v23 = vrot.slane %v2150_v9, 1  ;;  %v2388_v15 = vrot.slane %v9649_v17, 1  ;;  %v4110_v3 = vrot.slane %v9662_v49, 1  ;;  %v7869_v10 = vcombine.low %v7504_v61, %v9724_v63 }
  0x58   : > { %v3857_v20 = vsel %vm968_vm1, %v3852_v42, %v3856_v46  ;;  %v2725_v60 = vshll.u32 %v7867_v50, 16  ;;  %v1032_v44 = vshll.u32 %v7713_v57, 16  ;;  %v2730_v14 = vshll.u32 %v9718_v29, 16 }
  0x59   : > { %1568 = vrot.lane.b32.xlu0 %v1525_v2, %s13573_s23  ;;  %1678 = vrot.lane.b32.xlu1 %v8857_v18, %s13547_s22  ;;  %v3584_v18 = vrot.slane %v3582_v6, 1  ;;  %v2385_v2 = vrot.slane %v9625_v13, 1  ;;  %v2153_v45 = vsel %vm968_vm1, %v2148_v31, %v2152_v23  ;;  %v1030_v48 = vshrl.u32 %v7713_v57, 16 }
  0x5a   : > { %v2727_v49 = vrot.slane %v2725_v60, 1  ;;  %v1037_v0 = vshll.u32 %v9730_v32, 16  ;;  %v2997_v19 = vshll.u32 %v8877_v7, 16  ;;  %v2732_v31 = vrot.slane %v2730_v14, 1  ;;  %v7395_v14 = vld [vmem:[%s9469_s21 + $0x3c] sm:$0xf] }
  0x5b   : > { %v3585_v13 = vsel %vm968_vm1, %v3580_v16, %v3584_v18  ;;  %v2386_v53 = vsel %vm1513_vm0, %v2384_v37, %v2385_v2  ;;  %v1034_v18 = vrot.slane %v1032_v44, 1  ;;  %v2737_v2 = vshll.u32 %v7869_v10, 16 }
  0x5c   : > { %v1039_v33 = vrot.slane %v1037_v0, 1  ;;  %v1304_v41 = vshll.u32 %v8891_v24, 16 }
  0x5d   : > { %3292 = vrot.lane.b32.xlu0 %v3247_v30, %s13571_s19  ;;  %3402 = vrot.lane.b32.xlu1 %v8859_v34, %s13567_s20  ;;  %v9685_v30 = vld [vmem:[%s9469_s21 + $0x1e4] sm:$0xf]  ;;  %v1035_v35 = vor.u32 %v1034_v18, %v1030_v48  ;;  %v2739_v37 = vrot.slane %v2737_v2, 1  ;;  %v9776_v48 = vld [vmem:[%s9469_s21 + $0x40] sm:$0xf]  ;;  %v3249_v2 = vrot.slane %v9718_v29, 1 }
  0x5e   : > { %v7672_v34 = vld [vmem:[%s9469_s21 + $0x24] sm:$0xe]  ;;  %v7711_v40 = vcombine.low %v7283_v28, %v9685_v30 }
  0x5f   : > { %v7992_v52 = vcombine.low %v7672_v34, %v9646_v25  ;;  %v2387_v25 = vrot.slane %v7834_v47, 1  ;;  %v8881_v34 = vld [vmem:[%s9469_s21 + $0x2b8] sm:$0xff]  }
  0x60   : > { %v1020_v55 = vshll.u32 %v7711_v40, 16  ;;  %v1018_v4 = vshrl.u32 %v7711_v40, 16  ;;  %v8892_v40 = vld [vmem:[%s9469_s21 + $0x2cc] ss:$0 sps:$4 sm:$0x11]  }
  0x61   : > { %1680 = vrot.lane.b32.xlu0 %v8860_v38, %s13547_s22  ;;  %2030 = vrot.lane.b32.xlu1 %v1869_v54, %s13549_s26  ;;  %s13565_s22 = smov 39   ;;  %v9699_v38 = vld [vmem:[%s9469_s21 + $0x1e8] ss:$0 sps:$4 sm:$0x11]   ;;  %v4106_v54 = vrot.slane %v7991_v39, 1  ;;  %v4109_v1 = vrot.slane %v7992_v52, 1 }
  0x62   : > { %v1025_v58 = vshll.u32 %v9699_v38, 16  ;;  %v1022_v6 = vrot.slane %v1020_v55, 1  ;;  %v2742_v39 = vshll.u32 %v9742_v56, 16  ;;  %v3009_v52 = vshll.u32 %v8881_v34, 16  ;;  %v7339_v55 = vld [vmem:[%s9469_s21 + $0x1e0] sm:$0xe] }
  0x63   : > { %v4108_v17 = vsel %vm1513_vm0, %v4106_v54, %v4107_v51  ;;  %v4111_v21 = vsel %vm1513_vm0, %v4109_v1, %v4110_v3  ;;  %v3002_v51 = vshll.u32 %v8890_v27, 16  ;;  %v1302_v54 = vshrl.u32 %v8891_v24, 16  ;;  %v7561_v3 = vld [vmem:[%s9469_s21 + $0x1d4] sm:$0xe]  ;;  %v8953_v24 = vld [vmem:[%s13611_s1 + $0x8] sm:$0xff]  }
  0x64   : > { %v1027_v5 = vrot.slane %v1025_v58, 1  ;;  %v1023_v16 = vor.u32 %v1022_v6, %v1018_v4  ;;  %v1306_v58 = vrot.slane %v1304_v41, 1  ;;  %v7755_v1 = vcombine.low %v7339_v55, %v9685_v30 }
  0x65   : > { %3404 = vrot.lane.b32.xlu0 %v8863_v59, %s13567_s20  ;;  %3754 = vrot.lane.b32.xlu1 %v3573_v8, %s13565_s22  ;;  %v8886_v59 = vld [vmem:[%s9469_s21 + $0x2b8] sm:$0xff]   ;;  %v2723_v8 = vshrl.u32 %v7867_v50, 16  ;;  %v2999_v50 = vrot.slane %v2997_v19, 1  ;;  %v3004_v61 = vrot.slane %v3002_v51, 1  ;;  %v3007_v4 = vshrl.u32 %v8881_v34, 16 }
  0x66   : > { %v1292_v9 = vshll.u32 %v8886_v59, 16  ;;  %v1290_v22 = vshrl.u32 %v8886_v59, 16  ;;  %v1028_v28 = vsel %vm968_vm1, %v1023_v16, %v1027_v5  ;;  %v1309_v59 = vshll.u32 %v8892_v40, 16  ;;  %v7562_v19 = vld [vmem:[%s9469_s21 + $0x1e0] sm:$0xe] }
  0x67   : > { %v3011_v6 = vrot.slane %v3009_v52, 1  ;;  %v7913_v30 = vcombine.low %v7561_v3, %v9693_v36  ;;  %v1530_v27 = vrot.slane %v9730_v32, 1  ;;  %v3252_v41 = vrot.slane %v9742_v56, 1  ;;  %v9825_v52 = vld [vmem:[%s9469_s21 + $0x38] ss:$0 sps:$4 sm:$0x11]  }
  0x68   : > { %v1294_v23 = vrot.slane %v1292_v9, 1  ;;  %v1311_v5 = vrot.slane %v1309_v59, 1  ;;  %v7340_v9 = vld [vmem:[%s9469_s21 + $0x1ec] sm:$0xe]  ;;  %v3594_v3 = vshll.u32 %v9825_v52, 16 }
  0x69   : > { %2032 = vrot.lane.b32.xlu0 %v1881_v11, %s13549_s26  ;;  %2302 = vrot.lane.b32.xlu1 %v2141_v12, %s13551_s10  ;;  %s13561_s26 = smov 42   ;;  %v2389_v12 = vsel %vm1513_vm0, %v2387_v25, %v2388_v15  ;;  %v8887_v11 = vld [vmem:[%s9469_s21 + $0x2c0] ss:$0 sps:$4 sm:$0x11]   ;;  %v2744_v15 = vrot.slane %v2742_v39, 1  ;;  %v3012_v16 = vor.u32 %v3011_v6, %v3007_v4  ;;  %v7756_v18 = vcombine.low %v7340_v9, %v9704_v43 }
  0x6a   : > { %v1297_v26 = vshll.u32 %v8887_v11, 16  ;;  %v1295_v47 = vor.u32 %v1294_v23, %v1290_v22  ;;  %v3248_v0 = vrot.slane %v7913_v30, 1  ;;  %v9786_v22 = vld [vmem:[%s9469_s21 + $0x44] ss:$0 sps:$4 sm:$0x11]  }
  0x6b   : > { %v7613_v23 = vld [vmem:[%s9469_s21 + $0x30] sm:$0xf]  ;;  %v9794_v43 = vld [vmem:[%s9469_s21 + $0x34] sm:$0xf]  ;;  %v8900_v4 = vld [vmem:[%s9469_s21 + $0x120] sm:$0xff]  }
  0x6c   : > { %v1299_v42 = vrot.slane %v1297_v26, 1  ;;  %v1529_v26 = vrot.slane %v7756_v18, 1  ;;  %v7947_v32 = vcombine.low %v7613_v23, %v9794_v43  ;;  %v9845_v6 = vld [vmem:[%s9469_s21 + $0x44] ss:$0 sps:$4 sm:$0x11]   ;;  %v2169_v9 = vshll.u32 %v8900_v4, 16 }
  0x6d   : > { %3756 = vrot.lane.b32.xlu0 %v3585_v13, %s13565_s22  ;;  %4026 = vrot.lane.b32.xlu1 %v3845_v62, %s13561_s26  ;;  %v2728_v13 = vor.u32 %v2727_v49, %v2723_v8  ;;  %v2735_v62 = vshrl.u32 %v7869_v10, 16  ;;  %v1527_v49 = vrot.slane %v9699_v38, 1  ;;  %v8911_v18 = vld [vmem:[%s9469_s21 + $0x110] ss:$0 sps:$4 sm:$0x11]  }
  0x6e   : > { %v1300_v25 = vsel %vm968_vm1, %v1295_v47, %v1299_v42 }
  0x6f   : > { %v2733_v46 = vsel %vm968_vm1, %v2728_v13, %v2732_v31  ;;  %v2740_v57 = vor.u32 %v2739_v37, %v2735_v62  ;;  %v8956_v13 = vld [vmem:[%s13611_s1] sm:$0xff]   ;;  %v7398_v31 = vld [vmem:[%s9469_s21 + $0x48] sm:$0xf]  ;;  %v1531_v62 = vsel %vm1513_vm0, %v1529_v26, %v1530_v27  ;;  %v8897_v37 = vld [vmem:[%s9469_s21 + $0x114] sm:$0xff]  }
  0x70   : > { %v2157_v56 = vshll.u32 %v8897_v37, 16 }
  0x71   : > { %2304 = vrot.lane.b32.xlu0 %v2153_v45, %s13551_s10  ;;  %2430 = vrot.lane.b32.xlu1 %v2386_v53, %s13563_s12  ;;  %s13555_s10 = smov 45   ;;  %v2995_v45 = vshrl.u32 %v8877_v7, 16  ;;  %v1040_v53 = vsel %vm968_vm1, %v1035_v35, %v1039_v33  ;;  %v2745_v44 = vsel %vm968_vm1, %v2740_v57, %v2744_v15  ;;  %v9805_v33 = vld [vmem:[%s9469_s21 + $0x4c] sm:$0xf] }
  0x72   : > { %v7793_v42 = vcombine.low %v7398_v31, %v9805_v33  ;;  %v9833_v15 = vld [vmem:[%s9469_s21 + $0x50] ss:$0 sps:$4 sm:$0x11]  }
  0x73   : > { %v3000_v60 = vor.u32 %v2999_v50, %v2995_v45  ;;  %v7616_v45 = vld [vmem:[%s9469_s21 + $0x3c] sm:$0xf] }
  0x75   : > { %4028 = vrot.lane.b32.xlu0 %v3857_v20, %s13561_s26  ;;  %4154 = vrot.lane.b32.xlu1 %v4108_v17, %s13555_s10  ;;  %v8894_v20 = vld [vmem:[%s9469_s21 + $0x2c0] ss:$0 sps:$4 sm:$0x11]   ;;  %v8949_v17 = vld [vmem:[%s13611_s1 + $0x10] sm:$0xff]   ;;  %v3005_v10 = vsel %vm968_vm1, %v3000_v60, %v3004_v61  ;;  %s13631_s1 = smov 36  }
  0x76   : > { %v3014_v8 = vshll.u32 %v8894_v20, 16  ;;  %8366 = vmatprep.subr.bf16.mxu0 %v8949_v17  ;;  %v3587_v20 = vshrl.u32 %v7947_v32, 16 }
  0x77   : > { %8367 = vmatpush3.bf16.msra.mxu0 %v8949_v17 }
  0x78   : > { %v3016_v36 = vrot.slane %v3014_v8, 1  ;;  %8368 = vmatprep.subr.bf16.mxu0 %v8953_v24  ;;  %v1902_v8 = vshll.u32 %v9833_v15, 16 }
  0x79   : > { %2432 = vrot.lane.b32.xlu0 %v2389_v12, %s13563_s12  ;;  %2542 = vrot.lane.b32.xlu1 %v8877_v7, %s13553_s13  ;;  %v1307_v7 = vor.u32 %v1306_v58, %v1302_v54  ;;  %v1526_v12 = vrot.slane %v7755_v1, 1  ;;  %v9829_v54 = vld [vmem:[%s9469_s21 + $0x108] sm:$0xff]   ;;  %v1897_v58 = vshll.u32 %v7793_v42, 16 }
  0x7a   : > { %v3017_v29 = vsel %vm968_vm1, %v3012_v16, %v3016_v36  ;;  %v3861_v17 = vshll.u32 %v9829_v54, 16  ;;  %v3596_v36 = vrot.slane %v3594_v3, 1  ;;  %v3859_v27 = vshrl.u32 %v9829_v54, 16 }
  0x7b   : > { %v1312_v11 = vsel %vm968_vm1, %v1307_v7, %v1311_v5  ;;  %v1528_v38 = vsel %vm1513_vm0, %v1526_v12, %v1527_v49  ;;  %8369 = vmatpush3.bf16.msra.mxu0 %v8953_v24  ;;  %v1895_v7 = vshrl.u32 %v7793_v42, 16  ;;  %v1899_v5 = vrot.slane %v1897_v58, 1  ;;  %v7289_v58 = vld [vmem:[%s9469_s21 + $0x1f8] sm:$0xf] }
  0x7c   : > { %8370 = vmatprep.subr.bf16.mxu0 %v8956_v13  ;;  %v2155_v12 = vshrl.u32 %v8897_v37, 16  ;;  %v2159_v49 = vrot.slane %v2157_v56, 1  ;;  %v3863_v31 = vrot.slane %v3861_v17, 1  ;;  %v2171_v42 = vrot.slane %v2169_v9, 1  ;;  %v7673_v56 = vld [vmem:[%s9469_s21 + $0x30] sm:$0xe] }
  0x7d   : > { %4156 = vrot.lane.b32.xlu0 %v4111_v21, %s13555_s10  ;;  %1169 = vrot.lane.b32.xlu1 %v1028_v28, %s13559_s25  ;;  %v7791_v21 = vcombine.low %v7395_v14, %v9776_v48  ;;  %v7914_v28 = vcombine.low %v7562_v19, %v9724_v63  ;;  %v1890_v63 = vshll.u32 %v9786_v22, 16  ;;  %s13614_s10 = smov 18  }
  0x7f   : > { %v1885_v35 = vshll.u32 %v7791_v21, 16  ;;  %v3251_v40 = vrot.slane %v7914_v28, 1  ;;  %8371 = vmatpush3.bf16.msra.mxu0 %v8956_v13  ;;  %v1883_v50 = vshrl.u32 %v7791_v21, 16  ;;  %v1892_v55 = vrot.slane %v1890_v63, 1 }
  0x80   : > { %v1904_v21 = vrot.slane %v1902_v8, 1  ;;  %v2160_v13 = vor.u32 %v2159_v49, %v2155_v12  ;;  %v9898_v12 = vld [vmem:[%s9469_s21 + $0x1f0] sm:$0xf] }
  0x81   : > { %2544 = vrot.lane.b32.xlu0 %v8881_v34, %s13553_s13  ;;  %2894 = vrot.lane.b32.xlu1 %v2733_v46, %s13557_s17  ;;  %v3250_v34 = vsel %vm1513_vm0, %v3248_v0, %v3249_v2  ;;  %v9820_v46 = vld [vmem:[%s9469_s21 + $0x40] sm:$0xf]  ;;  %v1887_v51 = vrot.slane %v1885_v35, 1  ;;  %v3253_v57 = vsel %vm1513_vm0, %v3251_v40, %v3252_v41  ;;  %v3606_v0 = vshll.u32 %v9845_v6, 16  ;;  %v7451_v35 = vld [vmem:[%s9469_s21 + $0x3c] sm:$0xe] }
  0x82   : > { %v7949_v59 = vcombine.low %v7616_v45, %v9820_v46  ;;  %v8912_v2 = vld [vmem:[%s9469_s21 + $0x128] ss:$0 sps:$4 sm:$0x11]   ;;  %v2167_v41 = vshrl.u32 %v8900_v4, 16  ;;  %s13615_s13 = smov 45  }
  0x83   : > { %v1888_v61 = vor.u32 %v1887_v51, %v1883_v50  ;;  %v3608_v63 = vrot.slane %v3606_v0, 1  ;;  %v8914_v45 = vld [vmem:[%s9469_s21 + $0x11c] ss:$0 sps:$4 sm:$0x11]  }
  0x84   : > { %v3601_v30 = vshll.u32 %v7949_v59, 16  ;;  %v3599_v23 = vshrl.u32 %v7949_v59, 16  ;;  %v9883_v59 = vld [vmem:[%s9469_s21 + $0x1fc] sm:$0xf]  ;;  %v3878_v3 = vshll.u32 %v8914_v45, 16 }
  0x85   : > { %1171 = vrot.lane.b32.xlu0 %v1040_v53, %s13559_s25  ;;  %1441 = vrot.lane.b32.xlu1 %v1300_v25, %s13577_s24  ;;  %v3589_v53 = vshll.u32 %v7947_v32, 16  ;;  %s13612_s25 = smov 12   ;;  %v8908_v25 = vld [vmem:[%s9469_s21 + $0x11c] ss:$0 sps:$4 sm:$0x11]   ;;  %v7715_v8 = vcombine.low %v7289_v58, %v9883_v59 }
  0x86   : > { %v2162_v14 = vshll.u32 %v8908_v25, 16  ;;  %v3603_v24 = vrot.slane %v3601_v30, 1  ;;  %v7507_v30 = vld [vmem:[%s9469_s21 + $0x1ec] sm:$0xf] }
  0x87   : > { %v3591_v1 = vrot.slane %v3589_v53, 1  ;;  %v7835_v53 = vcombine.low %v7451_v35, %v9776_v48  ;;  %v2172_v48 = vor.u32 %v2171_v42, %v2167_v41  ;;  %v1044_v0 = vshll.u32 %v7715_v8, 16 }
  0x88   : > { %v2164_v26 = vrot.slane %v2162_v14, 1  ;;  %v3604_v40 = vor.u32 %v3603_v24, %v3599_v23  ;;  %v7674_v14 = vld [vmem:[%s9469_s21 + $0x3c] sm:$0xe] }
  0x89   : > { %2896 = vrot.lane.b32.xlu0 %v2745_v44, %s13557_s17  ;;  %3166 = vrot.lane.b32.xlu1 %v3005_v10, %s13575_s18  ;;  %v9853_v10 = vld [vmem:[%s9469_s21 + $0x114] sm:$0xff]   ;;  %v3592_v16 = vor.u32 %v3591_v1, %v3587_v20  ;;  %s13613_s17 = smov 15  }
  0x8a   : > { %v3873_v32 = vshll.u32 %v9853_v10, 16  ;;  %v3871_v25 = vshrl.u32 %v9853_v10, 16 }
  0x8b   : > { %v3597_v28 = vsel %vm968_vm1, %v3592_v16, %v3596_v36  ;;  %v3880_v16 = vrot.slane %v3878_v3, 1 }
  0x8c   : > { %v3875_v1 = vrot.slane %v3873_v32, 1 }
  0x8d   : > { %1443 = vrot.lane.b32.xlu0 %v1312_v11, %s13577_s24  ;;  %1570 = vrot.lane.b32.xlu1 %v1528_v38, %s13573_s23  ;;  %v1893_v11 = vsel %vm968_vm1, %v1888_v61, %v1892_v55  ;;  %v1900_v38 = vor.u32 %v1899_v5, %v1895_v7  ;;  %v3864_v55 = vor.u32 %v3863_v31, %v3859_v27  ;;  %v2391_v7 = vrot.slane %v9786_v22, 1  ;;  %v7452_v5 = vld [vmem:[%s9469_s21 + $0x48] sm:$0xe]  ;;  %v7510_v31 = vld [vmem:[%s9469_s21 + $0x1f8] sm:$0xf] }
  0x8e   : > { %v3609_v61 = vsel %vm968_vm1, %v3604_v40, %v3608_v63  ;;  %v3876_v22 = vor.u32 %v3875_v1, %v3871_v25  ;;  %v7836_v36 = vcombine.low %v7452_v5, %v9805_v33  ;;  %v4113_v33 = vrot.slane %v9825_v52, 1  ;;  %v9934_v52 = vld [vmem:[%s9469_s21 + $0x1f4] ss:$0 sps:$4 sm:$0x11]  }
  0x8f   : > { %v2394_v27 = vrot.slane %v9833_v15, 1  ;;  %v2754_v58 = vshll.u32 %v9934_v52, 16 }
  0x90   : > { %v3881_v35 = vsel %vm968_vm1, %v3876_v22, %v3880_v16  ;;  %v2393_v32 = vrot.slane %v7836_v36, 1 }
  0x91   : > { %3168 = vrot.lane.b32.xlu0 %v3017_v29, %s13575_s18  ;;  %3294 = vrot.lane.b32.xlu1 %v3250_v34, %s13571_s19  ;;  %v3866_v34 = vshll.u32 %v8911_v18, 16  ;;  %v9907_v18 = vld [vmem:[%s9469_s21 + $0x200] ss:$0 sps:$4 sm:$0x11]  }
  0x92   : > { %v9813_v39 = vpop.permute.xlu1 %1676  ;;  %v9822_v47 = vpop.permute.xlu0 %1674  ;;  %v1049_v63 = vshll.u32 %v9907_v18, 16 }
  0x94   : > { %v1051_v1 = vrot.slane %v1049_v63, 1 }
  0x95   : > { %1572 = vrot.lane.b32.xlu0 %v1531_v62, %s13573_s23  ;;  %1682 = vrot.lane.b32.xlu1 %v8897_v37, %s13612_s25  ;;  %v2174_v62 = vshll.u32 %v8912_v2, 16  ;;  %v1905_v37 = vsel %vm968_vm1, %v1900_v38, %v1904_v21  ;;  %v7871_v2 = vcombine.low %v7507_v30, %v9898_v12  ;;  %v7292_v38 = vld [vmem:[%s9469_s21 + $0x204] sm:$0xf]  ;;  %v9915_v21 = vld [vmem:[%s9469_s21 + $0x208] sm:$0xf] }
  0x97   : > { %v2176_v20 = vrot.slane %v2174_v62, 1  ;;  %v7717_v62 = vcombine.low %v7292_v38, %v9915_v21  ;;  %v2749_v40 = vshll.u32 %v7871_v2, 16  ;;  %v2747_v3 = vshrl.u32 %v7871_v2, 16 }
  0x98   : > { %v9838_v60 = vpop.permute.xlu1 %1564 }
  0x99   : > { %3296 = vrot.lane.b32.xlu0 %v3253_v57, %s13571_s19  ;;  %3406 = vrot.lane.b32.xlu1 %v9829_v54, %s13567_s20  ;;  %v2165_v54 = vsel %vm968_vm1, %v2160_v13, %v2164_v26  ;;  %v3868_v57 = vrot.slane %v3866_v34, 1  ;;  %v9925_v13 = vld [vmem:[%s9469_s21 + $0x2d0] sm:$0xff]   ;;  %v9929_v34 = vld [vmem:[%s9469_s21 + $0x1fc] sm:$0xf]  ;;  %v1056_v25 = vshll.u32 %v7717_v62, 16  ;;  %v1054_v22 = vshrl.u32 %v7717_v62, 16 }
  0x9a   : > { %v9847_v44 = vpop.permute.xlu0 %1562  ;;  %v7873_v42 = vcombine.low %v7510_v31, %v9929_v34 }
  0x9b   : > { %v3869_v9 = vsel %vm968_vm1, %v3864_v55, %v3868_v57  ;;  %v2395_v55 = vsel %vm1513_vm0, %v2393_v32, %v2394_v27  ;;  %v9949_v57 = vld [vmem:[%s9469_s21 + $0x2c4] sm:$0xff]   ;;  %v1058_v16 = vrot.slane %v1056_v25, 1 }
  0x9c   : > { %v2761_v5 = vshll.u32 %v7873_v42, 16  ;;  %v3021_v30 = vshll.u32 %v9949_v57, 16  ;;  %v8932_v32 = vld [vmem:[%s9469_s21 + $0x2e4] ss:$0 sps:$4 sm:$0x11]  }
  0x9d   : > { %1684 = vrot.lane.b32.xlu0 %v8900_v4, %s13612_s25  ;;  %v9860_v19 = vpop.permute.xlu1 %1433  ;;  %2034 = vrot.lane.b32.xlu1 %v1893_v11, %s13613_s17  ;;  %v2390_v4 = vrot.slane %v7835_v53, 1  ;;  %v2177_v11 = vsel %vm968_vm1, %v2172_v48, %v2176_v20  ;;  %v9953_v20 = vld [vmem:[%s9469_s21 + $0x20c] ss:$0 sps:$4 sm:$0x11]   ;;  %v1059_v63 = vor.u32 %v1058_v16, %v1054_v22  ;;  %v7563_v22 = vld [vmem:[%s9469_s21 + $0x1ec] sm:$0xe] }
  0x9e   : > { %v1061_v36 = vshll.u32 %v9953_v20, 16 }
  0x9f   : > { %v9863_v29 = vpop.permute.xlu0 %1161  ;;  %v2392_v23 = vsel %vm1513_vm0, %v2390_v4, %v2391_v7  ;;  %v8927_v4 = vld [vmem:[%s9469_s21 + $0x2d8] ss:$0 sps:$4 sm:$0x11]   ;;  %v9960_v7 = vld [vmem:[%s9469_s21 + $0x200] ss:$0 sps:$4 sm:$0x11]  }
  0xa0   : > { %v1321_v27 = vshll.u32 %v8927_v4, 16  ;;  %v2766_v31 = vshll.u32 %v9960_v7, 16  ;;  %v1063_v62 = vrot.slane %v1061_v36, 1 }
  0xa1   : > { %3408 = vrot.lane.b32.xlu0 %v9853_v10, %s13567_s20  ;;  %3758 = vrot.lane.b32.xlu1 %v3597_v28, %s13565_s22  ;;  %v9876_v51 = vpop.permute.xlu1 %1435  ;;  %v7993_v10 = vcombine.low %v7673_v56, %v9794_v43  ;;  %v7994_v28 = vcombine.low %v7674_v14, %v9820_v46  ;;  %v1042_v46 = vshrl.u32 %v7715_v8, 16  ;;  %v4116_v56 = vrot.slane %v9845_v6, 1 }
  0xa2   : > { %v2751_v6 = vrot.slane %v2749_v40, 1 }
  0xa3   : > { %v9874_v50 = vpop.permute.xlu0 %1163  ;;  %v4112_v24 = vrot.slane %v7993_v10, 1  ;;  %v4115_v53 = vrot.slane %v7994_v28, 1  ;;  %v1314_v10 = vshrl.u32 %v9925_v13, 16  ;;  %v2759_v28 = vshrl.u32 %v7873_v42, 16 }
  0xa5   : > { %2036 = vrot.lane.b32.xlu0 %v1905_v37, %s13613_s17  ;;  %2306 = vrot.lane.b32.xlu1 %v2165_v54, %s13614_s10  ;;  %v1046_v37 = vrot.slane %v1044_v0, 1  ;;  %v4114_v41 = vsel %vm1513_vm0, %v4112_v24, %v4113_v33  ;;  %v1316_v54 = vshll.u32 %v9925_v13, 16  ;;  %v8931_v0 = vld [vmem:[%s9469_s21 + $0x2dc] sm:$0xff]   ;;  %v8930_v24 = vld [vmem:[%s9469_s21 + $0x2cc] ss:$0 sps:$4 sm:$0x11]  }
  0xa6   : > { %v8921_v33 = vld [vmem:[%s9469_s21 + $0x2d0] sm:$0xff]   ;;  %v2763_v13 = vrot.slane %v2761_v5, 1  ;;  %v1326_v4 = vshrl.u32 %v8931_v0, 16 }
  0xa7   : > { %v9889_v17 = vpop.permute.xlu0 %2026  ;;  %v9900_v49 = vpop.permute.xlu1 %2028  ;;  %v1047_v48 = vor.u32 %v1046_v37, %v1042_v46  ;;  %v1318_v14 = vrot.slane %v1316_v54, 1  ;;  %v1328_v46 = vshll.u32 %v8931_v0, 16  ;;  %v3033_v40 = vshll.u32 %v8921_v33, 16 }
  0xa8   : > { %v2768_v54 = vrot.slane %v2766_v31, 1 }
  0xa9   : > { %3760 = vrot.lane.b32.xlu0 %v3609_v61, %s13565_s22  ;;  %4030 = vrot.lane.b32.xlu1 %v3869_v9, %s13561_s26  ;;  %v4117_v9 = vsel %vm1513_vm0, %v4115_v53, %v4116_v56  ;;  %v1052_v38 = vsel %vm968_vm1, %v1047_v48, %v1051_v1  ;;  %v1319_v42 = vor.u32 %v1318_v14, %v1314_v10  ;;  %v3019_v53 = vshrl.u32 %v9949_v57, 16  ;;  %s13618_s22 = smov 27  }
  0xaa   : > { %v1323_v56 = vrot.slane %v1321_v27, 1  ;;  %v2764_v48 = vor.u32 %v2763_v13, %v2759_v28  ;;  %v1333_v1 = vshll.u32 %v8932_v32, 16  ;;  %v1330_v5 = vrot.slane %v1328_v46, 1 }
  0xab   : > { %v9910_v43 = vpop.permute.xlu0 %2298  ;;  %v9919_v26 = vpop.permute.xlu1 %2300  ;;  %v3035_v27 = vrot.slane %v3033_v40, 1  ;;  %v10016_v40 = vld [vmem:[%s9469_s21 + $0x58] sm:$0xf] }
  0xac   : > { %v2769_v36 = vsel %vm968_vm1, %v2764_v48, %v2768_v54  ;;  %v1335_v0 = vrot.slane %v1333_v1, 1  ;;  %v10030_v1 = vld [vmem:[%s9469_s21 + $0x5c] ss:$0 sps:$4 sm:$0x11]  }
  0xad   : > { %2308 = vrot.lane.b32.xlu0 %v2177_v11, %s13614_s10  ;;  %2434 = vrot.lane.b32.xlu1 %v2392_v23, %s13563_s12  ;;  %v2756_v11 = vrot.slane %v2754_v58, 1  ;;  %v2752_v23 = vor.u32 %v2751_v6, %v2747_v3  ;;  %v3026_v58 = vshll.u32 %v8930_v24, 16  ;;  %v7341_v3 = vld [vmem:[%s9469_s21 + $0x1f8] sm:$0xe]  ;;  %v1064_v6 = vsel %vm968_vm1, %v1059_v63, %v1063_v62 }
  0xae   : > { %v3031_v24 = vshrl.u32 %v8921_v33, 16  ;;  %v1533_v63 = vrot.slane %v9907_v18, 1 }
  0xaf   : > { %v9938_v15 = vpop.permute.xlu0 %2426  ;;  %v9942_v45 = vpop.permute.xlu1 %2428  ;;  %v3028_v14 = vrot.slane %v3026_v58, 1  ;;  %v1536_v58 = vrot.slane %v9953_v20, 1 }
  0xb1   : > { %4032 = vrot.lane.b32.xlu0 %v3881_v35, %s13561_s26  ;;  %4158 = vrot.lane.b32.xlu1 %v4114_v41, %s13615_s13  ;;  %s13616_s26 = smov 24   ;;  %v2757_v41 = vsel %vm968_vm1, %v2752_v23, %v2756_v11  ;;  %v7757_v11 = vcombine.low %v7341_v3, %v9883_v59  ;;  %v1331_v23 = vor.u32 %v1330_v5, %v1326_v4  ;;  %v10037_v4 = vld [vmem:[%s9469_s21 + $0x4c] sm:$0xf] }
  0xb2   : > { %v7915_v59 = vcombine.low %v7563_v22, %v9898_v12  ;;  %v3036_v12 = vor.u32 %v3035_v27, %v3031_v24  ;;  %v10053_v22 = vld [vmem:[%s9469_s21 + $0x12c] sm:$0xff]  }
  0xb3   : > { %v9956_v61 = vpop.permute.xlu0 %2538  ;;  %v9962_v8 = vpop.permute.xlu1 %1165  ;;  %v1532_v32 = vrot.slane %v7757_v11, 1  ;;  %v10070_v24 = vld [vmem:[%s9469_s21 + $0x50] ss:$0 sps:$4 sm:$0x11]  }
  0xb5   : > { %2436 = vrot.lane.b32.xlu0 %v2395_v55, %s13563_s12  ;;  %2546 = vrot.lane.b32.xlu1 %v9949_v57, %s13616_s26  ;;  %s13617_s12 = smov 3   ;;  %v3023_v55 = vrot.slane %v3021_v30, 1  ;;  %v1324_v30 = vsel %vm968_vm1, %v1319_v42, %v1323_v56  ;;  %v3255_v56 = vrot.slane %v9934_v52, 1  ;;  %v1534_v54 = vsel %vm1513_vm0, %v1532_v32, %v1533_v63  ;;  %v7404_v52 = vld [vmem:[%s9469_s21 + $0x60] sm:$0xf] }
  0xb6   : > { %v1914_v63 = vshll.u32 %v10030_v1, 16 }
  0xb7   : > { %v9972_v2 = vpop.permute.xlu0 %2540  ;;  %v9978_v35 = vpop.permute.xlu1 %2890  ;;  %v3024_v10 = vor.u32 %v3023_v55, %v3019_v53  ;;  %v7564_v53 = vld [vmem:[%s9469_s21 + $0x1f8] sm:$0xe] }
  0xb8   : > { %v7916_v20 = vcombine.low %v7564_v53, %v9929_v34  ;;  %v10056_v34 = vld [vmem:[%s9469_s21 + $0x120] sm:$0xff]  }
  0xb9   : > { %4160 = vrot.lane.b32.xlu0 %v4117_v9, %s13615_s13  ;;  %1173 = vrot.lane.b32.xlu1 %v1052_v38, %s13617_s12  ;;  %v8934_v9 = vld [vmem:[%s9469_s21 + $0x2d8] ss:$0 sps:$4 sm:$0x11]   ;;  %v7342_v38 = vld [vmem:[%s9469_s21 + $0x204] sm:$0xe]  ;;  %v3029_v31 = vsel %vm968_vm1, %v3024_v10, %v3028_v14 }
  0xba   : > { %v3038_v28 = vshll.u32 %v8934_v9, 16  ;;  %v7758_v62 = vcombine.low %v7342_v38, %v9915_v21  ;;  %v3254_v21 = vrot.slane %v7915_v59, 1  ;;  %v10043_v9 = vld [vmem:[%s9469_s21 + $0x64] sm:$0xf]  ;;  %v9261_v10 = vld [vmem:[%s9469_s21 + $0x294] sm:$0xff]   ;;  %v3257_v32 = vrot.slane %v7916_v20, 1 }
  0xbb   : > { %v9983_v37 = vpop.permute.xlu0 %1167  ;;  %v9987_v25 = vpop.permute.xlu1 %1437  ;;  %v4190_v14 = vsel %vm4186_vm2, %v9261_v10, %v9874_v50  ;;  %v3258_v50 = vrot.slane %v9960_v7, 1  ;;  %v10073_v27 = vcombine.low %v7404_v52, %v10043_v9 }
  0xbc   : > { %v3040_v42 = vrot.slane %v3038_v28, 1  ;;  %v1535_v55 = vrot.slane %v7758_v62, 1  ;;  %v3256_v11 = vsel %vm1513_vm0, %v3254_v21, %v3255_v56  ;;  %v9262_v28 = vld [vmem:[%s9469_s21 + $0x288] sm:$0xff]   ;;  %v4223_v7 = vsel %vm13581_vm3, %v4190_v14, %v9876_v51 }
  0xbd   : > { %2548 = vrot.lane.b32.xlu0 %v8921_v33, %s13616_s26  ;;  %2898 = vrot.lane.b32.xlu1 %v2757_v41, %s13618_s22  ;;  %v7401_v33 = vld [vmem:[%s9469_s21 + $0x54] sm:$0xf]  ;;  %v1336_v41 = vsel %vm968_vm1, %v1331_v23, %v1335_v0  ;;  %v10067_v23 = vld [vmem:[%s9469_s21 + $0x138] sm:$0xff]   ;;  %v4188_v59 = vsel %vm4186_vm2, %v9262_v28, %v9863_v29  ;;  %v1921_v52 = vshll.u32 %v10073_v27, 16 }
  0xbe   : > { %v10027_v48 = vcombine.low %v7401_v33, %v10016_v40  ;;  %v3041_v5 = vsel %vm968_vm1, %v3036_v12, %v3040_v42  ;;  %v2181_v33 = vshll.u32 %v10053_v22, 16  ;;  %v7622_v12 = vld [vmem:[%s9469_s21 + $0x54] sm:$0xf]  ;;  %v10091_v29 = vld [vmem:[%s9469_s21 + $0x58] sm:$0xf]  ;;  %v4221_v56 = vsel %vm13581_vm3, %v4188_v59, %v9860_v19 }
  0xbf   : > { %v9994_v57 = vpop.permute.xlu0 %2892  ;;  %v9999_v16 = vpop.permute.xlu1 %3162  ;;  %v10110_v10 = vcombine.low %v7622_v12, %v10091_v29  ;;  %v4256_v19 = vsel %vm13579_vm4, %v4223_v7, %v9838_v60 }
  0xc0   : > { %v1907_v53 = vshrl.u32 %v10027_v48, 16  ;;  %v4289_v12 = vsel %vm13580_vm5, %v4256_v19, %v9813_v39  ;;  %v8952_v19 = vld [vmem:[%s9469_s21 + $0x128] ss:$0 sps:$4 sm:$0x11]  }
  0xc1   : > { %1175 = vrot.lane.b32.xlu0 %v1064_v6, %s13617_s12  ;;  %1445 = vrot.lane.b32.xlu1 %v1324_v30, %s13577_s24  ;;  %v7619_v6 = vld [vmem:[%s9469_s21 + $0x48] sm:$0xf]  ;;  %v4322_v42 = vsel %vm4318_vm6, %v4289_v12, %v9900_v49 }
  0xc2   : > { %v10060_v0 = vcombine.low %v7619_v6, %v10037_v4  ;;  %v10104_v6 = vld [vmem:[%s9469_s21 + $0x68] ss:$0 sps:$4 sm:$0x11]  }
  0xc3   : > { %v10005_v13 = vpop.permute.xlu0 %1439  ;;  %v10011_v46 = vpop.permute.xlu1 %1566  ;;  %v1926_v7 = vshll.u32 %v10104_v6, 16 }
  0xc4   : > { %v3613_v51 = vshll.u32 %v10060_v0, 16  ;;  %v3611_v28 = vshrl.u32 %v10060_v0, 16  ;;  %v3625_v0 = vshll.u32 %v10110_v10, 16 }
  0xc5   : > { %2900 = vrot.lane.b32.xlu0 %v2769_v36, %s13618_s22  ;;  %3170 = vrot.lane.b32.xlu1 %v3029_v31, %s13575_s18  ;;  %v1909_v36 = vshll.u32 %v10027_v48, 16  ;;  %v1537_v31 = vsel %vm1513_vm0, %v1535_v55, %v1536_v58  ;;  %v2193_v58 = vshll.u32 %v10067_v23, 16  ;;  %v3259_v48 = vsel %vm1513_vm0, %v3257_v32, %v3258_v50 }
  0xc6   : > { %v3615_v59 = vrot.slane %v3613_v51, 1  ;;  %v4254_v32 = vsel %vm13579_vm4, %v4221_v56, %v9847_v44  ;;  %v2183_v51 = vrot.slane %v2181_v33, 1  ;;  %v8954_v33 = vld [vmem:[%s9469_s21 + $0x140] ss:$0 sps:$4 sm:$0x11]  }
  0xc7   : > { %v10021_v18 = vpop.permute.xlu0 %3164  ;;  %v10032_v3 = vpop.permute.xlu1 %3290  ;;  %v1911_v21 = vrot.slane %v1909_v36, 1  ;;  %v8948_v36 = vld [vmem:[%s9469_s21 + $0x134] ss:$0 sps:$4 sm:$0x11]  }
  0xc8   : > { %v2186_v56 = vshll.u32 %v8948_v36, 16  ;;  %v3623_v36 = vshrl.u32 %v10110_v10, 16  ;;  %v3883_v10 = vshrl.u32 %v10056_v34, 16 }
  0xc9   : > { %1447 = vrot.lane.b32.xlu0 %v1336_v41, %s13577_s24  ;;  %1574 = vrot.lane.b32.xlu1 %v1534_v54, %s13573_s23  ;;  %v10087_v41 = vld [vmem:[%s9469_s21 + $0x12c] sm:$0xff]   ;;  %v1912_v50 = vor.u32 %v1911_v21, %v1907_v53  ;;  %v10131_v53 = vld [vmem:[%s9469_s21 + $0x5c] ss:$0 sps:$4 sm:$0x11]   ;;  %v2179_v21 = vshrl.u32 %v10053_v22, 16 }
  0xca   : > { %v3897_v20 = vshll.u32 %v10087_v41, 16 }
  0xcb   : > { %v10046_v30 = vpop.permute.xlu0 %1568  ;;  %v10062_v38 = vpop.permute.xlu1 %1678 }
  0xcd   : > { %3172 = vrot.lane.b32.xlu0 %v3041_v5, %s13575_s18  ;;  %3298 = vrot.lane.b32.xlu1 %v3256_v11, %s13571_s19  ;;  %v1916_v5 = vrot.slane %v1914_v63, 1  ;;  %v3618_v11 = vshll.u32 %v10070_v24, 16  ;;  %v1923_v63 = vrot.slane %v1921_v52, 1  ;;  %v4287_v52 = vsel %vm13580_vm5, %v4254_v32, %v9822_v47 }
  0xce   : > { %v4320_v55 = vsel %vm4318_vm6, %v4287_v52, %v9889_v17  ;;  %v2184_v32 = vor.u32 %v2183_v51, %v2179_v21  ;;  %v3899_v52 = vrot.slane %v3897_v20, 1  ;;  %v2198_v21 = vshll.u32 %v8954_v33, 16 }
  0xcf   : > { %v10083_v62 = vpop.permute.xlu0 %3292  ;;  %v10098_v54 = vpop.permute.xlu1 %3402  ;;  %v1917_v39 = vsel %vm968_vm1, %v1912_v50, %v1916_v5  ;;  %v3627_v5 = vrot.slane %v3625_v0, 1  ;;  %v3630_v50 = vshll.u32 %v10131_v53, 16  ;;  %v4353_v17 = vsel %vm13569_vm7, %v4320_v55, %v9910_v43 }
  0xd0   : > { %v3890_v0 = vshll.u32 %v8952_v19, 16  ;;  %v2195_v43 = vrot.slane %v2193_v58, 1  ;;  %v4355_v51 = vsel %vm13569_vm7, %v4322_v42, %v9919_v26  ;;  %v4386_v20 = vsel %vm13570_vm8, %v4353_v17, %v9938_v15  ;;  %v7675_v26 = vld [vmem:[%s9469_s21 + $0x48] sm:$0xe]  ;;  %v7295_v42 = vld [vmem:[%s9469_s21 + $0x210] sm:$0xf] }
  0xd1   : > { %1576 = vrot.lane.b32.xlu0 %v1537_v31, %s13573_s23  ;;  %1686 = vrot.lane.b32.xlu1 %v10053_v22, %s13612_s25  ;;  %v1919_v31 = vshrl.u32 %v10073_v27, 16  ;;  %v3620_v27 = vrot.slane %v3618_v11, 1  ;;  %v1928_v22 = vrot.slane %v1926_v7, 1  ;;  %v2188_v7 = vrot.slane %v2186_v56, 1  ;;  %v10185_v19 = vld [vmem:[%s9469_s21 + $0x214] sm:$0xf] }
  0xd2   : > { %v3628_v56 = vor.u32 %v3627_v5, %v3623_v36  ;;  %v3632_v58 = vrot.slane %v3630_v50, 1  ;;  %v3892_v33 = vrot.slane %v3890_v0, 1  ;;  %vm4648_vm7 = vcmask 367616   ;;  %v7454_v17 = vld [vmem:[%s9469_s21 + $0x60] sm:$0xe]  ;;  %s13623_s23 = smov 21  }
  0xd3   : > { %v10116_v14 = vpop.permute.xlu0 %1680  ;;  %v10124_v60 = vpop.permute.xlu1 %2030  ;;  %v1924_v47 = vor.u32 %v1923_v63, %v1919_v31  ;;  %v13619_v63 = vshll.u32 %v10056_v34, 16  ;;  %v4419_v15 = vsel %vm4417_vm9, %v4386_v20, %v9956_v61  ;;  %v13621_v36 = vshrl.u32 %v10067_v23, 16 }
  0xd4   : > { %v2200_v50 = vrot.slane %v2198_v21, 1  ;;  %v10213_v21 = vld [vmem:[%s9469_s21 + $0x208] sm:$0xf] }
  0xd5   : > { %3300 = vrot.lane.b32.xlu0 %v3259_v48, %s13571_s19  ;;  %3410 = vrot.lane.b32.xlu1 %v10056_v34, %s13567_s20  ;;  %v3616_v48 = vor.u32 %v3615_v59, %v3611_v28  ;;  %v7453_v28 = vld [vmem:[%s9469_s21 + $0x54] sm:$0xe]  ;;  %v3895_v59 = vshrl.u32 %v10087_v41, 16  ;;  %v3887_v12 = vrot.slane %v13619_v63, 1  ;;  %v1929_v34 = vsel %vm968_vm1, %v1924_v47, %v1928_v22  ;;  %s13622_s19 = smov 42  }
  0xd6   : > { %v2397_v47 = vrot.slane %v10030_v1, 1  ;;  %v2196_v5 = vor.u32 %v2195_v43, %v13621_v36  ;;  %v7995_v1 = vcombine.low %v7675_v26, %v10037_v4  ;;  %v10207_v63 = vld [vmem:[%s9469_s21 + $0x218] ss:$0 sps:$4 sm:$0x11]   ;;  %v7838_v43 = vcombine.low %v7454_v17, %v10043_v9 }
  0xd7   : > { %v10136_v44 = vpop.permute.xlu0 %3404  ;;  %v10147_v11 = vpop.permute.xlu1 %3754  ;;  %v3621_v31 = vsel %vm968_vm1, %v3616_v48, %v3620_v27  ;;  %v7837_v27 = vcombine.low %v7453_v28, %v10016_v40  ;;  %v4388_v48 = vsel %vm13570_vm8, %v4355_v51, %v9942_v45  ;;  %v2189_v40 = vsel %vm968_vm1, %v2184_v32, %v2188_v7 }
  0xd8   : > { %v3888_v22 = vor.u32 %v3887_v12, %v3883_v10  ;;  %v3633_v32 = vsel %vm968_vm1, %v3628_v56, %v3632_v58  ;;  %v4421_v61 = vsel %vm4417_vm9, %v4388_v48, %v9972_v2  ;;  %v4452_v10 = vsel %vm4450_vm10, %v4419_v15, %v9978_v35  ;;  %v7513_v12 = vld [vmem:[%s9469_s21 + $0x204] sm:$0xf] }
  0xd9   : > { %1688 = vrot.lane.b32.xlu0 %v10067_v23, %s13612_s25  ;;  %2038 = vrot.lane.b32.xlu1 %v1917_v39, %s13613_s17  ;;  %v8957_v39 = vld [vmem:[%s9469_s21 + $0x134] ss:$0 sps:$4 sm:$0x11]   ;;  %v2396_v28 = vrot.slane %v7837_v27, 1  ;;  %vm13598_vm8 = vcmask 392192   ;;  %v3900_v0 = vor.u32 %v3899_v52, %v3895_v59  ;;  %v4485_v2 = vsel %vm4483_vm11, %v4452_v10, %v9999_v16 }
  0xda   : > { %v3902_v7 = vshll.u32 %v8957_v39, 16  ;;  %v3893_v4 = vsel %vm968_vm1, %v3888_v22, %v3892_v33  ;;  %v2201_v27 = vsel %vm968_vm1, %v2196_v5, %v2200_v50  ;;  %v7298_v59 = vld [vmem:[%s9469_s21 + $0x21c] sm:$0xf]  ;;  %v10225_v52 = vld [vmem:[%s9469_s21 + $0x220] sm:$0xf]  ;;  %v4518_v9 = vsel %vm4516_vm12, %v4485_v2, %v10032_v3  ;;  %v10241_v3 = vld [vmem:[%s9469_s21 + $0x2e8] sm:$0xff]  }
  0xdb   : > { %v10158_v49 = vpop.permute.xlu0 %2032  ;;  %v10165_v55 = vpop.permute.xlu1 %2302  ;;  %v2398_v51 = vsel %vm1513_vm0, %v2396_v28, %v2397_v47  ;;  %v4118_v16 = vrot.slane %v7995_v1, 1  ;;  %v4454_v39 = vsel %vm4450_vm10, %v4421_v61, %v9994_v57  ;;  %v4551_v20 = vsel %vm4549_vm13, %v4518_v9, %v10098_v54  ;;  %v7516_v1 = vld [vmem:[%s9469_s21 + $0x210] sm:$0xf] }
  0xdc   : > { %v3904_v56 = vrot.slane %v3902_v7, 1  ;;  %v10238_v26 = vcombine.low %v7513_v12, %v10213_v21  ;;  %v2399_v22 = vrot.slane %v7838_v43, 1  ;;  %v4122_v57 = vrot.slane %v10131_v53, 1 }
  0xdd   : > { %3412 = vrot.lane.b32.xlu0 %v10087_v41, %s13567_s20  ;;  %s13620_s20 = smov 39   ;;  %v10247_v54 = vcombine.low %v7298_v59, %v10225_v52  ;;  %v1073_v15 = vshll.u32 %v10207_v63, 16  ;;  %v1338_v36 = vshrl.u32 %v10241_v3, 16  ;;  %v4487_v28 = vsel %vm4483_vm11, %v4454_v39, %v10021_v18  ;;  %v10276_v18 = vld [vmem:[%s9469_s21 + $0x224] ss:$0 sps:$4 sm:$0x11]  }
  0xde   : > { %3762 = vrot.lane.b32.xlu1 %v3621_v31, %s13620_s20  ;;  %v10197_v31 = vcombine.low %v7295_v42, %v10185_v19  ;;  %v4584_v42 = vsel %vm4582_vm14, %v4551_v20, %v10147_v11  ;;  %v3905_v53 = vsel %vm968_vm1, %v3900_v0, %v3904_v56  ;;  %v1340_v7 = vshll.u32 %v10241_v3, 16  ;;  %v8970_v0 = vld [vmem:[%s9469_s21 + $0x2f0] ss:$0 sps:$4 sm:$0x11]   ;;  %v8974_v20 = vld [vmem:[%s9469_s21 + $0x2f4] sm:$0xff]  }
  0xdf   : > { %v10179_v41 = vpop.permute.xlu0 %3756  ;;  %v4027_v45 = vpop.permute.xlu1 %4026  ;;  %v1080_v10 = vshll.u32 %v10247_v54, 16  ;;  %v1075_v59 = vrot.slane %v1073_v15, 1  ;;  %v2771_v9 = vshrl.u32 %v10238_v26, 16  ;;  %v1345_v3 = vshll.u32 %v8970_v0, 16 }
  0xe0   : > { %v1068_v58 = vshll.u32 %v10197_v31, 16  ;;  %v4617_v33 = vsel %vm4615_vm15, %v4584_v42, %v4027_v45  ;;  %v10258_v45 = vld [vmem:[%s9469_s21 + $0x20c] ss:$0 sps:$4 sm:$0x11]   ;;  %v1342_v39 = vrot.slane %v1340_v7, 1 }
  0xe1   : > { %2040 = vrot.lane.b32.xlu0 %v1929_v34, %s13613_s17  ;;  %v4119_v34 = vrot.slane %v10070_v24, 1  ;;  %v2400_v24 = vrot.slane %v10104_v6, 1  ;;  %v1066_v6 = vshrl.u32 %v10197_v31, 16  ;;  %v10270_v31 = vld [vmem:[%s9469_s21 + $0x214] sm:$0xf]  ;;  %v2778_v56 = vshll.u32 %v10258_v45, 16 }
  0xe2   : > { %2310 = vrot.lane.b32.xlu1 %v2189_v40, %s13614_s10  ;;  %v7676_v40 = vld [vmem:[%s9469_s21 + $0x54] sm:$0xe]  ;;  %v1070_v50 = vrot.slane %v1068_v58, 1  ;;  %v8975_v7 = vld [vmem:[%s9469_s21 + $0x2fc] ss:$0 sps:$4 sm:$0x11]  }
  0xe3   : > { %v10204_v23 = vpop.permute.xlu0 %2304  ;;  %v10217_v35 = vpop.permute.xlu1 %2430  ;;  %v7996_v5 = vcombine.low %v7676_v40, %v10091_v29  ;;  %v4520_v29 = vsel %vm4516_vm12, %v4487_v28, %v10083_v62  ;;  %v4120_v61 = vsel %vm1513_vm0, %v4118_v16, %v4119_v34  ;;  %v2401_v62 = vsel %vm1513_vm0, %v2399_v22, %v2400_v24  ;;  %v10304_v22 = vld [vmem:[%s9469_s21 + $0x218] ss:$0 sps:$4 sm:$0x11]  }
  0xe4   : > { %v4553_v12 = vsel %vm4549_vm13, %v4520_v29, %v10136_v44  ;;  %v8960_v44 = vld [vmem:[%s9469_s21 + $0x2dc] sm:$0xff]   ;;  %v1082_v40 = vrot.slane %v1080_v10, 1  ;;  %v2790_v10 = vshll.u32 %v10304_v22, 16  ;;  %v1347_v0 = vrot.slane %v1345_v3, 1 }
  0xe5   : > { %3764 = vrot.lane.b32.xlu0 %v3633_v32, %s13620_s20  ;;  %v2773_v32 = vshll.u32 %v10238_v26, 16  ;;  %v4586_v43 = vsel %vm4582_vm14, %v4553_v12, %v10179_v41  ;;  %v4121_v2 = vrot.slane %v7996_v5, 1  ;;  %v1071_v41 = vor.u32 %v1070_v50, %v1066_v6  ;;  %v8973_v6 = vld [vmem:[%s9469_s21 + $0x2e4] ss:$0 sps:$4 sm:$0x11]  }
  0xe6   : > { %4034 = vrot.lane.b32.xlu1 %v3893_v4, %s13622_s19  ;;  %v1085_v26 = vshll.u32 %v10276_v18, 16  ;;  %v3045_v15 = vshll.u32 %v8960_v44, 16  ;;  %v2780_v5 = vrot.slane %v2778_v56, 1  ;;  %v1352_v50 = vshll.u32 %v8974_v20, 16 }
  0xe7   : > { %v4029_v48 = vpop.permute.xlu0 %4028  ;;  %v4155_v47 = vpop.permute.xlu1 %4154  ;;  %v2775_v58 = vrot.slane %v2773_v32, 1  ;;  %v4123_v42 = vsel %vm1513_vm0, %v4121_v2, %v4122_v57  ;;  %v1343_v32 = vor.u32 %v1342_v39, %v1338_v36  ;;  %v1350_v2 = vshrl.u32 %v8974_v20, 16  ;;  %v8977_v56 = vld [vmem:[%s9469_s21 + $0x2f0] ss:$0 sps:$4 sm:$0x11]  }
  0xe8   : > { %v4650_v11 = vsel %vm4648_vm7, %v4617_v33, %v4155_v47  ;;  %v1087_v57 = vrot.slane %v1085_v26, 1  ;;  %v1354_v36 = vrot.slane %v1352_v50, 1  ;;  %v2792_v39 = vrot.slane %v2790_v10, 1 }
  0xe9   : > { %2312 = vrot.lane.b32.xlu0 %v2201_v27, %s13614_s10  ;;  %8372 = vmatprep.mubr.msk.bf16.mxu0 %vm13598_vm8, %v4650_v11  ;;  %v7877_v27 = vcombine.low %v7516_v1, %v10270_v31  ;;  %v1076_v11 = vsel %vm968_vm1, %v1071_v41, %v1075_v59  ;;  %v7343_v59 = vld [vmem:[%s9469_s21 + $0x210] sm:$0xe]  ;;  %v1348_v20 = vsel %vm968_vm1, %v1343_v32, %v1347_v0  ;;  %v3261_v0 = vrot.slane %v10258_v45, 1  ;;  %v7410_v45 = vld [vmem:[%s9469_s21 + $0x78] sm:$0xf] }
  0xea   : > { %2438 = vrot.lane.b32.xlu1 %v2398_v51, %s13623_s23  ;;  %v4619_v51 = vsel %vm4615_vm15, %v4586_v43, %v4029_v48  ;;  %v1078_v48 = vshrl.u32 %v10247_v54, 16  ;;  %v2776_v54 = vor.u32 %v2775_v58, %v2771_v9  ;;  %v3043_v43 = vshrl.u32 %v8960_v44, 16  ;;  %v10340_v32 = vld [vmem:[%s9469_s21 + $0x70] sm:$0xf] }
  0xeb   : > { %v10264_v17 = vpop.permute.xlu0 %2432  ;;  %v10281_v4 = vpop.permute.xlu1 %2542  ;;  %v2785_v33 = vshll.u32 %v7877_v27, 16  ;;  %v2783_v29 = vshrl.u32 %v7877_v27, 16  ;;  %v1357_v27 = vshll.u32 %v8975_v7, 16  ;;  %v1355_v3 = vor.u32 %v1354_v36, %v1350_v2 }
  0xec   : > { %v1083_v1 = vor.u32 %v1082_v40, %v1078_v48  ;;  %v7565_v48 = vld [vmem:[%s9469_s21 + $0x204] sm:$0xe] }
  0xed   : > { %4036 = vrot.lane.b32.xlu0 %v3905_v53, %s13622_s19  ;;  %v8964_v53 = vld [vmem:[%s9469_s21 + $0x2e8] sm:$0xff]   ;;  %v7917_v50 = vcombine.low %v7565_v48, %v10213_v21 }
  0xee   : > { %4162 = vrot.lane.b32.xlu1 %v4120_v61, %s13615_s13  ;;  %v2787_v61 = vrot.slane %v2785_v33, 1  ;;  %v1088_v41 = vsel %vm968_vm1, %v1083_v1, %v1087_v57  ;;  %v7407_v57 = vld [vmem:[%s9469_s21 + $0x6c] sm:$0xf] }
  0xef   : > { %v4157_v34 = vpop.permute.xlu0 %4156  ;;  %v10296_v24 = vpop.permute.xlu1 %1169 }
  0xf0   : > { %v4652_v16 = vsel %vm4648_vm7, %v4619_v51, %v4157_v34  ;;  %v2781_v51 = vsel %vm968_vm1, %v2776_v54, %v2780_v5  ;;  %v3050_v34 = vshll.u32 %v8973_v6, 16  ;;  %v2788_v58 = vor.u32 %v2787_v61, %v2783_v29  ;;  %v7566_v61 = vld [vmem:[%s9469_s21 + $0x210] sm:$0xe] }
  0xf1   : > { %2440 = vrot.lane.b32.xlu0 %v2401_v62, %s13623_s23  ;;  %8373 = vmatmul.mubr.msk.bf16.vlgmr.msra.gmra.mxu0 %vm13598_vm8, %v4652_v16  ;;  %v3047_v62 = vrot.slane %v3045_v15, 1  ;;  %v3057_v16 = vshll.u32 %v8964_v53, 16  ;;  %v1359_v6 = vrot.slane %v1357_v27, 1  ;;  %v3055_v15 = vshrl.u32 %v8964_v53, 16  ;;  %v10362_v27 = vld [vmem:[%s9469_s21 + $0x64] sm:$0xf] }
  0xf2   : > { %2550 = vrot.lane.b32.xlu1 %v8960_v44, %s13616_s26  ;;  %v3052_v26 = vrot.slane %v3050_v34, 1  ;;  %v3062_v54 = vshll.u32 %v8977_v56, 16  ;;  %v2793_v5 = vsel %vm968_vm1, %v2788_v58, %v2792_v39  ;;  %v7918_v36 = vcombine.low %v7566_v61, %v10270_v31 }
  0xf3   : > { %v10307_v47 = vpop.permute.xlu0 %2544  ;;  %v10312_v28 = vpop.permute.xlu1 %2894  ;;  %v3048_v40 = vor.u32 %v3047_v62, %v3043_v43  ;;  %v1360_v21 = vsel %vm968_vm1, %v1355_v3, %v1359_v6  ;;  %v7799_v43 = vcombine.low %v7407_v57, %v10340_v32  ;;  %v3264_v3 = vrot.slane %v10304_v22, 1  ;;  %v10396_v57 = vld [vmem:[%s9469_s21 + $0x68] ss:$0 sps:$4 sm:$0x11]  }
  0xf4   : > { %v3064_v2 = vrot.slane %v3062_v54, 1  ;;  %v10392_v54 = vld [vmem:[%s9469_s21 + $0x144] sm:$0xff]  }
  0xf5   : > { %4164 = vrot.lane.b32.xlu0 %v4123_v42, %s13615_s13  ;;  %v7759_v42 = vcombine.low %v7343_v59, %v10185_v19  ;;  %v7344_v19 = vld [vmem:[%s9469_s21 + $0x21c] sm:$0xe]  ;;  %v3053_v1 = vsel %vm968_vm1, %v3048_v40, %v3052_v26  ;;  %v7625_v59 = vld [vmem:[%s9469_s21 + $0x60] sm:$0xf]  ;;  %v1933_v58 = vshll.u32 %v7799_v43, 16  ;;  %v3263_v26 = vrot.slane %v7918_v36, 1 }
  0xf6   : > { %1177 = vrot.lane.b32.xlu1 %v1076_v11, %s13617_s12  ;;  %v3059_v11 = vrot.slane %v3057_v16, 1  ;;  %v7760_v34 = vcombine.low %v7344_v19, %v10225_v52  ;;  %v10367_v16 = vld [vmem:[%s9469_s21 + $0x7c] sm:$0xf]  ;;  %v10373_v52 = vld [vmem:[%s9469_s21 + $0x74] ss:$0 sps:$4 sm:$0x11]   ;;  %v7955_v48 = vcombine.low %v7625_v59, %v10362_v27 }
  0xf7   : > { %v10318_v12 = vpop.permute.xlu0 %1171  ;;  %v10322_v9 = vpop.permute.xlu1 %1441  ;;  %v1538_v29 = vrot.slane %v7759_v42, 1  ;;  %v7801_v42 = vcombine.low %v7410_v45, %v10367_v16  ;;  %v1938_v22 = vshll.u32 %v10373_v52, 16  ;;  %v10418_v36 = vld [vmem:[%s9469_s21 + $0x74] ss:$0 sps:$4 sm:$0x11]   ;;  %v3265_v59 = vsel %vm1513_vm0, %v3263_v26, %v3264_v3 }
  0xf8   : > { %v3060_v62 = vor.u32 %v3059_v11, %v3055_v15  ;;  %v1541_v39 = vrot.slane %v7760_v34, 1  ;;  %v7628_v15 = vld [vmem:[%s9469_s21 + $0x6c] sm:$0xf]  ;;  %v10386_v11 = vld [vmem:[%s9469_s21 + $0x70] sm:$0xf]  ;;  %v3642_v45 = vshll.u32 %v10396_v57, 16 }
  0xf9   : > { %2552 = vrot.lane.b32.xlu0 %v8964_v53, %s13616_s26  ;;  %v1539_v53 = vrot.slane %v10207_v63, 1  ;;  %v1943_v26 = vshrl.u32 %v7801_v42, 16 }
  0xfa   : > { %2902 = vrot.lane.b32.xlu1 %v2781_v51, %s13618_s22  ;;  %v3260_v51 = vrot.slane %v7917_v50, 1  ;;  %v3065_v31 = vsel %vm968_vm1, %v3060_v62, %v3064_v2  ;;  %v1935_v50 = vrot.slane %v1933_v58, 1  ;;  %v10410_v62 = vcombine.low %v7628_v15, %v10386_v11  ;;  %v9264_v2 = vld [vmem:[%s9469_s21 + $0x2ac] sm:$0xff]  }
  0xfb   : > { %v10328_v44 = vpop.permute.xlu0 %2896  ;;  %v10333_v33 = vpop.permute.xlu1 %3166  ;;  %v1540_v56 = vsel %vm1513_vm0, %v1538_v29, %v1539_v53  ;;  %v10400_v29 = vld [vmem:[%s9469_s21 + $0x80] ss:$0 sps:$4 sm:$0x11]   ;;  %v2205_v58 = vshll.u32 %v10392_v54, 16  ;;  %v10435_v15 = vld [vmem:[%s9469_s21 + $0x150] sm:$0xff]  }
  0xfc   : > { %v3262_v6 = vsel %vm1513_vm0, %v3260_v51, %v3261_v0  ;;  %v9263_v53 = vld [vmem:[%s9469_s21 + $0x2a0] sm:$0xff]   ;;  %v1945_v0 = vshll.u32 %v7801_v42, 16  ;;  %v4194_v51 = vsel %vm4186_vm2, %v9264_v2, %v9983_v37  ;;  %v3635_v37 = vshrl.u32 %v7955_v48, 16 }
  0xfd   : > { %1179 = vrot.lane.b32.xlu0 %v1088_v41, %s13617_s12  ;;  %v4192_v61 = vsel %vm4186_vm2, %v9263_v53, %v9962_v8  ;;  %v3644_v42 = vrot.slane %v3642_v45, 1  ;;  %v3647_v45 = vshrl.u32 %v10410_v62, 16 }
  0xfe   : > { %1449 = vrot.lane.b32.xlu1 %v1348_v20, %s13577_s24  ;;  %v1542_v20 = vrot.slane %v10276_v18, 1  ;;  %v4225_v34 = vsel %vm13581_vm3, %v4192_v61, %v9987_v25  ;;  %v1947_v3 = vrot.slane %v1945_v0, 1  ;;  %v2203_v61 = vshrl.u32 %v10392_v54, 16 }
  0xff   : > { %v10343_v7 = vpop.permute.xlu0 %1443  ;;  %v10349_v10 = vpop.permute.xlu1 %1570  ;;  %v2207_v0 = vrot.slane %v2205_v58, 1 }
 0x100   : > { %v1543_v19 = vsel %vm1513_vm0, %v1541_v39, %v1542_v20  ;;  %v1950_v20 = vshll.u32 %v10400_v29, 16 }
 0x101   : > { %2904 = vrot.lane.b32.xlu0 %v2793_v5, %s13618_s22  ;;  %v1931_v5 = vshrl.u32 %v7799_v43, 16  ;;  %v8991_v43 = vld [vmem:[%s9469_s21 + $0x14c] ss:$0 sps:$4 sm:$0x11]  }
 0x102   : > { %3174 = vrot.lane.b32.xlu1 %v3053_v1, %s13575_s18  ;;  %s13624_s18 = smov 9   ;;  %v3637_v1 = vshll.u32 %v7955_v48, 16  ;;  %v4227_v48 = vsel %vm13581_vm3, %v4194_v51, %v10005_v13  ;;  %v1952_v51 = vrot.slane %v1950_v20, 1  ;;  %v2215_v20 = vshrl.u32 %v10435_v15, 16 }
 0x103   : > { %v10357_v63 = vpop.permute.xlu0 %3168  ;;  %v10369_v41 = vpop.permute.xlu1 %3294 }
 0x104   : > { %v3639_v39 = vrot.slane %v3637_v1, 1  ;;  %v8994_v1 = vld [vmem:[%s9469_s21 + $0x140] ss:$0 sps:$4 sm:$0x11]  }
 0x105   : > { %1451 = vrot.lane.b32.xlu0 %v1360_v21, %s13577_s24  ;;  %s13627_s24 = smov 30  }
 0x106   : > { %1578 = vrot.lane.b32.xlu1 %v1540_v56, %s13624_s18  ;;  %v1940_v56 = vrot.slane %v1938_v22, 1  ;;  %v2210_v22 = vshll.u32 %v8991_v43, 16  ;;  %v3640_v13 = vor.u32 %v3639_v39, %v3635_v37  ;;  %v3914_v39 = vshll.u32 %v8994_v1, 16 }
 0x107   : > { %v10379_v40 = vpop.permute.xlu0 %1572  ;;  %v10388_v18 = vpop.permute.xlu1 %1682 }
 0x108   : > { %13625 = vst [vmem:[#allocation9_spill] sm:$0xff] %v10379_v40  ;;  %13626 = vst [vmem:[#allocation10_spill] sm:$0xff] %v10388_v18  ;;  %v4260_v18 = vsel %vm13579_vm4, %v4227_v48, %v10046_v30 }
 0x109   : > { %3176 = vrot.lane.b32.xlu0 %v3065_v31, %s13627_s24  ;;  %v1936_v31 = vor.u32 %v1935_v50, %v1931_v5  ;;  %v4258_v5 = vsel %vm13579_vm4, %v4225_v34, %v10011_v46  ;;  %v3654_v50 = vshll.u32 %v10418_v36, 16  ;;  %v8995_v46 = vld [vmem:[%s9469_s21 + $0x158] ss:$0 sps:$4 sm:$0x11]   ;;  %v2217_v34 = vshll.u32 %v10435_v15, 16 }
 0x10a   : > { %3302 = vrot.lane.b32.xlu1 %v3262_v6, %s13628_s0  ;;  %v10432_v6 = vld [vmem:[%s9469_s21 + $0x138] sm:$0xff]   ;;  %v4291_v40 = vsel %vm13580_vm5, %v4258_v5, %v10062_v38  ;;  %v2222_v38 = vshll.u32 %v8995_v46, 16  ;;  %vm13632_vm4 = vcmask 146432   ;;  %v3916_v46 = vrot.slane %v3914_v39, 1 }
 0x10b   : > { %v10406_v21 = vpop.permute.xlu0 %3296  ;;  %v10420_v8 = vpop.permute.xlu1 %3406  ;;  %v3909_v43 = vshll.u32 %v10432_v6, 16  ;;  %v1941_v2 = vsel %vm968_vm1, %v1936_v31, %v1940_v56  ;;  %v3907_v56 = vshrl.u32 %v10432_v6, 16  ;;  %v2212_v31 = vrot.slane %v2210_v22, 1  ;;  %v7677_v22 = vld [vmem:[%s9469_s21 + $0x60] sm:$0xe] }
 0x10c   : > { %v3656_v37 = vrot.slane %v3654_v50, 1  ;;  %v4324_v30 = vsel %vm4318_vm6, %v4291_v40, %v10124_v60  ;;  %v2219_v48 = vrot.slane %v2217_v34, 1  ;;  %v7456_v5 = vld [vmem:[%s9469_s21 + $0x78] sm:$0xe]  ;;  %v10488_v60 = vld [vmem:[%s9469_s21 + $0x22c] sm:$0xf] }
 0x10d   : > { %1580 = vrot.lane.b32.xlu0 %v1543_v19, %s13624_s18  ;;  %v3649_v19 = vshll.u32 %v10410_v62, 16  ;;  %v2208_v62 = vor.u32 %v2207_v0, %v2203_v61  ;;  %v4357_v50 = vsel %vm13632_vm4, %v4324_v30, %v10165_v55  ;;  %v7301_v61 = vld [vmem:[%s9469_s21 + $0x228] sm:$0xf]  ;;  %v2403_v34 = vrot.slane %v10373_v52, 1 }
 0x10e   : > { %1690 = vrot.lane.b32.xlu1 %v10392_v54, %s13612_s25  ;;  %v1948_v54 = vor.u32 %v1947_v3, %v1943_v26  ;;  %v8997_v3 = vld [vmem:[%s9469_s21 + $0x14c] ss:$0 sps:$4 sm:$0x11]   ;;  %v2220_v52 = vor.u32 %v2219_v48, %v2215_v20 }
 0x10f   : > { %v10429_v25 = vpop.permute.xlu0 %1684  ;;  %v10444_v53 = vpop.permute.xlu1 %2034  ;;  %v3651_v58 = vrot.slane %v3649_v19, 1  ;;  %v4293_v19 = vsel %vm13580_vm5, %v4260_v18, %v10116_v14  ;;  %v3645_v14 = vsel %vm968_vm1, %v3640_v13, %v3644_v42  ;;  %vm13633_vm5 = vmmov %vm13632_vm4  ;;  %vm13634_vm4 = vcmask 171008  }
 0x110   : > { %13629 = vst [vmem:[#allocation11_spill] sm:$0xff] %v10429_v25  ;;  %13630 = vst [vmem:[#allocation12_spill] sm:$0xff] %v10444_v53  ;;  %v7455_v25 = vld [vmem:[%s9469_s21 + $0x6c] sm:$0xe]  ;;  %v1953_v0 = vsel %vm968_vm1, %v1948_v54, %v1952_v51  ;;  %v4390_v42 = vsel %vm13634_vm4, %v4357_v50, %v10217_v35  ;;  %v3926_v51 = vshll.u32 %v8997_v3, 16  ;;  %v10509_v54 = vcombine.low %v7301_v61, %v10488_v60 }
 0x111   : > { %3304 = vrot.lane.b32.xlu0 %v3265_v59, %s13628_s0  ;;  %v10457_v59 = vld [vmem:[%s9469_s21 + $0x144] sm:$0xff]   ;;  %v3652_v18 = vor.u32 %v3651_v58, %v3647_v45  ;;  %v7519_v35 = vld [vmem:[%s9469_s21 + $0x21c] sm:$0xf] }
 0x112   : > { %3414 = vrot.lane.b32.xlu1 %v10432_v6, %s13631_s1  ;;  %v3911_v6 = vrot.slane %v3909_v43, 1  ;;  %v3921_v55 = vshll.u32 %v10457_v59, 16  ;;  %v7678_v43 = vld [vmem:[%s9469_s21 + $0x6c] sm:$0xe]  ;;  %v1092_v20 = vshll.u32 %v10509_v54, 16 }
 0x113   : > { %v10454_v53 = vpop.permute.xlu0 %3408  ;;  %v10467_v26 = vpop.permute.xlu1 %3758  ;;  %v3657_v58 = vsel %vm968_vm1, %v3652_v18, %v3656_v37  ;;  %v3928_v37 = vrot.slane %v3926_v51, 1  ;;  %v7522_v51 = vld [vmem:[%s9469_s21 + $0x228] sm:$0xf] }
 0x114   : > { %v3923_v3 = vrot.slane %v3921_v55, 1 }
 0x115   : > { %1692 = vrot.lane.b32.xlu0 %v10435_v15, %s13612_s25  ;;  %v4326_v15 = vsel %vm4318_vm6, %v4293_v19, %v10158_v49  ;;  %v7839_v49 = vcombine.low %v7455_v25, %v10340_v32  ;;  %v7997_v32 = vcombine.low %v7677_v22, %v10362_v27  ;;  %v3912_v25 = vor.u32 %v3911_v6, %v3907_v56  ;;  %v10519_v27 = vld [vmem:[%s9469_s21 + $0x220] sm:$0xf]  ;;  %v10522_v56 = vld [vmem:[%s9469_s21 + $0x224] ss:$0 sps:$4 sm:$0x11]  }
 0x116   : > { %2042 = vrot.lane.b32.xlu1 %v1941_v2, %s13613_s17  ;;  %v4359_v40 = vsel %vm13633_vm5, %v4326_v15, %v10204_v23  ;;  %v10497_v2 = vld [vmem:[%s9469_s21 + $0x230] ss:$0 sps:$4 sm:$0x11]   ;;  %v2213_v23 = vsel %vm968_vm1, %v2208_v62, %v2212_v31  ;;  %v2224_v19 = vrot.slane %v2222_v38, 1  ;;  %v7840_v31 = vcombine.low %v7456_v5, %v10367_v16  ;;  %v7304_v5 = vld [vmem:[%s9469_s21 + $0x234] sm:$0xf]  ;;  %vm13635_vm5 = vmmov %vm13634_vm4 }
 0x117   : > { %v10483_v1 = vpop.permute.xlu0 %2036  ;;  %v10501_v13 = vpop.permute.xlu1 %2306  ;;  %v7998_v62 = vcombine.low %v7678_v43, %v10386_v11  ;;  %v2402_v39 = vrot.slane %v7839_v49, 1  ;;  %v3919_v6 = vshrl.u32 %v10457_v59, 16  ;;  %v10526_v30 = vrot.slane %v7997_v32, 1  ;;  %v10539_v15 = vld [vmem:[%s9469_s21 + $0x238] sm:$0xf] }
 0x118   : > { %v4125_v16 = vrot.slane %v10396_v57, 1  ;;  %v2406_v11 = vrot.slane %v10400_v29, 1  ;;  %v4423_v38 = vsel %vm4417_vm9, %v4390_v42, %v10281_v4  ;;  %v10535_v48 = vcombine.low %v7519_v35, %v10519_v27 }
 0x119   : > { %3416 = vrot.lane.b32.xlu0 %v10457_v59, %s13631_s1  ;;  %v1097_v59 = vshll.u32 %v10497_v2, 16  ;;  %v10544_v18 = vrot.slane %v7998_v62, 1  ;;  %v4128_v4 = vrot.slane %v10418_v36, 1  ;;  %v2802_v61 = vshll.u32 %v10522_v56, 16  ;;  %v10582_v62 = vld [vmem:[%s9469_s21 + $0x2f4] sm:$0xff]  }
 0x11a   : > { %3766 = vrot.lane.b32.xlu1 %v3645_v14, %s13620_s20  ;;  %v2405_v14 = vrot.slane %v7840_v31, 1  ;;  %v4456_v49 = vsel %vm4450_vm10, %v4423_v38, %v10312_v28  ;;  %v3917_v55 = vsel %vm968_vm1, %v3912_v25, %v3916_v46  ;;  %v3924_v43 = vor.u32 %v3923_v3, %v3919_v6  ;;  %v10571_v46 = vld [vmem:[%s9469_s21 + $0x22c] sm:$0xf] }
 0x11b   : > { %v10513_v45 = vpop.permute.xlu0 %3760  ;;  %v4031_v22 = vpop.permute.xlu1 %4030  ;;  %v1090_v42 = vshrl.u32 %v10509_v54, 16  ;;  %v4392_v32 = vsel %vm13635_vm5, %v4359_v40, %v10264_v17  ;;  %v4489_v35 = vsel %vm4483_vm11, %v4456_v49, %v10333_v33  ;;  %v2225_v28 = vsel %vm968_vm1, %v2220_v52, %v2224_v19  ;;  %v9013_v49 = vld [vmem:[%s9469_s21 + $0x2fc] ss:$0 sps:$4 sm:$0x11]  }
 0x11c   : > { %v10568_v25 = vcombine.low %v7304_v5, %v10539_v15  ;;  %v4522_v54 = vsel %vm4516_vm12, %v4489_v35, %v10369_v41  ;;  %v1094_v17 = vrot.slane %v1092_v20, 1  ;;  %v10575_v40 = vrot.slane %v1097_v59, 1  ;;  %v9010_v41 = vld [vmem:[%s9469_s21 + $0x308] ss:$0 sps:$4 sm:$0x11]  }
 0x11d   : > { %2044 = vrot.lane.b32.xlu0 %v1953_v0, %s13613_s17  ;;  %v10549_v0 = vld [vmem:[%s9469_s21 + $0x300] sm:$0xff]   ;;  %v2797_v33 = vshll.u32 %v10535_v48, 16  ;;  %v2795_v52 = vshrl.u32 %v10535_v48, 16  ;;  %v10585_v6 = vrot.slane %v2802_v61, 1  ;;  %v2404_v20 = vsel %vm1513_vm0, %v2402_v39, %v2403_v34 }
 0x11e   : > { %2314 = vrot.lane.b32.xlu1 %v2213_v23, %s13614_s10  ;;  %v10556_v23 = vld [vmem:[%s9469_s21 + $0x23c] ss:$0 sps:$4 sm:$0x11]   ;;  %v1362_v3 = vshrl.u32 %v10549_v0, 16  ;;  %v10594_v59 = vcombine.low %v7522_v51, %v10571_v46  ;;  %v4425_v61 = vsel %vm4417_vm9, %v4392_v32, %v10307_v47  ;;  %v1104_v34 = vshll.u32 %v10568_v25, 16 }
 0x11f   : > { %v10542_v50 = vpop.permute.xlu0 %2308  ;;  %v10563_v31 = vpop.permute.xlu1 %2434  ;;  %v10597_v5 = vld [vmem:[%s9469_s21 + $0x230] ss:$0 sps:$4 sm:$0x11]   ;;  %v4458_v39 = vsel %vm4450_vm10, %v4425_v61, %v10328_v44  ;;  %v1109_v51 = vshll.u32 %v10556_v23, 16  ;;  %v1364_v32 = vshll.u32 %v10549_v0, 16  ;;  %v1369_v44 = vshll.u32 %v9010_v41, 16 }
 0x120   : > { %v4491_v47 = vsel %vm4483_vm11, %v4458_v39, %v10357_v63  ;;  %v4126_v63 = vsel %vm1513_vm0, %v10526_v30, %v4125_v16  ;;  %v1095_v57 = vor.u32 %v1094_v17, %v1090_v42  ;;  %v3074_v41 = vshll.u32 %v9013_v49, 16  ;;  %v7413_v48 = vld [vmem:[%s9469_s21 + $0x84] sm:$0xf] }
 0x121   : > { %3768 = vrot.lane.b32.xlu0 %v3657_v58, %s13620_s20  ;;  %v4555_v58 = vsel %vm4549_vm13, %v4522_v54, %v10420_v8  ;;  %v3929_v8 = vsel %vm968_vm1, %v3924_v43, %v3928_v37  ;;  %v2799_v43 = vrot.slane %v2797_v33, 1  ;;  %v10611_v54 = vld [vmem:[%s9469_s21 + $0x30c] sm:$0xff]   ;;  %v4524_v33 = vsel %vm4516_vm12, %v4491_v47, %v10406_v21 }
 0x122   : > { %4038 = vrot.lane.b32.xlu1 %v3917_v55, %s13622_s19  ;;  %v4588_v38 = vsel %vm4582_vm14, %v4555_v58, %v10467_v26  ;;  %v1102_v26 = vshrl.u32 %v10568_v25, 16  ;;  %v2809_v58 = vshll.u32 %v10594_v59, 16  ;;  %v2407_v21 = vsel %vm1513_vm0, %v2405_v14, %v2406_v11  ;;  %v7345_v14 = vld [vmem:[%s9469_s21 + $0x228] sm:$0xe] }
 0x123   : > { %v4033_v19 = vpop.permute.xlu0 %4032  ;;  %v4621_v55 = vsel %vm4615_vm15, %v4588_v38, %v4031_v22  ;;  %v4159_v35 = vpop.permute.xlu1 %4158  ;;  %v2814_v38 = vshll.u32 %v10597_v5, 16  ;;  %v1106_v16 = vrot.slane %v1104_v34, 1  ;;  %v1371_v29 = vrot.slane %v1369_v44, 1 }
 0x124   : > { %v4654_v37 = vsel %vm4648_vm7, %v4621_v55, %v4159_v35  ;;  %v9015_v55 = vld [vmem:[%s9469_s21 + $0x314] ss:$0 sps:$4 sm:$0x11]   ;;  %v1111_v35 = vrot.slane %v1109_v51, 1  ;;  %v3067_v11 = vshrl.u32 %v10582_v62, 16  ;;  %v1374_v49 = vshrl.u32 %v10611_v54, 16 }
 0x125   : > { %2316 = vrot.lane.b32.xlu0 %v2225_v28, %s13614_s10  ;;  %8376 = vmatprep.mubr.msk.bf16.mxu0 %vm13598_vm8, %v4654_v37  ;;  %v3069_v28 = vshll.u32 %v10582_v62, 16  ;;  %v1366_v37 = vrot.slane %v1364_v32, 1  ;;  %v2811_v51 = vrot.slane %v2809_v58, 1  ;;  %v2816_v47 = vrot.slane %v2814_v38, 1 }
 0x126   : > { %2442 = vrot.lane.b32.xlu1 %v2404_v20, %s13623_s23  ;;  %v4557_v20 = vsel %vm4549_vm13, %v4524_v33, %v10454_v53  ;;  %v1376_v53 = vshll.u32 %v10611_v54, 16  ;;  %v10655_v32 = vrot.slane %v3074_v41, 1  ;;  %v1381_v44 = vshll.u32 %v9015_v55, 16 }
 0x127   : > { %v10617_v22 = vpop.permute.xlu0 %2436  ;;  %v10631_v61 = vpop.permute.xlu1 %2546  ;;  %v4590_v30 = vsel %vm4582_vm14, %v4557_v20, %v10513_v45  ;;  %v2807_v45 = vshrl.u32 %v10594_v59, 16  ;;  %v3071_v17 = vrot.slane %v3069_v28, 1  ;;  %v4129_v59 = vsel %vm1513_vm0, %v10544_v18, %v4128_v4  ;;  %v7346_v18 = vld [vmem:[%s9469_s21 + $0x234] sm:$0xe] }
 0x128   : > { %v4623_v39 = vsel %vm4615_vm15, %v4590_v30, %v4033_v19  ;;  %v10653_v19 = vld [vmem:[%s9469_s21 + $0x300] sm:$0xff]   ;;  %v1378_v28 = vrot.slane %v1376_v53, 1  ;;  %v7761_v33 = vcombine.low %v7345_v14, %v10488_v60  ;;  %v1545_v58 = vrot.slane %v10497_v2, 1 }
 0x129   : > { %4040 = vrot.lane.b32.xlu0 %v3929_v8, %s13622_s19  ;;  %v3079_v38 = vshrl.u32 %v10653_v19, 16  ;;  %v1100_v36 = vsel %vm968_vm1, %v1095_v57, %v10575_v40  ;;  %v2800_v60 = vor.u32 %v2799_v43, %v2795_v52  ;;  %v10678_v41 = vrot.slane %v1381_v44, 1  ;;  %v7568_v57 = vld [vmem:[%s9469_s21 + $0x228] sm:$0xe]  ;;  %v7416_v44 = vld [vmem:[%s9469_s21 + $0x90] sm:$0xf] }
 0x12a   : > { %4166 = vrot.lane.b32.xlu1 %v4126_v63, %s13615_s13  ;;  %v9017_v63 = vld [vmem:[%s9469_s21 + $0x308] ss:$0 sps:$4 sm:$0x11]   ;;  %v3081_v55 = vshll.u32 %v10653_v19, 16  ;;  %v1107_v30 = vor.u32 %v1106_v16, %v1102_v26  ;;  %v10683_v53 = vrot.slane %v7761_v33, 1  ;;  %v1367_v43 = vor.u32 %v1366_v37, %v1362_v3  ;;  %v10714_v33 = vld [vmem:[%s9469_s21 + $0x15c] sm:$0xff]  }
 0x12b   : > { %v4161_v8 = vpop.permute.xlu0 %4160  ;;  %v10648_v34 = vpop.permute.xlu1 %1173  ;;  %v3086_v40 = vshll.u32 %v9017_v63, 16  ;;  %v2805_v25 = vsel %vm968_vm1, %v2800_v60, %v10585_v6  ;;  %v10700_v16 = vld [vmem:[%s9469_s21 + $0x7c] sm:$0xf]  ;;  %v7762_v37 = vcombine.low %v7346_v18, %v10539_v15  ;;  %v10710_v6 = vld [vmem:[%s9469_s21 + $0x94] sm:$0xf]  ;;  %v7920_v63 = vcombine.low %v7568_v57, %v10571_v46 }
 0x12c   : > { %v4656_v42 = vsel %vm4648_vm7, %v4623_v39, %v4161_v8  ;;  %13636 = vst [vmem:[#allocation13_spill] sm:$0xff] %v10648_v34  ;;  %v10693_v39 = vld [vmem:[%s9469_s21 + $0x88] sm:$0xf]  ;;  %v7631_v8 = vld [vmem:[%s9469_s21 + $0x78] sm:$0xf]  ;;  %v3083_v0 = vrot.slane %v3081_v55, 1  ;;  %v1372_v15 = vsel %vm968_vm1, %v1367_v43, %v1371_v29  ;;  %v3072_v46 = vor.u32 %v3071_v17, %v3067_v11 }
 0x12d   : > { %2444 = vrot.lane.b32.xlu0 %v2407_v21, %s13623_s23  ;;  %8377 = vmatmul.mubr.msk.bf16.gmra.mxu0 %vm13598_vm8, %v4656_v42  ;;  %v7567_v21 = vld [vmem:[%s9469_s21 + $0x21c] sm:$0xe]  ;;  %v2812_v42 = vor.u32 %v2811_v51, %v2807_v45  ;;  %v10721_v45 = vld [vmem:[%s9469_s21 + $0x8c] ss:$0 sps:$4 sm:$0x11]   ;;  %v10742_v55 = vcombine.low %v7416_v44, %v10710_v6  ;;  %v10750_v57 = vrot.slane %v7762_v37, 1 }
 0x12e   : > { %2554 = vrot.lane.b32.xlu1 %v10582_v62, %s13616_s26  ;;  %v7919_v26 = vcombine.low %v7567_v21, %v10519_v27  ;;  %v1112_v27 = vsel %vm968_vm1, %v1107_v30, %v1111_v35  ;;  %v10728_v35 = vcombine.low %v7631_v8, %v10700_v16  ;;  %v10731_v21 = vld [vmem:[%s9469_s21 + $0x80] ss:$0 sps:$4 sm:$0x11]   ;;  %v7634_v11 = vld [vmem:[%s9469_s21 + $0x84] sm:$0xf]  ;;  %v10757_v43 = vrot.slane %v7920_v63, 1 }
 0x12f   : > { %v10665_v20 = vpop.permute.xlu0 %2548  ;;  %v10675_v4 = vpop.permute.xlu1 %2898  ;;  %v2817_v29 = vsel %vm968_vm1, %v2812_v42, %v2816_v47  ;;  %v10755_v17 = vld [vmem:[%s9469_s21 + $0x88] sm:$0xf]  ;;  %v3077_v42 = vsel %vm968_vm1, %v3072_v46, %v10655_v32  ;;  %v1969_v37 = vshll.u32 %v10742_v55, 16  ;;  %v1546_v32 = vsel %vm1513_vm0, %v10683_v53, %v1545_v58  ;;  %v7457_v34 = vld [vmem:[%s9469_s21 + $0x84] sm:$0xe] }
 0x130   : > { %v10738_v60 = vrot.slane %v7919_v26, 1  ;;  %v3661_v26 = vshll.u32 %v10728_v35, 16  ;;  %v10776_v44 = vcombine.low %v7634_v11, %v10755_v17  ;;  %v10791_v46 = vld [vmem:[%s9469_s21 + $0x168] sm:$0xff]   ;;  %v9034_v11 = vld [vmem:[%s9469_s21 + $0x158] ss:$0 sps:$4 sm:$0x11]  }
 0x131   : > { %4168 = vrot.lane.b32.xlu0 %v4129_v59, %s13615_s13  ;;  %v3088_v59 = vrot.slane %v3086_v40, 1  ;;  %v1379_v40 = vor.u32 %v1378_v28, %v1374_v49  ;;  %v1962_v28 = vshll.u32 %v10721_v45, 16  ;;  %v2229_v18 = vshll.u32 %v10714_v33, 16 }
 0x132   : > { %1181 = vrot.lane.b32.xlu1 %v1100_v36, %s13617_s12  ;;  %v10734_v36 = vld [vmem:[%s9469_s21 + $0x98] ss:$0 sps:$4 sm:$0x11]   ;;  %v10804_v53 = vrot.slane %v3661_v26, 1  ;;  %v3938_v58 = vshll.u32 %v9034_v11, 16  ;;  %vm13651_vm4 = vcmask 72704  }
 0x133   : > { %v10688_v52 = vpop.permute.xlu0 %1175  ;;  %v10702_v14 = vpop.permute.xlu1 %1445  ;;  %v1974_v47 = vshll.u32 %v10734_v36, 16  ;;  %v10801_v2 = vrot.slane %v1962_v28, 1  ;;  %v10815_v28 = vrot.slane %v1969_v37, 1  ;;  %vm13653_vm5 = vmmov %vm13651_vm4 }
 0x134   : > { %13637 = vst [vmem:[#allocation14_spill] sm:$0xff] %v10688_v52  ;;  %13638 = vst [vmem:[#allocation15_spill] sm:$0xff] %v10702_v14 }
 0x135   : > { %2556 = vrot.lane.b32.xlu0 %v10653_v19, %s13616_s26  ;;  %v10718_v19 = vcombine.low %v7413_v48, %v10693_v39  ;;  %v3084_v48 = vor.u32 %v3083_v0, %v3079_v38  ;;  %v3666_v38 = vshll.u32 %v10731_v21, 16  ;;  %v10772_v0 = vld [vmem:[%s9469_s21 + $0x150] sm:$0xff]   ;;  %v10817_v26 = vrot.slane %v1974_v47, 1 }
 0x136   : > { %2906 = vrot.lane.b32.xlu1 %v2805_v25, %s13618_s22  ;;  %v9031_v25 = vld [vmem:[%s9469_s21 + $0x164] ss:$0 sps:$4 sm:$0x11]   ;;  %v13646_v47 = vrot.slane %v10522_v56, 1  ;;  %v10848_v56 = vrot.slane %v3938_v58, 1 }
 0x137   : > { %v10724_v51 = vpop.permute.xlu0 %2900  ;;  %v10744_v30 = vpop.permute.xlu1 %3170  ;;  %v1957_v8 = vshll.u32 %v10718_v19, 16  ;;  %v3089_v62 = vsel %vm968_vm1, %v3084_v48, %v3088_v59  ;;  %v2234_v3 = vshll.u32 %v9031_v25, 16  ;;  %v10807_v59 = vrot.slane %v3666_v38, 1  ;;  %v10821_v38 = vld [vmem:[%s9469_s21 + $0x15c] sm:$0xff]  }
 0x138   : > { %13639 = vst [vmem:[#allocation16_spill] sm:$0xff] %v10724_v51  ;;  %v3673_v48 = vshll.u32 %v10776_v44, 16  ;;  %v3933_v25 = vshll.u32 %v10772_v0, 16  ;;  %v7307_v58 = vld [vmem:[%s9469_s21 + $0x240] sm:$0xf] }
 0x139   : > { %1183 = vrot.lane.b32.xlu0 %v1112_v27, %s13617_s12  ;;  %v10779_v27 = vld [vmem:[%s9469_s21 + $0x8c] ss:$0 sps:$4 sm:$0x11]   ;;  %v1959_v49 = vrot.slane %v1957_v8, 1  ;;  %v10825_v52 = vrot.slane %v2234_v3, 1 }
 0x13a   : > { %1453 = vrot.lane.b32.xlu1 %v1372_v15, %s13640_s14  ;;  %13642 = vst [vmem:[#allocation18_spill] sm:$0xff] %v10779_v27  ;;  %v1384_v15 = vsel %vm968_vm1, %v1379_v40, %v10678_v41  ;;  %v3678_v8 = vshll.u32 %v10779_v27, 16  ;;  %v2241_v40 = vshll.u32 %v10791_v46, 16  ;;  %v10838_v3 = vrot.slane %v3673_v48, 1  ;;  %v10992_v27 = vld [vmem:[%s9469_s21 + $0x324] sm:$0xff]  }
 0x13b   : > { %v10763_v54 = vpop.permute.xlu0 %1447  ;;  %v10781_v63 = vpop.permute.xlu1 %1574 }
 0x13c   : > { %13641 = vst [vmem:[#allocation17_spill] sm:$0xff] %v10763_v54  ;;  %13643 = vst [vmem:[#allocation19_spill] sm:$0xff] %v10781_v63  ;;  %v10823_v54 = vrot.slane %v2229_v18, 1  ;;  %v9037_v18 = vld [vmem:[%s9469_s21 + $0x164] ss:$0 sps:$4 sm:$0x11]  }
 0x13d   : > { %2908 = vrot.lane.b32.xlu0 %v2817_v29, %s13618_s22  ;;  %v9035_v29 = vld [vmem:[%s9469_s21 + $0x170] ss:$0 sps:$4 sm:$0x11]   ;;  %v10840_v63 = vrot.slane %v3678_v8, 1  ;;  %v7679_v8 = vld [vmem:[%s9469_s21 + $0x78] sm:$0xe] }
 0x13e   : > { %3178 = vrot.lane.b32.xlu1 %v3077_v42, %s13627_s24  ;;  %v2246_v14 = vshll.u32 %v9035_v29, 16  ;;  %v10842_v29 = vrot.slane %v3933_v25, 1  ;;  %v13648_v25 = vrot.slane %v10556_v23, 1 }
 0x13f   : > { %v10799_v41 = vpop.permute.xlu0 %3172  ;;  %v10812_v42 = vpop.permute.xlu1 %3298 }
 0x140   : > { %13644 = vst [vmem:[#allocation20_spill] sm:$0xff] %v10799_v41  ;;  %v10859_v11 = vrot.slane %v2246_v14, 1  ;;  %v3945_v14 = vshll.u32 %v10821_v38, 16 }
 0x141   : > { %1455 = vrot.lane.b32.xlu0 %v1384_v15, %s13640_s14  ;;  %v3268_v15 = vsel %vm1513_vm0, %v10738_v60, %v13646_v47  ;;  %v10850_v60 = vrot.slane %v2241_v40, 1  ;;  %v7841_v47 = vcombine.low %v7457_v34, %v10693_v39  ;;  %v9265_v40 = vld [vmem:[%s9469_s21 + $0x2b8] sm:$0xff]   ;;  %v9266_v39 = vld [vmem:[%s9469_s21 + $0x2c4] sm:$0xff]  }
 0x142   : > { %1582 = vrot.lane.b32.xlu1 %v1546_v32, %s13624_s18  ;;  %v1549_v32 = vsel %vm1513_vm0, %v10750_v57, %v13648_v25  ;;  %v4196_v34 = vsel %vm4186_vm2, %v9265_v40, %v10296_v24  ;;  %v4198_v48 = vsel %vm4186_vm2, %v9266_v39, %v10318_v12  ;;  %v3950_v57 = vshll.u32 %v9037_v18, 16  ;;  %v7458_v25 = vld [vmem:[%s9469_s21 + $0x90] sm:$0xe]  ;;  %v7525_v40 = vld [vmem:[%s9469_s21 + $0x234] sm:$0xf]  ;;  %v13652_v18 = vld [vmem:[#allocation9_spill] sm:$0xff] }
 0x143   : > { %v10830_v37 = vpop.permute.xlu0 %1576  ;;  %v4231_v24 = vsel %vm13581_vm3, %v4198_v48, %v10343_v7  ;;  %v13650_v12 = vshrl.u32 %v10718_v19, 16  ;;  %v10885_v39 = vld [vmem:[%s9469_s21 + $0x238] sm:$0xf]  ;;  %v7999_v7 = vcombine.low %v7679_v8, %v10700_v16  ;;  %v7680_v19 = vld [vmem:[%s9469_s21 + $0x84] sm:$0xe]  ;;  %v13654_v48 = vld [vmem:[#allocation10_spill] sm:$0xff] }
 0x144   : > { %13645 = vst [vmem:[#allocation21_spill] sm:$0xff] %v10830_v37  ;;  %v10845_v37 = vpop.permute.xlu1 %1686  ;;  %v4264_v41 = vsel %vm13653_vm5, %v4231_v24, %v13652_v18  ;;  %v10912_v16 = vld [vmem:[%s9469_s21 + $0x23c] ss:$0 sps:$4 sm:$0x11]   ;;  %v10923_v24 = vrot.slane %v3950_v57, 1  ;;  %vm13680_vm5 = vcmask 171008  }
 0x145   : > { %13647 = vst [vmem:[#allocation22_spill] sm:$0xff] %v10845_v37  ;;  %3180 = vrot.lane.b32.xlu0 %v3089_v62, %s13627_s24  ;;  %v10875_v62 = vld [vmem:[%s9469_s21 + $0x244] sm:$0xf]  ;;  %v4229_v37 = vsel %vm13581_vm3, %v4196_v34, %v10322_v9  ;;  %v10894_v9 = vrot.slane %v7841_v47, 1  ;;  %vm13655_vm3 = vcmask 97280   ;;  %v10940_v57 = vld [vmem:[%s9469_s21 + $0x318] sm:$0xff]  }
 0x146   : > { %3306 = vrot.lane.b32.xlu1 %v3268_v15, %s13628_s0  ;;  %v1960_v15 = vor.u32 %v1959_v49, %v13650_v12  ;;  %v10899_v49 = vld [vmem:[%s9469_s21 + $0x248] ss:$0 sps:$4 sm:$0x11]   ;;  %v10909_v47 = vcombine.low %v7307_v58, %v10875_v62  ;;  %v10926_v12 = vcombine.low %v7525_v40, %v10885_v39  ;;  %v7310_v58 = vld [vmem:[%s9469_s21 + $0x24c] sm:$0xf] }
 0x147   : > { %v10870_v23 = vpop.permute.xlu0 %3300  ;;  %v10930_v18 = vld [vmem:[%s9469_s21 + $0x250] sm:$0xf]  ;;  %v10944_v40 = vld [vmem:[%s9469_s21 + $0x244] sm:$0xf] }
 0x148   : > { %13649 = vst [vmem:[#allocation23_spill] sm:$0xff] %v10870_v23  ;;  %v4262_v23 = vsel %vm13651_vm4, %v4229_v37, %v10349_v10  ;;  %v10891_v51 = vpop.permute.xlu1 %3410  ;;  %v13656_v10 = vrot.slane %v10597_v5, 1  ;;  %13657 = vst [vmem:[#allocation9_spill] sm:$0xff] %v10909_v47  ;;  %v13659_v5 = vshrl.u32 %v10728_v35, 16  ;;  %vm13675_vm4 = vcmask 146432  }
 0x149   : > { %1584 = vrot.lane.b32.xlu0 %v1549_v32, %s13624_s18  ;;  %v4295_v34 = vsel %vm13655_vm3, %v4262_v23, %v13654_v48  ;;  %13660 = vst [vmem:[#allocation24_spill] sm:$0xff] %v10926_v12  ;;  %v1965_v48 = vsel %vm968_vm1, %v1960_v15, %v10801_v2  ;;  %13662 = vst [vmem:[#allocation25_spill] sm:$0xff] %v10944_v40  ;;  %v13664_v2 = vshrl.u32 %v10714_v33, 16  ;;  %v10952_v15 = vrot.slane %v7999_v7, 1  ;;  %v13666_v7 = vld [vmem:[#allocation12_spill] sm:$0xff] }
 0x14a   : > { %v3271_v37 = vsel %vm1513_vm0, %v10757_v43, %v13656_v10  ;;  %1694 = vrot.lane.b32.xlu1 %v10714_v33, %s13612_s25  ;;  %v3664_v23 = vor.u32 %v10804_v53, %v13659_v5  ;;  %v10921_v43 = vrot.slane %v3945_v14, 1  ;;  %v13661_v10 = vshrl.u32 %v10742_v55, 16  ;;  %v7528_v5 = vld [vmem:[%s9469_s21 + $0x240] sm:$0xf] }
 0x14b   : > { %v10916_v8 = vpop.permute.xlu0 %1688  ;;  %v7842_v53 = vcombine.low %v7458_v25, %v10710_v6  ;;  %v8000_v14 = vcombine.low %v7680_v19, %v10755_v17  ;;  %v2232_v55 = vor.u32 %v10823_v54, %v13664_v2  ;;  %v1121_v17 = vshll.u32 %v10899_v49, 16  ;;  %v13665_v25 = vld [vmem:[#allocation11_spill] sm:$0xff] }
 0x14c   : > { %13658 = vst [vmem:[#allocation10_spill] sm:$0xff] %v10916_v8  ;;  %v1972_v35 = vor.u32 %v10815_v28, %v13661_v10  ;;  %v10946_v32 = vpop.permute.xlu1 %2038  ;;  %v10957_v28 = vld [vmem:[%s9469_s21 + $0x254] ss:$0 sps:$4 sm:$0x11]   ;;  %v10961_v19 = vsel %vm13655_vm3, %v4264_v41, %v13665_v25  ;;  %v1116_v33 = vshll.u32 %v10909_v47, 16  ;;  %v10966_v54 = vcombine.low %v7310_v58, %v10930_v18  ;;  %vm13683_vm3 = vmmov %vm13675_vm4 }
 0x14d   : > { %13663 = vst [vmem:[#allocation26_spill] sm:$0xff] %v10946_v32  ;;  %3308 = vrot.lane.b32.xlu0 %v3271_v37, %s13628_s0  ;;  %v4328_v10 = vsel %vm4318_vm6, %v4295_v34, %v13666_v7  ;;  %v3669_v41 = vsel %vm968_vm1, %v3664_v23, %v10807_v59  ;;  %v2821_v25 = vshll.u32 %v10926_v12, 16  ;;  %v9050_v37 = vld [vmem:[%s9469_s21 + $0x320] ss:$0 sps:$4 sm:$0x11]   ;;  %v10979_v6 = vcombine.low %v7528_v5, %v10944_v40  ;;  %v11001_v5 = vld [vmem:[%s9469_s21 + $0x30c] sm:$0xff]  }
 0x14e   : > { %3418 = vrot.lane.b32.xlu1 %v10772_v0, %s13631_s1  ;;  %v1977_v58 = vsel %vm968_vm1, %v1972_v35, %v10817_v26  ;;  %v10983_v34 = vrot.slane %v7842_v53, 1  ;;  %v10985_v7 = vrot.slane %v8000_v14, 1  ;;  %v2826_v8 = vshll.u32 %v10912_v16, 16  ;;  %v10989_v32 = vld [vmem:[%s9469_s21 + $0x248] ss:$0 sps:$4 sm:$0x11]  }
 0x14f   : > { %v10972_v2 = vpop.permute.xlu0 %3412  ;;  %v2237_v23 = vsel %vm968_vm1, %v2232_v55, %v10825_v52  ;;  %v11004_v35 = vrot.slane %v1121_v17, 1  ;;  %v9053_v14 = vld [vmem:[%s9469_s21 + $0x314] ss:$0 sps:$4 sm:$0x11]   ;;  %v1133_v40 = vshll.u32 %v10957_v28, 16  ;;  %v11016_v55 = vrot.slane %v2821_v25, 1 }
 0x150   : > { %13667 = vst [vmem:[#allocation11_spill] sm:$0xff] %v10972_v2  ;;  %13668 = vst [vmem:[#allocation12_spill] sm:$0xff] %v10983_v34  ;;  %v10994_v59 = vpop.permute.xlu1 %3762  ;;  %v1128_v2 = vshll.u32 %v10966_v54, 16  ;;  %v1388_v34 = vshll.u32 %v10940_v57, 16  ;;  %v1393_v53 = vshll.u32 %v9050_v37, 16  ;;  %v2833_v26 = vshll.u32 %v10979_v6, 16 }
 0x151   : > { %13669 = vst [vmem:[#allocation27_spill] sm:$0xff] %v10985_v7  ;;  %1696 = vrot.lane.b32.xlu0 %v10791_v46, %s13612_s25  ;;  %13670 = vst [vmem:[#allocation28_spill] sm:$0xff] %v11004_v35  ;;  %v11008_v7 = vrot.slane %v1116_v33, 1  ;;  %v13673_v33 = vshrl.u32 %v10776_v44, 16  ;;  %v11023_v12 = vrot.slane %v2826_v8, 1  ;;  %v4361_v25 = vsel %vm13675_vm4, %v4328_v10, %v10501_v13 }
 0x152   : > { %2046 = vrot.lane.b32.xlu1 %v1965_v48, %s13613_s17  ;;  %v2838_v48 = vshll.u32 %v10989_v32, 16  ;;  %v9055_v47 = vld [vmem:[%s9469_s21 + $0x32c] ss:$0 sps:$4 sm:$0x11]   ;;  %v13677_v44 = vshrl.u32 %v10772_v0, 16  ;;  %v3093_v8 = vshll.u32 %v11001_v5, 16  ;;  %vm13686_vm4 = vmmov %vm13680_vm5 }
 0x153   : > { %13671 = vst [vmem:[#allocation29_spill] sm:$0xff] %v11008_v7  ;;  %v11014_v52 = vpop.permute.xlu0 %2040  ;;  %v3676_v35 = vor.u32 %v10838_v3, %v13673_v33  ;;  %13674 = vst [vmem:[#allocation31_spill] sm:$0xff] %v11023_v12  ;;  %v3098_v37 = vshll.u32 %v9053_v14, 16  ;;  %v11039_v33 = vld [vmem:[%s9469_s21 + $0x318] sm:$0xff]   ;;  %v11041_v17 = vrot.slane %v1128_v2, 1  ;;  %v11043_v7 = vrot.slane %v1133_v40, 1 }
 0x154   : > { %13672 = vst [vmem:[#allocation30_spill] sm:$0xff] %v11014_v52  ;;  %v11030_v52 = vpop.permute.xlu1 %2310  ;;  %v3936_v3 = vor.u32 %v10842_v29, %v13677_v44  ;;  %v11045_v13 = vrot.slane %v1388_v34, 1  ;;  %v1400_v10 = vshll.u32 %v10992_v27, 16  ;;  %v11051_v0 = vrot.slane %v1393_v53, 1  ;;  %v7347_v2 = vld [vmem:[%s9469_s21 + $0x240] sm:$0xe] }
 0x155   : > { %13676 = vst [vmem:[#allocation32_spill] sm:$0xff] %v11030_v52  ;;  %3420 = vrot.lane.b32.xlu0 %v10821_v38, %s13631_s1  ;;  %13678 = vst [vmem:[#allocation33_spill] sm:$0xff] %v11043_v7  ;;  %v11054_v14 = vrot.slane %v2833_v26, 1  ;;  %v4394_v40 = vsel %vm13680_vm5, %v4361_v25, %v10563_v31  ;;  %v3681_v34 = vsel %vm968_vm1, %v3676_v35, %v10840_v63  ;;  %v13681_v7 = vshrl.u32 %v10791_v46, 16 }
 0x156   : > { %3770 = vrot.lane.b32.xlu1 %v3669_v41, %s13620_s20  ;;  %13679 = vst [vmem:[#allocation34_spill] sm:$0xff] %v11051_v0  ;;  %v1405_v12 = vshll.u32 %v9055_v47, 16  ;;  %v9057_v53 = vld [vmem:[%s9469_s21 + $0x320] ss:$0 sps:$4 sm:$0x11]   ;;  %v11067_v26 = vrot.slane %v2838_v48, 1  ;;  %v7763_v63 = vcombine.low %v7347_v2, %v10875_v62  ;;  %v4330_v47 = vsel %vm4318_vm6, %v10961_v19, %v10483_v1 }
 0x157   : > { %v11049_v52 = vpop.permute.xlu0 %3764  ;;  %v2244_v41 = vor.u32 %v10850_v60, %v13681_v7  ;;  %v11069_v44 = vrot.slane %v3093_v8, 1  ;;  %v11071_v29 = vrot.slane %v3098_v37, 1  ;;  %v11074_v25 = vrot.slane %v1400_v10, 1  ;;  %v7569_v62 = vld [vmem:[%s9469_s21 + $0x234] sm:$0xe] }
 0x158   : > { %v4035_v0 = vpop.permute.xlu1 %4034  ;;  %v3105_v60 = vshll.u32 %v11039_v33, 16  ;;  %v3941_v35 = vsel %vm968_vm1, %v3936_v3, %v10848_v56  ;;  %v11092_v8 = vrot.slane %v1405_v12, 1  ;;  %v3110_v1 = vshll.u32 %v9057_v53, 16  ;;  %v7348_v3 = vld [vmem:[%s9469_s21 + $0x24c] sm:$0xe] }
 0x159   : > { %2048 = vrot.lane.b32.xlu0 %v1977_v58, %s13613_s17  ;;  %v4427_v58 = vsel %vm4417_vm9, %v4394_v40, %v10631_v61  ;;  %v4363_v19 = vsel %vm13683_vm3, %v4330_v47, %v10542_v50  ;;  %v13685_v56 = vshrl.u32 %v10821_v38, 16  ;;  %v11110_v10 = vrot.slane %v7763_v63, 1  ;;  %v11127_v53 = vld [vmem:[%s9469_s21 + $0xa0] sm:$0xf] }
 0x15a   : > { %2318 = vrot.lane.b32.xlu1 %v2237_v23, %s13614_s10  ;;  %v4460_v48 = vsel %vm4450_vm10, %v4427_v58, %v10675_v4  ;;  %v2249_v4 = vsel %vm968_vm1, %v2244_v41, %v10859_v11  ;;  %v7921_v2 = vcombine.low %v7569_v62, %v10885_v39  ;;  %v4396_v40 = vsel %vm13686_vm4, %v4363_v19, %v10617_v22  ;;  %v7419_v41 = vld [vmem:[%s9469_s21 + $0x9c] sm:$0xf] }
 0x15b   : > { %v11085_v7 = vpop.permute.xlu0 %2312  ;;  %v4493_v61 = vsel %vm4483_vm11, %v4460_v48, %v10744_v30  ;;  %v3948_v12 = vor.u32 %v10921_v43, %v13685_v56  ;;  %v11112_v30 = vrot.slane %v3105_v60, 1  ;;  %v13687_v43 = vrot.slane %v10721_v45, 1  ;;  %v7637_v60 = vld [vmem:[%s9469_s21 + $0x90] sm:$0xf]  ;;  %v13689_v62 = vld [vmem:[#allocation16_spill] sm:$0xff] }
 0x15c   : > { %13682 = vst [vmem:[#allocation35_spill] sm:$0xff] %v11085_v7  ;;  %v11099_v23 = vpop.permute.xlu1 %2438  ;;  %v4526_v50 = vsel %vm4516_vm12, %v4493_v61, %v10812_v42  ;;  %v11131_v22 = vrot.slane %v3110_v1, 1  ;;  %v7764_v63 = vcombine.low %v7348_v3, %v10930_v18  ;;  %v4429_v45 = vsel %vm4417_vm9, %v4396_v40, %v10665_v20  ;;  %v11176_v40 = vld [vmem:[%s9469_s21 + $0xac] sm:$0xf] }
 0x15d   : > { %13684 = vst [vmem:[#allocation36_spill] sm:$0xff] %v11099_v23  ;;  %3772 = vrot.lane.b32.xlu0 %v3681_v34, %s13620_s20  ;;  %v4559_v11 = vsel %vm4549_vm13, %v4526_v50, %v10891_v51  ;;  %v2410_v42 = vsel %vm1513_vm0, %v10894_v9, %v13687_v43  ;;  %v7570_v34 = vld [vmem:[%s9469_s21 + $0x240] sm:$0xe]  ;;  %v13688_v58 = vrot.slane %v10731_v21, 1  ;;  %v4462_v20 = vsel %vm4450_vm10, %v4429_v45, %v13689_v62  ;;  %v11330_v23 = vld [vmem:[%s9469_s21 + $0x25c] sm:$0xf] }
 0x15e   : > { %4042 = vrot.lane.b32.xlu1 %v3941_v35, %s13622_s19  ;;  %v4592_v39 = vsel %vm4582_vm14, %v4559_v11, %v10994_v59  ;;  %v3953_v59 = vsel %vm968_vm1, %v3948_v12, %v10923_v24  ;;  %v11147_v35 = vld [vmem:[%s9469_s21 + $0x94] sm:$0xf]  ;;  %v11152_v48 = vrot.slane %v7921_v2, 1  ;;  %v11155_v1 = vcombine.low %v7419_v41, %v11127_v53  ;;  %v11158_v24 = vld [vmem:[%s9469_s21 + $0xa4] ss:$0 sps:$4 sm:$0x11]  }
 0x15f   : > { %v4037_v38 = vpop.permute.xlu0 %4036  ;;  %v4625_v9 = vsel %vm4615_vm15, %v4592_v39, %v4035_v0  ;;  %v4132_v18 = vsel %vm1513_vm0, %v10952_v15, %v13688_v58  ;;  %v13690_v21 = vld [vmem:[#allocation20_spill] sm:$0xff]  ;;  %v13692_v61 = vrot.slane %v10734_v36, 1  ;;  %v13694_v12 = vld [vmem:[#allocation25_spill] sm:$0xff]  ;;  %v11172_v50 = vld [vmem:[%s9469_s21 + $0x98] ss:$0 sps:$4 sm:$0x11]   ;;  %v11187_v39 = vcombine.low %v7637_v60, %v11147_v35 }
 0x160   : > { %v4163_v47 = vpop.permute.xlu1 %4162  ;;  %v4495_v15 = vsel %vm4483_vm11, %v4462_v20, %v13690_v21  ;;  %v7922_v3 = vcombine.low %v7570_v34, %v13694_v12  ;;  %v7422_v2 = vld [vmem:[%s9469_s21 + $0xa8] sm:$0xf]  ;;  %v13695_v11 = vld [vmem:[#allocation23_spill] sm:$0xff]  ;;  %v7640_v34 = vld [vmem:[%s9469_s21 + $0x9c] sm:$0xf]  ;;  %v13709_v41 = vshrl.u32 %v10966_v54, 16 }
 0x161   : > { %2320 = vrot.lane.b32.xlu0 %v2249_v4, %s13614_s10  ;;  %v4658_v0 = vsel %vm4648_vm7, %v4625_v9, %v4163_v47  ;;  %v13693_v4 = vld [vmem:[#allocation12_spill] sm:$0xff]  ;;  %v4528_v43 = vsel %vm4516_vm12, %v4495_v15, %v13695_v11  ;;  %v13696_v9 = vld [vmem:[#allocation11_spill] sm:$0xff]  ;;  %v13701_v21 = vld [vmem:[#allocation9_spill] sm:$0xff]  ;;  %v13716_v7 = vshrl.u32 %v10979_v6, 16  ;;  %vm13754_vm5 = vcmask 48128  }
 0x162   : > { %2446 = vrot.lane.b32.xlu1 %v2410_v42, %s13623_s23  ;;  %8380 = vmatprep.mubr.msk.bf16.mxu0 %vm13598_vm8, %v4658_v0  ;;  %v2413_v56 = vsel %vm1513_vm0, %v13693_v4, %v13692_v61  ;;  %v11180_v42 = vrot.slane %v7764_v63, 1  ;;  %v11184_v36 = vld [vmem:[%s9469_s21 + $0x174] sm:$0xff]   ;;  %v11191_v45 = vld [vmem:[%s9469_s21 + $0xa0] sm:$0xf]  ;;  %v4561_v47 = vsel %vm4549_vm13, %v4528_v43, %v13696_v9  ;;  %v13698_v63 = vld [vmem:[#allocation18_spill] sm:$0xff]  ;;  %v13702_v15 = vshrl.u32 %v13701_v21, 16 }
 0x163   : > { %v11164_v19 = vpop.permute.xlu0 %2440  ;;  %v13699_v62 = vrot.slane %v13698_v63, 1  ;;  %v13700_v20 = vld [vmem:[#allocation27_spill] sm:$0xff]  ;;  %v13703_v60 = vld [vmem:[#allocation29_spill] sm:$0xff]  ;;  %v11207_v12 = vld [vmem:[%s9469_s21 + $0xb0] ss:$0 sps:$4 sm:$0x11]   ;;  %v4594_v11 = vsel %vm4582_vm14, %v4561_v47, %v11049_v52 }
 0x164   : > { %13691 = vst [vmem:[#allocation16_spill] sm:$0xff] %v11164_v19  ;;  %v11195_v58 = vpop.permute.xlu1 %2550  ;;  %v1119_v61 = vor.u32 %v13703_v60, %v13702_v15  ;;  %v13704_v43 = vld [vmem:[#allocation24_spill] sm:$0xff]  ;;  %v1981_v63 = vshll.u32 %v11155_v1, 16  ;;  %v4627_v21 = vsel %vm4615_vm15, %v4594_v11, %v4037_v38  ;;  %v11221_v60 = vrot.slane %v7922_v3, 1  ;;  %v11224_v4 = vld [vmem:[%s9469_s21 + $0x168] sm:$0xff]  }
 0x165   : > { %13697 = vst [vmem:[#allocation20_spill] sm:$0xff] %v11195_v58  ;;  %4044 = vrot.lane.b32.xlu0 %v3953_v59, %s13622_s19  ;;  %v4135_v0 = vsel %vm1513_vm0, %v13700_v20, %v13699_v62  ;;  %v13705_v9 = vshrl.u32 %v13704_v43, 16  ;;  %v11216_v62 = vcombine.low %v7422_v2, %v11176_v40  ;;  %v9071_v20 = vld [vmem:[%s9469_s21 + $0x17c] ss:$0 sps:$4 sm:$0x11]   ;;  %v1986_v52 = vshll.u32 %v11158_v24, 16 }
 0x166   : > { %4170 = vrot.lane.b32.xlu1 %v4132_v18, %s13615_s13  ;;  %v11231_v47 = vld [vmem:[%s9469_s21 + $0xa4] ss:$0 sps:$4 sm:$0x11]   ;;  %v3685_v43 = vshll.u32 %v11187_v39, 16  ;;  %v2253_v18 = vshll.u32 %v11184_v36, 16  ;;  %v3690_v38 = vshll.u32 %v11172_v50, 16 }
 0x167   : > { %v2824_v59 = vor.u32 %v11016_v55, %v13705_v9  ;;  %v4165_v15 = vpop.permute.xlu0 %4164  ;;  %v11228_v55 = vcombine.low %v7640_v34, %v11191_v45  ;;  %13706 = vst [vmem:[#allocation12_spill] sm:$0xff] %v11231_v47  ;;  %v9074_v3 = vld [vmem:[%s9469_s21 + $0x170] ss:$0 sps:$4 sm:$0x11]   ;;  %v13708_v34 = vld [vmem:[#allocation28_spill] sm:$0xff]  ;;  %v11249_v51 = vrot.slane %v1981_v63, 1 }
 0x168   : > { %v4660_v2 = vsel %vm4648_vm7, %v4627_v21, %v4165_v15  ;;  %v11238_v11 = vpop.permute.xlu1 %1177  ;;  %v1124_v9 = vsel %vm968_vm1, %v1119_v61, %v13708_v34  ;;  %v1131_v21 = vor.u32 %v11041_v17, %v13709_v41  ;;  %v1993_v46 = vshll.u32 %v11216_v62, 16  ;;  %v11258_v54 = vld [vmem:[%s9469_s21 + $0x180] sm:$0xff]   ;;  %v9075_v34 = vld [vmem:[%s9469_s21 + $0x188] ss:$0 sps:$4 sm:$0x11]   ;;  %v11305_v58 = vld [vmem:[%s9469_s21 + $0x174] sm:$0xff]  }
 0x169   : > { %13707 = vst [vmem:[#allocation25_spill] sm:$0xff] %v11238_v11  ;;  %2448 = vrot.lane.b32.xlu0 %v2413_v56, %s13623_s23  ;;  %8381 = vmatmul.mubr.msk.bf16.gmra.mxu0 %vm13598_vm8, %v4660_v2  ;;  %v1998_v37 = vshll.u32 %v11207_v12, 16  ;;  %v2258_v56 = vshll.u32 %v9071_v20, 16  ;;  %v11260_v17 = vrot.slane %v1986_v52, 1  ;;  %v3697_v41 = vshll.u32 %v11228_v55, 16  ;;  %v13719_v6 = vld [vmem:[#allocation33_spill] sm:$0xff] }
 0x16a   : > { %2558 = vrot.lane.b32.xlu1 %v11001_v5, %s13616_s26  ;;  %v3702_v61 = vshll.u32 %v11231_v47, 16  ;;  %v3957_v63 = vshll.u32 %v11224_v4, 16  ;;  %v11266_v15 = vrot.slane %v3685_v43, 1  ;;  %v11268_v20 = vrot.slane %v2253_v18, 1  ;;  %v11456_v47 = vld [vmem:[%s9469_s21 + $0x33c] sm:$0xff]  }
 0x16b   : > { %v11255_v2 = vpop.permute.xlu0 %2552  ;;  %v13712_v52 = vshrl.u32 %v10940_v57, 16  ;;  %v11277_v19 = vrot.slane %v3690_v38, 1  ;;  %v3962_v43 = vshll.u32 %v9074_v3, 16  ;;  %v11281_v18 = vrot.slane %v1993_v46, 1  ;;  %v7459_v46 = vld [vmem:[%s9469_s21 + $0x9c] sm:$0xe] }
 0x16c   : > { %13710 = vst [vmem:[#allocation23_spill] sm:$0xff] %v11255_v2  ;;  %v11271_v11 = vpop.permute.xlu1 %2902  ;;  %v11283_v31 = vrot.slane %v1998_v37, 1  ;;  %v11292_v38 = vrot.slane %v3697_v41, 1  ;;  %v11294_v3 = vrot.slane %v3702_v61, 1  ;;  %v13715_v37 = vld [vmem:[#allocation31_spill] sm:$0xff]  ;;  %vm13756_vm3 = vcmask 72704  }
 0x16d   : > { %13711 = vst [vmem:[#allocation11_spill] sm:$0xff] %v11271_v11  ;;  %4172 = vrot.lane.b32.xlu0 %v4135_v0, %s13615_s13  ;;  %v1391_v2 = vor.u32 %v11045_v13, %v13712_v52  ;;  %v11285_v11 = vrot.slane %v2258_v56, 1  ;;  %v2265_v0 = vshll.u32 %v11258_v54, 16  ;;  %v11296_v52 = vrot.slane %v3957_v63, 1 }
 0x16e   : > { %1185 = vrot.lane.b32.xlu1 %v1124_v9, %s13617_s12  ;;  %13714 = vst [vmem:[#allocation27_spill] sm:$0xff] %v11294_v3  ;;  %v2829_v56 = vsel %vm968_vm1, %v2824_v59, %v13715_v37  ;;  %v2836_v9 = vor.u32 %v11054_v14, %v13716_v7  ;;  %v9077_v41 = vld [vmem:[%s9469_s21 + $0x17c] ss:$0 sps:$4 sm:$0x11]   ;;  %v11313_v63 = vrot.slane %v3962_v43, 1  ;;  %v1136_v14 = vsel %vm968_vm1, %v1131_v21, %v13719_v6  ;;  %v13720_v43 = vld [vmem:[#allocation34_spill] sm:$0xff] }
 0x16f   : > { %v11289_v57 = vpop.permute.xlu0 %1179  ;;  %v7681_v59 = vld [vmem:[%s9469_s21 + $0x90] sm:$0xe]  ;;  %v11318_v7 = vrot.slane %v2265_v0, 1  ;;  %v7843_v37 = vcombine.low %v7459_v46, %v11127_v53  ;;  %v7460_v3 = vld [vmem:[%s9469_s21 + $0xa8] sm:$0xe]  ;;  %v13721_v0 = vshrl.u32 %v11001_v5, 16 }
 0x170   : > { %13713 = vst [vmem:[#allocation18_spill] sm:$0xff] %v11289_v57  ;;  %v11309_v61 = vpop.permute.xlu1 %1449  ;;  %13718 = vst [vmem:[#allocation29_spill] sm:$0xff] %v11313_v63  ;;  %v2270_v57 = vshll.u32 %v9075_v34, 16  ;;  %v1396_v34 = vsel %vm968_vm1, %v1391_v2, %v13720_v43  ;;  %v7313_v63 = vld [vmem:[%s9469_s21 + $0x258] sm:$0xf]  ;;  %v2841_v21 = vsel %vm968_vm1, %v2836_v9, %v11067_v26  ;;  %v13722_v46 = vshrl.u32 %v10992_v27, 16 }
 0x171   : > { %13717 = vst [vmem:[#allocation9_spill] sm:$0xff] %v11309_v61  ;;  %2560 = vrot.lane.b32.xlu0 %v11039_v33, %s13616_s26  ;;  %v3096_v53 = vor.u32 %v11069_v44, %v13721_v0  ;;  %v11342_v13 = vld [vmem:[%s9469_s21 + $0x260] ss:$0 sps:$4 sm:$0x11]   ;;  %v3969_v26 = vshll.u32 %v11305_v58, 16  ;;  %v3974_v5 = vshll.u32 %v9077_v41, 16  ;;  %v8001_v44 = vcombine.low %v7681_v59, %v11147_v35 }
 0x172   : > { %2910 = vrot.lane.b32.xlu1 %v2829_v56, %s13618_s22  ;;  %v1403_v56 = vor.u32 %v11074_v25, %v13722_v46  ;;  %v7844_v27 = vcombine.low %v7460_v3, %v11176_v40  ;;  %v7682_v9 = vld [vmem:[%s9469_s21 + $0x9c] sm:$0xe]  ;;  %v11351_v25 = vrot.slane %v2270_v57, 1  ;;  %v11353_v43 = vrot.slane %v7843_v37, 1  ;;  %v7531_v6 = vld [vmem:[%s9469_s21 + $0x24c] sm:$0xf] }
 0x173   : > { %v11324_v61 = vpop.permute.xlu0 %2904  ;;  %v11357_v46 = vcombine.low %v7313_v63, %v11330_v23  ;;  %v3101_v35 = vsel %vm968_vm1, %v3096_v53, %v11071_v29  ;;  %v8002_v40 = vcombine.low %v7682_v9, %v11191_v45  ;;  %v1145_v57 = vshll.u32 %v11342_v13, 16  ;;  %v11368_v3 = vld [vmem:[%s9469_s21 + $0x250] sm:$0xf]  ;;  %v11371_v41 = vld [vmem:[%s9469_s21 + $0x254] ss:$0 sps:$4 sm:$0x11]  }
 0x174   : > { %v11344_v2 = vpop.permute.xlu1 %3174  ;;  %v11376_v63 = vrot.slane %v3969_v26, 1  ;;  %v11378_v37 = vrot.slane %v3974_v5, 1  ;;  %v11382_v29 = vrot.slane %v7844_v27, 1  ;;  %v1408_v45 = vsel %vm968_vm1, %v1403_v56, %v11092_v8  ;;  %v7316_v26 = vld [vmem:[%s9469_s21 + $0x264] sm:$0xf] }
 0x175   : > { %1187 = vrot.lane.b32.xlu0 %v1136_v14, %s13617_s12  ;;  %v13725_v53 = vshrl.u32 %v11039_v33, 16  ;;  %v11404_v56 = vld [vmem:[%s9469_s21 + $0x268] sm:$0xf]  ;;  %v11407_v27 = vld [vmem:[%s9469_s21 + $0x26c] ss:$0 sps:$4 sm:$0x11]  }
 0x176   : > { %1457 = vrot.lane.b32.xlu1 %v1396_v34, %s13640_s14  ;;  %v11380_v34 = vrot.slane %v8001_v44, 1  ;;  %v13726_v44 = vrot.slane %v10899_v49, 1  ;;  %13728 = vst [vmem:[#allocation33_spill] sm:$0xff] %v11407_v27  ;;  %v11412_v0 = vrot.slane %v1145_v57, 1  ;;  %v2850_v49 = vshll.u32 %v11371_v41, 16 }
 0x177   : > { %v11360_v14 = vpop.permute.xlu0 %1451  ;;  %v3108_v9 = vor.u32 %v11112_v30, %v13725_v53  ;;  %v11401_v30 = vcombine.low %v7531_v6, %v11368_v3  ;;  %v11409_v53 = vrot.slane %v8002_v40, 1  ;;  %v7534_v6 = vld [vmem:[%s9469_s21 + $0x258] sm:$0xf]  ;;  %v11423_v33 = vld [vmem:[%s9469_s21 + $0x25c] sm:$0xf]  ;;  %v11430_v57 = vcombine.low %v7316_v26, %v11404_v56 }
 0x178   : > { %13723 = vst [vmem:[#allocation24_spill] sm:$0xff] %v11360_v14  ;;  %v11373_v59 = vpop.permute.xlu1 %1578  ;;  %v1552_v8 = vsel %vm1513_vm0, %v11110_v10, %v13726_v44  ;;  %13730 = vst [vmem:[#allocation37_spill] sm:$0xff] %v11412_v0  ;;  %v11416_v10 = vld [vmem:[%s9469_s21 + $0x330] sm:$0xff]   ;;  %v9090_v14 = vld [vmem:[%s9469_s21 + $0x338] ss:$0 sps:$4 sm:$0x11]  }
 0x179   : > { %13724 = vst [vmem:[#allocation28_spill] sm:$0xff] %v11373_v59  ;;  %2912 = vrot.lane.b32.xlu0 %v2841_v21, %s13618_s22  ;;  %v1140_v21 = vshll.u32 %v11357_v46, 16  ;;  %13727 = vst [vmem:[#allocation31_spill] sm:$0xff] %v11401_v30  ;;  %v3113_v40 = vsel %vm968_vm1, %v3108_v9, %v11131_v22  ;;  %v1157_v22 = vshll.u32 %v11407_v27, 16  ;;  %v11443_v9 = vld [vmem:[%s9469_s21 + $0x324] sm:$0xff]   ;;  %v11446_v26 = vrot.slane %v2850_v49, 1 }
 0x17a   : > { %3182 = vrot.lane.b32.xlu1 %v3101_v35, %s13627_s24  ;;  %13729 = vst [vmem:[#allocation34_spill] sm:$0xff] %v11409_v53  ;;  %13731 = vst [vmem:[#allocation38_spill] sm:$0xff] %v11416_v10  ;;  %v2845_v53 = vshll.u32 %v11401_v30, 16  ;;  %v9093_v27 = vld [vmem:[%s9469_s21 + $0x32c] ss:$0 sps:$4 sm:$0x11]  }
 0x17b   : > { %v11393_v5 = vpop.permute.xlu0 %3176  ;;  %13732 = vst [vmem:[#allocation39_spill] sm:$0xff] %v11423_v33  ;;  %v11427_v35 = vrot.slane %v1140_v21, 1  ;;  %13734 = vst [vmem:[#allocation41_spill] sm:$0xff] %v11430_v57  ;;  %v13741_v21 = vrot.slane %v10957_v28, 1  ;;  %vm13759_vm4 = vcmask 97280  }
 0x17c   : > { %v11418_v44 = vpop.permute.xlu1 %3302  ;;  %13737 = vst [vmem:[#allocation43_spill] sm:$0xff] %v11443_v9  ;;  %13738 = vst [vmem:[#allocation44_spill] sm:$0xff] %v11446_v26  ;;  %v9095_v26 = vld [vmem:[%s9469_s21 + $0x344] ss:$0 sps:$4 sm:$0x11]  }
 0x17d   : > { %1459 = vrot.lane.b32.xlu0 %v1408_v45, %s13640_s14  ;;  %13733 = vst [vmem:[#allocation40_spill] sm:$0xff] %v11427_v35  ;;  %v13736_v45 = vrot.slane %v10912_v16, 1  ;;  %v11453_v16 = vld [vmem:[%s9469_s21 + $0x260] ss:$0 sps:$4 sm:$0x11]   ;;  %v1555_v49 = vsel %vm1513_vm0, %v11180_v42, %v13741_v21 }
 0x17e   : > { %1586 = vrot.lane.b32.xlu1 %v1552_v8, %s13624_s18  ;;  %13739 = vst [vmem:[#allocation45_spill] sm:$0xff] %v11453_v16  ;;  %v1412_v8 = vshll.u32 %v11416_v10, 16  ;;  %v2862_v42 = vshll.u32 %v11453_v16, 16  ;;  %v3117_v10 = vshll.u32 %v11443_v9, 16  ;;  %v1424_v9 = vshll.u32 %v11456_v47, 16 }
 0x17f   : > { %v11434_v59 = vpop.permute.xlu0 %1580  ;;  %v3274_v0 = vsel %vm1513_vm0, %v11152_v48, %v13736_v45  ;;  %v11473_v45 = vrot.slane %v2845_v53, 1  ;;  %v11489_v53 = vld [vmem:[%s9469_s21 + $0x330] sm:$0xff]   ;;  %v9097_v16 = vld [vmem:[%s9469_s21 + $0x338] ss:$0 sps:$4 sm:$0x11]  }
 0x180   : > { %13735 = vst [vmem:[#allocation42_spill] sm:$0xff] %v11434_v59  ;;  %v11450_v59 = vcombine.low %v7534_v6, %v11423_v33  ;;  %v11458_v48 = vpop.permute.xlu1 %1690  ;;  %v1152_v6 = vshll.u32 %v11430_v57, 16  ;;  %v1417_v33 = vshll.u32 %v9090_v14, 16  ;;  %v11495_v21 = vrot.slane %v1412_v8, 1 }
 0x181   : > { %13740 = vst [vmem:[#allocation46_spill] sm:$0xff] %v11458_v48  ;;  %3184 = vrot.lane.b32.xlu0 %v3113_v40, %s13627_s24  ;;  %13742 = vst [vmem:[#allocation47_spill] sm:$0xff] %v11473_v45  ;;  %v11475_v48 = vrot.slane %v1157_v22, 1  ;;  %v3122_v22 = vshll.u32 %v9093_v27, 16  ;;  %v11524_v27 = vrot.slane %v1424_v9, 1 }
 0x182   : > { %3310 = vrot.lane.b32.xlu1 %v3274_v0, %s13628_s0  ;;  %v2857_v28 = vshll.u32 %v11450_v59, 16  ;;  %v13744_v0 = vrot.slane %v10989_v32, 1  ;;  %v11493_v45 = vrot.slane %v1152_v6, 1  ;;  %13746 = vst [vmem:[#allocation50_spill] sm:$0xff] %v11495_v21  ;;  %v11497_v30 = vrot.slane %v1417_v33, 1 }
 0x183   : > { %v11471_v40 = vpop.permute.xlu0 %3304  ;;  %13743 = vst [vmem:[#allocation48_spill] sm:$0xff] %v11475_v48  ;;  %v7349_v48 = vld [vmem:[%s9469_s21 + $0x258] sm:$0xe]  ;;  %v7571_v6 = vld [vmem:[%s9469_s21 + $0x24c] sm:$0xe]  ;;  %v11512_v33 = vrot.slane %v3117_v10, 1 }
 0x184   : > { %v11481_v57 = vpop.permute.xlu1 %3414  ;;  %v3277_v14 = vsel %vm1513_vm0, %v11221_v60, %v13744_v0  ;;  %13745 = vst [vmem:[#allocation49_spill] sm:$0xff] %v11493_v45  ;;  %13747 = vst [vmem:[#allocation51_spill] sm:$0xff] %v11497_v30  ;;  %v13748_v60 = vshrl.u32 %v11155_v1, 16  ;;  %v1429_v0 = vshll.u32 %v9095_v26, 16  ;;  %v7350_v45 = vld [vmem:[%s9469_s21 + $0x264] sm:$0xe]  ;;  %v7765_v21 = vcombine.low %v7349_v48, %v11330_v23 }
 0x185   : > { %1588 = vrot.lane.b32.xlu0 %v1555_v49, %s13624_s18  ;;  %v11510_v8 = vrot.slane %v2857_v28, 1  ;;  %v11519_v1 = vrot.slane %v2862_v42, 1  ;;  %v3129_v26 = vshll.u32 %v11489_v53, 16  ;;  %v1557_v10 = vrot.slane %v11342_v13, 1 }
 0x186   : > { %1698 = vrot.lane.b32.xlu1 %v11184_v36, %s13612_s25  ;;  %v1984_v49 = vor.u32 %v11249_v51, %v13748_v60  ;;  %v11521_v51 = vrot.slane %v3122_v22, 1  ;;  %v3134_v60 = vshll.u32 %v9097_v16, 16  ;;  %v7923_v28 = vcombine.low %v7571_v6, %v11368_v3 }
 0x187   : > { %v11502_v32 = vpop.permute.xlu0 %1692  ;;  %v7766_v30 = vcombine.low %v7350_v45, %v11404_v56  ;;  %v11533_v48 = vrot.slane %v1429_v0, 1  ;;  %v3127_v42 = vshrl.u32 %v11489_v53, 16  ;;  %v13749_v16 = vshrl.u32 %v11187_v39, 16 }
 0x188   : > { %v11516_v35 = vpop.permute.xlu1 %2042  ;;  %v1989_v9 = vsel %vm968_vm1, %v1984_v49, %v11260_v17  ;;  %v11541_v3 = vrot.slane %v7765_v21, 1  ;;  %v11546_v22 = vrot.slane %v3129_v26, 1  ;;  %v11548_v0 = vrot.slane %v3134_v60, 1  ;;  %v9267_v21 = vld [vmem:[%s9469_s21 + $0x2d0] sm:$0xff]  }
 0x189   : > { %3312 = vrot.lane.b32.xlu0 %v3277_v14, %s13628_s0  ;;  %v3688_v14 = vor.u32 %v11266_v15, %v13749_v16  ;;  %v13750_v6 = vshrl.u32 %v11216_v62, 16  ;;  %v11553_v49 = vrot.slane %v7923_v28, 1  ;;  %v11555_v39 = vrot.slane %v7766_v30, 1  ;;  %v13751_v16 = vld [vmem:[#allocation13_spill] sm:$0xff] }
 0x18a   : > { %3422 = vrot.lane.b32.xlu1 %v11224_v4, %s13631_s1  ;;  %v4200_v56 = vsel %vm4186_vm2, %v9267_v21, %v13751_v16  ;;  %v13752_v60 = vshrl.u32 %v11184_v36, 16  ;;  %v13760_v16 = vld [vmem:[#allocation26_spill] sm:$0xff] }
 0x18b   : > { %v11531_v23 = vpop.permute.xlu0 %3416  ;;  %v1996_v17 = vor.u32 %v11281_v18, %v13750_v6  ;;  %v3693_v26 = vsel %vm968_vm1, %v3688_v14, %v11277_v19  ;;  %v13753_v18 = vld [vmem:[#allocation15_spill] sm:$0xff]  ;;  %v13757_v19 = vshrl.u32 %v11228_v55, 16 }
 0x18c   : > { %v3767_v45 = vpop.permute.xlu1 %3766  ;;  %v2256_v62 = vor.u32 %v11268_v20, %v13752_v60  ;;  %v4233_v30 = vsel %vm13754_vm5, %v4200_v56, %v13753_v18  ;;  %v13758_v20 = vld [vmem:[#allocation22_spill] sm:$0xff]  ;;  %vm13763_vm5 = vcmask 146432  }
 0x18d   : > { %1700 = vrot.lane.b32.xlu0 %v11258_v54, %s13612_s25  ;;  %v2001_v21 = vsel %vm968_vm1, %v1996_v17, %v11283_v31  ;;  %v3700_v36 = vor.u32 %v11292_v38, %v13757_v19  ;;  %v13762_v17 = vld [vmem:[#allocation32_spill] sm:$0xff] }
 0x18e   : > { %2050 = vrot.lane.b32.xlu1 %v1989_v9, %s13613_s17  ;;  %v13755_v9 = vld [vmem:[#allocation19_spill] sm:$0xff]  ;;  %v2261_v18 = vsel %vm968_vm1, %v2256_v62, %v11285_v11  ;;  %v13765_v19 = vld [vmem:[#allocation36_spill] sm:$0xff]  ;;  %v13769_v62 = vld [vmem:[#allocation17_spill] sm:$0xff] }
 0x18f   : > { %v11558_v15 = vpop.permute.xlu0 %2044  ;;  %v4266_v6 = vsel %vm13756_vm3, %v4233_v30, %v13755_v9  ;;  %v13761_v30 = vshrl.u32 %v11224_v4, 16  ;;  %v9268_v9 = vld [vmem:[%s9469_s21 + $0x2dc] sm:$0xff]   ;;  %vm13766_vm3 = vcmask 171008   ;;  %v13768_v4 = vshrl.u32 %v11258_v54, 16 }
 0x190   : > { %v11570_v28 = vpop.permute.xlu1 %2314  ;;  %v4299_v14 = vsel %vm13759_vm4, %v4266_v6, %v13758_v20  ;;  %v13764_v6 = vld [vmem:[#allocation14_spill] sm:$0xff]  ;;  %vm13770_vm4 = vcmask 48128  }
 0x191   : > { %3424 = vrot.lane.b32.xlu0 %v11305_v58, %s13631_s1  ;;  %v4332_v60 = vsel %vm4318_vm6, %v4299_v14, %v13760_v16  ;;  %v3960_v31 = vor.u32 %v11296_v52, %v13761_v30  ;;  %v13767_v14 = vld [vmem:[#allocation27_spill] sm:$0xff]  ;;  %v2268_v52 = vor.u32 %v11318_v7, %v13768_v4  ;;  %v13776_v7 = vld [vmem:[#allocation10_spill] sm:$0xff] }
 0x192   : > { %3774 = vrot.lane.b32.xlu1 %v3693_v26, %s13620_s20  ;;  %v4365_v55 = vsel %vm13763_vm5, %v4332_v60, %v13762_v17  ;;  %v4202_v26 = vsel %vm4186_vm2, %v9268_v9, %v13764_v6  ;;  %v3705_v11 = vsel %vm968_vm1, %v3700_v36, %v13767_v14  ;;  %v13771_v60 = vld [vmem:[#allocation20_spill] sm:$0xff]  ;;  %v13772_v17 = vld [vmem:[#allocation21_spill] sm:$0xff]  ;;  %vm13773_vm5 = vcmask 72704   ;;  %v13774_v9 = vld [vmem:[#allocation11_spill] sm:$0xff] }
 0x193   : > { %v3769_v56 = vpop.permute.xlu0 %3768  ;;  %v4398_v20 = vsel %vm13766_vm3, %v4365_v55, %v13765_v19  ;;  %v4235_v16 = vsel %vm13770_vm4, %v4202_v26, %v13769_v62  ;;  %v13775_v6 = vld [vmem:[#allocation29_spill] sm:$0xff]  ;;  %vm13777_vm3 = vcmask 97280   ;;  %v2273_v62 = vsel %vm968_vm1, %v2268_v52, %v11351_v25 }
 0x194   : > { %v4039_v38 = vpop.permute.xlu1 %4038  ;;  %v4268_v55 = vsel %vm13773_vm5, %v4235_v16, %v13772_v17  ;;  %v3965_v54 = vsel %vm968_vm1, %v3960_v31, %v13775_v6  ;;  %v13779_v31 = vshrl.u32 %v11305_v58, 16  ;;  %vm13781_vm4 = vcmask 146432   ;;  %v13782_v17 = vld [vmem:[#allocation16_spill] sm:$0xff] }
 0x195   : > { %2052 = vrot.lane.b32.xlu0 %v2001_v21, %s13613_s17  ;;  %v4431_v21 = vsel %vm4417_vm9, %v4398_v20, %v13771_v60  ;;  %v4301_v19 = vsel %vm13777_vm3, %v4268_v55, %v13776_v7  ;;  %v13780_v60 = vld [vmem:[#allocation35_spill] sm:$0xff]  ;;  %vm13783_vm5 = vcmask 171008   ;;  %v13784_v25 = vrot.slane %v11158_v24, 1 }
 0x196   : > { %2322 = vrot.lane.b32.xlu1 %v2261_v18, %s13614_s10  ;;  %v4464_v36 = vsel %vm4450_vm10, %v4431_v21, %v13774_v9  ;;  %v13778_v18 = vld [vmem:[#allocation30_spill] sm:$0xff]  ;;  %v3972_v16 = vor.u32 %v11376_v63, %v13779_v31  ;;  %v13785_v63 = vld [vmem:[#allocation23_spill] sm:$0xff] }
 0x197   : > { %v11609_v30 = vpop.permute.xlu0 %2316  ;;  %v4497_v26 = vsel %vm4483_vm11, %v4464_v36, %v11344_v2  ;;  %v4334_v14 = vsel %vm4318_vm6, %v4301_v19, %v13778_v18  ;;  %v2416_v58 = vsel %vm1513_vm0, %v11353_v43, %v13784_v25  ;;  %v13787_v19 = vrot.slane %v11207_v12, 1  ;;  %v13789_v18 = vld [vmem:[#allocation40_spill] sm:$0xff]  ;;  %v13793_v31 = vld [vmem:[#allocation43_spill] sm:$0xff] }
 0x198   : > { %v11621_v20 = vpop.permute.xlu1 %2442  ;;  %v4530_v4 = vsel %vm4516_vm12, %v4497_v26, %v11418_v44  ;;  %v4367_v2 = vsel %vm13781_vm4, %v4334_v14, %v13780_v60  ;;  %v13790_v12 = vld [vmem:[#allocation12_spill] sm:$0xff] }
 0x199   : > { %3776 = vrot.lane.b32.xlu0 %v3705_v11, %s13620_s20  ;;  %v4563_v21 = vsel %vm4549_vm13, %v4530_v4, %v11481_v57  ;;  %v4400_v55 = vsel %vm13783_vm5, %v4367_v2, %v13782_v17  ;;  %v2419_v26 = vsel %vm1513_vm0, %v11382_v29, %v13787_v19  ;;  %v13791_v29 = vrot.slane %v13790_v12, 1  ;;  %v13795_v2 = vld [vmem:[#allocation31_spill] sm:$0xff] }
 0x19a   : > { %4046 = vrot.lane.b32.xlu1 %v3965_v54, %s13622_s19  ;;  %v4596_v44 = vsel %vm4582_vm14, %v4563_v21, %v3767_v45  ;;  %v4433_v52 = vsel %vm4417_vm9, %v4400_v55, %v13785_v63  ;;  %v3977_v45 = vsel %vm968_vm1, %v3972_v16, %v11378_v37  ;;  %v13786_v54 = vrot.slane %v11172_v50, 1 }
 0x19b   : > { %v4041_v11 = vpop.permute.xlu0 %4040  ;;  %v4629_v9 = vsel %vm4615_vm15, %v4596_v44, %v4039_v38  ;;  %v4466_v57 = vsel %vm4450_vm10, %v4433_v52, %v11324_v61  ;;  %v13796_v21 = vshrl.u32 %v13795_v2, 16  ;;  %v13798_v44 = vld [vmem:[#allocation41_spill] sm:$0xff] }
 0x19c   : > { %v4167_v36 = vpop.permute.xlu1 %4166  ;;  %v4499_v24 = vsel %vm4483_vm11, %v4466_v57, %v11393_v5  ;;  %v4138_v61 = vsel %vm1513_vm0, %v11380_v34, %v13786_v54  ;;  %v13799_v25 = vshrl.u32 %v13798_v44, 16  ;;  %v13802_v57 = vld [vmem:[#allocation44_spill] sm:$0xff] }
 0x19d   : > { %2324 = vrot.lane.b32.xlu0 %v2273_v62, %s13614_s10  ;;  %v4662_v6 = vsel %vm4648_vm7, %v4629_v9, %v4167_v36  ;;  %v4532_v38 = vsel %vm4516_vm12, %v4499_v24, %v11471_v40  ;;  %v7425_v9 = vld [vmem:[%s9469_s21 + $0xb4] sm:$0xf]  ;;  %v11710_v36 = vld [vmem:[%s9469_s21 + $0xb8] sm:$0xf] }
 0x19e   : > { %2450 = vrot.lane.b32.xlu1 %v2416_v58, %s13623_s23  ;;  %8384 = vmatprep.mubr.msk.bf16.mxu0 %vm13598_vm8, %v4662_v6  ;;  %v4565_v37 = vsel %vm4549_vm13, %v4532_v38, %v11531_v23  ;;  %v13788_v23 = vshrl.u32 %v11357_v46, 16  ;;  %v13794_v46 = vld [vmem:[#allocation37_spill] sm:$0xff]  ;;  %v13805_v38 = vld [vmem:[#allocation50_spill] sm:$0xff]  ;;  %v11740_v12 = vcombine.low %v7425_v9, %v11710_v36 }
 0x19f   : > { %v11658_v43 = vpop.permute.xlu0 %2444  ;;  %v4598_v5 = vsel %vm4582_vm14, %v4565_v37, %v3769_v56  ;;  %v13792_v56 = vld [vmem:[#allocation34_spill] sm:$0xff]  ;;  %v13800_v58 = vld [vmem:[#allocation49_spill] sm:$0xff]  ;;  %v11724_v37 = vld [vmem:[%s13540_s2] ss:$0 sm:$0xff] }
 0x1a0   : > { %v11668_v7 = vpop.permute.xlu1 %2554  ;;  %v4631_v40 = vsel %vm4615_vm15, %v4598_v5, %v4041_v11  ;;  %v1143_v14 = vor.u32 %v13789_v18, %v13788_v23  ;;  %v4141_v62 = vsel %vm1513_vm0, %v13792_v56, %v13791_v29  ;;  %v13797_v11 = vld [vmem:[#allocation47_spill] sm:$0xff]  ;;  %v1155_v63 = vor.u32 %v13800_v58, %v13799_v25  ;;  %v13806_v5 = vld [vmem:[#allocation48_spill] sm:$0xff] }
 0x1a1   : > { %4048 = vrot.lane.b32.xlu0 %v3977_v45, %s13622_s19  ;;  %v2848_v17 = vor.u32 %v13797_v11, %v13796_v21  ;;  %v13803_v45 = vld [vmem:[#allocation38_spill] sm:$0xff]  ;;  %v13809_v18 = vld [vmem:[#allocation51_spill] sm:$0xff]  ;;  %v13812_v21 = vld [vmem:[#allocation33_spill] sm:$0xff] }
 0x1a2   : > { %4174 = vrot.lane.b32.xlu1 %v4138_v61, %s13615_s13  ;;  %v1148_v60 = vsel %vm968_vm1, %v1143_v14, %v13794_v46  ;;  %v13804_v24 = vshrl.u32 %v13803_v45, 16  ;;  %v1160_v19 = vsel %vm968_vm1, %v1155_v63, %v13806_v5  ;;  %v1560_v11 = vrot.slane %v13812_v21, 1  ;;  %v9100_v21 = vld [vmem:[%s9469_s21 + $0x18c] sm:$0xff]  }
 0x1a3   : > { %v4169_v50 = vpop.permute.xlu0 %4168  ;;  %v2853_v6 = vsel %vm968_vm1, %v2848_v17, %v13802_v57 }
 0x1a4   : > { %v4664_v34 = vsel %vm4648_vm7, %v4631_v40, %v4169_v50  ;;  %v11682_v4 = vpop.permute.xlu1 %1181  ;;  %v1415_v54 = vor.u32 %v13805_v38, %v13804_v24  ;;  %v11783_v24 = vld [vmem:[%s9469_s21 + $0xc4] sm:$0xf] }
 0x1a5   : > { %2452 = vrot.lane.b32.xlu0 %v2419_v26, %s13623_s23  ;;  %8385 = vmatmul.mubr.msk.bf16.gmra.mxu0 %vm13598_vm8, %v4664_v34  ;;  %v13807_v26 = vshrl.u32 %v11450_v59, 16  ;;  %v13808_v34 = vshrl.u32 %v13793_v31, 16 }
 0x1a6   : > { %2562 = vrot.lane.b32.xlu1 %v13793_v31, %s13616_s26  ;;  %v1420_v14 = vsel %vm968_vm1, %v1415_v54, %v13809_v18  ;;  %v13813_v54 = vld [vmem:[#allocation39_spill] sm:$0xff] }
 0x1a7   : > { %v11692_v16 = vpop.permute.xlu0 %2556  ;;  %v2860_v40 = vor.u32 %v11510_v8, %v13807_v26  ;;  %v3120_v23 = vor.u32 %v11512_v33, %v13808_v34  ;;  %v13817_v34 = vrot.slane %v11371_v41, 1 }
 0x1a8   : > { %v11699_v55 = vpop.permute.xlu1 %2906 }
 0x1a9   : > { %4176 = vrot.lane.b32.xlu0 %v4141_v62, %s13615_s13  ;;  %v2865_v56 = vsel %vm968_vm1, %v2860_v40, %v11519_v1  ;;  %v13810_v62 = vshrl.u32 %v11456_v47, 16  ;;  %v7572_v1 = vld [vmem:[%s9469_s21 + $0x258] sm:$0xe]  ;;  %v2005_v47 = vshll.u32 %v11740_v12, 16 }
 0x1aa   : > { %1189 = vrot.lane.b32.xlu1 %v1148_v60, %s13617_s12  ;;  %v3125_v60 = vsel %vm968_vm1, %v3120_v23, %v11521_v51  ;;  %v3132_v51 = vor.u32 %v11546_v22, %v3127_v42  ;;  %v7643_v42 = vld [vmem:[%s9469_s21 + $0xa8] sm:$0xf]  ;;  %v11778_v22 = vld [vmem:[%s9469_s21 + $0xac] sm:$0xf]  ;;  %v3280_v23 = vsel %vm1513_vm0, %v11553_v49, %v13817_v34  ;;  %v1561_v49 = vsel %vm1513_vm0, %v11555_v39, %v1560_v11 }
 0x1ab   : > { %v11706_v52 = vpop.permute.xlu0 %1183  ;;  %v1427_v33 = vor.u32 %v11524_v27, %v13810_v62  ;;  %v7967_v18 = vcombine.low %v7643_v42, %v11778_v22  ;;  %v2007_v39 = vrot.slane %v2005_v47, 1 }
 0x1ac   : > { %13801 = vst [vmem:[#allocation13_spill] sm:$0xff] %v11706_v52  ;;  %v11717_v61 = vpop.permute.xlu1 %1453  ;;  %v3137_v13 = vsel %vm968_vm1, %v3132_v51, %v11548_v0  ;;  %v11833_v51 = vld [vmem:[%s9469_s21 + $0xb8] sm:$0xf]  ;;  %v9115_v0 = vld [vmem:[%s9469_s21 + $0x1a0] ss:$0 sps:$4 sm:$0x11]  }
 0x1ad   : > { %2564 = vrot.lane.b32.xlu0 %v11489_v53, %s13616_s26  ;;  %v1432_v63 = vsel %vm968_vm1, %v1427_v33, %v11533_v48  ;;  %v1558_v53 = vsel %vm1513_vm0, %v11541_v3, %v1557_v10  ;;  %v7428_v48 = vld [vmem:[%s9469_s21 + $0xc0] sm:$0xf]  ;;  %v7924_v10 = vcombine.low %v7572_v1, %v13813_v54  ;;  %v11792_v3 = vld [vmem:[%s9469_s21 + $0xbc] ss:$0 sps:$4 sm:$0x11]   ;;  %v3709_v11 = vshll.u32 %v7967_v18, 16 }
 0x1ae   : > { %2914 = vrot.lane.b32.xlu1 %v2853_v6, %s13618_s22  ;;  %v13820_v33 = vld [vmem:[#allocation45_spill] sm:$0xff]  ;;  %v2010_v1 = vshll.u32 %v11792_v3, 16 }
 0x1af   : > { %v11732_v50 = vpop.permute.xlu0 %2908  ;;  %v3281_v62 = vrot.slane %v7924_v10, 1  ;;  %v3707_v10 = vshrl.u32 %v7967_v18, 16 }
 0x1b0   : > { %v11742_v29 = vpop.permute.xlu1 %3178 }
 0x1b1   : > { %1191 = vrot.lane.b32.xlu0 %v1160_v19, %s13617_s12  ;;  %v8374_v59 = vpop.f32.mrf.mxu0 }
 0x1b2   : > { %v4788_v8 = vadd.f32 %v8374_v59, %v11724_v37  ;;  %1461 = vrot.lane.b32.xlu1 %v1420_v14, %s13640_s14 }
 0x1b3   : > { %v11752_v31 = vpop.permute.xlu0 %1455  ;;  %v4779_v46 = vpop.f32.mrf.mxu0 }
 0x1b4   : > { %13811 = vst [vmem:[#allocation15_spill] sm:$0xff] %v11752_v31  ;;  %vm4908_vm3 = vcmp.gt.f32.partialorder %v4788_v8, 0.0  ;;  %v4780_v2 = vadd.f32 %v11724_v37, %v4779_v46  ;;  %v11760_v17 = vpop.permute.xlu1 %1582  ;;  %v4940_v44 = vmul.f32 0.2, %v4788_v8  ;;  %v3282_v46 = vrot.slane %v13820_v33, 1 }
 0x1b5   : > { %2916 = vrot.lane.b32.xlu0 %v2865_v56, %s13618_s22  ;;  %v8375_v27 = vpop.f32.mrf.mxu0  ;;  %v7813_v56 = vcombine.low %v7428_v48, %v11783_v24  ;;  %v2277_v48 = vshll.u32 %v9100_v21, 16  ;;  %v9114_v33 = vld [vmem:[%s9469_s21 + $0x188] ss:$0 sps:$4 sm:$0x11]  }
 0x1b6   : > { %v4938_v25 = vmul.f32 0.2, %v4780_v2  ;;  %v4791_v58 = vadd.f32 %v8375_v27, %v11724_v37  ;;  %3186 = vrot.lane.b32.xlu1 %v3125_v60, %s13627_s24  ;;  %vm4906_vm4 = vcmp.gt.f32.partialorder %v4780_v2, 0.0  ;;  %v11795_v19 = vsel %vm4908_vm3, %v4788_v8, %v4940_v44  ;;  %v11824_v60 = vld [vmem:[%s9469_s21 + $0xb0] ss:$0 sps:$4 sm:$0x11]  }
 0x1b7   : > { %v11770_v9 = vpop.permute.xlu0 %3180  ;;  %v4782_v57 = vpop.f32.mrf.mxu0  ;;  %13814 = vst [vmem:[#allocation19_spill] sm:$0xff] %v11795_v19  ;;  %v7646_v27 = vld [vmem:[%s9469_s21 + $0xb4] sm:$0xf]  ;;  %v2003_v44 = vshrl.u32 %v11740_v12, 16  ;;  %v2012_v12 = vrot.slane %v2010_v1, 1  ;;  %v3714_v47 = vshll.u32 %v11824_v60, 16 }
 0x1b8   : > { %vm4909_vm5 = vcmp.gt.f32.partialorder %v4791_v58, 0.0  ;;  %v4941_v6 = vmul.f32 0.2, %v4791_v58  ;;  %v4783_v45 = vadd.f32 %v11724_v37, %v4782_v57  ;;  %v11785_v38 = vpop.permute.xlu1 %3306  ;;  %v11810_v14 = vsel %vm4906_vm4, %v4780_v2, %v4938_v25  ;;  %v11859_v1 = vld [vmem:[%s9469_s21 + $0xbc] ss:$0 sps:$4 sm:$0x11]  }
 0x1b9   : > { %1463 = vrot.lane.b32.xlu0 %v1432_v63, %s13640_s14  ;;  %13818 = vst [vmem:[#allocation32_spill] sm:$0xff] %v11810_v14  ;;  %v2017_v63 = vshll.u32 %v7813_v56, 16  ;;  %v3283_v57 = vsel %vm1513_vm0, %v3281_v62, %v3282_v46  ;;  %v7969_v42 = vcombine.low %v7646_v27, %v11833_v51  ;;  %v2008_v54 = vor.u32 %v2007_v39, %v2003_v44  ;;  %v11872_v19 = vld [vmem:[%s9469_s21 + $0x18c] sm:$0xff]   ;;  %s9362_s14 = smov 48  }
 0x1ba   : > { %vm4907_vm8 = vcmp.gt.f32.partialorder %v4783_v45, 0.0  ;;  %v4939_v5 = vmul.f32 0.2, %v4783_v45  ;;  %v11797_v26 = vsel %vm4909_vm5, %v4791_v58, %v4941_v6  ;;  %1590 = vrot.lane.b32.xlu1 %v1558_v53, %s13624_s18  ;;  %v11840_v58 = vld [vmem:[%s9469_s21 + $0xc8] ss:$0 sps:$4 sm:$0x11]  }
 0x1bb   : > { %13815 = vst [vmem:[#allocation22_spill] sm:$0xff] %v11797_v26  ;;  %v11800_v40 = vpop.permute.xlu0 %1584  ;;  %v9102_v53 = vld [vmem:[%s9469_s21 + $0x180] sm:$0xff]   ;;  %v2015_v34 = vshrl.u32 %v7813_v56, 16  ;;  %v2022_v62 = vshll.u32 %v11840_v58, 16  ;;  %v3721_v27 = vshll.u32 %v7969_v42, 16  ;;  %v3716_v18 = vrot.slane %v3714_v47, 1 }
 0x1bc   : > { %13816 = vst [vmem:[#allocation26_spill] sm:$0xff] %v11800_v40  ;;  %v11812_v59 = vsel %vm4907_vm8, %v4783_v45, %v4939_v5  ;;  %v11814_v8 = vpop.permute.xlu1 %1694  ;;  %v9111_v45 = vld [vmem:[%s9469_s21 + $0x194] ss:$0 sps:$4 sm:$0x11]   ;;  %v3711_v5 = vrot.slane %v3709_v11, 1  ;;  %v3981_v46 = vshll.u32 %v9102_v53, 16 }
 0x1bd   : > { %13819 = vst [vmem:[#allocation14_spill] sm:$0xff] %v11812_v59  ;;  %3188 = vrot.lane.b32.xlu0 %v3137_v13, %s13627_s24  ;;  %v11851_v13 = vld [vmem:[%s9469_s21 + $0x198] sm:$0xff]   ;;  %v2275_v56 = vshrl.u32 %v9100_v21, 16  ;;  %v2279_v39 = vrot.slane %v2277_v48, 1  ;;  %v2282_v11 = vshll.u32 %v9111_v45, 16  ;;  %v3979_v41 = vshrl.u32 %v9102_v53, 16 }
 0x1be   : > { %3314 = vrot.lane.b32.xlu1 %v3280_v23, %s13628_s0  ;;  %v2289_v14 = vshll.u32 %v11851_v13, 16  ;;  %v2024_v47 = vrot.slane %v2022_v62, 1  ;;  %v3986_v45 = vshll.u32 %v9114_v33, 16  ;;  %v3719_v48 = vshrl.u32 %v7969_v42, 16  ;;  %v7461_v33 = vld [vmem:[%s9469_s21 + $0xb4] sm:$0xe] }
 0x1bf   : > { %v11827_v2 = vpop.permute.xlu0 %3308  ;;  %v2280_v40 = vor.u32 %v2279_v39, %v2275_v56  ;;  %v2284_v31 = vrot.slane %v2282_v11, 1  ;;  %v2294_v42 = vshll.u32 %v9115_v0, 16  ;;  %vm13824_vm8 = vcmask 48128   ;;  %v13825_v11 = vld [vmem:[#allocation28_spill] sm:$0xff] }
 0x1c0   : > { %v11836_v25 = vpop.permute.xlu1 %3418  ;;  %v2291_v62 = vrot.slane %v2289_v14, 1  ;;  %v3988_v39 = vrot.slane %v3986_v45, 1  ;;  %vm13826_vm3 = vcmask 72704   ;;  %vm13828_vm4 = vcmask 97280  }
 0x1c1   : > { %1592 = vrot.lane.b32.xlu0 %v1561_v49, %s13624_s18  ;;  %v2019_v49 = vrot.slane %v2017_v63, 1  ;;  %v3712_v63 = vor.u32 %v3711_v5, %v3707_v10  ;;  %vm13830_vm5 = vcmask 146432   ;;  %s9369_s18 = smov 64  }
 0x1c2   : > { %1702 = vrot.lane.b32.xlu1 %v9100_v21, %s13612_s25  ;;  %v3983_v21 = vrot.slane %v3981_v46, 1  ;;  %v13823_v46 = vld [vmem:[#allocation9_spill] sm:$0xff] }
 0x1c3   : > { %v11846_v6 = vpop.permute.xlu0 %1696  ;;  %v2020_v26 = vor.u32 %v2019_v49, %v2015_v34  ;;  %v3717_v34 = vsel %vm968_vm1, %v3712_v63, %v3716_v18  ;;  %v2287_v49 = vshrl.u32 %v11851_v13, 16  ;;  %v9117_v18 = vld [vmem:[%s9469_s21 + $0x194] ss:$0 sps:$4 sm:$0x11]   ;;  %v3993_v63 = vshll.u32 %v11872_v19, 16 }
 0x1c4   : > { %13821 = vst [vmem:[#allocation36_spill] sm:$0xff] %v11846_v6  ;;  %v11853_v23 = vpop.permute.xlu1 %2046  ;;  %v3723_v6 = vrot.slane %v3721_v27, 1  ;;  %v3984_v56 = vor.u32 %v3983_v21, %v3979_v41  ;;  %v7845_v41 = vcombine.low %v7461_v33, %v11710_v36  ;;  %v13829_v21 = vld [vmem:[#allocation18_spill] sm:$0xff] }
 0x1c5   : > { %3316 = vrot.lane.b32.xlu0 %v3283_v57, %s13628_s0  ;;  %v2013_v57 = vsel %vm968_vm1, %v2008_v54, %v2012_v12  ;;  %v3726_v12 = vshll.u32 %v11859_v1, 16  ;;  %v13822_v54 = vld [vmem:[#allocation25_spill] sm:$0xff] }
 0x1c6   : > { %3426 = vrot.lane.b32.xlu1 %v9102_v53, %s13631_s1  ;;  %v9269_v53 = vld [vmem:[%s9469_s21 + $0x2e8] sm:$0xff]   ;;  %v3724_v0 = vor.u32 %v3723_v6, %v3719_v48  ;;  %v2292_v48 = vor.u32 %v2291_v62, %v2287_v49  ;;  %v3989_v36 = vsel %vm968_vm1, %v3984_v56, %v3988_v39  ;;  %v3991_v49 = vshrl.u32 %v11872_v19, 16  ;;  %v7537_v39 = vld [vmem:[%s9469_s21 + $0x264] sm:$0xf] }
 0x1c7   : > { %v11862_v44 = vpop.permute.xlu0 %3420  ;;  %v4204_v10 = vsel %vm4186_vm2, %v9269_v53, %v13822_v54  ;;  %v13827_v53 = vld [vmem:[#allocation46_spill] sm:$0xff]  ;;  %v3995_v62 = vrot.slane %v3993_v63, 1  ;;  %v2420_v56 = vrot.slane %v7845_v41, 1 }
 0x1c8   : > { %v11867_v59 = vpop.permute.xlu1 %3770  ;;  %v4237_v27 = vsel %vm13824_vm8, %v4204_v10, %v13823_v46  ;;  %v7683_v46 = vld [vmem:[%s9469_s21 + $0xa8] sm:$0xe]  ;;  %vm13831_vm8 = vcmask 171008   ;;  %v7540_v41 = vld [vmem:[%s9469_s21 + $0x270] sm:$0xf] }
 0x1c9   : > { %1704 = vrot.lane.b32.xlu0 %v11851_v13, %s13612_s25  ;;  %v4270_v14 = vsel %vm13826_vm3, %v4237_v27, %v13825_v11  ;;  %v3728_v13 = vrot.slane %v3726_v12, 1  ;;  %v2296_v12 = vrot.slane %v2294_v42, 1  ;;  %v7462_v42 = vld [vmem:[%s9469_s21 + $0xc0] sm:$0xe]  ;;  %vm13833_vm3 = vcmask 48128   ;;  %s9365_s25 = smov 8  }
 0x1ca   : > { %2054 = vrot.lane.b32.xlu1 %v2013_v57, %s13613_s17  ;;  %v2025_v57 = vsel %vm968_vm1, %v2020_v26, %v2024_v47  ;;  %v4303_v54 = vsel %vm13828_vm4, %v4270_v14, %v13827_v53  ;;  %v2285_v26 = vsel %vm968_vm1, %v2280_v40, %v2284_v31  ;;  %v9270_v47 = vld [vmem:[%s9469_s21 + $0x2f4] sm:$0xff]   ;;  %v2421_v31 = vrot.slane %v11792_v3, 1 }
 0x1cb   : > { %v11879_v5 = vpop.permute.xlu0 %2048  ;;  %v4206_v45 = vsel %vm4186_vm2, %v9270_v47, %v13829_v21  ;;  %v4336_v6 = vsel %vm4318_vm6, %v4303_v54, %v11516_v35  ;;  %v3998_v40 = vshll.u32 %v9117_v18, 16  ;;  %v3729_v35 = vsel %vm968_vm1, %v3724_v0, %v3728_v13  ;;  %v11928_v18 = vld [vmem:[%s9469_s21 + $0x268] sm:$0xf]  ;;  %v11946_v47 = vld [vmem:[%s9469_s21 + $0x274] sm:$0xf] }
 0x1cc   : > { %v11886_v52 = vpop.permute.xlu1 %2318  ;;  %vm13835_vm4 = vcmask 72704   ;;  %v4143_v13 = vrot.slane %v11824_v60, 1  ;;  %v7684_v21 = vld [vmem:[%s9469_s21 + $0xb4] sm:$0xe] }
 0x1cd   : > { %3428 = vrot.lane.b32.xlu0 %v11872_v19, %s13631_s1  ;;  %v13834_v19 = vld [vmem:[#allocation42_spill] sm:$0xff]  ;;  %v4000_v54 = vrot.slane %v3998_v40, 1 }
 0x1ce   : > { %3778 = vrot.lane.b32.xlu1 %v3717_v34, %s13620_s20  ;;  %v4369_v34 = vsel %vm13830_vm5, %v4336_v6, %v11570_v28  ;;  %v13832_v28 = vld [vmem:[#allocation24_spill] sm:$0xff]  ;;  %vm13836_vm5 = vcmask 97280   ;;  %v11972_v40 = vld [vmem:[%s9469_s21 + $0x26c] ss:$0 sps:$4 sm:$0x11]  }
 0x1cf   : > { %v11898_v10 = vpop.permute.xlu0 %3772  ;;  %v4402_v33 = vsel %vm13831_vm8, %v4369_v34, %v11621_v20  ;;  %v4239_v11 = vsel %vm13833_vm3, %v4206_v45, %v13832_v28  ;;  %v8003_v20 = vcombine.low %v7683_v46, %v11778_v22  ;;  %vm13837_vm8 = vcmask 146432   ;;  %v9122_v28 = vld [vmem:[%s9469_s21 + $0x348] sm:$0xff]  }
 0x1d0   : > { %v4043_v27 = vpop.permute.xlu1 %4042  ;;  %v4272_v14 = vsel %vm13835_vm4, %v4239_v11, %v13834_v19  ;;  %vm13838_vm3 = vcmask 171008   ;;  %v2424_v46 = vrot.slane %v11840_v58, 1  ;;  %vm13839_vm4 = vcmask 392192  }
 0x1d1   : > { %2056 = vrot.lane.b32.xlu0 %v2025_v57, %s13613_s17  ;;  %v4435_v57 = vsel %vm4417_vm9, %v4402_v33, %v11668_v7  ;;  %v2297_v7 = vsel %vm968_vm1, %v2292_v48, %v2296_v12  ;;  %v4305_v63 = vsel %vm13836_vm5, %v4272_v14, %v11502_v32  ;;  %v3996_v32 = vor.u32 %v3995_v62, %v3991_v49  ;;  %v9120_v62 = vld [vmem:[%s9469_s21 + $0x33c] sm:$0xff]   ;;  %v9127_v14 = vld [vmem:[%s9469_s21 + $0x344] ss:$0 sps:$4 sm:$0x11]   ;;  %vm13840_vm5 = vmmov %vm13839_vm4  ;;  %s9366_s17 = smov 88  }
 0x1d2   : > { %2326 = vrot.lane.b32.xlu1 %v2285_v26, %s13614_s10  ;;  %v4468_v0 = vsel %vm4450_vm10, %v4435_v57, %v11699_v55  ;;  %v7846_v26 = vcombine.low %v7462_v42, %v11783_v24  ;;  %v4338_v55 = vsel %vm4318_vm6, %v4305_v63, %v11558_v15  ;;  %v2422_v48 = vsel %vm1513_vm0, %v2420_v56, %v2421_v31 }
 0x1d3   : > { %v11923_v3 = vpop.permute.xlu0 %2320  ;;  %v4501_v22 = vsel %vm4483_vm11, %v4468_v0, %v11742_v29  ;;  %v7891_v29 = vcombine.low %v7537_v39, %v11928_v18  ;;  %v4371_v45 = vsel %vm13837_vm8, %v4338_v55, %v11609_v30  ;;  %v4142_v15 = vrot.slane %v8003_v20, 1 }
 0x1d4   : > { %v11940_v53 = vpop.permute.xlu1 %2446  ;;  %v4534_v60 = vsel %vm4516_vm12, %v4501_v22, %v11785_v38  ;;  %v4404_v38 = vsel %vm13838_vm3, %v4371_v45, %v11658_v43  ;;  %v7893_v30 = vcombine.low %v7540_v41, %v11946_v47  ;;  %v2423_v31 = vrot.slane %v7846_v26, 1  ;;  %v9128_v26 = vld [vmem:[%s9469_s21 + $0x350] ss:$0 sps:$4 sm:$0x11]  }
 0x1d5   : > { %3780 = vrot.lane.b32.xlu0 %v3729_v35, %s13620_s20  ;;  %v4567_v24 = vsel %vm4549_vm13, %v4534_v60, %v11836_v25  ;;  %v4437_v25 = vsel %vm4417_vm9, %v4404_v38, %v11692_v16  ;;  %v8004_v43 = vcombine.low %v7684_v21, %v11833_v51  ;;  %v4001_v33 = vsel %vm968_vm1, %v3996_v32, %v4000_v54  ;;  %v11985_v51 = vld [vmem:[%s9469_s21 + $0x278] ss:$0 sps:$4 sm:$0x11]   ;;  %v7573_v32 = vld [vmem:[%s9469_s21 + $0x264] sm:$0xe] }
 0x1d6   : > { %4050 = vrot.lane.b32.xlu1 %v3989_v36, %s13622_s19  ;;  %v4600_v12 = vsel %vm4582_vm14, %v4567_v24, %v11867_v59  ;;  %v4470_v59 = vsel %vm4450_vm10, %v4437_v25, %v11732_v50  ;;  %v2869_v16 = vshll.u32 %v7891_v29, 16  ;;  %v4144_v49 = vsel %vm1513_vm0, %v4142_v15, %v4143_v13 }
 0x1d7   : > { %v4045_v6 = vpop.permute.xlu0 %4044  ;;  %v4633_v34 = vsel %vm4615_vm15, %v4600_v12, %v4043_v27  ;;  %v4503_v27 = vsel %vm4483_vm11, %v4470_v59, %v11770_v9  ;;  %v4146_v42 = vrot.slane %v11859_v1, 1  ;;  %v2881_v11 = vshll.u32 %v7893_v30, 16  ;;  %v7574_v59 = vld [vmem:[%s9469_s21 + $0x270] sm:$0xe] }
 0x1d8   : > { %v4171_v36 = vpop.permute.xlu1 %4170  ;;  %v4536_v50 = vsel %vm4516_vm12, %v4503_v27, %v11827_v2  ;;  %v2425_v56 = vsel %vm1513_vm0, %v2423_v31, %v2424_v46  ;;  %v4145_v20 = vrot.slane %v8004_v43, 1  ;;  %v2874_v2 = vshll.u32 %v11972_v40, 16 }
 0x1d9   : > { %2328 = vrot.lane.b32.xlu0 %v2297_v7, %s13614_s10  ;;  %v4666_v58 = vsel %vm4648_vm7, %v4633_v34, %v4171_v36  ;;  %v4569_v9 = vsel %vm4549_vm13, %v4536_v50, %v11862_v44  ;;  %v2867_v19 = vshrl.u32 %v7891_v29, 16  ;;  %v2871_v1 = vrot.slane %v2869_v16, 1  ;;  %v7652_v34 = vld [vmem:[%s9469_s21 + $0xcc] sm:$0xf]  ;;  %v12023_v36 = vld [vmem:[%s9469_s21 + $0xd0] sm:$0xf] }
 0x1da   : > { %2454 = vrot.lane.b32.xlu1 %v2422_v48, %s13623_s23  ;;  %8388 = vmatprep.mubr.msk.bf16.mxu0 %vm13839_vm4, %v4666_v58  ;;  %v4602_v39 = vsel %vm4582_vm14, %v4569_v9, %v11898_v10  ;;  %v3141_v0 = vshll.u32 %v9120_v62, 16  ;;  %v2886_v13 = vshll.u32 %v11985_v51, 16  ;;  %v2879_v22 = vshrl.u32 %v7893_v30, 16  ;;  %v12016_v48 = vld [vmem:[%s9469_s21 + $0xc4] sm:$0xf]  ;;  %v12033_v50 = vld [vmem:[%s9469_s21 + $0x198] sm:$0xff]  }
 0x1db   : > { %v11982_v35 = vpop.permute.xlu0 %2448  ;;  %v4635_v44 = vsel %vm4615_vm15, %v4602_v39, %v4045_v6  ;;  %v2883_v54 = vrot.slane %v2881_v11, 1  ;;  %v3153_v10 = vshll.u32 %v9122_v28, 16  ;;  %v2876_v55 = vrot.slane %v2874_v2, 1  ;;  %v7649_v6 = vld [vmem:[%s9469_s21 + $0xc0] sm:$0xf]  ;;  %s9356_s10 = smov 40  }
 0x1dc   : > { %v11995_v57 = vpop.permute.xlu1 %2558  ;;  %v3139_v60 = vshrl.u32 %v9120_v62, 16  ;;  %v4147_v21 = vsel %vm1513_vm0, %v4145_v20, %v4146_v42  ;;  %v2872_v29 = vor.u32 %v2871_v1, %v2867_v19  ;;  %v3143_v45 = vrot.slane %v3141_v0, 1  ;;  %v12046_v39 = vld [vmem:[%s9469_s21 + $0xc8] ss:$0 sps:$4 sm:$0x11]  }
 0x1dd   : > { %4052 = vrot.lane.b32.xlu0 %v4001_v33, %s13622_s19  ;;  %v3146_v24 = vshll.u32 %v9127_v14, 16  ;;  %v2888_v38 = vrot.slane %v2886_v13, 1  ;;  %v3151_v12 = vshrl.u32 %v9122_v28, 16  ;;  %v2884_v46 = vor.u32 %v2883_v54, %v2879_v22  ;;  %v12050_v1 = vld [vmem:[%s9469_s21 + $0xd4] ss:$0 sps:$4 sm:$0x11]  }
 0x1de   : > { %4178 = vrot.lane.b32.xlu1 %v4144_v49, %s13615_s13  ;;  %v3155_v30 = vrot.slane %v3153_v10, 1  ;;  %v3158_v25 = vshll.u32 %v9128_v26, 16  ;;  %v7925_v43 = vcombine.low %v7573_v32, %v11928_v18  ;;  %v7971_v58 = vcombine.low %v7649_v6, %v12016_v48  ;;  %v12057_v0 = vld [vmem:[%s9469_s21 + $0x1a4] sm:$0xff]  }
 0x1df   : > { %v4173_v7 = vpop.permute.xlu0 %4172  ;;  %v2877_v33 = vsel %vm968_vm1, %v2872_v29, %v2876_v55  ;;  %v3144_v16 = vor.u32 %v3143_v45, %v3139_v60  ;;  %v3148_v27 = vrot.slane %v3146_v24, 1  ;;  %v2889_v18 = vsel %vm968_vm1, %v2884_v46, %v2888_v38  ;;  %v9137_v60 = vld [vmem:[%s9469_s21 + $0x1a0] ss:$0 sps:$4 sm:$0x11]  }
 0x1e0   : > { %v4668_v63 = vsel %vm4648_vm7, %v4635_v44, %v4173_v7  ;;  %v12008_v41 = vpop.permute.xlu1 %1185  ;;  %v3156_v42 = vor.u32 %v3155_v30, %v3151_v12  ;;  %v3160_v11 = vrot.slane %v3158_v25, 1  ;;  %v7926_v9 = vcombine.low %v7574_v59, %v11946_v47  ;;  %v9138_v12 = vld [vmem:[%s9469_s21 + $0x1ac] ss:$0 sps:$4 sm:$0x11]  }
 0x1e1   : > { %2456 = vrot.lane.b32.xlu0 %v2425_v56, %s13623_s23  ;;  %8389 = vmatmul.mubr.msk.bf16.gmra.mxu0 %vm13840_vm5, %v4668_v63  ;;  %v3284_v20 = vrot.slane %v7925_v43, 1  ;;  %v3285_v2 = vrot.slane %v11972_v40, 1  ;;  %v3149_v19 = vsel %vm968_vm1, %v3144_v16, %v3148_v27  ;;  %v4005_v14 = vshll.u32 %v12033_v50, 16  ;;  %s9367_s23 = smov 80  }
 0x1e2   : > { %2566 = vrot.lane.b32.xlu1 %v9120_v62, %s13616_s26  ;;  %v7973_v62 = vcombine.low %v7652_v34, %v12023_v36  ;;  %v3161_v7 = vsel %vm968_vm1, %v3156_v42, %v3160_v11  ;;  %v3287_v40 = vrot.slane %v7926_v9, 1  ;;  %v3288_v13 = vrot.slane %v11985_v51, 1  ;;  %v7685_v11 = vld [vmem:[%s9469_s21 + $0xc0] sm:$0xe] }
 0x1e3   : > { %v12019_v15 = vpop.permute.xlu0 %2560  ;;  %v3286_v54 = vsel %vm1513_vm0, %v3284_v20, %v3285_v2  ;;  %v3731_v26 = vshrl.u32 %v7971_v58, 16  ;;  %v3738_v55 = vshll.u32 %v12046_v39, 16  ;;  %v4003_v29 = vshrl.u32 %v12033_v50, 16 }
 0x1e4   : > { %v12025_v31 = vpop.permute.xlu1 %2910  ;;  %v3745_v44 = vshll.u32 %v7973_v62, 16  ;;  %v4007_v51 = vrot.slane %v4005_v14, 1  ;;  %v3743_v6 = vshrl.u32 %v7973_v62, 16  ;;  %v4017_v46 = vshll.u32 %v12057_v0, 16 }
 0x1e5   : > { %4180 = vrot.lane.b32.xlu0 %v4147_v21, %s13615_s13  ;;  %v3750_v21 = vshll.u32 %v12050_v1, 16  ;;  %v3289_v25 = vsel %vm1513_vm0, %v3287_v40, %v3288_v13  ;;  %v4015_v16 = vshrl.u32 %v12057_v0, 16 }
 0x1e6   : > { %2568 = vrot.lane.b32.xlu1 %v9122_v28, %s13616_s26  ;;  %v3733_v28 = vshll.u32 %v7971_v58, 16  ;;  %v3747_v38 = vrot.slane %v3745_v44, 1  ;;  %v3740_v58 = vrot.slane %v3738_v55, 1  ;;  %v4008_v42 = vor.u32 %v4007_v51, %v4003_v29 }
 0x1e7   : > { %v12036_v49 = vpop.permute.xlu0 %1187 }
 0x1e8   : > { %v12041_v56 = vpop.permute.xlu1 %1457  ;;  %v3735_v10 = vrot.slane %v3733_v28, 1  ;;  %v3748_v2 = vor.u32 %v3747_v38, %v3743_v6  ;;  %v4019_v28 = vrot.slane %v4017_v46, 1  ;;  %v4149_v46 = vrot.slane %v12046_v39, 1 }
 0x1e9   : > { %2918 = vrot.lane.b32.xlu0 %v2877_v33, %s13618_s22  ;;  %v4010_v33 = vshll.u32 %v9137_v60, 16 }
 0x1ea   : > { %2920 = vrot.lane.b32.xlu1 %v2889_v18, %s13618_s22  ;;  %v3736_v59 = vor.u32 %v3735_v10, %v3731_v26  ;;  %v3752_v18 = vrot.slane %v3750_v21, 1  ;;  %v7686_v26 = vld [vmem:[%s9469_s21 + $0xcc] sm:$0xe]  ;;  %s8132_s22 = sshll.u32 %s9437_s9, 4  ;;  %s9370_s9 = smov [#allocation3]  }
 0x1eb   : > { %v12054_v47 = vpop.permute.xlu0 %2912  ;;  %v8006_v51 = vcombine.low %v7686_v26, %v12023_v36 }
 0x1ec   : > { %v12061_v63 = vpop.permute.xlu1 %3182  ;;  %v3741_v13 = vsel %vm968_vm1, %v3736_v59, %v3740_v58 }
 0x1ed   : > { %3190 = vrot.lane.b32.xlu0 %v3149_v19, %s13627_s24  ;;  %v8378_v22 = vpop.f32.mrf.mxu0  ;;  %v4022_v19 = vshll.u32 %v9138_v12, 16 }
 0x1ee   : > { %v4804_v32 = vadd.f32 %v8378_v22, %v11724_v37  ;;  %3192 = vrot.lane.b32.xlu1 %v3161_v7, %s13627_s24  ;;  %v4012_v22 = vrot.slane %v4010_v33, 1  ;;  %s9368_s24 = smov 16  }
 0x1ef   : > { %v12071_v45 = vpop.permute.xlu0 %1459  ;;  %v4795_v24 = vpop.f32.mrf.mxu0  ;;  %v4024_v21 = vrot.slane %v4022_v19, 1 }
 0x1f0   : > { %v4796_v30 = vadd.f32 %v11724_v37, %v4795_v24  ;;  %v12077_v34 = vpop.permute.xlu1 %1586  ;;  %v4944_v27 = vmul.f32 0.2, %v4804_v32  ;;  %vm4912_vm8 = vcmp.gt.f32.partialorder %v4804_v32, 0.0  ;;  %v4013_v38 = vsel %vm968_vm1, %v4008_v42, %v4012_v22 }
 0x1f1   : > { %3318 = vrot.lane.b32.xlu0 %v3286_v54, %s13628_s0  ;;  %v8379_v43 = vpop.f32.mrf.mxu0  ;;  %v8005_v54 = vcombine.low %v7685_v11, %v12016_v48  ;;  %v4020_v48 = vor.u32 %v4019_v28, %v4015_v16 }
 0x1f2   : > { %v4807_v62 = vadd.f32 %v8379_v43, %v11724_v37  ;;  %3320 = vrot.lane.b32.xlu1 %v3289_v25, %s13628_s0  ;;  %v4942_v14 = vmul.f32 0.2, %v4796_v30  ;;  %vm4910_vm4 = vcmp.gt.f32.partialorder %v4796_v30, 0.0  ;;  %v12095_v55 = vsel %vm4912_vm8, %v4804_v32, %v4944_v27  ;;  %s9358_s0 = smov 56  }
 0x1f3   : > { %v12084_v9 = vpop.permute.xlu0 %3184  ;;  %v4798_v20 = vpop.f32.mrf.mxu0  ;;  %v4148_v12 = vrot.slane %v8005_v54, 1  ;;  %v4151_v25 = vrot.slane %v8006_v51, 1  ;;  %v4152_v43 = vrot.slane %v12050_v1, 1  ;;  %vm13843_vm8 = vcmask 97280   ;;  %v13847_v54 = vld [vmem:[#allocation15_spill] sm:$0xff] }
 0x1f4   : > { %vm4913_vm3 = vcmp.gt.f32.partialorder %v4807_v62, 0.0  ;;  %v4945_v44 = vmul.f32 0.2, %v4807_v62  ;;  %v4799_v7 = vadd.f32 %v11724_v37, %v4798_v20  ;;  %v12087_v40 = vpop.permute.xlu1 %3310  ;;  %v12108_v24 = vsel %vm4910_vm4, %v4796_v30, %v4942_v14 }
 0x1f5   : > { %3430 = vrot.lane.b32.xlu0 %v12033_v50, %s13631_s1  ;;  %v3753_v50 = vsel %vm968_vm1, %v3748_v2, %v3752_v18  ;;  %v4025_v30 = vsel %vm968_vm1, %v4020_v48, %v4024_v21  ;;  %v4150_v58 = vsel %vm1513_vm0, %v4148_v12, %v4149_v46  ;;  %v4153_v39 = vsel %vm1513_vm0, %v4151_v25, %v4152_v43  ;;  %v9271_v18 = vld [vmem:[%s9469_s21 + $0x300] sm:$0xff]  }
 0x1f6   : > { %vm4911_vm5 = vcmp.gt.f32.partialorder %v4799_v7, 0.0  ;;  %v4943_v10 = vmul.f32 0.2, %v4799_v7  ;;  %v12097_v60 = vsel %vm4913_vm3, %v4807_v62, %v4945_v44  ;;  %3432 = vrot.lane.b32.xlu1 %v12057_v0, %s13631_s1  ;;  %v4208_v42 = vsel %vm4186_vm2, %v9271_v18, %v11682_v4  ;;  %v9272_v4 = vld [vmem:[%s9469_s21 + $0x30c] sm:$0xff]   ;;  %s9359_s1 = smov 120  }
 0x1f7   : > { %v12101_v37 = vpop.permute.xlu0 %1588  ;;  %v5037_v29 = vpack.c.bf16 %v12097_v60, %v12095_v55  ;;  %vm13841_vm1 = vcmask 48128   ;;  %vm13842_vm0 = vcmask 72704   ;;  %vm13844_vm3 = vcmask 146432   ;;  %v9141_v55 = vld [vmem:[%s13543_s5] ss:$8 sps:$4 sm:$0xff]  }
 0x1f8   : > { %v12110_v32 = vsel %vm4911_vm5, %v4799_v7, %v4943_v10  ;;  %v12112_v6 = vpop.permute.xlu1 %1698  ;;  %v4241_v11 = vsel %vm13841_vm1, %v4208_v42, %v11717_v61  ;;  %vm13846_vm4 = vcmask 171008   ;;  %vm13848_vm5 = vmmov %vm13841_vm1  ;;  %v13884_v60 = vld [vmem:[#allocation14_spill] sm:$0xff] }
 0x1f9   : > { %3782 = vrot.lane.b32.xlu0 %v3741_v13, %s13620_s20  ;;  %v5036_v0 = vpack.c.bf16 %v12110_v32, %v12108_v24  ;;  %v4274_v2 = vsel %vm13842_vm0, %v4241_v11, %v11760_v17  ;;  %v13845_v13 = vld [vmem:[#allocation13_spill] sm:$0xff]  ;;  %vm13850_vm1 = vmmov %vm13842_vm0  ;;  %v9144_v24 = vld [vmem:[%s13543_s5 + $0x14] ss:$8 sps:$4 sm:$0xff]  }
 0x1fa   : > { %3784 = vrot.lane.b32.xlu1 %v3753_v50, %s13620_s20  ;;  %v4307_v28 = vsel %vm13843_vm8, %v4274_v2, %v11814_v8  ;;  %v4210_v61 = vsel %vm4186_vm2, %v9272_v4, %v13845_v13  ;;  %v13851_v50 = vld [vmem:[#allocation36_spill] sm:$0xff]  ;;  %vm13852_vm0 = vmmov %vm13843_vm8  ;;  %s9364_s20 = smov 72  }
 0x1fb   : > { %v3313_v36 = vpop.permute.xlu0 %3312  ;;  %v4340_v14 = vsel %vm4318_vm6, %v4307_v28, %v11853_v23  ;;  %v4243_v17 = vsel %vm13848_vm5, %v4210_v61, %v13847_v54  ;;  %v13849_v23 = vld [vmem:[#allocation26_spill] sm:$0xff]  ;;  %vm13853_vm8 = vmmov %vm13844_vm3 }
 0x1fc   : > { %v3423_v59 = vpop.permute.xlu1 %3422  ;;  %v4373_v44 = vsel %vm13844_vm3, %v4340_v14, %v11886_v52  ;;  %v4276_v10 = vsel %vm13850_vm1, %v4243_v17, %v13849_v23  ;;  %vm13854_vm3 = vmmov %vm13846_vm4  ;;  %vm13857_vm1 = vcmask 48128   ;;  %v9146_v32 = vld [vmem:[%s13543_s5 + $0x10] ss:$8 sps:$4 sm:$0xff]  }
 0x1fd   : > { %4054 = vrot.lane.b32.xlu0 %v4013_v38, %s13622_s19  ;;  %v4406_v22 = vsel %vm13846_vm4, %v4373_v44, %v11940_v53  ;;  %v4309_v21 = vsel %vm13852_vm0, %v4276_v10, %v13851_v50  ;;  %vm13855_vm4 = vcmask 392192   ;;  %vm13858_vm0 = vcmask 72704  }
 0x1fe   : > { %4056 = vrot.lane.b32.xlu1 %v4025_v30, %s13622_s19  ;;  %v4439_v8 = vsel %vm4417_vm9, %v4406_v22, %v11995_v57  ;;  %v4342_v51 = vsel %vm4318_vm6, %v4309_v21, %v11879_v5  ;;  %vm13856_vm5 = vmmov %vm13855_vm4  ;;  %s13503_s19 = scalar_lea.hbm %s13546_s8, %s8132_s22 }
 0x1ff   : > { %v12125_v33 = vpop.permute.xlu0 %1700  ;;  %v4472_v52 = vsel %vm4450_vm10, %v4439_v8, %v12025_v31  ;;  %v4375_v38 = vsel %vm13853_vm8, %v4342_v51, %v11923_v3  ;;  %vm13859_vm8 = vcmask 97280  }
 0x200   : > { %v12128_v16 = vpop.permute.xlu1 %2050  ;;  %v4505_v53 = vsel %vm4483_vm11, %v4472_v52, %v12061_v63  ;;  %v4408_v31 = vsel %vm13854_vm3, %v4375_v38, %v11982_v35  ;;  %v9273_v52 = vld [vmem:[%s9469_s21 + $0x318] sm:$0xff]   ;;  %vm13860_vm3 = vcmask 146432  }
 0x201   : > { %4182 = vrot.lane.b32.xlu0 %v4150_v58, %s13615_s13  ;;  %v4538_v57 = vsel %vm4516_vm12, %v4505_v53, %v12087_v40  ;;  %v4441_v63 = vsel %vm4417_vm9, %v4408_v31, %v12019_v15  ;;  %v4212_v50 = vsel %vm4186_vm2, %v9273_v52, %v12008_v41 }
 0x202   : > { %4184 = vrot.lane.b32.xlu1 %v4153_v39, %s13615_s13  ;;  %v4571_v12 = vsel %vm4549_vm13, %v4538_v57, %v3423_v59  ;;  %v4474_v40 = vsel %vm4450_vm10, %v4441_v63, %v12054_v47  ;;  %v4245_v21 = vsel %vm13857_vm1, %v4212_v50, %v12041_v56  ;;  %s9357_s13 = smov 104  }
 0x203   : > { %v3425_v27 = vpop.permute.xlu0 %3424  ;;  %v4507_v3 = vsel %vm4483_vm11, %v4474_v40, %v12084_v9  ;;  %v4278_v51 = vsel %vm13858_vm0, %v4245_v21, %v12077_v34  ;;  %v9275_v21 = vld [vmem:[%s9469_s21 + $0x330] sm:$0xff]  }
 0x204   : > { %v3775_v1 = vpop.permute.xlu1 %3774  ;;  %v4540_v35 = vsel %vm4516_vm12, %v4507_v3, %v3313_v36  ;;  %v4311_v57 = vsel %vm13859_vm8, %v4278_v51, %v12112_v6 }
 0x205   : > { %v4604_v30 = vsel %vm4582_vm14, %v4571_v12, %v3775_v1  ;;  %v4573_v58 = vsel %vm4549_vm13, %v4540_v35, %v3425_v27  ;;  %v4344_v12 = vsel %vm4318_vm6, %v4311_v57, %v12128_v16 }
 0x207   : > { %v12132_v62 = vpop.permute.xlu0 %2052 }
 0x208   : > { %v12139_v20 = vpop.permute.xlu1 %2322 }
 0x20b   : > { %v3777_v19 = vpop.permute.xlu0 %3776 }
 0x20c   : > { %v4047_v7 = vpop.permute.xlu1 %4046  ;;  %v4606_v15 = vsel %vm4582_vm14, %v4573_v58, %v3777_v19 }
 0x20d   : > { %v4637_v25 = vsel %vm4615_vm15, %v4604_v30, %v4047_v7  ;;  %v9274_v30 = vld [vmem:[%s9469_s21 + $0x324] sm:$0xff]  }
 0x20e   : > { %v4214_v41 = vsel %vm4186_vm2, %v9274_v30, %v12036_v49 }
 0x20f   : > { %v12158_v26 = vpop.permute.xlu0 %2324 }
 0x210   : > { %v2451_v48 = vpop.permute.xlu1 %2450 }
 0x213   : > { %v4049_v46 = vpop.permute.xlu0 %4048 }
 0x214   : > { %v4175_v5 = vpop.permute.xlu1 %4174  ;;  %v4639_v1 = vsel %vm4615_vm15, %v4606_v15, %v4049_v46  ;;  %v4377_v46 = vsel %vm13860_vm3, %v4344_v12, %v12139_v20 }
 0x215   : > { %v4670_v43 = vsel %vm4648_vm7, %v4637_v25, %v4175_v5 }
 0x216   : > { %8392 = vmatprep.mubr.msk.bf16.mxu0 %vm13855_vm4, %v4670_v43  ;;  %vm13861_vm4 = vcmask 171008  }
 0x217   : > { %v2453_v59 = vpop.permute.xlu0 %2452  ;;  %v4410_v56 = vsel %vm13861_vm4, %v4377_v46, %v2451_v48 }
 0x218   : > { %v2563_v39 = vpop.permute.xlu1 %2562 }
 0x219   : > { %v4443_v63 = vsel %vm4417_vm9, %v4410_v56, %v2563_v39 }
 0x21b   : > { %v4177_v18 = vpop.permute.xlu0 %4176 }
 0x21c   : > { %v4672_v47 = vsel %vm4648_vm7, %v4639_v1, %v4177_v18  ;;  %v12192_v42 = vpop.permute.xlu1 %1189 }
 0x21d   : > { %8393 = vmatmul.mubr.msk.bf16.gmra.mxu0 %vm13856_vm5, %v4672_v47  ;;  %vm13862_vm5 = vmmov %vm13857_vm1 }
 0x21e   : > { %v4247_v34 = vsel %vm13862_vm5, %v4214_v41, %v12071_v45  ;;  %vm13863_vm1 = vmmov %vm13858_vm0 }
 0x21f   : > { %v2565_v9 = vpop.permute.xlu0 %2564  ;;  %v4280_v25 = vsel %vm13863_vm1, %v4247_v34, %v12101_v37  ;;  %vm13864_vm0 = vmmov %vm13859_vm8  ;;  %vm13869_vm1 = vcmask 48128  }
 0x220   : > { %v2915_v11 = vpop.permute.xlu1 %2914  ;;  %v4313_v20 = vsel %vm13864_vm0, %v4280_v25, %v12125_v33  ;;  %vm13865_vm8 = vmmov %vm13860_vm3  ;;  %vm13870_vm0 = vcmask 72704  }
 0x221   : > { %v4476_v16 = vsel %vm4450_vm10, %v4443_v63, %v2915_v11  ;;  %v4346_v49 = vsel %vm4318_vm6, %v4313_v20, %v12132_v62  ;;  %vm13866_vm3 = vmmov %vm13861_vm4  ;;  %vm13867_vm4 = vcmask 392192  }
 0x222   : > { %v4379_v45 = vsel %vm13865_vm8, %v4346_v49, %v12158_v26  ;;  %vm13868_vm5 = vmmov %vm13867_vm4 }
 0x223   : > { %v12195_v2 = vpop.permute.xlu0 %1191  ;;  %v4412_v37 = vsel %vm13866_vm3, %v4379_v45, %v2453_v59  ;;  %vm13871_vm8 = vmmov %vm13869_vm1  ;;  %vm13872_vm3 = vcmask 97280  }
 0x224   : > { %v12197_v28 = vpop.permute.xlu1 %1461  ;;  %v4445_v33 = vsel %vm4417_vm9, %v4412_v37, %v2565_v9 }
 0x227   : > { %v2917_v36 = vpop.permute.xlu0 %2916 }
 0x228   : > { %v3187_v27 = vpop.permute.xlu1 %3186  ;;  %v4478_v15 = vsel %vm4450_vm10, %v4445_v33, %v2917_v36 }
 0x229   : > { %v4509_v5 = vsel %vm4483_vm11, %v4476_v16, %v3187_v27 }
 0x22b   : > { %v12199_v14 = vpop.permute.xlu0 %1463 }
 0x22c   : > { %v12201_v19 = vpop.permute.xlu1 %1590 }
 0x22f   : > { %v3189_v44 = vpop.permute.xlu0 %3188 }
 0x230   : > { %v3315_v7 = vpop.permute.xlu1 %3314  ;;  %v4511_v1 = vsel %vm4483_vm11, %v4478_v15, %v3189_v44  ;;  %v9143_v15 = vld [vmem:[%s13543_s5 + $0x4] ss:$8 sps:$4 sm:$0xff]  }
 0x231   : > { %v4542_v48 = vsel %vm4516_vm12, %v4509_v5, %v3315_v7  ;;  %5242 = vmatprep.mubr.bf16.mxu1 %v9143_v15 }
 0x233   : > { %v12203_v4 = vpop.permute.xlu0 %1592 }
 0x234   : > { %v12205_v13 = vpop.permute.xlu1 %1702 }
 0x237   : > { %v3317_v61 = vpop.permute.xlu0 %3316 }
 0x238   : > { %v3427_v22 = vpop.permute.xlu1 %3426  ;;  %v4544_v18 = vsel %vm4516_vm12, %v4511_v1, %v3317_v61 }
 0x239   : > { %v4575_v43 = vsel %vm4549_vm13, %v4542_v48, %v3427_v22 }
 0x23b   : > { %v12207_v54 = vpop.permute.xlu0 %1704 }
 0x23c   : > { %v12209_v17 = vpop.permute.xlu1 %2054 }
 0x23f   : > { %v3429_v8 = vpop.permute.xlu0 %3428 }
 0x240   : > { %v3779_v23 = vpop.permute.xlu1 %3778  ;;  %v4577_v59 = vsel %vm4549_vm13, %v4544_v18, %v3429_v8  ;;  %v4216_v8 = vsel %vm4186_vm2, %v9275_v21, %v12192_v42 }
 0x241   : > { %v4608_v35 = vsel %vm4582_vm14, %v4575_v43, %v3779_v23  ;;  %v4249_v51 = vsel %vm13869_vm1, %v4216_v8, %v12197_v28  ;;  %vm13876_vm1 = vcmask 171008  }
 0x242   : > { %v4282_v46 = vsel %vm13870_vm0, %v4249_v51, %v12201_v19  ;;  %v12327_v51 = vld [vmem:[%s13540_s2] ss:$0 sm:$0xff] }
 0x243   : > { %v12211_v10 = vpop.permute.xlu0 %2056  ;;  %v4315_v30 = vsel %vm13872_vm3, %v4282_v46, %v12205_v13 }
 0x244   : > { %v2327_v53 = vpop.permute.xlu1 %2326  ;;  %v4348_v28 = vsel %vm4318_vm6, %v4315_v30, %v12209_v17 }
 0x247   : > { %v3781_v38 = vpop.permute.xlu0 %3780 }
 0x248   : > { %v4051_v31 = vpop.permute.xlu1 %4050  ;;  %v4610_v9 = vsel %vm4582_vm14, %v4577_v59, %v3781_v38  ;;  %v9276_v38 = vld [vmem:[%s9469_s21 + $0x33c] sm:$0xff]   ;;  %s9363_s21 = smov 112  }
 0x249   : > { %v4641_v58 = vsel %vm4615_vm15, %v4608_v35, %v4051_v31  ;;  %v4218_v12 = vsel %vm4186_vm2, %v9276_v38, %v12195_v2  ;;  %vm13875_vm2 = vcmask 146432  }
 0x24a   : > { %v4251_v31 = vsel %vm13871_vm8, %v4218_v12, %v12199_v14  ;;  %v4381_v2 = vsel %vm13875_vm2, %v4348_v28, %v2327_v53  ;;  %vm13878_vm8 = vmmov %vm13876_vm1 }
 0x24b   : > { %v2329_v6 = vpop.permute.xlu0 %2328 }
 0x24c   : > { %v2455_v40 = vpop.permute.xlu1 %2454 }
 0x24d   : > { %v4414_v14 = vsel %vm13876_vm1, %v4381_v2, %v2455_v40 }
 0x24f   : > { %v4053_v3 = vpop.permute.xlu0 %4052 }
 0x250   : > { %v4179_v39 = vpop.permute.xlu1 %4178  ;;  %v4643_v11 = vsel %vm4615_vm15, %v4610_v9, %v4053_v3 }
 0x251   : > { %v4674_v62 = vsel %vm4648_vm7, %v4641_v58, %v4179_v39 }
 0x252   : > { %8396 = vmatprep.mubr.msk.bf16.mxu0 %vm13867_vm4, %v4674_v62  ;;  %vm13873_vm4 = vmmov %vm13870_vm0  ;;  %v8382_v62 = vpop.f32.mrf.mxu0 }
 0x253   : > { %v2457_v26 = vpop.permute.xlu0 %2456  ;;  %v4284_v42 = vsel %vm13873_vm4, %v4251_v31, %v12203_v4  ;;  %vm13877_vm0 = vmmov %vm13875_vm2 }
 0x254   : > { %v2567_v47 = vpop.permute.xlu1 %2566  ;;  %v12306_v1 = vpop.f32.mrf.mxu0 }
 0x255   : > { %v4447_v63 = vsel %vm4417_vm9, %v4414_v14, %v2567_v47 }
 0x257   : > { %v4181_v27 = vpop.permute.xlu0 %4180 }
 0x258   : > { %v4676_v36 = vsel %vm4648_vm7, %v4643_v11, %v4181_v27  ;;  %v2569_v7 = vpop.permute.xlu1 %2568 }
 0x259   : > { %8397 = vmatmul.mubr.msk.bf16.gmra.mxu0 %vm13868_vm5, %v4676_v36  ;;  %vm13874_vm5 = vmmov %vm13872_vm3 }
 0x25a   : > { %v4317_v56 = vsel %vm13874_vm5, %v4284_v42, %v12207_v54 }
 0x25b   : > { %v2919_v44 = vpop.permute.xlu0 %2918  ;;  %v4350_v19 = vsel %vm4318_vm6, %v4317_v56, %v12211_v10  ;;  %vm13879_vm6 = vcmask 392192  }
 0x25c   : > { %v2921_v22 = vpop.permute.xlu1 %2920  ;;  %v4383_v13 = vsel %vm13877_vm0, %v4350_v19, %v2329_v6  ;;  %v4480_v17 = vsel %vm4450_vm10, %v4447_v63, %v2919_v44 }
 0x25d   : > { %v4416_v4 = vsel %vm13878_vm8, %v4383_v13, %v2457_v26  ;;  %v8383_v26 = vpop.f32.mrf.mxu0 }
 0x25e   : > { %v4449_v16 = vsel %vm4417_vm9, %v4416_v4, %v2569_v7  ;;  %v12332_v46 = vadd.f32 %v12327_v51, %v8383_v26 }
 0x25f   : > { %v3191_v23 = vpop.permute.xlu0 %3190  ;;  %v4482_v20 = vsel %vm4450_vm10, %v4449_v16, %v2921_v22  ;;  %vm13880_vm10 = vmmov %vm13879_vm6  ;;  %v12308_v18 = vpop.f32.mrf.mxu0 }
 0x260   : > { %v3193_v52 = vpop.permute.xlu1 %3192  ;;  %v4513_v54 = vsel %vm4483_vm11, %v4480_v17, %v3191_v23  ;;  %v4949_v14 = vmul.f32 0.2, %v12332_v46  ;;  %vm4917_vm0 = vcmp.gt.f32.partialorder %v12332_v46, 0.0 }
 0x261   : > { %v4515_v5 = vsel %vm4483_vm11, %v4482_v20, %v3193_v52 }
 0x263   : > { %v3319_v50 = vpop.permute.xlu0 %3318 }
 0x264   : > { %v3321_v61 = vpop.permute.xlu1 %3320  ;;  %v4546_v10 = vsel %vm4516_vm12, %v4513_v54, %v3319_v50 }
 0x265   : > { %v4548_v49 = vsel %vm4516_vm12, %v4515_v5, %v3321_v61  ;;  %v8386_v59 = vpop.f32.mrf.mxu0 }
 0x267   : > { %v3431_v57 = vpop.permute.xlu0 %3430  ;;  %v4827_v47 = vpop.f32.mrf.mxu0 }
 0x268   : > { %v3433_v41 = vpop.permute.xlu1 %3432  ;;  %v4579_v6 = vsel %vm4549_vm13, %v4546_v10, %v3431_v57  ;;  %v4836_v57 = vadd.f32 %v12327_v51, %v8386_v59 }
 0x269   : > { %v4581_v45 = vsel %vm4549_vm13, %v4548_v49, %v3433_v41  ;;  %v8387_v9 = vpop.f32.mrf.mxu0  ;;  %v4828_v41 = vadd.f32 %v12327_v51, %v4827_v47 }
 0x26a   : > { %v4839_v38 = vadd.f32 %v12327_v51, %v8387_v9  ;;  %v4952_v30 = vmul.f32 0.2, %v4836_v57 }
 0x26b   : > { %v3783_v34 = vpop.permute.xlu0 %3782  ;;  %v4830_v11 = vpop.f32.mrf.mxu0  ;;  %vm4918_vm12 = vcmp.gt.f32.partialorder %v4828_v41, 0.0 }
 0x26c   : > { %v3785_v25 = vpop.permute.xlu1 %3784  ;;  %v4612_v48 = vsel %vm4582_vm14, %v4579_v6, %v3783_v34  ;;  %v4953_v28 = vmul.f32 0.2, %v4839_v38  ;;  %v4831_v56 = vadd.f32 %v12327_v51, %v4830_v11  ;;  %v12338_v34 = vadd.f32 %v12327_v51, %v8382_v62 }
 0x26d   : > { %v4614_v37 = vsel %vm4582_vm14, %v4581_v45, %v3785_v25  ;;  %vm4921_vm11 = vcmp.gt.f32.partialorder %v4839_v38, 0.0  ;;  %v4815_v62 = vadd.f32 %v12327_v51, %v12308_v18 }
 0x26e   : > { %vm4919_vm13 = vcmp.gt.f32.partialorder %v4831_v56, 0.0  ;;  %v4951_v6 = vmul.f32 0.2, %v4831_v56 }
 0x26f   : > { %v4055_v53 = vpop.permute.xlu0 %4054 }
 0x270   : > { %v4057_v40 = vpop.permute.xlu1 %4056  ;;  %v4645_v43 = vsel %vm4615_vm15, %v4612_v48, %v4055_v53  ;;  %v4985_v53 = vsel %vm4921_vm11, %v4839_v38, %v4953_v28  ;;  %v4983_v59 = vsel %vm4919_vm13, %v4831_v56, %v4951_v6 }
 0x271   : > { %v4647_v33 = vsel %vm4615_vm15, %v4614_v37, %v4057_v40  ;;  %vm4916_vm15 = vcmp.gt.f32.partialorder %v12338_v34, 0.0 }
 0x273   : > { %v4183_v3 = vpop.permute.xlu0 %4182 }
 0x274   : > { %v4678_v35 = vsel %vm4648_vm7, %v4645_v43, %v4183_v3  ;;  %v4185_v58 = vpop.permute.xlu1 %4184  ;;  %v4950_v3 = vmul.f32 0.2, %v4828_v41 }
 0x275   : > { %8400 = vmatprep.mubr.msk.bf16.mxu0 %vm13879_vm6, %v4678_v35  ;;  %v4680_v39 = vsel %vm4648_vm7, %v4647_v33, %v4185_v58  ;;  %vm4920_vm7 = vcmp.gt.f32.partialorder %v4836_v57, 0.0 }
 0x276   : > { %8401 = vmatmul.mubr.msk.bf16.gmra.mxu0 %vm13880_vm10, %v4680_v39  ;;  %v4984_v17 = vsel %vm4920_vm7, %v4836_v57, %v4952_v30  ;;  %v4982_v18 = vsel %vm4918_vm12, %v4828_v41, %v4950_v3  ;;  %v4981_v30 = vsel %vm4917_vm0, %v12332_v46, %v4949_v14  ;;  %vm4915_vm10 = vcmp.gt.f32.partialorder %v4815_v62, 0.0  ;;  %v13881_v3 = vld [vmem:[#allocation22_spill] sm:$0xff] }
 0x277   : > { %v5041_v35 = vpack.c.bf16 %v4985_v53, %v4984_v17  ;;  %v5040_v38 = vpack.c.bf16 %v4983_v59, %v4982_v18  ;;  %v9156_v59 = vld [vmem:[%s13543_s5 + $0x54] ss:$8 sps:$4 sm:$0xff]   ;;  %v9165_v18 = vld [vmem:[%s13543_s5 + $0x84] ss:$8 sps:$4 sm:$0xff]   ;;  %vm6109_vm0 = vcmask 130048  }
 0x2a1   : > { %v12310_v27 = vpop.f32.mrf.mxu0 }
 0x2a3   : > { %v12312_v36 = vpop.f32.mrf.mxu0 }
 0x2a5   : > { %v12314_v7 = vpop.f32.mrf.mxu0 }
 0x2a7   : > { %v12316_v44 = vpop.f32.mrf.mxu0 }
 0x2dd   : > { %v12318_v22 = vpop.f32.mrf.mxu0 }
 0x2df   : > { %v12320_v23 = vpop.f32.mrf.mxu0 }
 0x2e1   : > { %v8395_v52 = vpop.f32.mrf.mxu0 }
 0x2e2   : > { %v4871_v47 = vadd.f32 %v12327_v51, %v8395_v52 }
 0x2e3   : > { %v12322_v50 = vpop.f32.mrf.mxu0 }
 0x2e4   : > { %vm4929_vm11 = vcmp.gt.f32.partialorder %v4871_v47, 0.0 }
 0x319   : > { %v8398_v61 = vpop.f32.mrf.mxu0 }
 0x31a   : > { %v4884_v16 = vadd.f32 %v12327_v51, %v8398_v61  ;;  %v4948_v61 = vmul.f32 0.2, %v12338_v34 }
 0x31b   : > { %v4875_v21 = vpop.f32.mrf.mxu0 }
 0x31c   : > { %v4964_v33 = vmul.f32 0.2, %v4884_v16  ;;  %v4876_v58 = vadd.f32 %v12327_v51, %v4875_v21  ;;  %vm4932_vm1 = vcmp.gt.f32.partialorder %v4884_v16, 0.0  ;;  %v4812_v21 = vadd.f32 %v12327_v51, %v12306_v1 }
 0x31d   : > { %v8399_v8 = vpop.f32.mrf.mxu0  ;;  %v4961_v1 = vmul.f32 0.2, %v4871_v47  ;;  %v4980_v28 = vsel %vm4916_vm15, %v12338_v34, %v4948_v61  ;;  %v9162_v61 = vld [vmem:[%s13543_s5 + $0x74] ss:$8 sps:$4 sm:$0xff]  }
 0x31e   : > { %v4887_v13 = vadd.f32 %v12327_v51, %v8399_v8  ;;  %v4868_v8 = vadd.f32 %v12327_v51, %v12318_v22  ;;  %v4962_v57 = vmul.f32 0.2, %v4876_v58  ;;  %v4996_v52 = vsel %vm4932_vm1, %v4884_v16, %v4964_v33 }
 0x31f   : > { %v4878_v12 = vpop.f32.mrf.mxu0  ;;  %vm4930_vm6 = vcmp.gt.f32.partialorder %v4876_v58, 0.0  ;;  %vm4914_vm7 = vcmp.gt.f32.partialorder %v4812_v21, 0.0  ;;  %v4946_v22 = vmul.f32 0.2, %v4812_v21  ;;  %v5039_v46 = vpack.c.bf16 %v4981_v30, %v4980_v28  ;;  %v9174_v30 = vld [vmem:[%s13543_s5 + $0xb4] ss:$8 sps:$4 sm:$0xff]  }
 0x320   : > { %v4965_v40 = vmul.f32 0.2, %v4887_v13  ;;  %v4879_v49 = vadd.f32 %v12327_v51, %v4878_v12  ;;  %vm4933_vm2 = vcmp.gt.f32.partialorder %v4887_v13, 0.0  ;;  %v4947_v12 = vmul.f32 0.2, %v4815_v62 }
 0x321   : > { %v4960_v56 = vmul.f32 0.2, %v4868_v8  ;;  %vm4928_vm12 = vcmp.gt.f32.partialorder %v4868_v8, 0.0  ;;  %v4978_v34 = vsel %vm4914_vm7, %v4812_v21, %v4946_v22  ;;  %v9164_v21 = vld [vmem:[%s13543_s5 + $0x70] ss:$8 sps:$4 sm:$0xff]   ;;  %vm5373_vm1 = vcmask 58368  }
 0x322   : > { %v4963_v9 = vmul.f32 0.2, %v4879_v49  ;;  %v4997_v11 = vsel %vm4933_vm2, %v4887_v13, %v4965_v40  ;;  %vm4931_vm8 = vcmp.gt.f32.partialorder %v4879_v49, 0.0  ;;  %v4855_v13 = vadd.f32 %v12327_v51, %v12314_v7  ;;  %v9180_v22 = vld [vmem:[%s13543_s5 + $0xd4] ss:$8 sps:$4 sm:$0xff]  }
 0x323   : > { %v4992_v16 = vsel %vm4928_vm12, %v4868_v8, %v4960_v56  ;;  %v9167_v8 = vld [vmem:[%s13543_s5 + $0x80] ss:$8 sps:$4 sm:$0xff]   ;;  %vm5371_vm2 = vcmask 64512   ;;  %v9182_v28 = vld [vmem:[%s13543_s5 + $0xd0] ss:$8 sps:$4 sm:$0xff]   ;;  %vm6161_vm7 = vcmask 523264  }
 0x324   : > { %v4995_v41 = vsel %vm4931_vm8, %v4879_v49, %v4963_v9  ;;  %v4957_v53 = vmul.f32 0.2, %v4855_v13  ;;  %vm4925_vm15 = vcmp.gt.f32.partialorder %v4855_v13, 0.0  ;;  %v9159_v9 = vld [vmem:[%s13543_s5 + $0x64] ss:$8 sps:$4 sm:$0xff]   ;;  %vm6126_vm8 = vcmask 261120  }
 0x325   : > { %v9183_v56 = vld [vmem:[%s13543_s5 + $0xe4] ss:$8 sps:$4 sm:$0xff]   ;;  %vm6179_vm12 = vcmask 654336  }
 0x326   : > { %v4989_v49 = vsel %vm4925_vm15, %v4855_v13, %v4957_v53  ;;  %vm13891_vm15 = vcmask 392192  }
 0x336   : > { %v8402_v31 = vpop.f32.mrf.mxu0 }
 0x337   : > { %v4900_v42 = vadd.f32 %v12327_v51, %v8402_v31  ;;  %v5047_v31 = vpack.c.bf16 %v4997_v11, %v4996_v52  ;;  %v9161_v11 = vld [vmem:[%s13543_s5 + $0x60] ss:$8 sps:$4 sm:$0xff]   ;;  %v9355_v52 = vmov 0.0  }
 0x338   : > { %v4891_v2 = vpop.f32.mrf.mxu0  ;;  %5375 = vst.msk [vmem:[#allocation2 + $0x10] sm:$0xff] %vm5371_vm2, %v9355_v52  ;;  %5377 = vst.msk [vmem:[#allocation2 + $0x20] sm:$0xff] %vm5371_vm2, %v9355_v52 }
 0x339   : > { %v4892_v19 = vadd.f32 %v12327_v51, %v4891_v2  ;;  %v4968_v25 = vmul.f32 0.2, %v4900_v42  ;;  %vm4936_vm14 = vcmp.gt.f32.partialorder %v4900_v42, 0.0  ;;  %v4860_v2 = vadd.f32 %v12327_v51, %v12320_v23  ;;  %5376 = vst.msk [vmem:[#allocation2 + $0x18] sm:$0x3] %vm5373_vm1, %v9355_v52 }
 0x33a   : > { %v8403_v63 = vpop.f32.mrf.mxu0  ;;  %v4852_v23 = vadd.f32 %v12327_v51, %v12310_v27  ;;  %5378 = vst.msk [vmem:[#allocation2 + $0x28] sm:$0x3] %vm5373_vm1, %v9355_v52  ;;  %5380 = vst.msk [vmem:[#allocation2 + $0x38] sm:$0x3] %vm5373_vm1, %v9355_v52 }
 0x33b   : > { %v4903_v4 = vadd.f32 %v12327_v51, %v8403_v63  ;;  %v4966_v20 = vmul.f32 0.2, %v4892_v19  ;;  %vm4934_vm4 = vcmp.gt.f32.partialorder %v4892_v19, 0.0  ;;  %v5000_v45 = vsel %vm4936_vm14, %v4900_v42, %v4968_v25  ;;  %5379 = vst.msk [vmem:[#allocation2 + $0x30] sm:$0xff] %vm5371_vm2, %v9355_v52  ;;  %5381 = vst.msk [vmem:[#allocation2 + $0x40] sm:$0xff] %vm5371_vm2, %v9355_v52 }
 0x33c   : > { %v4894_v54 = vpop.f32.mrf.mxu0  ;;  %v4863_v42 = vadd.f32 %v12327_v51, %v12322_v50  ;;  %v4979_v50 = vsel %vm4915_vm10, %v4815_v62, %v4947_v12  ;;  %v4993_v25 = vsel %vm4929_vm11, %v4871_v47, %v4961_v1  ;;  %vm4926_vm14 = vcmp.gt.f32.partialorder %v4860_v2, 0.0  ;;  %v9153_v62 = vld [vmem:[%s13543_s5 + $0x44] ss:$8 sps:$4 sm:$0xff]   ;;  %v9158_v47 = vld [vmem:[%s13543_s5 + $0x50] ss:$8 sps:$4 sm:$0xff]   ;;  %5383 = vst.msk [vmem:[#allocation2 + $0x50] sm:$0xff] %vm5371_vm2, %v9355_v52 }
 0x33d   : > { %v4969_v10 = vmul.f32 0.2, %v4903_v4  ;;  %v4895_v5 = vadd.f32 %v12327_v51, %v4894_v54  ;;  %vm4937_vm3 = vcmp.gt.f32.partialorder %v4903_v4, 0.0  ;;  %v4998_v39 = vsel %vm4934_vm4, %v4892_v19, %v4966_v20  ;;  %5382 = vst.msk [vmem:[#allocation2 + $0x48] sm:$0x3] %vm5373_vm1, %v9355_v52 }
 0x33e   : > { %v4994_v19 = vsel %vm4930_vm6, %v4876_v58, %v4962_v57  ;;  %v4959_v63 = vmul.f32 0.2, %v4863_v42  ;;  %vm4927_vm13 = vcmp.gt.f32.partialorder %v4863_v42, 0.0  ;;  %v5038_v17 = vpack.c.bf16 %v4979_v50, %v4978_v34  ;;  %v9149_v58 = vld [vmem:[%s13543_s5 + $0x20] ss:$8 sps:$4 sm:$0xff]   ;;  %5385 = vst.msk [vmem:[#allocation2 + $0x60] sm:$0xff] %vm5371_vm2, %v9355_v52 }
 0x33f   : > { %vm4935_vm5 = vcmp.gt.f32.partialorder %v4895_v5, 0.0  ;;  %v4967_v48 = vmul.f32 0.2, %v4895_v5  ;;  %v5001_v43 = vsel %vm4937_vm3, %v4903_v4, %v4969_v10  ;;  %v5046_v14 = vpack.c.bf16 %v4995_v41, %v4994_v19  ;;  %v9168_v57 = vld [vmem:[%s13543_s5 + $0x94] ss:$8 sps:$4 sm:$0xff]   ;;  %5387 = vst.msk [vmem:[#allocation2 + $0x70] sm:$0xff] %vm5371_vm2, %v9355_v52 }
 0x340   : > { %v5049_v37 = vpack.c.bf16 %v5001_v43, %v5000_v45  ;;  %v4958_v4 = vmul.f32 0.2, %v4860_v2  ;;  %v5045_v54 = vpack.c.bf16 %v4993_v25, %v4992_v16  ;;  %v4847_v20 = vadd.f32 %v12327_v51, %v12316_v44  ;;  %5384 = vst.msk [vmem:[#allocation2 + $0x58] sm:$0x3] %vm5373_vm1, %v9355_v52  ;;  %5386 = vst.msk [vmem:[#allocation2 + $0x68] sm:$0x3] %vm5373_vm1, %v9355_v52 }
 0x341   : > { %v4999_v15 = vsel %vm4935_vm5, %v4895_v5, %v4967_v48  ;;  %v4991_v7 = vsel %vm4927_vm13, %v4863_v42, %v4959_v63  ;;  %v4956_v10 = vmul.f32 0.2, %v4852_v23  ;;  %v4844_v5 = vadd.f32 %v12327_v51, %v12312_v36  ;;  %5388 = vst.msk [vmem:[#allocation2 + $0x78] sm:$0x3] %vm5373_vm1, %v9355_v52  ;;  %5390 = vst.msk [vmem:[#allocation2 + $0x88] sm:$0x3] %vm5373_vm1, %v9355_v52 }
 0x342   : > { %8154 = vmatprep.subr.bf16.mxu1 %v5049_v37  ;;  %v5048_v26 = vpack.c.bf16 %v4999_v15, %v4998_v39  ;;  %v4990_v6 = vsel %vm4926_vm14, %v4860_v2, %v4958_v4  ;;  %vm4924_vm3 = vcmp.gt.f32.partialorder %v4852_v23, 0.0  ;;  %v4955_v40 = vmul.f32 0.2, %v4847_v20  ;;  %v13882_v37 = vld [vmem:[#allocation19_spill] sm:$0xff]  ;;  %5389 = vst.msk [vmem:[#allocation2 + $0x80] sm:$0xff] %vm5371_vm2, %v9355_v52  ;;  %5391 = vst.msk [vmem:[#allocation2 + $0x90] sm:$0xff] %vm5371_vm2, %v9355_v52 }
 0x343   : > { %8155 = vmatpush3.bf16.msra.mxu1 %v5041_v35  ;;  %v5044_v27 = vpack.c.bf16 %v4991_v7, %v4990_v6  ;;  %vm4923_vm4 = vcmp.gt.f32.partialorder %v4847_v20, 0.0  ;;  %v4954_v44 = vmul.f32 0.2, %v4844_v5  ;;  %v4988_v48 = vsel %vm4924_vm3, %v4852_v23, %v4956_v10  ;;  %v9150_v39 = vld [vmem:[%s13543_s5 + $0x34] ss:$8 sps:$4 sm:$0xff]   ;;  %5395 = vst.msk [vmem:[#allocation2 + $0xb0] sm:$0xff] %vm5371_vm2, %v9355_v52  ;;  %vm13893_vm3 = vmmov %vm13891_vm15 }
 0x344   : > { %8156 = vmatprep.subr.bf16.mxu1 %v5048_v26  ;;  %vm4922_vm5 = vcmp.gt.f32.partialorder %v4844_v5, 0.0  ;;  %v5043_v45 = vpack.c.bf16 %v4989_v49, %v4988_v48  ;;  %v4987_v36 = vsel %vm4923_vm4, %v4847_v20, %v4955_v40  ;;  %v13883_v35 = vpack.c.bf16 %v13881_v3, %v13882_v37  ;;  %v9152_v15 = vld [vmem:[%s13543_s5 + $0x30] ss:$8 sps:$4 sm:$0xff]   ;;  %v9155_v26 = vld [vmem:[%s13543_s5 + $0x40] ss:$8 sps:$4 sm:$0xff]   ;;  %5397 = vst.msk [vmem:[#allocation2 + $0xc0] sm:$0xff] %vm5371_vm2, %v9355_v52  ;;  %vm13903_vm4 = vmmov %vm13893_vm3 }
 0x345   : > { %v4986_v51 = vsel %vm4922_vm5, %v4844_v5, %v4954_v44  ;;  %5392 = vst.msk [vmem:[#allocation2 + $0x98] sm:$0x3] %vm5373_vm1, %v9355_v52  ;;  %5396 = vst.msk [vmem:[#allocation2 + $0xb8] sm:$0x3] %vm5373_vm1, %v9355_v52  ;;  %v9171_v12 = vld [vmem:[%s13543_s5 + $0xa4] ss:$8 sps:$4 sm:$0xff]  }
 0x346   : > { %v5042_v43 = vpack.c.bf16 %v4987_v36, %v4986_v51  ;;  %5398 = vst.msk [vmem:[#allocation2 + $0xc8] sm:$0x3] %vm5373_vm1, %v9355_v52  ;;  %5400 = vst.msk [vmem:[#allocation2 + $0xd8] sm:$0x3] %vm5373_vm1, %v9355_v52  ;;  %v9176_v1 = vld [vmem:[%s13543_s5 + $0xb0] ss:$8 sps:$4 sm:$0xff]  }
 0x347   : > { %8157 = vmatpush3.bf16.msra.mxu1 %v5040_v38  ;;  %v12452_v38 = vld [vmem:[%s13543_s5 + $0x90] ss:$8 sps:$4 sm:$0xff]   ;;  %5399 = vst.msk [vmem:[#allocation2 + $0xd0] sm:$0xff] %vm5371_vm2, %v9355_v52  ;;  %5401 = vst.msk [vmem:[#allocation2 + $0xe0] sm:$0xff] %vm5371_vm2, %v9355_v52  ;;  %v9177_v42 = vld [vmem:[%s13543_s5 + $0xc4] ss:$8 sps:$4 sm:$0xff]  }
 0x348   : > { %8158 = vmatprep.subr.bf16.mxu1 %v5047_v31  ;;  %5402 = vst.msk [vmem:[#allocation2 + $0xe8] sm:$0x3] %vm5373_vm1, %v9355_v52  ;;  %5404 = vst.msk [vmem:[#allocation2 + $0xf8] sm:$0x3] %vm5373_vm1, %v9355_v52  ;;  %v9173_v31 = vld [vmem:[%s13543_s5 + $0xa0] ss:$8 sps:$4 sm:$0xff]  }
 0x349   : > { %5403 = vst.msk [vmem:[#allocation2 + $0xf0] sm:$0xff] %vm5371_vm2, %v9355_v52  ;;  %5405 = vst.msk [vmem:[#allocation2 + $0x100] sm:$0xff] %vm5371_vm2, %v9355_v52  ;;  %v9179_v41 = vld [vmem:[%s13543_s5 + $0xc0] ss:$8 sps:$4 sm:$0xff]   ;;  %v9188_v19 = vld [vmem:[%s13543_s5 + $0xf0] ss:$8 sps:$4 sm:$0xff]  }
 0x34a   : > { %5406 = vst.msk [vmem:[#allocation2 + $0x108] sm:$0x3] %vm5373_vm1, %v9355_v52  ;;  %5408 = vst.msk [vmem:[#allocation2 + $0x118] sm:$0x3] %vm5373_vm1, %v9355_v52  ;;  %v9185_v2 = vld [vmem:[%s13543_s5 + $0xe0] ss:$8 sps:$4 sm:$0xff]  }
 0x34b   : > { %8159 = vmatpush3.bf16.msra.mxu1 %v5039_v46  ;;  %5407 = vst.msk [vmem:[#allocation2 + $0x110] sm:$0xff] %vm5371_vm2, %v9355_v52  ;;  %5409 = vst.msk [vmem:[#allocation2 + $0x120] sm:$0xff] %vm5371_vm2, %v9355_v52  ;;  %v9186_v46 = vld [vmem:[%s13543_s5 + $0xf4] ss:$8 sps:$4 sm:$0xff]   ;;  %vm6135_vm6 = vcmask 326656   ;;  %vm6152_vm10 = vcmask 457728  }
 0x34c   : > { %8160 = vmatprep.subr.bf16.mxu1 %v5046_v14  ;;  %5410 = vst.msk [vmem:[#allocation2 + $0x128] sm:$0x3] %vm5373_vm1, %v9355_v52  ;;  %5412 = vst.msk [vmem:[#allocation2 + $0x138] sm:$0x3] %vm5373_vm1, %v9355_v52  ;;  %vm6170_vm11 = vcmask 588800   ;;  %vm6188_vm13 = vcmask 719872  }
 0x34d   : > { %5411 = vst.msk [vmem:[#allocation2 + $0x130] sm:$0xff] %vm5371_vm2, %v9355_v52  ;;  %5413 = vst.msk [vmem:[#allocation2 + $0x140] sm:$0xff] %vm5371_vm2, %v9355_v52  ;;  %vm6197_vm14 = vcmask 785408  }
 0x34e   : > { %5414 = vst.msk [vmem:[#allocation2 + $0x148] sm:$0x3] %vm5373_vm1, %v9355_v52  ;;  %5416 = vst.msk [vmem:[#allocation2 + $0x158] sm:$0x3] %vm5373_vm1, %v9355_v52 }
 0x34f   : > { %8161 = vmatpush3.bf16.msra.mxu1 %v5038_v17  ;;  %5415 = vst.msk [vmem:[#allocation2 + $0x150] sm:$0xff] %vm5371_vm2, %v9355_v52  ;;  %5417 = vst.msk [vmem:[#allocation2 + $0x160] sm:$0xff] %vm5371_vm2, %v9355_v52 }
 0x350   : > { %8162 = vmatprep.subr.bf16.mxu1 %v5045_v54  ;;  %5418 = vst.msk [vmem:[#allocation2 + $0x168] sm:$0x3] %vm5373_vm1, %v9355_v52  ;;  %5420 = vst.msk [vmem:[#allocation2 + $0x178] sm:$0x3] %vm5373_vm1, %v9355_v52 }
 0x351   : > { %5419 = vst.msk [vmem:[#allocation2 + $0x170] sm:$0xff] %vm5371_vm2, %v9355_v52  ;;  %5421 = vst.msk [vmem:[#allocation2 + $0x180] sm:$0xff] %vm5371_vm2, %v9355_v52 }
 0x352   : > { %5422 = vst.msk [vmem:[#allocation2 + $0x188] sm:$0x3] %vm5373_vm1, %v9355_v52  ;;  %5424 = vst.msk [vmem:[#allocation2 + $0x198] sm:$0x3] %vm5373_vm1, %v9355_v52 }
 0x353   : > { %8163 = vmatpush3.bf16.msra.mxu1 %v5037_v29  ;;  %v13885_v29 = vld [vmem:[#allocation32_spill] sm:$0xff]  ;;  %5423 = vst.msk [vmem:[#allocation2 + $0x190] sm:$0xff] %vm5371_vm2, %v9355_v52  ;;  %5425 = vst.msk [vmem:[#allocation2 + $0x1a0] sm:$0xff] %vm5371_vm2, %v9355_v52 }
 0x354   : > { %8164 = vmatprep.subr.bf16.mxu1 %v5044_v27  ;;  %v13886_v33 = vpack.c.bf16 %v13884_v60, %v13885_v29  ;;  %5426 = vst.msk [vmem:[#allocation2 + $0x1a8] sm:$0x3] %vm5373_vm1, %v9355_v52  ;;  %5428 = vst.msk [vmem:[#allocation2 + $0x1b8] sm:$0x3] %vm5373_vm1, %v9355_v52 }
 0x355   : > { %5427 = vst.msk [vmem:[#allocation2 + $0x1b0] sm:$0xff] %vm5371_vm2, %v9355_v52  ;;  %5429 = vst.msk [vmem:[#allocation2 + $0x1c0] sm:$0xff] %vm5371_vm2, %v9355_v52 }
 0x356   : > { %5430 = vst.msk [vmem:[#allocation2 + $0x1c8] sm:$0x3] %vm5373_vm1, %v9355_v52  ;;  %5434 = vst.msk [vmem:[#allocation2 + $0x1e8] sm:$0x3] %vm5373_vm1, %v9355_v52 }
 0x357   : > { %8165 = vmatpush3.bf16.msra.mxu1 %v5036_v0  ;;  %v9147_v0 = vld [vmem:[%s13543_s5 + $0x24] ss:$8 sps:$4 sm:$0xff]   ;;  %5433 = vst.msk [vmem:[#allocation2 + $0x1e0] sm:$0xff] %vm5371_vm2, %v9355_v52  ;;  %5435 = vst.msk [vmem:[#allocation2 + $0x1f0] sm:$0xff] %vm5371_vm2, %v9355_v52 }
 0x358   : > { %8166 = vmatprep.subr.bf16.mxu1 %v5043_v45  ;;  %5436 = vst.msk [vmem:[#allocation2 + $0x1f8] sm:$0x3] %vm5373_vm1, %v9355_v52  ;;  %5438 = vst.msk [vmem:[#allocation2 + $0x208] sm:$0x3] %vm5373_vm1, %v9355_v52 }
 0x359   : > { %5437 = vst.msk [vmem:[#allocation2 + $0x200] sm:$0xff] %vm5371_vm2, %v9355_v52  ;;  %5439 = vst.msk [vmem:[#allocation2 + $0x210] sm:$0xff] %vm5371_vm2, %v9355_v52 }
 0x35a   : > { %5440 = vst.msk [vmem:[#allocation2 + $0x218] sm:$0x3] %vm5373_vm1, %v9355_v52  ;;  %5442 = vst.msk [vmem:[#allocation2 + $0x228] sm:$0x3] %vm5373_vm1, %v9355_v52 }
 0x35b   : > { %8167 = vmatpush3.bf16.msra.mxu1 %v13883_v35  ;;  %5441 = vst.msk [vmem:[#allocation2 + $0x220] sm:$0xff] %vm5371_vm2, %v9355_v52  ;;  %5443 = vst.msk [vmem:[#allocation2 + $0x230] sm:$0xff] %vm5371_vm2, %v9355_v52 }
 0x35c   : > { %8168 = vmatprep.subr.bf16.mxu1 %v5042_v43  ;;  %5444 = vst.msk [vmem:[#allocation2 + $0x238] sm:$0x3] %vm5373_vm1, %v9355_v52  ;;  %5446 = vst.msk [vmem:[#allocation2 + $0x248] sm:$0x3] %vm5373_vm1, %v9355_v52 }
 0x35d   : > { %5445 = vst.msk [vmem:[#allocation2 + $0x240] sm:$0xff] %vm5371_vm2, %v9355_v52  ;;  %5447 = vst.msk [vmem:[#allocation2 + $0x250] sm:$0xff] %vm5371_vm2, %v9355_v52 }
 0x35e   : > { %5448 = vst.msk [vmem:[#allocation2 + $0x258] sm:$0x3] %vm5373_vm1, %v9355_v52  ;;  %5450 = vst.msk [vmem:[#allocation2 + $0x268] sm:$0x3] %vm5373_vm1, %v9355_v52  ;;  %vm6215_vm1 = vcmask 916480  }
 0x35f   : > { %8169 = vmatpush3.bf16.msra.mxu1 %v13886_v33  ;;  %5449 = vst.msk [vmem:[#allocation2 + $0x260] sm:$0xff] %vm5371_vm2, %v9355_v52  ;;  %vm13905_vm5 = vmmov %vm13893_vm3 }
 0x362   : > { %5243 = vmatmul.mubr.bf16.vlgmr.msra.gmra.mxu1 %v9141_v55 }
 0x363   : > { %5250 = vmatprep.mubr.bf16.mxu1 %v9144_v24 }
 0x36a   : > { %5251 = vmatmul.mubr.bf16.gmra.mxu1 %v9146_v32 }
 0x36b   : > { %5258 = vmatprep.mubr.bf16.mxu1 %v9147_v0 }
 0x372   : > { %5259 = vmatmul.mubr.bf16.gmra.mxu1 %v9149_v58 }
 0x373   : > { %5266 = vmatprep.mubr.bf16.mxu1 %v9150_v39 }
 0x37a   : > { %5267 = vmatmul.mubr.bf16.gmra.mxu1 %v9152_v15 }
 0x37b   : > { %5274 = vmatprep.mubr.bf16.mxu1 %v9153_v62 }
 0x382   : > { %5275 = vmatmul.mubr.bf16.gmra.mxu1 %v9155_v26 }
 0x383   : > { %5282 = vmatprep.mubr.bf16.mxu1 %v9156_v59 }
 0x38a   : > { %5283 = vmatmul.mubr.bf16.gmra.mxu1 %v9158_v47 }
 0x38b   : > { %5290 = vmatprep.mubr.bf16.mxu1 %v9159_v9 }
 0x392   : > { %5291 = vmatmul.mubr.bf16.gmra.mxu1 %v9161_v11 }
 0x393   : > { %5298 = vmatprep.mubr.bf16.mxu1 %v9162_v61 }
 0x39a   : > { %5299 = vmatmul.mubr.bf16.gmra.mxu1 %v9164_v21 }
 0x39b   : > { %5306 = vmatprep.mubr.bf16.mxu1 %v9165_v18 }
 0x3a2   : > { %5307 = vmatmul.mubr.bf16.gmra.mxu1 %v9167_v8 }
 0x3a3   : > { %5314 = vmatprep.mubr.bf16.mxu1 %v9168_v57 }
 0x3aa   : > { %5315 = vmatmul.mubr.bf16.gmra.mxu1 %v12452_v38 }
 0x3ab   : > { %5322 = vmatprep.mubr.bf16.mxu1 %v9171_v12 }
 0x3b2   : > { %5323 = vmatmul.mubr.bf16.gmra.mxu1 %v9173_v31 }
 0x3b3   : > { %5330 = vmatprep.mubr.bf16.mxu1 %v9174_v30 }
 0x3ba   : > { %5331 = vmatmul.mubr.bf16.gmra.mxu1 %v9176_v1 }
 0x3bb   : > { %5338 = vmatprep.mubr.bf16.mxu1 %v9177_v42 }
 0x3c2   : > { %5339 = vmatmul.mubr.bf16.gmra.mxu1 %v9179_v41 }
 0x3c3   : > { %5346 = vmatprep.mubr.bf16.mxu1 %v9180_v22 }
 0x3ca   : > { %5347 = vmatmul.mubr.bf16.gmra.mxu1 %v9182_v28 }
 0x3cb   : > { %5354 = vmatprep.mubr.bf16.mxu1 %v9183_v56 }
 0x3d2   : > { %5355 = vmatmul.mubr.bf16.gmra.mxu1 %v9185_v2 }
 0x3d3   : > { %5362 = vmatprep.mubr.bf16.mxu1 %v9186_v46 }
 0x3da   : > { %5363 = vmatmul.mubr.bf16.gmra.mxu1 %v9188_v19 }
 0x422   : > { %v8170_v14 = vpop.f32.mrf.mxu1 }
 0x424   : > { %v8171_v50 = vpop.f32.mrf.mxu1 }
 0x425   : > { %v8172_v13 = vadd.f32 %v8171_v50, %v8170_v14 }
 0x426   : > { %v8173_v63 = vpop.f32.mrf.mxu1 }
 0x427   : > { %5454 = vst.msk [vmem:[#allocation2 + $0x11] sm:$0xff] %vm5371_vm2, %v8172_v13 }
 0x428   : > { %v8174_v25 = vpop.f32.mrf.mxu1 }
 0x429   : > { %v8175_v34 = vadd.f32 %v8174_v25, %v8173_v63 }
 0x42a   : > { %v8176_v23 = vpop.f32.mrf.mxu1 }
 0x42b   : > { %5455 = vst.msk [vmem:[#allocation2 + $0x21] sm:$0xff] %vm5371_vm2, %v8175_v34 }
 0x42c   : > { %v8177_v4 = vpop.f32.mrf.mxu1 }
 0x42d   : > { %v8178_v17 = vadd.f32 %v8177_v4, %v8176_v23 }
 0x42e   : > { %v8179_v16 = vpop.f32.mrf.mxu1  ;;  %v5531_v7 = vld [vmem:[#allocation2 + $0x11] sm:$0xff] }
 0x42f   : > { %5456 = vst.msk [vmem:[#allocation2 + $0x31] sm:$0xff] %vm5371_vm2, %v8178_v17  ;;  %v5547_v48 = vld [vmem:[#allocation2 + $0x12] sm:$0xff] }
 0x430   : > { %v8180_v54 = vpop.f32.mrf.mxu1 }
 0x431   : > { %v8181_v53 = vadd.f32 %v8180_v54, %v8179_v16 }
 0x432   : > { %v8182_v20 = vpop.f32.mrf.mxu1  ;;  %v5532_v10 = vld [vmem:[#allocation2 + $0x21] sm:$0xff] }
 0x433   : > { %5457 = vst.msk [vmem:[#allocation2 + $0x41] sm:$0xff] %vm5371_vm2, %v8181_v53  ;;  %v8498_v5 = vpack.i.bf16 %v5532_v10, %v5531_v7  ;;  %v5548_v27 = vld [vmem:[#allocation2 + $0x22] sm:$0xff] }
 0x434   : > { %v8183_v6 = vpop.f32.mrf.mxu1  ;;  %v8503_v36 = vpack.i.bf16 %v5548_v27, %v5547_v48 }
 0x435   : > { %v8184_v40 = vadd.f32 %v8183_v6, %v8182_v20  ;;  %8499 = vrot.lane.b32.xlu0 %v8498_v5, %s9356_s10 }
 0x436   : > { %v8185_v49 = vpop.f32.mrf.mxu1  ;;  %v5598_v44 = vld [vmem:[#allocation2 + $0x31] sm:$0xff] }
 0x437   : > { %5458 = vst.msk [vmem:[#allocation2 + $0x51] sm:$0xff] %vm5371_vm2, %v8184_v40  ;;  %v8508_v45 = vpack.i.bf16 %v5598_v44, %v5532_v10  ;;  %v5614_v43 = vld [vmem:[#allocation2 + $0x32] sm:$0xff] }
 0x438   : > { %v8186_v51 = vpop.f32.mrf.mxu1  ;;  %v8513_v35 = vpack.i.bf16 %v5614_v43, %v5548_v27 }
 0x439   : > { %v8187_v3 = vadd.f32 %v8186_v51, %v8185_v49  ;;  %8509 = vrot.lane.b32.xlu1 %v8508_v45, %s9357_s13  ;;  %8504 = vrot.lane.b32.xlu0 %v8503_v36, %s9358_s0 }
 0x43a   : > { %v8188_v37 = vpop.f32.mrf.mxu1  ;;  %v5534_v60 = vld [vmem:[#allocation2 + $0x41] sm:$0xff] }
 0x43b   : > { %5459 = vst.msk [vmem:[#allocation2 + $0x61] sm:$0xff] %vm5371_vm2, %v8187_v3  ;;  %v8518_v32 = vpack.i.bf16 %v5534_v60, %v5598_v44  ;;  %v5550_v39 = vld [vmem:[#allocation2 + $0x42] sm:$0xff] }
 0x43c   : > { %v8189_v55 = vpop.f32.mrf.mxu1  ;;  %v8523_v59 = vpack.i.bf16 %v5550_v39, %v5614_v43 }
 0x43d   : > { %v8190_v29 = vadd.f32 %v8189_v55, %v8188_v37  ;;  %8514 = vrot.lane.b32.xlu1 %v8513_v35, %s9359_s1  ;;  %v9189_v55 = vld [vmem:[%s13541_s3 + $0x38] sm:$0xff]  }
 0x43e   : > { %v8191_v33 = vpop.f32.mrf.mxu1  ;;  %v5600_v24 = vld [vmem:[#allocation2 + $0x51] sm:$0xff]  ;;  %8404 = vmatprep.subr.bf16.mxu0 %v9189_v55 }
 0x43f   : > { %5460 = vst.msk [vmem:[#allocation2 + $0x71] sm:$0xff] %vm5371_vm2, %v8190_v29  ;;  %v8528_v0 = vpack.i.bf16 %v5600_v24, %v5534_v60  ;;  %v5616_v15 = vld [vmem:[#allocation2 + $0x52] sm:$0xff]  ;;  %8405 = vmatpush3.bf16.msra.mxu0 %v9189_v55 }
 0x440   : > { %v8192_v58 = vpop.f32.mrf.mxu1  ;;  %v8533_v47 = vpack.i.bf16 %v5616_v15, %v5550_v39 }
 0x441   : > { %v8193_v62 = vadd.f32 %v8192_v58, %v8191_v33  ;;  %8519 = vrot.lane.b32.xlu1 %v8518_v32, %s9356_s10  ;;  %8529 = vrot.lane.b32.xlu0 %v8528_v0, %s9357_s13 }
 0x442   : > { %v8194_v26 = vpop.f32.mrf.mxu1  ;;  %v12649_v11 = vld [vmem:[#allocation2 + $0x61] sm:$0xff] }
 0x443   : > { %5461 = vst.msk [vmem:[#allocation2 + $0x81] sm:$0xff] %vm5371_vm2, %v8193_v62  ;;  %v12653_v18 = vld [vmem:[#allocation2 + $0x62] sm:$0xff]  ;;  %v8538_v38 = vpack.i.bf16 %v12649_v11, %v5600_v24 }
 0x444   : > { %v8195_v9 = vpop.f32.mrf.mxu1  ;;  %v8543_v41 = vpack.i.bf16 %v12653_v18, %v5616_v15 }
 0x445   : > { %v8196_v61 = vadd.f32 %v8195_v9, %v8194_v26  ;;  %8524 = vrot.lane.b32.xlu1 %v8523_v59, %s9358_s0  ;;  %8534 = vrot.lane.b32.xlu0 %v8533_v47, %s9359_s1 }
 0x446   : > { %v8197_v21 = vpop.f32.mrf.mxu1  ;;  %v12655_v8 = vld [vmem:[#allocation2 + $0x71] sm:$0xff] }
 0x447   : > { %v12657_v57 = vld [vmem:[#allocation2 + $0x72] sm:$0xff]  ;;  %5463 = vst.msk [vmem:[#allocation2 + $0xb1] sm:$0xff] %vm5371_vm2, %v8196_v61  ;;  %v8758_v52 = vpack.i.bf16 %v12655_v8, %v12649_v11 }
 0x448   : > { %v8788_v12 = vpack.i.bf16 %v12657_v57, %v12653_v18  ;;  %v8198_v31 = vpop.f32.mrf.mxu1 }
 0x449   : > { %v8199_v30 = vadd.f32 %v8198_v31, %v8197_v21  ;;  %8539 = vrot.lane.b32.xlu1 %v8538_v38, %s9356_s10 }
 0x44a   : > { %v8200_v1 = vpop.f32.mrf.mxu1  ;;  %v12666_v42 = vld [vmem:[#allocation2 + $0x81] sm:$0xff] }
 0x44b   : > { %5464 = vst.msk [vmem:[#allocation2 + $0xc1] sm:$0xff] %vm5371_vm2, %v8199_v30  ;;  %v8548_v22 = vpack.i.bf16 %v12666_v42, %v12655_v8  ;;  %v12672_v56 = vld [vmem:[#allocation2 + $0x82] sm:$0xff]  ;;  %v9190_v30 = vld [vmem:[%s13541_s3 + $0x30] sm:$0xff]  }
 0x44c   : > { %v8201_v28 = vpop.f32.mrf.mxu1  ;;  %v8553_v19 = vpack.i.bf16 %v12672_v56, %v12657_v57  ;;  %8406 = vmatprep.subr.bf16.mxu0 %v9190_v30 }
 0x44d   : > { %v8202_v2 = vadd.f32 %v8201_v28, %v8200_v1  ;;  %8544 = vrot.lane.b32.xlu1 %v8543_v41, %s9358_s0  ;;  %8549 = vrot.lane.b32.xlu0 %v8548_v22, %s9356_s10  ;;  %v5595_v28 = vld [vmem:[#allocation2 + $0x130] sm:$0xff] }
 0x44e   : > { %v8203_v46 = vpop.f32.mrf.mxu1  ;;  %v5523_v63 = vld [vmem:[#allocation2 + $0xb0] sm:$0xff]  ;;  %8407 = vmatpush3.bf16.msra.mxu0 %v9190_v30 }
 0x44f   : > { %5465 = vst.msk [vmem:[#allocation2 + $0xd1] sm:$0xff] %vm5371_vm2, %v8202_v2  ;;  %v5539_v53 = vld [vmem:[#allocation2 + $0xb1] sm:$0xff] }
 0x450   : > { %v8204_v14 = vpop.f32.mrf.mxu1 }
 0x451   : > { %v8205_v50 = vadd.f32 %v8204_v14, %v8203_v46  ;;  %8554 = vrot.lane.b32.xlu0 %v8553_v19, %s9358_s0 }
 0x452   : > { %v8206_v13 = vpop.f32.mrf.mxu1  ;;  %v5524_v25 = vld [vmem:[#allocation2 + $0xc0] sm:$0xff] }
 0x453   : > { %5466 = vst.msk [vmem:[#allocation2 + $0xe1] sm:$0xff] %vm5371_vm2, %v8205_v50  ;;  %v8558_v34 = vpack.i.bf16 %v5524_v25, %v5523_v63  ;;  %v5540_v4 = vld [vmem:[#allocation2 + $0xc1] sm:$0xff] }
 0x454   : > { %v8207_v23 = vpop.f32.mrf.mxu1  ;;  %v8563_v7 = vpack.i.bf16 %v5540_v4, %v5539_v53 }
 0x455   : > { %v8208_v17 = vadd.f32 %v8207_v23, %v8206_v13  ;;  %8559 = vrot.lane.b32.xlu0 %v8558_v34, %s9360_s29 }
 0x456   : > { %v8209_v16 = vpop.f32.mrf.mxu1  ;;  %v5589_v54 = vld [vmem:[#allocation2 + $0xd0] sm:$0xff] }
 0x457   : > { %5467 = vst.msk [vmem:[#allocation2 + $0xf1] sm:$0xff] %vm5371_vm2, %v8208_v17  ;;  %v8568_v20 = vpack.i.bf16 %v5589_v54, %v5524_v25  ;;  %v5606_v5 = vld [vmem:[#allocation2 + $0xd1] sm:$0xff]  ;;  %v5499_v25 = vld [vmem:[#allocation2 + $0x141] sm:$0xff] }
 0x458   : > { %v8210_v10 = vpop.f32.mrf.mxu1  ;;  %v8573_v40 = vpack.i.bf16 %v5606_v5, %v5540_v4  ;;  %v9191_v17 = vld [vmem:[%s13541_s3 + $0x28] sm:$0xff]  }
 0x459   : > { %v8211_v6 = vadd.f32 %v8210_v10, %v8209_v16  ;;  %8569 = vrot.lane.b32.xlu1 %v8568_v20, %s9361_s11  ;;  %8564 = vrot.lane.b32.xlu0 %v8563_v7, %s9362_s14  ;;  %v5515_v10 = vld [vmem:[#allocation2 + $0x142] sm:$0xff] }
 0x45a   : > { %v8212_v27 = vpop.f32.mrf.mxu1  ;;  %v5526_v44 = vld [vmem:[#allocation2 + $0xe0] sm:$0xff]  ;;  %8408 = vmatprep.subr.bf16.mxu0 %v9191_v17 }
 0x45b   : > { %5468 = vst.msk [vmem:[#allocation2 + $0x101] sm:$0xff] %vm5371_vm2, %v8211_v6  ;;  %v8578_v51 = vpack.i.bf16 %v5526_v44, %v5589_v54  ;;  %v5542_v37 = vld [vmem:[#allocation2 + $0xe1] sm:$0xff]  ;;  %8409 = vmatpush3.bf16.msra.mxu0 %v9191_v17 }
 0x45c   : > { %v8213_v49 = vpop.f32.mrf.mxu1  ;;  %v8583_v33 = vpack.i.bf16 %v5542_v37, %v5606_v5 }
 0x45d   : > { %v8214_v48 = vadd.f32 %v8213_v49, %v8212_v27  ;;  %8574 = vrot.lane.b32.xlu1 %v8573_v40, %s9363_s21 }
 0x45e   : > { %v8215_v45 = vpop.f32.mrf.mxu1  ;;  %v5591_v36 = vld [vmem:[#allocation2 + $0xf0] sm:$0xff] }
 0x45f   : > { %5469 = vst.msk [vmem:[#allocation2 + $0x111] sm:$0xff] %vm5371_vm2, %v8214_v48  ;;  %v8588_v43 = vpack.i.bf16 %v5591_v36, %v5526_v44  ;;  %v5608_v35 = vld [vmem:[#allocation2 + $0xf1] sm:$0xff] }
 0x460   : > { %v8216_v3 = vpop.f32.mrf.mxu1  ;;  %v8593_v24 = vpack.i.bf16 %v5608_v35, %v5542_v37 }
 0x461   : > { %v8217_v60 = vadd.f32 %v8216_v3, %v8215_v45  ;;  %8579 = vrot.lane.b32.xlu1 %v8578_v51, %s9360_s29  ;;  %8589 = vrot.lane.b32.xlu0 %v8588_v43, %s9361_s11  ;;  %v9192_v51 = vld [vmem:[%s13541_s3 + $0x20] sm:$0xff]  }
 0x462   : > { %v8218_v29 = vpop.f32.mrf.mxu1  ;;  %v5528_v0 = vld [vmem:[#allocation2 + $0x100] sm:$0xff]  ;;  %8410 = vmatprep.subr.bf16.mxu0 %v9192_v51 }
 0x463   : > { %5470 = vst.msk [vmem:[#allocation2 + $0x121] sm:$0xff] %vm5371_vm2, %v8217_v60  ;;  %v12696_v62 = vld [vmem:[#allocation2 + $0x101] sm:$0xff]  ;;  %v8598_v59 = vpack.i.bf16 %v5528_v0, %v5591_v36  ;;  %8411 = vmatpush3.bf16.msra.mxu0 %v9192_v51 }
 0x464   : > { %v8219_v32 = vpop.f32.mrf.mxu1  ;;  %v8603_v1 = vpack.i.bf16 %v12696_v62, %v5608_v35 }
 0x465   : > { %v8220_v58 = vadd.f32 %v8219_v32, %v8218_v29  ;;  %8584 = vrot.lane.b32.xlu1 %v8583_v33, %s9362_s14  ;;  %8594 = vrot.lane.b32.xlu0 %v8593_v24, %s9363_s21 }
 0x466   : > { %v8221_v39 = vpop.f32.mrf.mxu1  ;;  %v5593_v15 = vld [vmem:[#allocation2 + $0x110] sm:$0xff] }
 0x467   : > { %v12698_v26 = vld [vmem:[#allocation2 + $0x111] sm:$0xff]  ;;  %5472 = vst.msk [vmem:[#allocation2 + $0x151] sm:$0xff] %vm5371_vm2, %v8220_v58  ;;  %v8608_v47 = vpack.i.bf16 %v5593_v15, %v5528_v0 }
 0x468   : > { %v8768_v9 = vpack.i.bf16 %v12698_v26, %v12696_v62  ;;  %v8222_v61 = vpop.f32.mrf.mxu1 }
 0x469   : > { %v8223_v21 = vadd.f32 %v8222_v61, %v8221_v39  ;;  %8599 = vrot.lane.b32.xlu1 %v8598_v59, %s9360_s29  ;;  %8609 = vrot.lane.b32.xlu0 %v8608_v47, %s9361_s11  ;;  %v9193_v59 = vld [vmem:[%s13541_s3 + $0x18] sm:$0xff]  }
 0x46a   : > { %v8224_v38 = vpop.f32.mrf.mxu1  ;;  %v5530_v31 = vld [vmem:[#allocation2 + $0x120] sm:$0xff]  ;;  %8412 = vmatprep.subr.bf16.mxu0 %v9193_v59 }
 0x46b   : > { %5473 = vst.msk [vmem:[#allocation2 + $0x161] sm:$0xff] %vm5371_vm2, %v8223_v21  ;;  %v8613_v41 = vpack.i.bf16 %v5530_v31, %v5593_v15  ;;  %v12710_v2 = vld [vmem:[#allocation2 + $0x121] sm:$0xff]  ;;  %v8623_v14 = vpack.i.bf16 %v5595_v28, %v5530_v31  ;;  %8413 = vmatpush3.bf16.msra.mxu0 %v9193_v59 }
 0x46c   : > { %v8225_v22 = vpop.f32.mrf.mxu1  ;;  %v8618_v50 = vpack.i.bf16 %v12710_v2, %v12698_v26 }
 0x46d   : > { %v8226_v46 = vadd.f32 %v8225_v22, %v8224_v38  ;;  %8604 = vrot.lane.b32.xlu1 %v8603_v1, %s9362_s14  ;;  %8614 = vrot.lane.b32.xlu0 %v8613_v41, %s9360_s29 }
 0x46e   : > { %v8227_v19 = vpop.f32.mrf.mxu1  ;;  %v5563_v63 = vld [vmem:[#allocation2 + $0x151] sm:$0xff] }
 0x46f   : > { %5474 = vst.msk [vmem:[#allocation2 + $0x171] sm:$0xff] %vm5371_vm2, %v8226_v46  ;;  %v8628_v54 = vpack.i.bf16 %v5563_v63, %v5499_v25  ;;  %v5579_v20 = vld [vmem:[#allocation2 + $0x152] sm:$0xff] }
 0x470   : > { %v8228_v13 = vpop.f32.mrf.mxu1  ;;  %v8633_v40 = vpack.i.bf16 %v5579_v20, %v5515_v10  ;;  %v5507_v10 = vld [vmem:[#allocation2 + $0x1e1] sm:$0xff] }
 0x471   : > { %v8229_v34 = vadd.f32 %v8228_v13, %v8227_v19  ;;  %8624 = vrot.lane.b32.xlu1 %v8623_v14, %s9361_s11  ;;  %8619 = vrot.lane.b32.xlu0 %v8618_v50, %s9362_s14  ;;  %s296_s14 = sand.u32 1, %s9330_s28  }
 0x472   : > { %v8230_v23 = vpop.f32.mrf.mxu1  ;;  %v5564_v4 = vld [vmem:[#allocation2 + $0x161] sm:$0xff] }
 0x473   : > { %5475 = vst.msk [vmem:[#allocation2 + $0x181] sm:$0xff] %vm5371_vm2, %v8229_v34  ;;  %v8638_v16 = vpack.i.bf16 %v5564_v4, %v5563_v63  ;;  %v5580_v7 = vld [vmem:[#allocation2 + $0x162] sm:$0xff] }
 0x474   : > { %v8231_v53 = vpop.f32.mrf.mxu1  ;;  %v8643_v27 = vpack.i.bf16 %v5580_v7, %v5579_v20 }
 0x475   : > { %v8232_v5 = vadd.f32 %v8231_v53, %v8230_v23  ;;  %8639 = vrot.lane.b32.xlu1 %v8638_v16, %s9364_s20  ;;  %8629 = vrot.lane.b32.xlu0 %v8628_v54, %s9365_s25 }
 0x476   : > { %v8233_v6 = vpop.f32.mrf.mxu1  ;;  %v5502_v44 = vld [vmem:[#allocation2 + $0x171] sm:$0xff] }
 0x477   : > { %5476 = vst.msk [vmem:[#allocation2 + $0x191] sm:$0xff] %vm5371_vm2, %v8232_v5  ;;  %v8648_v43 = vpack.i.bf16 %v5502_v44, %v5564_v4  ;;  %v5518_v35 = vld [vmem:[#allocation2 + $0x172] sm:$0xff] }
 0x478   : > { %v8234_v49 = vpop.f32.mrf.mxu1  ;;  %v8653_v33 = vpack.i.bf16 %v5518_v35, %v5580_v7  ;;  %v9194_v4 = vld [vmem:[%s13541_s3 + $0x10] sm:$0xff]  }
 0x479   : > { %v8235_v48 = vadd.f32 %v8234_v49, %v8233_v6  ;;  %8644 = vrot.lane.b32.xlu1 %v8643_v27, %s9366_s17  ;;  %8634 = vrot.lane.b32.xlu0 %v8633_v40, %s13616_s26 }
 0x47a   : > { %v8236_v45 = vpop.f32.mrf.mxu1  ;;  %v5566_v36 = vld [vmem:[#allocation2 + $0x181] sm:$0xff]  ;;  %8414 = vmatprep.subr.bf16.mxu0 %v9194_v4 }
 0x47b   : > { %5477 = vst.msk [vmem:[#allocation2 + $0x1a1] sm:$0xff] %vm5371_vm2, %v8235_v48  ;;  %v8658_v3 = vpack.i.bf16 %v5566_v36, %v5502_v44  ;;  %v5582_v55 = vld [vmem:[#allocation2 + $0x182] sm:$0xff]  ;;  %8415 = vmatpush3.bf16.msra.mxu0 %v9194_v4 }
 0x47c   : > { %v8237_v37 = vpop.f32.mrf.mxu1  ;;  %v8663_v24 = vpack.i.bf16 %v5582_v55, %v5518_v35 }
 0x47d   : > { %v8238_v60 = vadd.f32 %v8237_v37, %v8236_v45  ;;  %8649 = vrot.lane.b32.xlu1 %v8648_v43, %s9365_s25  ;;  %8659 = vrot.lane.b32.xlu0 %v8658_v3, %s9364_s20  ;;  %v9195_v3 = vld [vmem:[%s13541_s3 + $0x8] sm:$0xff]  }
 0x47e   : > { %v8239_v29 = vpop.f32.mrf.mxu1  ;;  %v5504_v0 = vld [vmem:[#allocation2 + $0x191] sm:$0xff]  ;;  %8416 = vmatprep.subr.bf16.mxu0 %v9195_v3 }
 0x47f   : > { %5478 = vst.msk [vmem:[#allocation2 + $0x1b1] sm:$0xff] %vm5371_vm2, %v8238_v60  ;;  %v8668_v47 = vpack.i.bf16 %v5504_v0, %v5566_v36  ;;  %v5520_v38 = vld [vmem:[#allocation2 + $0x192] sm:$0xff]  ;;  %8417 = vmatpush3.bf16.msra.mxu0 %v9195_v3 }
 0x480   : > { %v8240_v32 = vpop.f32.mrf.mxu1  ;;  %v8673_v41 = vpack.i.bf16 %v5520_v38, %v5582_v55 }
 0x481   : > { %v8241_v58 = vadd.f32 %v8240_v32, %v8239_v29  ;;  %8654 = vrot.lane.b32.xlu1 %v8653_v33, %s13616_s26  ;;  %8664 = vrot.lane.b32.xlu0 %v8663_v24, %s9366_s17 }
 0x482   : > { %v8242_v39 = vpop.f32.mrf.mxu1  ;;  %v5568_v15 = vld [vmem:[#allocation2 + $0x1a1] sm:$0xff] }
 0x483   : > { %5479 = vst.msk [vmem:[#allocation2 + $0x1c1] sm:$0xff] %vm5371_vm2, %v8241_v58  ;;  %v8678_v61 = vpack.i.bf16 %v5568_v15, %v5504_v0  ;;  %v5584_v31 = vld [vmem:[#allocation2 + $0x1a2] sm:$0xff] }
 0x484   : > { %v8243_v21 = vpop.f32.mrf.mxu1  ;;  %v8683_v22 = vpack.i.bf16 %v5584_v31, %v5520_v38 }
 0x485   : > { %v8244_v30 = vadd.f32 %v8243_v21, %v8242_v39  ;;  %8669 = vrot.lane.b32.xlu1 %v8668_v47, %s9365_s25  ;;  %8679 = vrot.lane.b32.xlu0 %v8678_v61, %s9364_s20  ;;  %v9196_v39 = vld [vmem:[%s13541_s3] sm:$0xff]  }
 0x486   : > { %v8245_v1 = vpop.f32.mrf.mxu1  ;;  %v5569_v46 = vld [vmem:[#allocation2 + $0x1b1] sm:$0xff]  ;;  %8418 = vmatprep.subr.bf16.mxu0 %v9196_v39 }
 0x487   : > { %5481 = vst.msk [vmem:[#allocation2 + $0x1f1] sm:$0xff] %vm5371_vm2, %v8244_v30  ;;  %v8688_v63 = vpack.i.bf16 %v5569_v46, %v5568_v15  ;;  %v5585_v34 = vld [vmem:[#allocation2 + $0x1b2] sm:$0xff]  ;;  %8419 = vmatpush3.bf16.msra.mxu0 %v9196_v39 }
 0x488   : > { %v8246_v28 = vpop.f32.mrf.mxu1  ;;  %v8693_v53 = vpack.i.bf16 %v5585_v34, %v5584_v31 }
 0x489   : > { %v8247_v19 = vadd.f32 %v8246_v28, %v8245_v1  ;;  %8674 = vrot.lane.b32.xlu1 %v8673_v41, %s13616_s26  ;;  %8684 = vrot.lane.b32.xlu0 %v8683_v22, %s9366_s17 }
 0x48a   : > { %v8248_v14 = vpop.f32.mrf.mxu1  ;;  %v5570_v50 = vld [vmem:[#allocation2 + $0x1c1] sm:$0xff] }
 0x48b   : > { %5482 = vst.msk [vmem:[#allocation2 + $0x201] sm:$0xff] %vm5371_vm2, %v8247_v19  ;;  %v8698_v13 = vpack.i.bf16 %v5570_v50, %v5569_v46  ;;  %v5586_v23 = vld [vmem:[#allocation2 + $0x1c2] sm:$0xff]  ;;  %v5604_v46 = vld [vmem:[#allocation2 + $0x91] sm:$0xff] }
 0x48c   : > { %v8249_v25 = vpop.f32.mrf.mxu1  ;;  %v8703_v54 = vpack.i.bf16 %v5586_v23, %v5585_v34 }
 0x48d   : > { %v8250_v17 = vadd.f32 %v8249_v25, %v8248_v14  ;;  %8699 = vrot.lane.b32.xlu1 %v8698_v13, %s9364_s20  ;;  %8689 = vrot.lane.b32.xlu0 %v8688_v63, %s9365_s25  ;;  %v8763_v14 = vpack.i.bf16 %v5604_v46, %v12666_v42  ;;  %s7167_s20 = scalar_lea.sflag [#allocation4], %s296_s14 }
 0x48e   : > { %v8251_v16 = vpop.f32.mrf.mxu1  ;;  %v5571_v7 = vld [vmem:[#allocation2 + $0x1f1] sm:$0xff] }
 0x48f   : > { %5483 = vst.msk [vmem:[#allocation2 + $0x211] sm:$0xff] %vm5371_vm2, %v8250_v17  ;;  %v8708_v49 = vpack.i.bf16 %v5571_v7, %v5507_v10  ;;  %v12760_v43 = vld [vmem:[#allocation2 + $0x1f0] sm:$0xff] }
 0x490   : > { %v8252_v20 = vpop.f32.mrf.mxu1 }
 0x491   : > { %v8253_v5 = vadd.f32 %v8252_v20, %v8251_v16  ;;  %8704 = vrot.lane.b32.xlu1 %v8703_v54, %s9366_s17  ;;  %8694 = vrot.lane.b32.xlu0 %v8693_v53, %s13616_s26  ;;  %v5612_v16 = vld [vmem:[#allocation2 + $0x131] sm:$0xff] }
 0x492   : > { %v8254_v6 = vpop.f32.mrf.mxu1  ;;  %v5572_v27 = vld [vmem:[#allocation2 + $0x201] sm:$0xff]  ;;  %v8783_v53 = vpack.i.bf16 %v5612_v16, %v12710_v2  ;;  %v5620_v20 = vld [vmem:[#allocation2 + $0x92] sm:$0xff] }
 0x493   : > { %5484 = vst.msk [vmem:[#allocation2 + $0x221] sm:$0xff] %vm5371_vm2, %v8253_v5  ;;  %v8718_v40 = vpack.i.bf16 %v5572_v27, %v5571_v7  ;;  %v12756_v48 = vld [vmem:[#allocation2 + $0x200] sm:$0xff]  ;;  %v8793_v8 = vpack.i.bf16 %v5620_v20, %v12672_v56 }
 0x494   : > { %v8255_v44 = vpop.f32.mrf.mxu1  ;;  %v8713_v35 = vpack.i.bf16 %v12756_v48, %v12760_v43 }
 0x495   : > { %v8256_v45 = vadd.f32 %v8255_v44, %v8254_v6  ;;  %8719 = vrot.lane.b32.xlu1 %v8718_v40, %s9367_s23  ;;  %8709 = vrot.lane.b32.xlu0 %v8708_v49, %s9368_s24 }
 0x496   : > { %v8257_v36 = vpop.f32.mrf.mxu1  ;;  %v5510_v51 = vld [vmem:[#allocation2 + $0x211] sm:$0xff] }
 0x497   : > { %5485 = vst.msk [vmem:[#allocation2 + $0x231] sm:$0xff] %vm5371_vm2, %v8256_v45  ;;  %v8723_v37 = vpack.i.bf16 %v5510_v51, %v5572_v27  ;;  %v12770_v33 = vld [vmem:[#allocation2 + $0x210] sm:$0xff] }
 0x498   : > { %v8258_v55 = vpop.f32.mrf.mxu1 }
 0x499   : > { %v8259_v60 = vadd.f32 %v8258_v55, %v8257_v36  ;;  %8724 = vrot.lane.b32.xlu1 %v8723_v37, %s9368_s24  ;;  %8714 = vrot.lane.b32.xlu0 %v8713_v35, %s9369_s18 }
 0x49a   : > { %v8260_v29 = vpop.f32.mrf.mxu1  ;;  %v12772_v24 = vld [vmem:[#allocation2 + $0x220] sm:$0xff] }
 0x49b   : > { %5486 = vst.msk [vmem:[#allocation2 + $0x241] sm:$0xff] %vm5371_vm2, %v8259_v60  ;;  %v8728_v32 = vpack.i.bf16 %v12772_v24, %v12770_v33  ;;  %v5511_v58 = vld [vmem:[#allocation2 + $0x221] sm:$0xff] }
 0x49c   : > { %v8261_v0 = vpop.f32.mrf.mxu1  ;;  %v8733_v21 = vpack.i.bf16 %v5511_v58, %v5510_v51 }
 0x49d   : > { %v8262_v15 = vadd.f32 %v8261_v0, %v8260_v29  ;;  %8729 = vrot.lane.b32.xlu0 %v8728_v32, %s9369_s18 }
 0x49e   : > { %v8263_v59 = vpop.f32.mrf.mxu1  ;;  %v5512_v47 = vld [vmem:[#allocation2 + $0x231] sm:$0xff] }
 0x49f   : > { %5487 = vst.msk [vmem:[#allocation2 + $0x251] sm:$0xff] %vm5371_vm2, %v8262_v15  ;;  %v8738_v61 = vpack.i.bf16 %v5512_v47, %v5511_v58  ;;  %v12784_v30 = vld [vmem:[#allocation2 + $0x230] sm:$0xff] }
 0x4a0   : > { %v8264_v38 = vpop.f32.mrf.mxu1 }
 0x4a1   : > { %v8265_v31 = vadd.f32 %v8264_v38, %v8263_v59  ;;  %8739 = vrot.lane.b32.xlu1 %v8738_v61, %s9368_s24  ;;  %8734 = vrot.lane.b32.xlu0 %v8733_v21, %s9367_s23 }
 0x4a2   : > { %v12786_v1 = vld [vmem:[#allocation2 + $0x240] sm:$0xff] }
 0x4a3   : > { %v5576_v41 = vld [vmem:[#allocation2 + $0x241] sm:$0xff]  ;;  %5488 = vst.msk [vmem:[#allocation2 + $0x261] sm:$0xff] %vm5371_vm2, %v8265_v31  ;;  %v8743_v22 = vpack.i.bf16 %v12786_v1, %v12784_v30 }
 0x4a4   : > { %v8748_v28 = vpack.i.bf16 %v5576_v41, %v5512_v47 }
 0x4a5   : > { %8744 = vrot.lane.b32.xlu1 %v8743_v22, %s9369_s18 }
 0x4a6   : > { %8749 = vrot.lane.b32.xlu0 %v8748_v28, %s9367_s23  ;;  %v5514_v19 = vld [vmem:[#allocation2 + $0x251] sm:$0xff] }
 0x4a7   : > { %v8753_v50 = vpack.i.bf16 %v5514_v19, %v5576_v41  ;;  %v12796_v13 = vld [vmem:[#allocation2 + $0x250] sm:$0xff]  ;;  %v12798_v25 = vpop.permute.xlu0 %8499 }
 0x4a9   : > { %8764 = vrot.lane.b32.xlu1 %v8763_v14, %s9357_s13 }
 0x4aa   : > { %8754 = vrot.lane.b32.xlu0 %v8753_v50, %s9368_s24  ;;  %v5562_v63 = vld [vmem:[#allocation2 + $0x260] sm:$0xff] }
 0x4ab   : > { %v12800_v34 = vpop.permute.xlu1 %8509  ;;  %v8773_v23 = vpack.i.bf16 %v5562_v63, %v12796_v13  ;;  %v5578_v4 = vld [vmem:[#allocation2 + $0x261] sm:$0xff]  ;;  %v12810_v54 = vpop.permute.xlu0 %8504 }
 0x4ac   : > { %v8778_v17 = vpack.i.bf16 %v5578_v4, %v5514_v19  ;;  %v5490_v63 = vld [vmem:[#allocation2 + $0x1e0] sm:$0xff] }
 0x4ad   : > { %8774 = vrot.lane.b32.xlu1 %v8773_v23, %s9369_s18 }
 0x4ae   : > { %8759 = vrot.lane.b32.xlu0 %v8758_v52, %s9357_s13 }
 0x4af   : > { %v12808_v42 = vpop.permute.xlu1 %8514 }
 0x4b1   : > { %8779 = vrot.lane.b32.xlu1 %v8778_v17, %s9367_s23  ;;  %s297_s23 = scalar_lea.vmem [#allocation3], %s296_s14 }
 0x4b2   : > { %8769 = vrot.lane.b32.xlu0 %v8768_v9, %s9363_s21  ;;  %s7179_s24 = sshll.u32 %s297_s23, 4  ;;  %s7180_s24 = int_to_ptr.vmem [resolvable:$true] %s7179_s24 }
 0x4b3   : > { %v12818_v7 = vpop.permute.xlu1 %8519  ;;  %v12820_v11 = vpop.permute.xlu0 %8529  ;;  %s9278_s13 = scalar_lea.vmem %s7180_s24, 16 }
 0x4b4   : > { %p9279_p11 = scmp.ne.s32.totalorder %s7180_s24, %s9278_s13 }
 0x4b5   : > { %8784 = vrot.lane.b32.xlu1 %v8783_v53, %s9363_s21 }
 0x4b6   : > { %8789 = vrot.lane.b32.xlu0 %v8788_v12, %s9359_s1  ;;  %p9280_p12 = pnand %p9279_p11, %p9454_p5 }
 0x4b7   : > { %v12829_v52 = vpop.permute.xlu1 %8524  ;;  %v12831_v62 = vpop.permute.xlu0 %8534 }
 0x4b8   : > { %p9281_p13 = pneg %p9280_p12 }
 0x4b9   : > { %8794 = vrot.lane.b32.xlu1 %v8793_v8, %s9359_s1  ;;  %s9282_s1 = sshll.u32 %s9370_s9, 4  ;;  %s9283_s1 = int_to_ptr.vmem [resolvable:$false] %s9282_s1 }
 0x4ba   : > { %s9284_s21 = scalar_lea.vmem %s9283_s1, 32  ;;  %p9285_p0 = scmp.lt.s32.totalorder %s7180_s24, %s9283_s1 }
 0x4bb   : > { %v12835_v9 = vpop.permute.xlu1 %8539  ;;  %p9286_p1 = scmp.lt.s32.totalorder %s9284_s21, %s9278_s13 }
 0x4bd   : > { %p9287_p2 = por %p9286_p1, %p9285_p0 }
 0x4bf   : > { %v12833_v26 = vpop.permute.xlu0 %8549  ;;  %v12839_v10 = vpop.permute.xlu1 %8544  ;;  %p9288_p3 = pnand %p9287_p2, %p9281_p13 }
 0x4c3   : > { %v12837_v2 = vpop.permute.xlu0 %8554 }
 0x4c7   : > { %v12841_v5 = vpop.permute.xlu0 %8559 }
 0x4c8   : > { %v8561_v39 = vunpack.i.l.bf16 %v12841_v5 }
 0x4cb   : > { %v12843_v18 = vpop.permute.xlu1 %8569  ;;  %v12845_v57 = vpop.permute.xlu0 %8564 }
 0x4cf   : > { %v12847_v12 = vpop.permute.xlu1 %8574 }
 0x4d3   : > { %v12849_v56 = vpop.permute.xlu1 %8579  ;;  %v12851_v6 = vpop.permute.xlu0 %8589 }
 0x4d7   : > { %v12853_v27 = vpop.permute.xlu1 %8584  ;;  %v12855_v40 = vpop.permute.xlu0 %8594 }
 0x4db   : > { %v12857_v49 = vpop.permute.xlu1 %8599  ;;  %v12859_v44 = vpop.permute.xlu0 %8609 }
 0x4df   : > { %v12861_v45 = vpop.permute.xlu1 %8604  ;;  %v12863_v36 = vpop.permute.xlu0 %8614 }
 0x4e3   : > { %v12865_v51 = vpop.permute.xlu1 %8624  ;;  %v12867_v3 = vpop.permute.xlu0 %8619 }
 0x4e7   : > { %v12869_v37 = vpop.permute.xlu1 %8639  ;;  %v12871_v35 = vpop.permute.xlu0 %8629 }
 0x4e8   : > { %v8632_v46 = vunpack.i.h.bf16 %v12871_v35  ;;  %v8631_v23 = vunpack.i.l.bf16 %v12871_v35 }
 0x4ea   : > { %v6102_v14 = vsel %vm5371_vm2, %v12760_v43, %v8632_v46  ;;  %v6101_v41 = vsel %vm5371_vm2, %v5490_v63, %v8631_v23 }
 0x4eb   : > { %v12873_v55 = vpop.permute.xlu1 %8644  ;;  %v12875_v60 = vpop.permute.xlu0 %8634 }
 0x4ec   : > { %v8636_v8 = vunpack.i.l.bf16 %v12875_v60 }
 0x4ef   : > { %v12877_v29 = vpop.permute.xlu1 %8649  ;;  %v12879_v32 = vpop.permute.xlu0 %8659 }
 0x4f0   : > { %v8652_v17 = vunpack.i.h.bf16 %v12877_v29  ;;  %v8651_v19 = vunpack.i.l.bf16 %v12877_v29  ;;  %v8637_v29 = vunpack.i.h.bf16 %v12875_v60  ;;  %v13887_v60 = vunpack.i.h.bf16 %v12841_v5 }
 0x4f1   : > { %v13890_v5 = vunpack.i.l.bf16 %v12845_v57 }
 0x4f2   : > { %v6104_v23 = vsel %vm5371_vm2, %v12770_v33, %v8652_v17  ;;  %v6103_v21 = vsel %vm5371_vm2, %v12756_v48, %v8651_v19 }
 0x4f3   : > { %v12885_v59 = vpop.permute.xlu1 %8654  ;;  %v12887_v47 = vpop.permute.xlu0 %8664 }
 0x4f4   : > { %v8656_v22 = vunpack.i.l.bf16 %v12885_v59 }
 0x4f7   : > { %v12905_v53 = vpop.permute.xlu1 %8669  ;;  %v12907_v20 = vpop.permute.xlu0 %8679 }
 0x4f8   : > { %v8672_v50 = vunpack.i.h.bf16 %v12905_v53  ;;  %v8671_v16 = vunpack.i.l.bf16 %v12905_v53  ;;  %v8657_v53 = vunpack.i.h.bf16 %v12885_v59 }
 0x4fa   : > { %v12978_v0 = vsel %vm5371_vm2, %v12784_v30, %v8672_v50  ;;  %v12982_v33 = vsel %vm5371_vm2, %v12772_v24, %v8671_v16 }
 0x4fb   : > { %v12925_v4 = vpop.permute.xlu1 %8674  ;;  %v12927_v15 = vpop.permute.xlu0 %8684 }
 0x4ff   : > { %v12945_v61 = vpop.permute.xlu1 %8699  ;;  %v8690_v35 = vpop.permute.xlu0 %8689 }
 0x500   : > { %v8692_v43 = vunpack.i.h.bf16 %v8690_v35  ;;  %v8691_v28 = vunpack.i.l.bf16 %v8690_v35 }
 0x502   : > { %v12994_v59 = vsel %vm5371_vm2, %v12796_v13, %v8692_v43  ;;  %v12998_v19 = vsel %vm5371_vm2, %v12786_v1, %v8691_v28  ;;  %vm6206_vm2 = vcmask 850944  }
 0x503   : > { %v12964_v46 = vpop.permute.xlu1 %8704  ;;  %v12966_v63 = vpop.permute.xlu0 %8694 }
 0x504   : > { %v8696_v50 = vunpack.i.l.bf16 %v12966_v63 }
 0x507   : > { %v8720_v38 = vpop.permute.xlu1 %8719  ;;  %v8710_v30 = vpop.permute.xlu0 %8709 }
 0x508   : > { %v8712_v16 = vunpack.i.h.bf16 %v8710_v30  ;;  %v8711_v48 = vunpack.i.l.bf16 %v8710_v30  ;;  %v8722_v58 = vunpack.i.h.bf16 %v8720_v38  ;;  %v8721_v13 = vunpack.i.l.bf16 %v8720_v38 }
 0x509   : > { %v13888_v38 = vunpack.i.l.bf16 %v12798_v25 }
 0x50a   : > { %v6110_v24 = vsel %vm6109_vm0, %v6101_v41, %v8711_v48  ;;  %v6111_v30 = vsel %vm6109_vm0, %v6102_v14, %v8712_v16 }
 0x50b   : > { %v6118_v43 = vsel %vm4417_vm9, %v6110_v24, %v8636_v8  ;;  %v6119_v1 = vsel %vm4417_vm9, %v6111_v30, %v8637_v29  ;;  %v8725_v28 = vpop.permute.xlu1 %8724  ;;  %v8715_v31 = vpop.permute.xlu0 %8714  ;;  %v13889_v29 = vunpack.i.h.bf16 %v12798_v25  ;;  %v13894_v25 = vunpack.i.l.bf16 %v12810_v54 }
 0x50c   : > { %v6127_v35 = vsel %vm6126_vm8, %v6118_v43, %v8561_v39  ;;  %v6128_v17 = vsel %vm6126_vm8, %v6119_v1, %v13887_v60  ;;  %v8727_v41 = vunpack.i.h.bf16 %v8725_v28  ;;  %v8726_v48 = vunpack.i.l.bf16 %v8725_v28 }
 0x50d   : > { %v8717_v14 = vunpack.i.h.bf16 %v8715_v31  ;;  %v8716_v16 = vunpack.i.l.bf16 %v8715_v31  ;;  %v6136_v8 = vsel %vm6135_vm6, %v6127_v35, %v13888_v38  ;;  %v6137_v24 = vsel %vm6135_vm6, %v6128_v17, %v13889_v29 }
 0x50e   : > { %v6112_v30 = vsel %vm6109_vm0, %v6103_v21, %v8726_v48  ;;  %v6113_v39 = vsel %vm6109_vm0, %v6104_v23, %v8727_v41  ;;  %v6144_v60 = vsel %vm13891_vm15, %v6136_v8, %v13890_v5  ;;  %v13892_v43 = vunpack.i.h.bf16 %v12845_v57 }
 0x50f   : > { %v6120_v1 = vsel %vm4417_vm9, %v6112_v30, %v8656_v22  ;;  %v6121_v35 = vsel %vm4417_vm9, %v6113_v39, %v8657_v53  ;;  %v6153_v17 = vsel %vm6152_vm10, %v6144_v60, %v13894_v25  ;;  %v13895_v21 = vunpack.i.h.bf16 %v12810_v54  ;;  %v8730_v28 = vpop.permute.xlu0 %8729 }
 0x510   : > { %v6145_v31 = vsel %vm13893_vm3, %v6137_v24, %v13892_v43  ;;  %v13896_v41 = vunpack.i.l.bf16 %v12849_v56  ;;  %v13897_v57 = vunpack.i.h.bf16 %v12849_v56  ;;  %v6162_v22 = vsel %vm6161_vm7, %v6153_v17, %v8716_v16 }
 0x511   : > { %v6154_v23 = vsel %vm6152_vm10, %v6145_v31, %v13895_v21  ;;  %v13898_v8 = vunpack.i.l.bf16 %v12869_v37  ;;  %v13899_v54 = vunpack.i.h.bf16 %v12869_v37  ;;  %v13900_v30 = vunpack.i.l.bf16 %v12818_v7 }
 0x512   : > { %v6129_v48 = vsel %vm6126_vm8, %v6120_v1, %v13896_v41  ;;  %v6130_v38 = vsel %vm6126_vm8, %v6121_v35, %v13897_v57  ;;  %v6163_v53 = vsel %vm6161_vm7, %v6154_v23, %v8717_v14  ;;  %v13901_v56 = vunpack.i.h.bf16 %v12818_v7 }
 0x513   : > { %v6171_v29 = vsel %vm6170_vm11, %v6162_v22, %v13898_v8  ;;  %v6172_v24 = vsel %vm6170_vm11, %v6163_v53, %v13899_v54  ;;  %v6138_v39 = vsel %vm6135_vm6, %v6129_v48, %v13900_v30  ;;  %v13902_v60 = vunpack.i.l.bf16 %v12853_v27  ;;  %v8735_v23 = vpop.permute.xlu0 %8734 }
 0x514   : > { %v6139_v5 = vsel %vm6135_vm6, %v6130_v38, %v13901_v56  ;;  %v6180_v16 = vsel %vm6179_vm12, %v6171_v29, %v8721_v13  ;;  %v6181_v14 = vsel %vm6179_vm12, %v6172_v24, %v8722_v58  ;;  %v13904_v37 = vunpack.i.h.bf16 %v12853_v27  ;;  %v8740_v27 = vpop.permute.xlu1 %8739 }
 0x515   : > { %v6146_v43 = vsel %vm13903_vm4, %v6138_v39, %v13902_v60  ;;  %v13906_v1 = vunpack.i.l.bf16 %v12873_v55  ;;  %v13907_v7 = vunpack.i.h.bf16 %v12873_v55  ;;  %v13908_v13 = vunpack.i.l.bf16 %v12829_v52  ;;  %vm13928_vm4 = vmmov %vm13893_vm3 }
 0x516   : > { %v6147_v31 = vsel %vm13905_vm5, %v6139_v5, %v13904_v37  ;;  %v13909_v17 = vunpack.i.h.bf16 %v12829_v52  ;;  %v8732_v41 = vunpack.i.h.bf16 %v8730_v28  ;;  %v8731_v48 = vunpack.i.l.bf16 %v8730_v28 }
 0x517   : > { %v6189_v35 = vsel %vm6188_vm13, %v6180_v16, %v13906_v1  ;;  %v6190_v25 = vsel %vm6188_vm13, %v6181_v14, %v13907_v7  ;;  %v6155_v58 = vsel %vm6152_vm10, %v6146_v43, %v13908_v13  ;;  %v8742_v57 = vunpack.i.h.bf16 %v8740_v27 }
 0x518   : > { %v6156_v21 = vsel %vm6152_vm10, %v6147_v31, %v13909_v17  ;;  %v8741_v38 = vunpack.i.l.bf16 %v8740_v27  ;;  %vm6224_vm15 = vcmask 982016   ;;  %v8737_v22 = vunpack.i.h.bf16 %v8735_v23  ;;  %v8750_v37 = vpop.permute.xlu0 %8749 }
 0x519   : > { %v8736_v55 = vunpack.i.l.bf16 %v8735_v23  ;;  %v13910_v53 = vunpack.i.l.bf16 %v12843_v18  ;;  %v13911_v29 = vunpack.i.h.bf16 %v12843_v18  ;;  %v6165_v54 = vsel %vm6161_vm7, %v6156_v21, %v8732_v41 }
 0x51a   : > { %v6164_v24 = vsel %vm6161_vm7, %v6155_v58, %v8731_v48  ;;  %v6114_v28 = vsel %vm6109_vm0, %v12982_v33, %v8741_v38  ;;  %v6115_v30 = vsel %vm6109_vm0, %v12978_v0, %v8742_v57  ;;  %v13912_v39 = vunpack.i.l.bf16 %v12925_v4  ;;  %v8745_v33 = vpop.permute.xlu1 %8744 }
 0x51b   : > { %v6198_v8 = vsel %vm6197_vm14, %v6189_v35, %v13910_v53  ;;  %v6199_v52 = vsel %vm6197_vm14, %v6190_v25, %v13911_v29  ;;  %v13913_v5 = vunpack.i.h.bf16 %v12925_v4  ;;  %v13914_v16 = vunpack.i.l.bf16 %v12879_v32 }
 0x51c   : > { %v6122_v56 = vsel %vm4417_vm9, %v6114_v28, %v13912_v39  ;;  %v13915_v60 = vunpack.i.h.bf16 %v12879_v32  ;;  %v13916_v0 = vunpack.i.l.bf16 %v12857_v49  ;;  %v13917_v1 = vunpack.i.h.bf16 %v12857_v49 }
 0x51d   : > { %v6123_v18 = vsel %vm4417_vm9, %v6115_v30, %v13913_v5  ;;  %v6173_v14 = vsel %vm6170_vm11, %v6164_v24, %v13914_v16  ;;  %v13918_v25 = vunpack.i.l.bf16 %v12887_v47  ;;  %v13919_v13 = vunpack.i.h.bf16 %v12887_v47 }
 0x51e   : > { %v6174_v43 = vsel %vm6170_vm11, %v6165_v54, %v13915_v60  ;;  %v6131_v31 = vsel %vm6126_vm8, %v6122_v56, %v13916_v0  ;;  %v6132_v4 = vsel %vm6126_vm8, %v6123_v18, %v13917_v1  ;;  %v6182_v35 = vsel %vm6179_vm12, %v6173_v14, %v8736_v55  ;;  %v13138_v30 = vpop.permute.xlu1 %8764 }
 0x51f   : > { %v6183_v7 = vsel %vm6179_vm12, %v6174_v43, %v8737_v22  ;;  %v6191_v32 = vsel %vm6188_vm13, %v6182_v35, %v13918_v25  ;;  %v8747_v17 = vunpack.i.h.bf16 %v8745_v33  ;;  %v8746_v21 = vunpack.i.l.bf16 %v8745_v33 }
 0x520   : > { %v6192_v58 = vsel %vm6188_vm13, %v6183_v7, %v13919_v13  ;;  %v13920_v27 = vunpack.i.l.bf16 %v12851_v6  ;;  %v13921_v23 = vunpack.i.h.bf16 %v12851_v6  ;;  %v13922_v48 = vunpack.i.l.bf16 %v12835_v9 }
 0x521   : > { %v13923_v38 = vunpack.i.h.bf16 %v12835_v9  ;;  %v13924_v22 = vunpack.i.l.bf16 %v12820_v11  ;;  %v13925_v53 = vunpack.i.h.bf16 %v12820_v11  ;;  %v13926_v6 = vunpack.i.l.bf16 %v12861_v45  ;;  %v8755_v9 = vpop.permute.xlu0 %8754 }
 0x522   : > { %v6200_v49 = vsel %vm6197_vm14, %v6191_v32, %v13920_v27  ;;  %v6201_v41 = vsel %vm6197_vm14, %v6192_v58, %v13921_v23  ;;  %v6140_v57 = vsel %vm6135_vm6, %v6131_v31, %v13922_v48  ;;  %v13927_v24 = vunpack.i.h.bf16 %v12861_v45  ;;  %v8775_v58 = vpop.permute.xlu1 %8774 }
 0x523   : > { %v6141_v47 = vsel %vm6135_vm6, %v6132_v4, %v13923_v38  ;;  %v6209_v55 = vsel %vm6206_vm2, %v6200_v49, %v13924_v22  ;;  %v6210_v29 = vsel %vm6206_vm2, %v6201_v41, %v13925_v53  ;;  %v6148_v54 = vsel %vm13893_vm3, %v6140_v57, %v13926_v6 }
 0x524   : > { %v6149_v28 = vsel %vm13928_vm4, %v6141_v47, %v13927_v24  ;;  %v13929_v39 = vunpack.i.l.bf16 %v12839_v10  ;;  %v13930_v5 = vunpack.i.h.bf16 %v12839_v10  ;;  %v8752_v18 = vunpack.i.h.bf16 %v8750_v37 }
 0x525   : > { %v8751_v16 = vunpack.i.l.bf16 %v8750_v37  ;;  %v13931_v45 = vunpack.i.l.bf16 %v12800_v34  ;;  %v13932_v33 = vunpack.i.h.bf16 %v12800_v34  ;;  %v13933_v31 = vunpack.i.l.bf16 %v12907_v20 }
 0x526   : > { %v6157_v56 = vsel %vm6152_vm10, %v6148_v54, %v13929_v39  ;;  %v6158_v11 = vsel %vm6152_vm10, %v6149_v28, %v13930_v5  ;;  %v13934_v1 = vunpack.i.h.bf16 %v12907_v20  ;;  %v13935_v4 = vunpack.i.l.bf16 %v12847_v12 }
 0x527   : > { %v6166_v14 = vsel %vm6161_vm7, %v6157_v56, %v8746_v21  ;;  %v6167_v60 = vsel %vm6161_vm7, %v6158_v11, %v8747_v17  ;;  %v6207_v43 = vsel %vm6206_vm2, %v6198_v8, %v13931_v45  ;;  %v6208_v0 = vsel %vm6206_vm2, %v6199_v52, %v13932_v33  ;;  %v8760_v17 = vpop.permute.xlu0 %8759 }
 0x528   : > { %v6175_v10 = vsel %vm6170_vm11, %v6166_v14, %v13933_v31  ;;  %v6176_v37 = vsel %vm6170_vm11, %v6167_v60, %v13934_v1  ;;  %v6216_v35 = vsel %vm6215_vm1, %v6207_v43, %v13935_v4  ;;  %v13936_v7 = vunpack.i.h.bf16 %v12847_v12 }
 0x529   : > { %v6184_v34 = vsel %vm6179_vm12, %v6175_v10, %v8751_v16  ;;  %v6185_v52 = vsel %vm6179_vm12, %v6176_v37, %v8752_v18  ;;  %v13937_v25 = vunpack.i.l.bf16 %v12808_v42  ;;  %v13938_v20 = vunpack.i.h.bf16 %v12808_v42 }
 0x52a   : > { %v6217_v8 = vsel %vm6215_vm1, %v6208_v0, %v13936_v7  ;;  %v13939_v21 = vunpack.i.l.bf16 %v12927_v15  ;;  %v13940_v27 = vunpack.i.h.bf16 %v12927_v15  ;;  %v8767_v41 = vunpack.i.h.bf16 %v13138_v30 }
 0x52b   : > { %v6225_v32 = vsel %vm6224_vm15, %v6216_v35, %v13937_v25  ;;  %v6226_v13 = vsel %vm6224_vm15, %v6217_v8, %v13938_v20  ;;  %v8766_v48 = vunpack.i.l.bf16 %v13138_v30  ;;  %v8757_v57 = vunpack.i.h.bf16 %v8755_v9  ;;  %v8770_v56 = vpop.permute.xlu0 %8769 }
 0x52c   : > { %v6193_v12 = vsel %vm6188_vm13, %v6184_v34, %v13939_v21  ;;  %v6194_v49 = vsel %vm6188_vm13, %v6185_v52, %v13940_v27  ;;  %v6233_v23 = vpack.c.bf16 %v6226_v13, %v6225_v32  ;;  %v8756_v38 = vunpack.i.l.bf16 %v8755_v9 }
 0x52d   : > { %v13941_v42 = vunpack.i.l.bf16 %v12855_v40  ;;  %v13942_v22 = vunpack.i.h.bf16 %v12855_v40  ;;  %v13943_v15 = vunpack.i.l.bf16 %v12831_v62  ;;  %v8777_v54 = vunpack.i.h.bf16 %v8775_v58  ;;  %v8780_v40 = vpop.permute.xlu1 %8779 }
 0x52e   : > { %8420 = vmatprep.mubr.bf16.mxu0 %v6233_v23  ;;  %v8776_v24 = vunpack.i.l.bf16 %v8775_v58  ;;  %v6116_v28 = vsel %vm6109_vm0, %v12998_v19, %v8756_v38  ;;  %v6117_v30 = vsel %vm6109_vm0, %v12994_v59, %v8757_v57  ;;  %v13944_v9 = vunpack.i.h.bf16 %v12831_v62  ;;  %vm13955_vm0 = vmmov %vm13893_vm3 }
 0x52f   : > { %v6218_v47 = vsel %vm6215_vm1, %v6209_v55, %v13941_v42  ;;  %v6219_v53 = vsel %vm6215_vm1, %v6210_v29, %v13942_v22  ;;  %v8762_v39 = vunpack.i.h.bf16 %v8760_v17  ;;  %v6124_v29 = vsel %vm4417_vm9, %v6116_v28, %v8696_v50  ;;  %v8790_v13 = vpop.permute.xlu0 %8789 }
 0x530   : > { %v6227_v6 = vsel %vm6224_vm15, %v6218_v47, %v13943_v15  ;;  %v6228_v55 = vsel %vm6224_vm15, %v6219_v53, %v13944_v9  ;;  %v13945_v5 = vunpack.i.h.bf16 %v12966_v63  ;;  %v8761_v19 = vunpack.i.l.bf16 %v8760_v17 }
 0x531   : > { %v6234_v18 = vpack.c.bf16 %v6228_v55, %v6227_v6  ;;  %v13946_v16 = vunpack.i.l.bf16 %v12863_v36  ;;  %v13947_v62 = vunpack.i.h.bf16 %v12863_v36  ;;  %v13948_v60 = vunpack.i.l.bf16 %v12859_v44  ;;  %v8785_v8 = vpop.permute.xlu1 %8784 }
 0x532   : > { %v6125_v11 = vsel %vm4417_vm9, %v6117_v30, %v13945_v5  ;;  %v13949_v50 = vunpack.i.h.bf16 %v12859_v44  ;;  %v13950_v43 = vunpack.i.l.bf16 %v12833_v26  ;;  %v13951_v0 = vunpack.i.h.bf16 %v12833_v26  ;;  %vm13953_vm9 = vmmov %vm13893_vm3 }
 0x533   : > { %v6133_v59 = vsel %vm6126_vm8, %v6124_v29, %v13946_v16  ;;  %v6134_v14 = vsel %vm6126_vm8, %v6125_v11, %v13947_v62  ;;  %v6202_v45 = vsel %vm6197_vm14, %v6193_v12, %v13948_v60  ;;  %8421 = vmatmul.mubr.bf16.vlgmr.msra.gmra.mxu0 %v6234_v18  ;;  %v13952_v1 = vunpack.i.l.bf16 %v12867_v3  ;;  %v8059_v62 = vld [vmem:[%s13542_s4] ss:$0 sm:$0xff] }
 0x534   : > { %v6203_v63 = vsel %vm6197_vm14, %v6194_v49, %v13949_v50  ;;  %v6142_v33 = vsel %vm6135_vm6, %v6133_v59, %v13950_v43  ;;  %v6143_v31 = vsel %vm6135_vm6, %v6134_v14, %v13951_v0  ;;  %v6211_v36 = vsel %vm6206_vm2, %v6202_v45, %v8761_v19 }
 0x535   : > { %v6212_v10 = vsel %vm6206_vm2, %v6203_v63, %v8762_v39  ;;  %v6150_v37 = vsel %vm13953_vm9, %v6142_v33, %v13952_v1  ;;  %v13954_v44 = vunpack.i.h.bf16 %v12867_v3  ;;  %v8782_v35 = vunpack.i.h.bf16 %v8780_v40  ;;  %v8795_v53 = vpop.permute.xlu1 %8794 }
 0x536   : > { %v8781_v7 = vunpack.i.l.bf16 %v8780_v40  ;;  %v13956_v34 = vunpack.i.l.bf16 %v12837_v2  ;;  %v13957_v52 = vunpack.i.h.bf16 %v12837_v2  ;;  %v8772_v32 = vunpack.i.h.bf16 %v8770_v56 }
 0x537   : > { %v6151_v4 = vsel %vm13955_vm0, %v6143_v31, %v13954_v44  ;;  %v8771_v20 = vunpack.i.l.bf16 %v8770_v56  ;;  %v8787_v17 = vunpack.i.h.bf16 %v8785_v8  ;;  %v8786_v21 = vunpack.i.l.bf16 %v8785_v8 }
 0x538   : > { %v6159_v26 = vsel %vm6152_vm10, %v6150_v37, %v13956_v34  ;;  %v6160_v25 = vsel %vm6152_vm10, %v6151_v4, %v13957_v52  ;;  %v13958_v12 = vunpack.i.l.bf16 %v12945_v61  ;;  %v13959_v49 = vunpack.i.h.bf16 %v12945_v61 }
 0x539   : > { %v6168_v58 = vsel %vm6161_vm7, %v6159_v26, %v8776_v24  ;;  %v6169_v3 = vsel %vm6161_vm7, %v6160_v25, %v8777_v54  ;;  %v6220_v2 = vsel %vm6215_vm1, %v6211_v36, %v8771_v20  ;;  %v6221_v57 = vsel %vm6215_vm1, %v6212_v10, %v8772_v32  ;;  %v9197_v25 = vld [vmem:[%s13544_s6 + $0x178] sm:$0xff]   ;;  %v9199_v20 = vld [vmem:[%s13544_s6 + $0x170] sm:$0xff]  }
 0x53a   : > { %v6177_v27 = vsel %vm6170_vm11, %v6168_v58, %v13958_v12  ;;  %v6178_v23 = vsel %vm6170_vm11, %v6169_v3, %v13959_v49  ;;  %v8792_v47 = vunpack.i.h.bf16 %v8790_v13  ;;  %v8791_v22 = vunpack.i.l.bf16 %v8790_v13  ;;  %v9198_v32 = vld [vmem:[%s13544_s6 + $0x138] sm:$0xff]   ;;  %8322 = vmatprep.subr.bf16.mxu1 %v9197_v25  ;;  %v9200_v12 = vld [vmem:[%s13544_s6 + $0x130] sm:$0xff]   ;;  %v9201_v49 = vld [vmem:[%s13544_s6 + $0x168] sm:$0xff]  }
 0x53b   : > { %v6186_v38 = vsel %vm6179_vm12, %v6177_v27, %v8781_v7  ;;  %v6187_v42 = vsel %vm6179_vm12, %v6178_v23, %v8782_v35  ;;  %v13960_v15 = vunpack.i.l.bf16 %v12964_v46  ;;  %v13961_v54 = vunpack.i.h.bf16 %v12964_v46  ;;  %v9203_v3 = vld [vmem:[%s13544_s6 + $0x78] sm:$0xff]   ;;  %8323 = vmatpush3.bf16.msra.mxu1 %v9198_v32  ;;  %v9206_v23 = vld [vmem:[%s13544_s6 + $0x30] sm:$0xff]  }
 0x53c   : > { %v8797_v24 = vunpack.i.h.bf16 %v8795_v53  ;;  %v8796_v28 = vunpack.i.l.bf16 %v8795_v53  ;;  %v13962_v30 = vunpack.i.l.bf16 %v12865_v51  ;;  %v13963_v55 = vunpack.i.h.bf16 %v12865_v51  ;;  %8324 = vmatprep.subr.bf16.mxu1 %v9199_v20  ;;  %8278 = vmatprep.subr.bf16.mxu0 %v9203_v3  ;;  %v9226_v25 = vld [vmem:[%s13544_s6 + $0xb8] sm:$0xff]   ;;  %v9229_v20 = vld [vmem:[%s13544_s6 + $0xf0] sm:$0xff]  }
 0x53d   : > { %v6195_v6 = vsel %vm6188_vm13, %v6186_v38, %v13960_v15  ;;  %v6196_v61 = vsel %vm6188_vm13, %v6187_v42, %v13961_v54  ;;  %v6229_v40 = vsel %vm6224_vm15, %v6220_v2, %v8791_v22  ;;  %v6230_v56 = vsel %vm6224_vm15, %v6221_v57, %v8792_v47  ;;  %v9207_v38 = vld [vmem:[%s13544_s6 + $0x68] sm:$0xff]   ;;  %v9211_v47 = vld [vmem:[%s13544_s6 + $0x160] sm:$0xff]  }
 0x53e   : > { %v6204_v9 = vsel %vm6197_vm14, %v6195_v6, %v13962_v30  ;;  %v6205_v39 = vsel %vm6197_vm14, %v6196_v61, %v13963_v55  ;;  %v6235_v5 = vpack.c.bf16 %v6230_v56, %v6229_v40  ;;  %v9202_v42 = vld [vmem:[%s13544_s6 + $0x128] sm:$0xff]   ;;  %v9209_v6 = vld [vmem:[%s13544_s6 + $0x60] sm:$0xff]   ;;  %v9219_v61 = vld [vmem:[%s13544_s6 + $0x158] sm:$0xff]  }
 0x53f   : > { %v6213_v29 = vsel %vm6206_vm2, %v6204_v9, %v8766_v48  ;;  %v6214_v46 = vsel %vm6206_vm2, %v6205_v39, %v8767_v41  ;;  %8325 = vmatpush3.bf16.msra.mxu1 %v9200_v12  ;;  %v9208_v22 = vld [vmem:[%s13544_s6 + $0x28] sm:$0xff]   ;;  %v9212_v54 = vld [vmem:[%s13544_s6 + $0x120] sm:$0xff]   ;;  %v9213_v30 = vld [vmem:[%s13544_s6 + $0x58] sm:$0xff]  }
 0x540   : > { %v6222_v11 = vsel %vm6215_vm1, %v6213_v29, %v8786_v21  ;;  %v6223_v18 = vsel %vm6215_vm1, %v6214_v46, %v8787_v17  ;;  %8424 = vmatprep.mubr.bf16.mxu0 %v6235_v5  ;;  %v9204_v17 = vld [vmem:[%s13544_s6 + $0x38] sm:$0xff]   ;;  %v9205_v21 = vld [vmem:[%s13544_s6 + $0x70] sm:$0xff]   ;;  %8326 = vmatprep.subr.bf16.mxu1 %v9201_v49  ;;  %v9217_v56 = vld [vmem:[%s13544_s6 + $0x48] sm:$0xff]  }
 0x541   : > { %v6231_v19 = vsel %vm6224_vm15, %v6222_v11, %v8796_v28  ;;  %v6232_v51 = vsel %vm6224_vm15, %v6223_v18, %v8797_v24  ;;  %8279 = vmatpush3.bf16.msra.mxu0 %v9204_v17  ;;  %v9210_v24 = vld [vmem:[%s13544_s6 + $0x20] sm:$0xff]   ;;  %v9220_v9 = vld [vmem:[%s13544_s6 + $0x118] sm:$0xff]   ;;  %v9215_v39 = vld [vmem:[%s13544_s6 + $0x50] sm:$0xff]  }
 0x542   : > { %v6236_v16 = vpack.c.bf16 %v6232_v51, %v6231_v19  ;;  %8280 = vmatprep.subr.bf16.mxu0 %v9205_v21  ;;  %v9214_v55 = vld [vmem:[%s13544_s6 + $0x18] sm:$0xff]   ;;  %v9216_v40 = vld [vmem:[%s13544_s6 + $0x10] sm:$0xff]   ;;  %v9218_v29 = vld [vmem:[%s13544_s6 + $0x8] sm:$0xff]  }
 0x543   : > { %8327 = vmatpush3.bf16.msra.mxu1 %v9202_v42  ;;  %v9221_v46 = vld [vmem:[%s13544_s6 + $0x40] sm:$0xff]   ;;  %v9223_v11 = vld [vmem:[%s13544_s6 + $0x150] sm:$0xff]   ;;  %v9225_v19 = vld [vmem:[%s13544_s6 + $0xf8] sm:$0xff]  }
 0x544   : > { %8425 = vmatmul.mubr.bf16.gmra.mxu0 %v6236_v16  ;;  %8328 = vmatprep.subr.bf16.mxu1 %v9211_v47  ;;  %v9222_v5 = vld [vmem:[%s13544_s6] sm:$0xff]   ;;  %v9224_v18 = vld [vmem:[%s13544_s6 + $0x110] sm:$0xff]   ;;  %v9227_v51 = vld [vmem:[%s13544_s6 + $0x148] sm:$0xff]  }
 0x545   : > { %8281 = vmatpush3.bf16.msra.mxu0 %v9206_v23  ;;  %v9228_v16 = vld [vmem:[%s13544_s6 + $0x108] sm:$0xff]   ;;  %v9230_v21 = vld [vmem:[%s13544_s6 + $0xb0] sm:$0xff]  }
 0x546   : > { %8282 = vmatprep.subr.bf16.mxu0 %v9207_v38  ;;  %v9233_v49 = vld [vmem:[%s13544_s6 + $0xe8] sm:$0xff]  }
 0x547   : > { %8329 = vmatpush3.bf16.msra.mxu1 %v9212_v54  ;;  %v9234_v47 = vld [vmem:[%s13544_s6 + $0xa8] sm:$0xff]   ;;  %v9239_v54 = vld [vmem:[%s13544_s6 + $0xd0] sm:$0xff]  }
 0x548   : > { %8330 = vmatprep.subr.bf16.mxu1 %v9219_v61  ;;  %v9240_v61 = vld [vmem:[%s13544_s6 + $0x90] sm:$0xff]  }
 0x549   : > { %8283 = vmatpush3.bf16.msra.mxu0 %v9208_v22  ;;  %v9235_v22 = vld [vmem:[%s13544_s6 + $0xe0] sm:$0xff]  }
 0x54a   : > { %8284 = vmatprep.subr.bf16.mxu0 %v9209_v6  ;;  %v9238_v6 = vld [vmem:[%s13544_s6 + $0x98] sm:$0xff]  }
 0x54b   : > { %8331 = vmatpush3.bf16.msra.mxu1 %v9220_v9  ;;  %v9243_v9 = vld [vmem:[%s13544_s6 + $0xc0] sm:$0xff]  }
 0x54c   : > { %8332 = vmatprep.subr.bf16.mxu1 %v9223_v11 }
 0x54d   : > { %8285 = vmatpush3.bf16.msra.mxu0 %v9210_v24  ;;  %v9241_v24 = vld [vmem:[%s13544_s6 + $0xc8] sm:$0xff]  }
 0x54e   : > { %8286 = vmatprep.subr.bf16.mxu0 %v9213_v30  ;;  %v9242_v30 = vld [vmem:[%s13544_s6 + $0x88] sm:$0xff]  }
 0x54f   : > { %8333 = vmatpush3.bf16.msra.mxu1 %v9224_v18  ;;  %v9246_v18 = vld [vmem:[%s13544_s6 + $0x1b8] sm:$0xff]  }
 0x550   : > { %8334 = vmatprep.subr.bf16.mxu1 %v9227_v51  ;;  %v9247_v51 = vld [vmem:[%s13544_s6 + $0x1f0] sm:$0xff]  }
 0x551   : > { %8287 = vmatpush3.bf16.msra.mxu0 %v9214_v55 }
 0x552   : > { %8288 = vmatprep.subr.bf16.mxu0 %v9215_v39 }
 0x553   : > { %8335 = vmatpush3.bf16.msra.mxu1 %v9228_v16 }
 0x555   : > { %8289 = vmatpush3.bf16.msra.mxu0 %v9216_v40 }
 0x556   : > { %8290 = vmatprep.subr.bf16.mxu0 %v9217_v56  ;;  %v9244_v56 = vld [vmem:[%s13544_s6 + $0x80] sm:$0xff]  }
 0x559   : > { %8291 = vmatpush3.bf16.msra.mxu0 %v9218_v29  ;;  %v9245_v29 = vld [vmem:[%s13544_s6 + $0x1f8] sm:$0xff]  }
 0x55a   : > { %8292 = vmatprep.subr.bf16.mxu0 %v9221_v46 }
 0x55d   : > { %8293 = vmatpush3.bf16.msra.mxu0 %v9222_v5 }
 0x55e   : > { %8300 = vmatprep.subr.bf16.mxu0 %v9225_v19 }
 0x5f3   : > { %v8422_v59 = vpop.f32.mrf.mxu0 }
 0x5f4   : > { %v6351_v50 = vadd.f32 %v8422_v59, %v8059_v62 }
 0x5f5   : > { %v6342_v48 = vpop.f32.mrf.mxu0 }
 0x5f6   : > { %v6343_v14 = vadd.f32 %v8059_v62, %v6342_v48  ;;  %v6383_v0 = vmul.f32 0.2, %v6351_v50  ;;  %vm6375_vm10 = vcmp.gt.f32.partialorder %v6351_v50, 0.0 }
 0x5f7   : > { %v8423_v41 = vpop.f32.mrf.mxu0 }
 0x5f8   : > { %v6381_v60 = vmul.f32 0.2, %v6343_v14  ;;  %vm6373_vm8 = vcmp.gt.f32.partialorder %v6343_v14, 0.0  ;;  %v6354_v31 = vadd.f32 %v8423_v41, %v8059_v62  ;;  %v6391_v37 = vsel %vm6375_vm10, %v6351_v50, %v6383_v0  ;;  %v9232_v50 = vld [vmem:[%s13544_s6 + $0x100] sm:$0xff]  }
 0x5f9   : > { %v6345_v45 = vpop.f32.mrf.mxu0 }
 0x5fa   : > { %v6346_v63 = vadd.f32 %v8059_v62, %v6345_v45  ;;  %v6389_v43 = vsel %vm6373_vm8, %v6343_v14, %v6381_v60  ;;  %v6384_v1 = vmul.f32 0.2, %v6354_v31  ;;  %vm6376_vm11 = vcmp.gt.f32.partialorder %v6354_v31, 0.0  ;;  %v9231_v45 = vld [vmem:[%s13544_s6 + $0x140] sm:$0xff]  }
 0x5fb   : > { %6397 = vxpose.xlu0.b32.start [1/8] (short) (narrow) %v6389_v43, 16  ;;  %8336 = vmatprep.subr.bf16.mxu1 %v9231_v45  ;;  %v9254_v45 = vld [vmem:[%s13544_s6 + $0x198] sm:$0xff]  }
 0x5fc   : > { %v6382_v33 = vmul.f32 0.2, %v6346_v63  ;;  %vm6374_vm6 = vcmp.gt.f32.partialorder %v6346_v63, 0.0  ;;  %v6392_v8 = vsel %vm6376_vm11, %v6354_v31, %v6384_v1  ;;  %8337 = vmatpush3.bf16.msra.mxu1 %v9232_v50  ;;  %v9255_v50 = vld [vmem:[%s13544_s6 + $0x1d0] sm:$0xff]  }
 0x5fe   : > { %v6390_v36 = vsel %vm6374_vm6, %v6346_v63, %v6382_v33 }
 0x5ff   : > { %6398 = vxpose.xlu0.b32.cont [2/8] (short) (narrow) %v6390_v36, 16 }
 0x603   : > { %6399 = vxpose.xlu0.b32.cont [3/8] (short) (narrow) %v6391_v37, 16 }
 0x604   : > { %v8426_v10 = vpop.f32.mrf.mxu0 }
 0x605   : > { %v6367_v58 = vadd.f32 %v8426_v10, %v8059_v62 }
 0x606   : > { %v6358_v44 = vpop.f32.mrf.mxu0 }
 0x607   : > { %v6359_v4 = vadd.f32 %v8059_v62, %v6358_v44  ;;  %6400 = vxpose.xlu0.b32.cont [4/8] (short) (narrow) %v6392_v8, 16  ;;  %v6387_v2 = vmul.f32 0.2, %v6367_v58  ;;  %vm6379_vm14 = vcmp.gt.f32.partialorder %v6367_v58, 0.0 }
 0x608   : > { %v8427_v35 = vpop.f32.mrf.mxu0 }
 0x609   : > { %v6385_v7 = vmul.f32 0.2, %v6359_v4  ;;  %vm6377_vm12 = vcmp.gt.f32.partialorder %v6359_v4, 0.0  ;;  %v6370_v57 = vadd.f32 %v8427_v35, %v8059_v62  ;;  %v6395_v15 = vsel %vm6379_vm14, %v6367_v58, %v6387_v2 }
 0x60a   : > { %v6361_v34 = vpop.f32.mrf.mxu0 }
 0x60b   : > { %v6362_v26 = vadd.f32 %v8059_v62, %v6361_v34  ;;  %v6393_v52 = vsel %vm6377_vm12, %v6359_v4, %v6385_v7  ;;  %v6388_v53 = vmul.f32 0.2, %v6370_v57  ;;  %vm6380_vm5 = vcmp.gt.f32.partialorder %v6370_v57, 0.0 }
 0x60c   : > { %6401 = vxpose.xlu0.b32.cont [5/8] (short) (narrow) %v6393_v52, 16 }
 0x60d   : > { %v6386_v13 = vmul.f32 0.2, %v6362_v26  ;;  %vm6378_vm13 = vcmp.gt.f32.partialorder %v6362_v26, 0.0  ;;  %v6396_v28 = vsel %vm6380_vm5, %v6370_v57, %v6388_v53  ;;  %v9236_v53 = vld [vmem:[%s13544_s6 + $0xa0] sm:$0xff]  }
 0x60f   : > { %v6394_v27 = vsel %vm6378_vm13, %v6362_v26, %v6386_v13 }
 0x610   : > { %6402 = vxpose.xlu0.b32.cont [6/8] (short) (narrow) %v6394_v27, 16 }
 0x614   : > { %6403 = vxpose.xlu0.b32.cont [7/8] (short) (narrow) %v6395_v15, 16  ;;  %v9237_v15 = vld [vmem:[%s13544_s6 + $0xd8] sm:$0xff]  }
 0x618   : > { %6404 = vxpose.xlu0.b32.end [8/8] (short) (narrow) %v6396_v28, 16 }
 0x678   : > { %v13364_v59 = vpop.trf.xlu0 }
 0x679   : > { %v6430_v62 = vrot.slane %v13364_v59, 1  ;;  %v6436_v48 = vrot.slane %v13364_v59, 3  ;;  %v6442_v41 = vrot.slane %v13364_v59, 5  ;;  %v6448_v60 = vrot.slane %v13364_v59, 7 }
 0x67a   : > { %v6434_v35 = vrot.slane %v13364_v59, 2  ;;  %v6446_v13 = vrot.slane %v13364_v59, 6  ;;  %v6440_v40 = vrot.slane %v13364_v59, 4 }
 0x67b   : > { %v8798_v14 = vpack.i.bf16 %v6430_v62, %v6436_v48  ;;  %v8803_v0 = vpack.i.bf16 %v6442_v41, %v6448_v60  ;;  %v9249_v62 = vld [vmem:[%s13544_s6 + $0x1e8] sm:$0xff]   ;;  %v9252_v41 = vld [vmem:[%s13544_s6 + $0x1a0] sm:$0xff]   ;;  %v9253_v60 = vld [vmem:[%s13544_s6 + $0x1d8] sm:$0xff]  }
 0x67c   : > { %v13376_v63 = vpop.trf.xlu0  ;;  %v9250_v48 = vld [vmem:[%s13544_s6 + $0x1a8] sm:$0xff]  }
 0x67d   : > { %8799 = vrot.lane.b32.xlu1 %v8798_v14, %s9369_s18  ;;  %v6453_v43 = vrot.slane %v13376_v63, 1  ;;  %v6459_v33 = vrot.slane %v13376_v63, 3  ;;  %v6465_v36 = vrot.slane %v13376_v63, 5  ;;  %v6471_v10 = vrot.slane %v13376_v63, 7  ;;  %v9251_v14 = vld [vmem:[%s13544_s6 + $0x1e0] sm:$0xff]  }
 0x67e   : > { %v6457_v23 = vrot.slane %v13376_v63, 2  ;;  %v6469_v46 = vrot.slane %v13376_v63, 6 }
 0x67f   : > { %v8808_v31 = vpack.i.bf16 %v6453_v43, %v6459_v33  ;;  %v8813_v1 = vpack.i.bf16 %v6465_v36, %v6471_v10  ;;  %v9256_v43 = vld [vmem:[%s13544_s6 + $0x190] sm:$0xff]   ;;  %v9257_v33 = vld [vmem:[%s13544_s6 + $0x1c8] sm:$0xff]   ;;  %v6463_v10 = vrot.slane %v13376_v63, 4 }
 0x681   : > { %8804 = vrot.lane.b32.xlu1 %v8803_v0, %s9369_s18  ;;  %v9258_v0 = vld [vmem:[%s13544_s6 + $0x188] sm:$0xff]  }
 0x685   : > { %8809 = vrot.lane.b32.xlu1 %v8808_v31, %s9369_s18  ;;  %v9259_v31 = vld [vmem:[%s13544_s6 + $0x1c0] sm:$0xff]  }
 0x689   : > { %8814 = vrot.lane.b32.xlu1 %v8813_v1, %s9369_s18  ;;  %v9260_v1 = vld [vmem:[%s13544_s6 + $0x180] sm:$0xff]  }
 0x6ef   : > { %v8800_v37 = vpop.permute.xlu1 %8799 }
 0x6f0   : > { %v8802_v44 = vunpack.i.h.bf16 %v8800_v37  ;;  %v8801_v4 = vunpack.i.l.bf16 %v8800_v37 }
 0x6f2   : > { %v6475_v7 = vsel %vm6161_vm7, %v13364_v59, %v8802_v44  ;;  %v6476_v8 = vsel %vm6161_vm7, %v6434_v35, %v8801_v4  ;;  %v9248_v59 = vld [vmem:[%s13544_s6 + $0x1b0] sm:$0xff]  }
 0x6f3   : > { %v6483_v34 = vpack.c.bf16 %v6475_v7, %v6475_v7  ;;  %v8805_v26 = vpop.permute.xlu1 %8804  ;;  %v6484_v52 = vpack.c.bf16 %v6476_v8, %v6476_v8 }
 0x6f4   : > { %v8806_v32 = vunpack.i.l.bf16 %v8805_v26  ;;  %v8807_v55 = vunpack.i.h.bf16 %v8805_v26 }
 0x6f5   : > { %7036 = vmatprep.mubr.bf16.mxu0 %v6484_v52 }
 0x6f6   : > { %7037 = vmatmul.mubr.bf16.vlgmr.msra.gmra.mxu0 %v6483_v34  ;;  %v6478_v58 = vsel %vm6161_vm7, %v6446_v13, %v8806_v32  ;;  %v6477_v5 = vsel %vm6161_vm7, %v6440_v40, %v8807_v55 }
 0x6f7   : > { %8301 = vmatpush3.bf16.msra.mxu0 %v9226_v25  ;;  %v8810_v3 = vpop.permute.xlu1 %8809  ;;  %v6486_v17 = vpack.c.bf16 %v6478_v58, %v6478_v58  ;;  %v6485_v19 = vpack.c.bf16 %v6477_v5, %v6477_v5 }
 0x6f8   : > { %v8812_v12 = vunpack.i.h.bf16 %v8810_v3  ;;  %v8811_v27 = vunpack.i.l.bf16 %v8810_v3  ;;  %8302 = vmatprep.subr.bf16.mxu0 %v9229_v20  ;;  %v6619_v3 = vld [vmem:[%s13545_s7] sm:$0x1] }
 0x6f9   : > { %7076 = vmatprep.mubr.bf16.mxu0 %v6486_v17 }
 0x6fa   : > { %v6479_v2 = vsel %vm6161_vm7, %v13376_v63, %v8812_v12  ;;  %v6480_v57 = vsel %vm6161_vm7, %v6457_v23, %v8811_v27 }
 0x6fb   : > { %v6487_v38 = vpack.c.bf16 %v6479_v2, %v6479_v2  ;;  %8303 = vmatpush3.bf16.msra.mxu0 %v9230_v21  ;;  %v6488_v42 = vpack.c.bf16 %v6480_v57, %v6480_v57  ;;  %v8815_v28 = vpop.permute.xlu1 %8814 }
 0x6fc   : > { %8304 = vmatprep.subr.bf16.mxu0 %v9233_v49  ;;  %v8816_v39 = vunpack.i.l.bf16 %v8815_v28  ;;  %v8817_v36 = vunpack.i.h.bf16 %v8815_v28 }
 0x6fd   : > { %7116 = vmatprep.mubr.bf16.mxu1 %v6488_v42 }
 0x6fe   : > { %7117 = vmatmul.mubr.bf16.vlgmr.msra.gmra.mxu1 %v6487_v38  ;;  %v6482_v11 = vsel %vm6161_vm7, %v6469_v46, %v8816_v39  ;;  %v6481_v37 = vsel %vm6161_vm7, %v6463_v10, %v8817_v36  ;;  %vm7164_vm7 = vcmask 122880  }
 0x6ff   : > { %8305 = vmatpush3.bf16.msra.mxu0 %v9234_v47  ;;  %v6490_v16 = vpack.c.bf16 %v6482_v11, %v6482_v11  ;;  %v6489_v44 = vpack.c.bf16 %v6481_v37, %v6481_v37 }
 0x700   : > { %8306 = vmatprep.subr.bf16.mxu0 %v9235_v22 }
 0x703   : > { %8307 = vmatpush3.bf16.msra.mxu0 %v9236_v53 }
 0x704   : > { %8308 = vmatprep.subr.bf16.mxu0 %v9237_v15 }
 0x707   : > { %8309 = vmatpush3.bf16.msra.mxu0 %v9238_v6 }
 0x708   : > { %8310 = vmatprep.subr.bf16.mxu0 %v9239_v54 }
 0x70b   : > { %8311 = vmatpush3.bf16.msra.mxu0 %v9240_v61 }
 0x70c   : > { %8312 = vmatprep.subr.bf16.mxu0 %v9241_v24 }
 0x70f   : > { %8313 = vmatpush3.bf16.msra.mxu0 %v9242_v30 }
 0x710   : > { %8314 = vmatprep.subr.bf16.mxu0 %v9243_v9 }
 0x713   : > { %8315 = vmatpush3.bf16.msra.mxu0 %v9244_v56 }
 0x714   : > { %8344 = vmatprep.subr.bf16.mxu0 %v9245_v29 }
 0x716   : > { %7077 = vmatmul.mubr.bf16.vlgmr.msra.gmra.mxu0 %v6485_v19 }
 0x717   : > { %8345 = vmatpush3.bf16.msra.mxu0 %v9246_v18  ;;  %7156 = vmatprep.mubr.bf16.mxu0 %v6490_v16 }
 0x718   : > { %8346 = vmatprep.subr.bf16.mxu0 %v9247_v51 }
 0x71b   : > { %8347 = vmatpush3.bf16.msra.mxu0 %v9248_v59 }
 0x71c   : > { %8348 = vmatprep.subr.bf16.mxu0 %v9249_v62 }
 0x71f   : > { %8349 = vmatpush3.bf16.msra.mxu0 %v9250_v48 }
 0x720   : > { %8350 = vmatprep.subr.bf16.mxu0 %v9251_v14 }
 0x723   : > { %8351 = vmatpush3.bf16.msra.mxu0 %v9252_v41 }
 0x724   : > { %8352 = vmatprep.subr.bf16.mxu0 %v9253_v60 }
 0x727   : > { %8353 = vmatpush3.bf16.msra.mxu0 %v9254_v45 }
 0x728   : > { %8354 = vmatprep.subr.bf16.mxu0 %v9255_v50 }
 0x72b   : > { %8355 = vmatpush3.bf16.msra.mxu0 %v9256_v43 }
 0x72c   : > { %8356 = vmatprep.subr.bf16.mxu0 %v9257_v33 }
 0x72f   : > { %8357 = vmatpush3.bf16.msra.mxu0 %v9258_v0 }
 0x730   : > { %8358 = vmatprep.subr.bf16.mxu0 %v9259_v31 }
 0x733   : > { %8359 = vmatpush3.bf16.msra.mxu0 %v9260_v1 }
 0x736   : > { %7157 = vmatmul.mubr.bf16.vlgmr.msra.gmra.mxu0 %v6489_v44 }
 0x7b6   : > { %v8294_v4 = vpop.f32.mrf.mxu0 }
 0x7b8   : > { %v8295_v35 = vpop.f32.mrf.mxu0 }
 0x7b9   : > { %v8296_v58 = vadd.f32 %v8295_v35, %v8294_v4 }
 0x7ba   : > { %v8297_v7 = vpop.f32.mrf.mxu0 }
 0x7bb   : > { %v7039_v21 = vadd.f32 %v8296_v58, %v6619_v3 }
 0x7bc   : > { %v8298_v8 = vpop.f32.mrf.mxu0 }
 0x7be   : > { %v8338_v34 = vpop.f32.mrf.mxu1 }
 0x7c0   : > { %v8339_v26 = vpop.f32.mrf.mxu1 }
 0x7c1   : > { %v8340_v49 = vadd.f32 %v8339_v26, %v8338_v34 }
 0x7c2   : > { %v8341_v63 = vpop.f32.mrf.mxu1 }
 0x7c4   : > { %v8342_v52 = vpop.f32.mrf.mxu1 }
 0x7d6   : > { %v8316_v25 = vpop.f32.mrf.mxu0 }
 0x7d8   : > { %v8317_v32 = vpop.f32.mrf.mxu0 }
 0x7d9   : > { %v8318_v17 = vadd.f32 %v8317_v32, %v8316_v25 }
 0x7da   : > { %v8319_v20 = vpop.f32.mrf.mxu0 }
 0x7db   : > { %v7079_v12 = vadd.f32 %v8318_v17, %v7039_v21 }
 0x7dc   : > { %v8320_v13 = vpop.f32.mrf.mxu0 }
 0x7dd   : > { %v7119_v2 = vadd.f32 %v8340_v49, %v7079_v12 }
 0x7f6   : > { %v8360_v27 = vpop.f32.mrf.mxu0 }
 0x7f8   : > { %v8361_v23 = vpop.f32.mrf.mxu0 }
 0x7f9   : > { %v8362_v57 = vadd.f32 %v8361_v23, %v8360_v27 }
 0x7fa   : > { %v8363_v38 = vpop.f32.mrf.mxu0 }
 0x7fb   : > { %v7159_v42 = vadd.f32 %v8362_v57, %v7119_v2 }
 0x7fc   : > { %v8364_v47 = vpop.f32.mrf.mxu0 }
 0x7fd   : > { %7165 = vst.msk [vmem:[%s297_s23] sm:$0x1] %vm7164_vm7, %v7159_v42 }
 0x7fe   : > { %9291 = shalt.err (!%p9288_p3)
}
 0x7ff   : > { %s9292_s18 = scalar_lea.hbm %s13503_s19, 16  ;;  %s9296_s10 = scalar_lea.hbm %s13546_s8, 32 }
 0x800   : > { %p9293_p4 = scmp.ne.s32.totalorder %s13503_s19, %s9292_s18  ;;  %p9297_p9 = scmp.lt.s32.totalorder %s13503_s19, %s13546_s8 }
 0x801   : > { %p9298_p10 = scmp.lt.s32.totalorder %s9296_s10, %s9292_s18 }
 0x802   : > { %p9294_p7 = pnand %p9293_p4, %p9454_p5 }
 0x803   : > { %p9299_p11 = por %p9298_p10, %p9297_p9 }
 0x804   : > { %p9295_p8 = pneg %p9294_p7 }
 0x806   : > { %p9300_p12 = pnand %p9299_p11, %p9295_p8 }
 0x808   : > { %9303 = shalt.err (!%p9300_p12)
}
 0x809   : > { %8429 = dma.vmem_to_hbm [thread:$0]  (%p9454_p5), %s7180_s24, 16, %s13503_s19, %s7167_s20  }
 0x80a PF: > { %p8435_p13 = scmp.ge.s32.totalorder %s9338_s30, 2  ;;  %s7191_s11 = sand.u32 1, %s9326_s27  }
 0x80b   : > { %s7192_s14 = scalar_lea.sflag [#allocation4], %s7191_s11 }
 0x80c   : > { %p8432_p0 = pnand %p8435_p13, %p9458_p6 }
 0x80e   : > { %p8433_p1 = pneg %p8432_p0 }
 0x810   : > { %9321 = dma.done.wait (%p8433_p1), %s7192_s14, 16  }
 0x811   : > { %9323 = vsyncadd (%p8433_p1), %s7192_s14, 4294967280  ;;  %s13964_s30 = sld [smem:[#allocation7_spill]]  ;;  %s13967_s27 = smov %s9330_s28 }
 0x812   : > { %s13965_s22 = sld [smem:[#allocation6_spill]] }
 0x813   : > { %s13966_s29 = sld [smem:[#allocation8_spill]] }
 0x817   : > { %p18_p2 = scmp.ge.s32.totalorder %s13964_s30, 4  }
 0x818   : > { %s13968_s28 = smov %s13965_s22 }
 0x819   :  { %20 = sbr.rel (!%p18_p2) target bundleno = 6 (0x6), region = 103 }
 0x81e   :  { %7196 = vsyncpa [#allocation4], 1 }
 0x81f   :  { %7198 = vsyncpa [#allocation4 + $0x1], 1 }

</bundles_post_ra>
